<compile_context>
chip_gen: v5e
topology: v5e:2x2
jax: 0.10.0
libtpu: 0.0.40
codegen_flags: <defaults>
</compile_context>

<pallas_src>
import functools

import jax
import jax.numpy as jnp
from jax import lax
from jax.experimental import pallas as pl
from jax.experimental.pallas import tpu as pltpu


def _zpad_hw(x, pad_h, pad_w):
    """Zero-pad the spatial axes (1, 2) of a (B, H, W, C) value via concat."""
    bh, ah = pad_h
    bw, aw = pad_w
    if bh or ah:
        pieces = []
        if bh:
            pieces.append(jnp.zeros((x.shape[0], bh) + x.shape[2:], x.dtype))
        pieces.append(x)
        if ah:
            pieces.append(jnp.zeros((x.shape[0], ah) + x.shape[2:], x.dtype))
        x = jnp.concatenate(pieces, axis=1)
    if bw or aw:
        pieces = []
        if bw:
            pieces.append(jnp.zeros(x.shape[:2] + (bw, x.shape[3]), x.dtype))
        pieces.append(x)
        if aw:
            pieces.append(jnp.zeros(x.shape[:2] + (aw, x.shape[3]), x.dtype))
        x = jnp.concatenate(pieces, axis=2)
    return x


# -----------------------------------------------------------------------------
# Fused UNet kernel: B batch elements per grid step, everything in VMEM.
# -----------------------------------------------------------------------------
def _unet_fused_kernel(xr_ref, w1_ref, b1_ref, w2_ref, b2_ref,
                       wt_ref, bt_ref, w3_ref, b3_ref, o_ref, *, B, Hh, Wh):
    f32 = jnp.float32
    M = Hh * Wh

    # ---- layer 1: Conv2d(1->64, 3x3, pad 1) + ReLU --------------------------
    # wrapper-built phase-major im2row -> one (B*4M, 9) @ (9, 64) MXU dot.
    xr = xr_ref[...].reshape(B * 4 * M, 9)
    x1 = jnp.dot(xr, w1_ref[...], preferred_element_type=f32) + b1_ref[...]
    x1 = jnp.maximum(x1, 0.0).reshape(B, 4, Hh, Wh, 64)
    x1ph = {(p, q): x1[:, 2 * p + q] for p in range(2) for q in range(2)}

    # ---- layer 2: Conv2d(64->128, 3x3, stride 2, pad 1) + ReLU --------------
    # polyphase taps -> 9 accumulating (B*M, 64) @ (64, 128) dots
    # (no lane concat / 576-wide im2row relayout).
    x1pad = {(p, q): _zpad_hw(x1ph[(p, q)],
                              (1, 0) if p else (0, 0),
                              (1, 0) if q else (0, 0))
             for p in range(2) for q in range(2)}
    sel2 = ((1, 0), (0, 0), (1, 1))      # tap index -> (source phase, start)
    acc2 = None
    for ti in range(3):
        pr, r0 = sel2[ti]
        for tj in range(3):
            pc, c0 = sel2[tj]
            tap = x1pad[(pr, pc)][:, r0:r0 + Hh, c0:c0 + Wh, :]
            d = jnp.dot(tap.reshape(B * M, 64), w2_ref[3 * ti + tj],
                        preferred_element_type=f32)
            acc2 = d if acc2 is None else acc2 + d
    x2 = jnp.maximum(acc2 + b2_ref[...], 0.0).reshape(B, Hh, Wh, 128)

    # ---- layer 3: ConvTranspose2d(128->64, 4x4, s=2, p=1) + ReLU ------------
    # polyphase; all 4 output-parity phases stacked along MXU N (256 lanes),
    # 9 shared taps over the zero-padded x2 (zero weight blocks where a tap
    # never contributes to a phase).
    x2p = _zpad_hw(x2, (1, 1), (1, 1))                        # (B, Hh+2, Wh+2, 128)
    acc3 = None
    for ta in range(3):
        for tb in range(3):
            tap = x2p[:, ta:ta + Hh, tb:tb + Wh, :].reshape(B * M, 128)
            d = jnp.dot(tap, wt_ref[3 * ta + tb], preferred_element_type=f32)
            acc3 = d if acc3 is None else acc3 + d
    x3s = jnp.maximum(acc3 + bt_ref[...], 0.0)                # (B*M, 256)
    x3ph = {(r, s): x3s[:, (2 * r + s) * 64:(2 * r + s + 1) * 64]
            .reshape(B, Hh, Wh, 64)
            for r in range(2) for s in range(2)}

    # ---- layer 4: Conv2d(64->1, 3x3, pad 1): VPU MAC + lane reduction -------
    x3pad = {(pr, pc): _zpad_hw(x3ph[(pr, pc)],
                                (1, 0) if pr else (0, 1),
                                (1, 0) if pc else (0, 1))
             for pr in range(2) for pc in range(2)}
    w3 = w3_ref[...]                                          # (9, 64)
    b3 = b3_ref[...]                                          # (1, 1)
    sel4 = (((1, 0), (0, 0), (1, 1)),    # out row-phase 0: taps ki = 0, 1, 2
            ((0, 0), (1, 1), (0, 1)))    # out row-phase 1: taps ki = 0, 1, 2
    ys = []
    for r in range(2):
        for s in range(2):
            acc = None
            for ki in range(3):
                pr, r0 = sel4[r][ki]
                for kj in range(3):
                    pc, c0 = sel4[s][kj]
                    patch = x3pad[(pr, pc)][:, r0:r0 + Hh, c0:c0 + Wh, :]
                    term = patch * w3[3 * ki + kj:3 * ki + kj + 1]
                    acc = term if acc is None else acc + term
            ys.append(jnp.sum(acc, axis=-1) + b3)             # (B, Hh, Wh)

    # lane-dense store: (B, 4*Hh*Wh) = (B, 256); the tiny spatial->lane
    # relayout happens on vregs here instead of a 16x-padded masked store.
    o_ref[...] = jnp.stack(ys, axis=1).reshape(B, 4 * M)[None]


# -----------------------------------------------------------------------------
# Wrapper: plain-JAX layout prep (tiny) + one pallas_call + phase interleave.
# -----------------------------------------------------------------------------
def unet_forward(params, x_nchw, t):
    del t  # the PyTorch forward accepts t but never uses it
    N, C, H, W = x_nchw.shape
    assert C == 1 and H % 2 == 0 and W % 2 == 0
    Hh, Wh = H // 2, W // 2
    M = Hh * Wh

    # >= 2 "parallel" grid steps when possible (keeps both v7x TensorCores
    # busy); the rest of the batch folds into the matmul M dimension.
    if N >= 2 and N % 2 == 0:
        G, B = 2, N // 2
    else:
        G, B = N, 1

    # phase-major im2row of the padded single-channel input: (N, 4*M, 9).
    # TODO(synk): for large H,W build these taps in-kernel from the padded
    # image instead (the 9x HBM blow-up is only negligible at 16x16).
    xp = jnp.pad(x_nchw[:, 0], ((0, 0), (1, 1), (1, 1)))      # (N, H+2, W+2)
    phase_rows = []
    for p in range(2):
        for q in range(2):
            taps = [xp[:, p + i:p + i + 2 * Hh - 1:2,
                        q + j:q + j + 2 * Wh - 1:2].reshape(N, M, 1)
                    for i in range(3) for j in range(3)]
            phase_rows.append(jnp.concatenate(taps, axis=-1))  # (N, M, 9)
    x_im2row = jnp.concatenate(phase_rows, axis=1)             # (N, 4M, 9)

    # per-tap weight slabs (so the kernel does accumulating dots, no concats)
    w1f = params["w1"].reshape(9, 64)                          # (tap, cout)
    w2t = params["w2"].reshape(9, 64, 128)                     # (tap, cin, cout)
    w3f = params["w3"].reshape(9, 64)                          # (tap, cin)
    b1 = params["b1"].reshape(1, 64)
    b2 = params["b2"].reshape(1, 128)
    b3 = params["b3"].reshape(1, 1)
    bt4 = jnp.tile(params["bt"].reshape(1, 64), (1, 4))        # (1, 256)

    # ConvTranspose polyphase weights with the 4 output phases stacked along
    # the output-channel (MXU N) axis: wtt[tap (a,b)] is (128, 256); the
    # 64-wide block for phase (r, s) is wt[:, :, kh, kw] with kh = 3-2a+r,
    # kw = 3-2b+s, or zeros when that kernel tap never feeds the phase.
    wt = params["wt"]                                          # (128, 64, 4, 4)
    zeros_blk = jnp.zeros((128, 64), jnp.float32)
    tap_blocks = []
    for a in range(3):
        for b in range(3):
            phase_blocks = []
            for r in range(2):
                for s in range(2):
                    kh, kw = 3 - 2 * a + r, 3 - 2 * b + s
                    if 0 <= kh < 4 and 0 <= kw < 4:
                        phase_blocks.append(wt[:, :, kh, kw])
                    else:
                        phase_blocks.append(zeros_blk)
            tap_blocks.append(jnp.concatenate(phase_blocks, axis=1))
    wtt = jnp.stack(tap_blocks, axis=0)                        # (9, 128, 256)

    kernel = functools.partial(_unet_fused_kernel, B=B, Hh=Hh, Wh=Wh)
    flops = int(N * (2 * 4 * M * 9 * 64        # layer 1
                     + 2 * M * 9 * 64 * 128    # layer 2
                     + 2 * M * 9 * 128 * 256   # layer 3 (phase-stacked)
                     + 2 * 4 * M * 9 * 64))    # layer 4 (VPU)
    bytes_accessed = 4 * int(x_im2row.size + w1f.size + b1.size + w2t.size
                             + b2.size + wtt.size + bt4.size + w3f.size
                             + b3.size + N * 4 * M)

    out_ph = pl.pallas_call(
        kernel,
        out_shape=jax.ShapeDtypeStruct((G, B, 4 * M), jnp.float32),
        grid_spec=pltpu.PrefetchScalarGridSpec(
            num_scalar_prefetch=0,
            grid=(G,),
            in_specs=[
                pl.BlockSpec((B, 4 * M, 9), lambda g: (g, 0, 0)),
                pl.BlockSpec((9, 64), lambda g: (0, 0)),
                pl.BlockSpec((1, 64), lambda g: (0, 0)),
                pl.BlockSpec((9, 64, 128), lambda g: (0, 0, 0)),
                pl.BlockSpec((1, 128), lambda g: (0, 0)),
                pl.BlockSpec((9, 128, 256), lambda g: (0, 0, 0)),
                pl.BlockSpec((1, 256), lambda g: (0, 0)),
                pl.BlockSpec((9, 64), lambda g: (0, 0)),
                pl.BlockSpec((1, 1), lambda g: (0, 0)),
            ],
            out_specs=pl.BlockSpec((1, B, 4 * M), lambda g: (g, 0, 0)),
        ),
        compiler_params=pltpu.CompilerParams(
            dimension_semantics=("parallel",),
        ),
        cost_estimate=pl.CostEstimate(flops=flops, transcendentals=0,
                                      bytes_accessed=bytes_accessed),
    )(x_im2row, w1f, b1, w2t, b2, wtt, bt4, w3f, b3)

    # interleave the four output-parity phases back to (N, 1, H, W)
    out = (out_ph.reshape(N, 2, 2, Hh, Wh)
           .transpose(0, 3, 1, 4, 2)
           .reshape(N, H, W))
    return out[:, None, :, :]


# -----------------------------------------------------------------------------
# Parameters (deterministic, PyTorch-like uniform(-1/sqrt(fan_in), ...))
# -----------------------------------------------------------------------------
def init_params(key):
    ks = jax.random.split(key, 8)

    def u(k, shape, fan_in):
        bound = 1.0 / (fan_in ** 0.5)
        return jax.random.uniform(k, shape, jnp.float32, -bound, bound)

    return {
        # down1: Conv2d(1, 64, 3, padding=1)        -> HWIO (3,3,1,64)
        "w1": u(ks[0], (3, 3, 1, 64), 1 * 3 * 3),
        "b1": u(ks[1], (64,), 1 * 3 * 3),
        # down2: Conv2d(64, 128, 3, padding=1, s=2) -> HWIO (3,3,64,128)
        "w2": u(ks[2], (3, 3, 64, 128), 64 * 3 * 3),
        "b2": u(ks[3], (128,), 64 * 3 * 3),
        # up1: ConvTranspose2d(128, 64, 4, s=2, p=1) -> PyTorch (128,64,4,4)
        "wt": u(ks[4], (128, 64, 4, 4), 128 * 4 * 4),
        "bt": u(ks[5], (64,), 128 * 4 * 4),
        # out: Conv2d(64, 1, 3, padding=1)           -> HWIO (3,3,64,1)
        "w3": u(ks[6], (3, 3, 64, 1), 64 * 3 * 3),
        "b3": u(ks[7], (1,), 64 * 3 * 3),
    }


# Pure-JAX reference (lax convs) for a correctness cross-check.
def unet_ref(params, x_nchw):
    dn = ("NHWC", "HWIO", "NHWC")
    x = jnp.transpose(x_nchw, (0, 2, 3, 1))
    x1 = jax.nn.relu(lax.conv_general_dilated(
        x, params["w1"], (1, 1), [(1, 1), (1, 1)],
        dimension_numbers=dn) + params["b1"])
    x2 = jax.nn.relu(lax.conv_general_dilated(
        x1, params["w2"], (2, 2), [(1, 1), (1, 1)],
        dimension_numbers=dn) + params["b2"])
    w_conv = jnp.transpose(params["wt"][:, :, ::-1, ::-1], (2, 3, 0, 1))
    x3 = jax.nn.relu(lax.conv_general_dilated(
        x2, w_conv, (1, 1), [(2, 2), (2, 2)], lhs_dilation=(2, 2),
        dimension_numbers=dn) + params["bt"])
    out = lax.conv_general_dilated(
        x3, params["w3"], (1, 1), [(1, 1), (1, 1)],
        dimension_numbers=dn) + params["b3"]
    return jnp.transpose(out, (0, 3, 1, 2))


if __name__ == "__main__":
    key = jax.random.PRNGKey(0)
    k_p, k_x, k_t = jax.random.split(key, 3)
    params = init_params(k_p)

    # NCHW grayscale images + (unused) timestep t, matching the PyTorch module.
    x = jax.random.normal(k_x, (2, 1, 16, 16), jnp.float32)
    t = jax.random.uniform(k_t, (2,), jnp.float32)

    fwd = jax.jit(unet_forward)
    out = jax.block_until_ready(fwd(params, x, t))
    assert out.shape == (2, 1, 16, 16), out.shape

    ref = jax.block_until_ready(unet_ref(params, x))
    err = float(jnp.max(jnp.abs(out - ref)))
    assert jnp.allclose(out, ref, rtol=1e-3, atol=1e-3), err

    print("KERNEL_OK")
</pallas_src>

<mosaic_0001>
module attributes {stable_mosaic.version = 11 : i64} {
  func.func @_unet_fused_kernel(%arg0: i32, %arg1: memref<1x256x9xf32, #tpu.memory_space<vmem>>, %arg2: memref<9x64xf32, #tpu.memory_space<vmem>>, %arg3: memref<1x64xf32, #tpu.memory_space<vmem>>, %arg4: memref<9x64x128xf32, #tpu.memory_space<vmem>>, %arg5: memref<1x128xf32, #tpu.memory_space<vmem>>, %arg6: memref<9x128x256xf32, #tpu.memory_space<vmem>>, %arg7: memref<1x256xf32, #tpu.memory_space<vmem>>, %arg8: memref<9x64xf32, #tpu.memory_space<vmem>>, %arg9: memref<1x1xf32, #tpu.memory_space<vmem>>, %arg10: memref<1x1x256xf32, #tpu.memory_space<vmem>>) attributes {dimension_semantics = [#tpu.dimension_semantics<parallel>], iteration_bounds = array<i64: 2>, scalar_prefetch = 0 : i64, scratch_operands = 0 : i64, tpu.core_type = #tpu.core_type<tc>, window_params = [{transform_indices = @transform_0, window_bounds = array<i64: 1, 256, 9>}, {pipeline_mode = #tpu.pipeline_mode<synchronous>, transform_indices = @transform_1, window_bounds = array<i64: 9, 64>}, {pipeline_mode = #tpu.pipeline_mode<synchronous>, transform_indices = @transform_2, window_bounds = array<i64: 1, 64>}, {pipeline_mode = #tpu.pipeline_mode<synchronous>, transform_indices = @transform_3, window_bounds = array<i64: 9, 64, 128>}, {pipeline_mode = #tpu.pipeline_mode<synchronous>, transform_indices = @transform_4, window_bounds = array<i64: 1, 128>}, {pipeline_mode = #tpu.pipeline_mode<synchronous>, transform_indices = @transform_5, window_bounds = array<i64: 9, 128, 256>}, {pipeline_mode = #tpu.pipeline_mode<synchronous>, transform_indices = @transform_6, window_bounds = array<i64: 1, 256>}, {pipeline_mode = #tpu.pipeline_mode<synchronous>, transform_indices = @transform_7, window_bounds = array<i64: 9, 64>}, {pipeline_mode = #tpu.pipeline_mode<synchronous>, transform_indices = @transform_8, window_bounds = array<i64: 1, 1>}, {transform_indices = @transform_9, window_bounds = array<i64: 1, 1, 256>}]} {
    %c0 = arith.constant 0 : index
    %c0_0 = arith.constant 0 : index
    %c0_1 = arith.constant 0 : index
    %0 = vector.load %arg1[%c0, %c0_0, %c0_1] : memref<1x256x9xf32, #tpu.memory_space<vmem>>, vector<1x256x9xf32>
    %1 = vector.shape_cast %0 : vector<1x256x9xf32> to vector<256x9xf32>
    %c0_2 = arith.constant 0 : index
    %c0_3 = arith.constant 0 : index
    %2 = vector.load %arg2[%c0_2, %c0_3] : memref<9x64xf32, #tpu.memory_space<vmem>>, vector<9x64xf32>
    %cst = arith.constant dense<0.000000e+00> : vector<256x64xf32>
    %3 = tpu.matmul %1, %2, %cst {dimension_numbers = #tpu.dot_dimension_numbers<[1], [0], [0], [1], [0, 0, 1, 1], [], []>} : vector<256x9xf32>, vector<9x64xf32>, vector<256x64xf32> -> vector<256x64xf32>
    %c0_4 = arith.constant 0 : index
    %c0_5 = arith.constant 0 : index
    %4 = vector.load %arg3[%c0_4, %c0_5] : memref<1x64xf32, #tpu.memory_space<vmem>>, vector<1x64xf32>
    %5 = vector.broadcast %4 : vector<1x64xf32> to vector<256x64xf32>
    %6 = arith.addf %3, %5 : vector<256x64xf32>
    %cst_6 = arith.constant 0.000000e+00 : f32
    %7 = vector.broadcast %cst_6 : f32 to vector<256x64xf32>
    %8 = arith.maximumf %6, %7 : vector<256x64xf32>
    %9 = vector.shape_cast %8 : vector<256x64xf32> to vector<1x4x8x8x64xf32>
    %10 = vector.extract_strided_slice %9 {offsets = [0, 0, 0, 0, 0], sizes = [1, 1, 8, 8, 64], strides = [1, 1, 1, 1, 1]} : vector<1x4x8x8x64xf32> to vector<1x1x8x8x64xf32>
    %11 = vector.shape_cast %10 : vector<1x1x8x8x64xf32> to vector<1x8x8x64xf32>
    %12 = vector.extract_strided_slice %9 {offsets = [0, 1, 0, 0, 0], sizes = [1, 1, 8, 8, 64], strides = [1, 1, 1, 1, 1]} : vector<1x4x8x8x64xf32> to vector<1x1x8x8x64xf32>
    %13 = vector.shape_cast %12 : vector<1x1x8x8x64xf32> to vector<1x8x8x64xf32>
    %14 = vector.extract_strided_slice %9 {offsets = [0, 2, 0, 0, 0], sizes = [1, 1, 8, 8, 64], strides = [1, 1, 1, 1, 1]} : vector<1x4x8x8x64xf32> to vector<1x1x8x8x64xf32>
    %15 = vector.shape_cast %14 : vector<1x1x8x8x64xf32> to vector<1x8x8x64xf32>
    %16 = vector.extract_strided_slice %9 {offsets = [0, 3, 0, 0, 0], sizes = [1, 1, 8, 8, 64], strides = [1, 1, 1, 1, 1]} : vector<1x4x8x8x64xf32> to vector<1x1x8x8x64xf32>
    %17 = vector.shape_cast %16 : vector<1x1x8x8x64xf32> to vector<1x8x8x64xf32>
    %cst_7 = arith.constant 0.000000e+00 : f32
    %18 = vector.broadcast %cst_7 : f32 to vector<1x8x1x64xf32>
    %19 = tpu.concatenate %18, %13 in 2 : vector<1x8x1x64xf32>, vector<1x8x8x64xf32> -> vector<1x8x9x64xf32>
    %cst_8 = arith.constant 0.000000e+00 : f32
    %20 = vector.broadcast %cst_8 : f32 to vector<1x1x8x64xf32>
    %21 = tpu.concatenate %20, %15 in 1 : vector<1x1x8x64xf32>, vector<1x8x8x64xf32> -> vector<1x9x8x64xf32>
    %cst_9 = arith.constant 0.000000e+00 : f32
    %22 = vector.broadcast %cst_9 : f32 to vector<1x1x8x64xf32>
    %23 = tpu.concatenate %22, %17 in 1 : vector<1x1x8x64xf32>, vector<1x8x8x64xf32> -> vector<1x9x8x64xf32>
    %cst_10 = arith.constant 0.000000e+00 : f32
    %24 = vector.broadcast %cst_10 : f32 to vector<1x9x1x64xf32>
    %25 = tpu.concatenate %24, %23 in 2 : vector<1x9x1x64xf32>, vector<1x9x8x64xf32> -> vector<1x9x9x64xf32>
    %26 = vector.extract_strided_slice %25 {offsets = [0, 0, 0, 0], sizes = [1, 8, 8, 64], strides = [1, 1, 1, 1]} : vector<1x9x9x64xf32> to vector<1x8x8x64xf32>
    %27 = vector.shape_cast %26 : vector<1x8x8x64xf32> to vector<64x64xf32>
    %c0_11 = arith.constant 0 : index
    %c0_12 = arith.constant 0 : index
    %c0_13 = arith.constant 0 : index
    %28 = vector.load %arg4[%c0_11, %c0_12, %c0_13] : memref<9x64x128xf32, #tpu.memory_space<vmem>>, vector<1x64x128xf32>
    %29 = vector.shape_cast %28 : vector<1x64x128xf32> to vector<64x128xf32>
    %cst_14 = arith.constant dense<0.000000e+00> : vector<64x128xf32>
    %30 = tpu.matmul %27, %29, %cst_14 {dimension_numbers = #tpu.dot_dimension_numbers<[1], [0], [0], [1], [0, 0, 1, 1], [], []>} : vector<64x64xf32>, vector<64x128xf32>, vector<64x128xf32> -> vector<64x128xf32>
    %31 = vector.extract_strided_slice %21 {offsets = [0, 0, 0, 0], sizes = [1, 8, 8, 64], strides = [1, 1, 1, 1]} : vector<1x9x8x64xf32> to vector<1x8x8x64xf32>
    %32 = vector.shape_cast %31 : vector<1x8x8x64xf32> to vector<64x64xf32>
    %c1 = arith.constant 1 : index
    %c0_15 = arith.constant 0 : index
    %c0_16 = arith.constant 0 : index
    %33 = vector.load %arg4[%c1, %c0_15, %c0_16] : memref<9x64x128xf32, #tpu.memory_space<vmem>>, vector<1x64x128xf32>
    %34 = vector.shape_cast %33 : vector<1x64x128xf32> to vector<64x128xf32>
    %cst_17 = arith.constant dense<0.000000e+00> : vector<64x128xf32>
    %35 = tpu.matmul %32, %34, %cst_17 {dimension_numbers = #tpu.dot_dimension_numbers<[1], [0], [0], [1], [0, 0, 1, 1], [], []>} : vector<64x64xf32>, vector<64x128xf32>, vector<64x128xf32> -> vector<64x128xf32>
    %36 = arith.addf %30, %35 : vector<64x128xf32>
    %37 = vector.extract_strided_slice %25 {offsets = [0, 0, 1, 0], sizes = [1, 8, 8, 64], strides = [1, 1, 1, 1]} : vector<1x9x9x64xf32> to vector<1x8x8x64xf32>
    %38 = vector.shape_cast %37 : vector<1x8x8x64xf32> to vector<64x64xf32>
    %c2 = arith.constant 2 : index
    %c0_18 = arith.constant 0 : index
    %c0_19 = arith.constant 0 : index
    %39 = vector.load %arg4[%c2, %c0_18, %c0_19] : memref<9x64x128xf32, #tpu.memory_space<vmem>>, vector<1x64x128xf32>
    %40 = vector.shape_cast %39 : vector<1x64x128xf32> to vector<64x128xf32>
    %cst_20 = arith.constant dense<0.000000e+00> : vector<64x128xf32>
    %41 = tpu.matmul %38, %40, %cst_20 {dimension_numbers = #tpu.dot_dimension_numbers<[1], [0], [0], [1], [0, 0, 1, 1], [], []>} : vector<64x64xf32>, vector<64x128xf32>, vector<64x128xf32> -> vector<64x128xf32>
    %42 = arith.addf %36, %41 : vector<64x128xf32>
    %43 = vector.extract_strided_slice %19 {offsets = [0, 0, 0, 0], sizes = [1, 8, 8, 64], strides = [1, 1, 1, 1]} : vector<1x8x9x64xf32> to vector<1x8x8x64xf32>
    %44 = vector.shape_cast %43 : vector<1x8x8x64xf32> to vector<64x64xf32>
    %c3 = arith.constant 3 : index
    %c0_21 = arith.constant 0 : index
    %c0_22 = arith.constant 0 : index
    %45 = vector.load %arg4[%c3, %c0_21, %c0_22] : memref<9x64x128xf32, #tpu.memory_space<vmem>>, vector<1x64x128xf32>
    %46 = vector.shape_cast %45 : vector<1x64x128xf32> to vector<64x128xf32>
    %cst_23 = arith.constant dense<0.000000e+00> : vector<64x128xf32>
    %47 = tpu.matmul %44, %46, %cst_23 {dimension_numbers = #tpu.dot_dimension_numbers<[1], [0], [0], [1], [0, 0, 1, 1], [], []>} : vector<64x64xf32>, vector<64x128xf32>, vector<64x128xf32> -> vector<64x128xf32>
    %48 = arith.addf %42, %47 : vector<64x128xf32>
    %49 = vector.shape_cast %11 : vector<1x8x8x64xf32> to vector<64x64xf32>
    %c4 = arith.constant 4 : index
    %c0_24 = arith.constant 0 : index
    %c0_25 = arith.constant 0 : index
    %50 = vector.load %arg4[%c4, %c0_24, %c0_25] : memref<9x64x128xf32, #tpu.memory_space<vmem>>, vector<1x64x128xf32>
    %51 = vector.shape_cast %50 : vector<1x64x128xf32> to vector<64x128xf32>
    %cst_26 = arith.constant dense<0.000000e+00> : vector<64x128xf32>
    %52 = tpu.matmul %49, %51, %cst_26 {dimension_numbers = #tpu.dot_dimension_numbers<[1], [0], [0], [1], [0, 0, 1, 1], [], []>} : vector<64x64xf32>, vector<64x128xf32>, vector<64x128xf32> -> vector<64x128xf32>
    %53 = arith.addf %48, %52 : vector<64x128xf32>
    %54 = vector.extract_strided_slice %19 {offsets = [0, 0, 1, 0], sizes = [1, 8, 8, 64], strides = [1, 1, 1, 1]} : vector<1x8x9x64xf32> to vector<1x8x8x64xf32>
    %55 = vector.shape_cast %54 : vector<1x8x8x64xf32> to vector<64x64xf32>
    %c5 = arith.constant 5 : index
    %c0_27 = arith.constant 0 : index
    %c0_28 = arith.constant 0 : index
    %56 = vector.load %arg4[%c5, %c0_27, %c0_28] : memref<9x64x128xf32, #tpu.memory_space<vmem>>, vector<1x64x128xf32>
    %57 = vector.shape_cast %56 : vector<1x64x128xf32> to vector<64x128xf32>
    %cst_29 = arith.constant dense<0.000000e+00> : vector<64x128xf32>
    %58 = tpu.matmul %55, %57, %cst_29 {dimension_numbers = #tpu.dot_dimension_numbers<[1], [0], [0], [1], [0, 0, 1, 1], [], []>} : vector<64x64xf32>, vector<64x128xf32>, vector<64x128xf32> -> vector<64x128xf32>
    %59 = arith.addf %53, %58 : vector<64x128xf32>
    %60 = vector.extract_strided_slice %25 {offsets = [0, 1, 0, 0], sizes = [1, 8, 8, 64], strides = [1, 1, 1, 1]} : vector<1x9x9x64xf32> to vector<1x8x8x64xf32>
    %61 = vector.shape_cast %60 : vector<1x8x8x64xf32> to vector<64x64xf32>
    %c6 = arith.constant 6 : index
    %c0_30 = arith.constant 0 : index
    %c0_31 = arith.constant 0 : index
    %62 = vector.load %arg4[%c6, %c0_30, %c0_31] : memref<9x64x128xf32, #tpu.memory_space<vmem>>, vector<1x64x128xf32>
    %63 = vector.shape_cast %62 : vector<1x64x128xf32> to vector<64x128xf32>
    %cst_32 = arith.constant dense<0.000000e+00> : vector<64x128xf32>
    %64 = tpu.matmul %61, %63, %cst_32 {dimension_numbers = #tpu.dot_dimension_numbers<[1], [0], [0], [1], [0, 0, 1, 1], [], []>} : vector<64x64xf32>, vector<64x128xf32>, vector<64x128xf32> -> vector<64x128xf32>
    %65 = arith.addf %59, %64 : vector<64x128xf32>
    %66 = vector.extract_strided_slice %21 {offsets = [0, 1, 0, 0], sizes = [1, 8, 8, 64], strides = [1, 1, 1, 1]} : vector<1x9x8x64xf32> to vector<1x8x8x64xf32>
    %67 = vector.shape_cast %66 : vector<1x8x8x64xf32> to vector<64x64xf32>
    %c7 = arith.constant 7 : index
    %c0_33 = arith.constant 0 : index
    %c0_34 = arith.constant 0 : index
    %68 = vector.load %arg4[%c7, %c0_33, %c0_34] : memref<9x64x128xf32, #tpu.memory_space<vmem>>, vector<1x64x128xf32>
    %69 = vector.shape_cast %68 : vector<1x64x128xf32> to vector<64x128xf32>
    %cst_35 = arith.constant dense<0.000000e+00> : vector<64x128xf32>
    %70 = tpu.matmul %67, %69, %cst_35 {dimension_numbers = #tpu.dot_dimension_numbers<[1], [0], [0], [1], [0, 0, 1, 1], [], []>} : vector<64x64xf32>, vector<64x128xf32>, vector<64x128xf32> -> vector<64x128xf32>
    %71 = arith.addf %65, %70 : vector<64x128xf32>
    %72 = vector.extract_strided_slice %25 {offsets = [0, 1, 1, 0], sizes = [1, 8, 8, 64], strides = [1, 1, 1, 1]} : vector<1x9x9x64xf32> to vector<1x8x8x64xf32>
    %73 = vector.shape_cast %72 : vector<1x8x8x64xf32> to vector<64x64xf32>
    %c8 = arith.constant 8 : index
    %c0_36 = arith.constant 0 : index
    %c0_37 = arith.constant 0 : index
    %74 = vector.load %arg4[%c8, %c0_36, %c0_37] : memref<9x64x128xf32, #tpu.memory_space<vmem>>, vector<1x64x128xf32>
    %75 = vector.shape_cast %74 : vector<1x64x128xf32> to vector<64x128xf32>
    %cst_38 = arith.constant dense<0.000000e+00> : vector<64x128xf32>
    %76 = tpu.matmul %73, %75, %cst_38 {dimension_numbers = #tpu.dot_dimension_numbers<[1], [0], [0], [1], [0, 0, 1, 1], [], []>} : vector<64x64xf32>, vector<64x128xf32>, vector<64x128xf32> -> vector<64x128xf32>
    %77 = arith.addf %71, %76 : vector<64x128xf32>
    %c0_39 = arith.constant 0 : index
    %c0_40 = arith.constant 0 : index
    %78 = vector.load %arg5[%c0_39, %c0_40] : memref<1x128xf32, #tpu.memory_space<vmem>>, vector<1x128xf32>
    %79 = vector.broadcast %78 : vector<1x128xf32> to vector<64x128xf32>
    %80 = arith.addf %77, %79 : vector<64x128xf32>
    %cst_41 = arith.constant 0.000000e+00 : f32
    %81 = vector.broadcast %cst_41 : f32 to vector<64x128xf32>
    %82 = arith.maximumf %80, %81 : vector<64x128xf32>
    %83 = vector.shape_cast %82 : vector<64x128xf32> to vector<1x8x8x128xf32>
    %cst_42 = arith.constant 0.000000e+00 : f32
    %84 = vector.broadcast %cst_42 : f32 to vector<1x1x8x128xf32>
    %cst_43 = arith.constant 0.000000e+00 : f32
    %85 = vector.broadcast %cst_43 : f32 to vector<1x1x8x128xf32>
    %86 = tpu.concatenate %84, %83, %85 in 1 : vector<1x1x8x128xf32>, vector<1x8x8x128xf32>, vector<1x1x8x128xf32> -> vector<1x10x8x128xf32>
    %cst_44 = arith.constant 0.000000e+00 : f32
    %87 = vector.broadcast %cst_44 : f32 to vector<1x10x1x128xf32>
    %cst_45 = arith.constant 0.000000e+00 : f32
    %88 = vector.broadcast %cst_45 : f32 to vector<1x10x1x128xf32>
    %89 = tpu.concatenate %87, %86, %88 in 2 : vector<1x10x1x128xf32>, vector<1x10x8x128xf32>, vector<1x10x1x128xf32> -> vector<1x10x10x128xf32>
    %90 = vector.extract_strided_slice %89 {offsets = [0, 0, 0, 0], sizes = [1, 8, 8, 128], strides = [1, 1, 1, 1]} : vector<1x10x10x128xf32> to vector<1x8x8x128xf32>
    %91 = vector.shape_cast %90 : vector<1x8x8x128xf32> to vector<64x128xf32>
    %c0_46 = arith.constant 0 : index
    %c0_47 = arith.constant 0 : index
    %c0_48 = arith.constant 0 : index
    %92 = vector.load %arg6[%c0_46, %c0_47, %c0_48] : memref<9x128x256xf32, #tpu.memory_space<vmem>>, vector<1x128x256xf32>
    %93 = vector.shape_cast %92 : vector<1x128x256xf32> to vector<128x256xf32>
    %cst_49 = arith.constant dense<0.000000e+00> : vector<64x256xf32>
    %94 = tpu.matmul %91, %93, %cst_49 {dimension_numbers = #tpu.dot_dimension_numbers<[1], [0], [0], [1], [0, 0, 1, 1], [], []>} : vector<64x128xf32>, vector<128x256xf32>, vector<64x256xf32> -> vector<64x256xf32>
    %95 = vector.extract_strided_slice %89 {offsets = [0, 0, 1, 0], sizes = [1, 8, 8, 128], strides = [1, 1, 1, 1]} : vector<1x10x10x128xf32> to vector<1x8x8x128xf32>
    %96 = vector.shape_cast %95 : vector<1x8x8x128xf32> to vector<64x128xf32>
    %c1_50 = arith.constant 1 : index
    %c0_51 = arith.constant 0 : index
    %c0_52 = arith.constant 0 : index
    %97 = vector.load %arg6[%c1_50, %c0_51, %c0_52] : memref<9x128x256xf32, #tpu.memory_space<vmem>>, vector<1x128x256xf32>
    %98 = vector.shape_cast %97 : vector<1x128x256xf32> to vector<128x256xf32>
    %cst_53 = arith.constant dense<0.000000e+00> : vector<64x256xf32>
    %99 = tpu.matmul %96, %98, %cst_53 {dimension_numbers = #tpu.dot_dimension_numbers<[1], [0], [0], [1], [0, 0, 1, 1], [], []>} : vector<64x128xf32>, vector<128x256xf32>, vector<64x256xf32> -> vector<64x256xf32>
    %100 = arith.addf %94, %99 : vector<64x256xf32>
    %101 = vector.extract_strided_slice %89 {offsets = [0, 0, 2, 0], sizes = [1, 8, 8, 128], strides = [1, 1, 1, 1]} : vector<1x10x10x128xf32> to vector<1x8x8x128xf32>
    %102 = vector.shape_cast %101 : vector<1x8x8x128xf32> to vector<64x128xf32>
    %c2_54 = arith.constant 2 : index
    %c0_55 = arith.constant 0 : index
    %c0_56 = arith.constant 0 : index
    %103 = vector.load %arg6[%c2_54, %c0_55, %c0_56] : memref<9x128x256xf32, #tpu.memory_space<vmem>>, vector<1x128x256xf32>
    %104 = vector.shape_cast %103 : vector<1x128x256xf32> to vector<128x256xf32>
    %cst_57 = arith.constant dense<0.000000e+00> : vector<64x256xf32>
    %105 = tpu.matmul %102, %104, %cst_57 {dimension_numbers = #tpu.dot_dimension_numbers<[1], [0], [0], [1], [0, 0, 1, 1], [], []>} : vector<64x128xf32>, vector<128x256xf32>, vector<64x256xf32> -> vector<64x256xf32>
    %106 = arith.addf %100, %105 : vector<64x256xf32>
    %107 = vector.extract_strided_slice %89 {offsets = [0, 1, 0, 0], sizes = [1, 8, 8, 128], strides = [1, 1, 1, 1]} : vector<1x10x10x128xf32> to vector<1x8x8x128xf32>
    %108 = vector.shape_cast %107 : vector<1x8x8x128xf32> to vector<64x128xf32>
    %c3_58 = arith.constant 3 : index
    %c0_59 = arith.constant 0 : index
    %c0_60 = arith.constant 0 : index
    %109 = vector.load %arg6[%c3_58, %c0_59, %c0_60] : memref<9x128x256xf32, #tpu.memory_space<vmem>>, vector<1x128x256xf32>
    %110 = vector.shape_cast %109 : vector<1x128x256xf32> to vector<128x256xf32>
    %cst_61 = arith.constant dense<0.000000e+00> : vector<64x256xf32>
    %111 = tpu.matmul %108, %110, %cst_61 {dimension_numbers = #tpu.dot_dimension_numbers<[1], [0], [0], [1], [0, 0, 1, 1], [], []>} : vector<64x128xf32>, vector<128x256xf32>, vector<64x256xf32> -> vector<64x256xf32>
    %112 = arith.addf %106, %111 : vector<64x256xf32>
    %113 = vector.extract_strided_slice %89 {offsets = [0, 1, 1, 0], sizes = [1, 8, 8, 128], strides = [1, 1, 1, 1]} : vector<1x10x10x128xf32> to vector<1x8x8x128xf32>
    %114 = vector.shape_cast %113 : vector<1x8x8x128xf32> to vector<64x128xf32>
    %c4_62 = arith.constant 4 : index
    %c0_63 = arith.constant 0 : index
    %c0_64 = arith.constant 0 : index
    %115 = vector.load %arg6[%c4_62, %c0_63, %c0_64] : memref<9x128x256xf32, #tpu.memory_space<vmem>>, vector<1x128x256xf32>
    %116 = vector.shape_cast %115 : vector<1x128x256xf32> to vector<128x256xf32>
    %cst_65 = arith.constant dense<0.000000e+00> : vector<64x256xf32>
    %117 = tpu.matmul %114, %116, %cst_65 {dimension_numbers = #tpu.dot_dimension_numbers<[1], [0], [0], [1], [0, 0, 1, 1], [], []>} : vector<64x128xf32>, vector<128x256xf32>, vector<64x256xf32> -> vector<64x256xf32>
    %118 = arith.addf %112, %117 : vector<64x256xf32>
    %119 = vector.extract_strided_slice %89 {offsets = [0, 1, 2, 0], sizes = [1, 8, 8, 128], strides = [1, 1, 1, 1]} : vector<1x10x10x128xf32> to vector<1x8x8x128xf32>
    %120 = vector.shape_cast %119 : vector<1x8x8x128xf32> to vector<64x128xf32>
    %c5_66 = arith.constant 5 : index
    %c0_67 = arith.constant 0 : index
    %c0_68 = arith.constant 0 : index
    %121 = vector.load %arg6[%c5_66, %c0_67, %c0_68] : memref<9x128x256xf32, #tpu.memory_space<vmem>>, vector<1x128x256xf32>
    %122 = vector.shape_cast %121 : vector<1x128x256xf32> to vector<128x256xf32>
    %cst_69 = arith.constant dense<0.000000e+00> : vector<64x256xf32>
    %123 = tpu.matmul %120, %122, %cst_69 {dimension_numbers = #tpu.dot_dimension_numbers<[1], [0], [0], [1], [0, 0, 1, 1], [], []>} : vector<64x128xf32>, vector<128x256xf32>, vector<64x256xf32> -> vector<64x256xf32>
    %124 = arith.addf %118, %123 : vector<64x256xf32>
    %125 = vector.extract_strided_slice %89 {offsets = [0, 2, 0, 0], sizes = [1, 8, 8, 128], strides = [1, 1, 1, 1]} : vector<1x10x10x128xf32> to vector<1x8x8x128xf32>
    %126 = vector.shape_cast %125 : vector<1x8x8x128xf32> to vector<64x128xf32>
    %c6_70 = arith.constant 6 : index
    %c0_71 = arith.constant 0 : index
    %c0_72 = arith.constant 0 : index
    %127 = vector.load %arg6[%c6_70, %c0_71, %c0_72] : memref<9x128x256xf32, #tpu.memory_space<vmem>>, vector<1x128x256xf32>
    %128 = vector.shape_cast %127 : vector<1x128x256xf32> to vector<128x256xf32>
    %cst_73 = arith.constant dense<0.000000e+00> : vector<64x256xf32>
    %129 = tpu.matmul %126, %128, %cst_73 {dimension_numbers = #tpu.dot_dimension_numbers<[1], [0], [0], [1], [0, 0, 1, 1], [], []>} : vector<64x128xf32>, vector<128x256xf32>, vector<64x256xf32> -> vector<64x256xf32>
    %130 = arith.addf %124, %129 : vector<64x256xf32>
    %131 = vector.extract_strided_slice %89 {offsets = [0, 2, 1, 0], sizes = [1, 8, 8, 128], strides = [1, 1, 1, 1]} : vector<1x10x10x128xf32> to vector<1x8x8x128xf32>
    %132 = vector.shape_cast %131 : vector<1x8x8x128xf32> to vector<64x128xf32>
    %c7_74 = arith.constant 7 : index
    %c0_75 = arith.constant 0 : index
    %c0_76 = arith.constant 0 : index
    %133 = vector.load %arg6[%c7_74, %c0_75, %c0_76] : memref<9x128x256xf32, #tpu.memory_space<vmem>>, vector<1x128x256xf32>
    %134 = vector.shape_cast %133 : vector<1x128x256xf32> to vector<128x256xf32>
    %cst_77 = arith.constant dense<0.000000e+00> : vector<64x256xf32>
    %135 = tpu.matmul %132, %134, %cst_77 {dimension_numbers = #tpu.dot_dimension_numbers<[1], [0], [0], [1], [0, 0, 1, 1], [], []>} : vector<64x128xf32>, vector<128x256xf32>, vector<64x256xf32> -> vector<64x256xf32>
    %136 = arith.addf %130, %135 : vector<64x256xf32>
    %137 = vector.extract_strided_slice %89 {offsets = [0, 2, 2, 0], sizes = [1, 8, 8, 128], strides = [1, 1, 1, 1]} : vector<1x10x10x128xf32> to vector<1x8x8x128xf32>
    %138 = vector.shape_cast %137 : vector<1x8x8x128xf32> to vector<64x128xf32>
    %c8_78 = arith.constant 8 : index
    %c0_79 = arith.constant 0 : index
    %c0_80 = arith.constant 0 : index
    %139 = vector.load %arg6[%c8_78, %c0_79, %c0_80] : memref<9x128x256xf32, #tpu.memory_space<vmem>>, vector<1x128x256xf32>
    %140 = vector.shape_cast %139 : vector<1x128x256xf32> to vector<128x256xf32>
    %cst_81 = arith.constant dense<0.000000e+00> : vector<64x256xf32>
    %141 = tpu.matmul %138, %140, %cst_81 {dimension_numbers = #tpu.dot_dimension_numbers<[1], [0], [0], [1], [0, 0, 1, 1], [], []>} : vector<64x128xf32>, vector<128x256xf32>, vector<64x256xf32> -> vector<64x256xf32>
    %142 = arith.addf %136, %141 : vector<64x256xf32>
    %c0_82 = arith.constant 0 : index
    %c0_83 = arith.constant 0 : index
    %143 = vector.load %arg7[%c0_82, %c0_83] : memref<1x256xf32, #tpu.memory_space<vmem>>, vector<1x256xf32>
    %144 = vector.broadcast %143 : vector<1x256xf32> to vector<64x256xf32>
    %145 = arith.addf %142, %144 : vector<64x256xf32>
    %cst_84 = arith.constant 0.000000e+00 : f32
    %146 = vector.broadcast %cst_84 : f32 to vector<64x256xf32>
    %147 = arith.maximumf %145, %146 : vector<64x256xf32>
    %148 = vector.extract_strided_slice %147 {offsets = [0, 0], sizes = [64, 64], strides = [1, 1]} : vector<64x256xf32> to vector<64x64xf32>
    %149 = vector.shape_cast %148 : vector<64x64xf32> to vector<1x8x8x64xf32>
    %150 = vector.extract_strided_slice %147 {offsets = [0, 64], sizes = [64, 64], strides = [1, 1]} : vector<64x256xf32> to vector<64x64xf32>
    %151 = vector.shape_cast %150 : vector<64x64xf32> to vector<1x8x8x64xf32>
    %152 = vector.extract_strided_slice %147 {offsets = [0, 128], sizes = [64, 64], strides = [1, 1]} : vector<64x256xf32> to vector<64x64xf32>
    %153 = vector.shape_cast %152 : vector<64x64xf32> to vector<1x8x8x64xf32>
    %154 = vector.extract_strided_slice %147 {offsets = [0, 192], sizes = [64, 64], strides = [1, 1]} : vector<64x256xf32> to vector<64x64xf32>
    %155 = vector.shape_cast %154 : vector<64x64xf32> to vector<1x8x8x64xf32>
    %cst_85 = arith.constant 0.000000e+00 : f32
    %156 = vector.broadcast %cst_85 : f32 to vector<1x1x8x64xf32>
    %157 = tpu.concatenate %149, %156 in 1 : vector<1x8x8x64xf32>, vector<1x1x8x64xf32> -> vector<1x9x8x64xf32>
    %cst_86 = arith.constant 0.000000e+00 : f32
    %158 = vector.broadcast %cst_86 : f32 to vector<1x9x1x64xf32>
    %159 = tpu.concatenate %157, %158 in 2 : vector<1x9x8x64xf32>, vector<1x9x1x64xf32> -> vector<1x9x9x64xf32>
    %cst_87 = arith.constant 0.000000e+00 : f32
    %160 = vector.broadcast %cst_87 : f32 to vector<1x1x8x64xf32>
    %161 = tpu.concatenate %151, %160 in 1 : vector<1x8x8x64xf32>, vector<1x1x8x64xf32> -> vector<1x9x8x64xf32>
    %cst_88 = arith.constant 0.000000e+00 : f32
    %162 = vector.broadcast %cst_88 : f32 to vector<1x9x1x64xf32>
    %163 = tpu.concatenate %162, %161 in 2 : vector<1x9x1x64xf32>, vector<1x9x8x64xf32> -> vector<1x9x9x64xf32>
    %cst_89 = arith.constant 0.000000e+00 : f32
    %164 = vector.broadcast %cst_89 : f32 to vector<1x1x8x64xf32>
    %165 = tpu.concatenate %164, %153 in 1 : vector<1x1x8x64xf32>, vector<1x8x8x64xf32> -> vector<1x9x8x64xf32>
    %cst_90 = arith.constant 0.000000e+00 : f32
    %166 = vector.broadcast %cst_90 : f32 to vector<1x9x1x64xf32>
    %167 = tpu.concatenate %165, %166 in 2 : vector<1x9x8x64xf32>, vector<1x9x1x64xf32> -> vector<1x9x9x64xf32>
    %cst_91 = arith.constant 0.000000e+00 : f32
    %168 = vector.broadcast %cst_91 : f32 to vector<1x1x8x64xf32>
    %169 = tpu.concatenate %168, %155 in 1 : vector<1x1x8x64xf32>, vector<1x8x8x64xf32> -> vector<1x9x8x64xf32>
    %cst_92 = arith.constant 0.000000e+00 : f32
    %170 = vector.broadcast %cst_92 : f32 to vector<1x9x1x64xf32>
    %171 = tpu.concatenate %170, %169 in 2 : vector<1x9x1x64xf32>, vector<1x9x8x64xf32> -> vector<1x9x9x64xf32>
    %c0_93 = arith.constant 0 : index
    %c0_94 = arith.constant 0 : index
    %172 = vector.load %arg8[%c0_93, %c0_94] : memref<9x64xf32, #tpu.memory_space<vmem>>, vector<9x64xf32>
    %c0_95 = arith.constant 0 : index
    %c0_96 = arith.constant 0 : index
    %173 = vector.load %arg9[%c0_95, %c0_96] : memref<1x1xf32, #tpu.memory_space<vmem>>, vector<1x1xf32>
    %174 = vector.extract_strided_slice %171 {offsets = [0, 0, 0, 0], sizes = [1, 8, 8, 64], strides = [1, 1, 1, 1]} : vector<1x9x9x64xf32> to vector<1x8x8x64xf32>
    %175 = vector.extract_strided_slice %172 {offsets = [0, 0], sizes = [1, 64], strides = [1, 1]} : vector<9x64xf32> to vector<1x64xf32>
    %176 = vector.shape_cast %175 : vector<1x64xf32> to vector<1x1x1x64xf32>
    %177 = vector.broadcast %176 : vector<1x1x1x64xf32> to vector<1x8x8x64xf32>
    %178 = arith.mulf %174, %177 : vector<1x8x8x64xf32>
    %179 = vector.extract_strided_slice %167 {offsets = [0, 0, 0, 0], sizes = [1, 8, 8, 64], strides = [1, 1, 1, 1]} : vector<1x9x9x64xf32> to vector<1x8x8x64xf32>
    %180 = vector.extract_strided_slice %172 {offsets = [1, 0], sizes = [1, 64], strides = [1, 1]} : vector<9x64xf32> to vector<1x64xf32>
    %181 = vector.shape_cast %180 : vector<1x64xf32> to vector<1x1x1x64xf32>
    %182 = vector.broadcast %181 : vector<1x1x1x64xf32> to vector<1x8x8x64xf32>
    %183 = arith.mulf %179, %182 : vector<1x8x8x64xf32>
    %184 = arith.addf %178, %183 : vector<1x8x8x64xf32>
    %185 = vector.extract_strided_slice %171 {offsets = [0, 0, 1, 0], sizes = [1, 8, 8, 64], strides = [1, 1, 1, 1]} : vector<1x9x9x64xf32> to vector<1x8x8x64xf32>
    %186 = vector.extract_strided_slice %172 {offsets = [2, 0], sizes = [1, 64], strides = [1, 1]} : vector<9x64xf32> to vector<1x64xf32>
    %187 = vector.shape_cast %186 : vector<1x64xf32> to vector<1x1x1x64xf32>
    %188 = vector.broadcast %187 : vector<1x1x1x64xf32> to vector<1x8x8x64xf32>
    %189 = arith.mulf %185, %188 : vector<1x8x8x64xf32>
    %190 = arith.addf %184, %189 : vector<1x8x8x64xf32>
    %191 = vector.extract_strided_slice %163 {offsets = [0, 0, 0, 0], sizes = [1, 8, 8, 64], strides = [1, 1, 1, 1]} : vector<1x9x9x64xf32> to vector<1x8x8x64xf32>
    %192 = vector.extract_strided_slice %172 {offsets = [3, 0], sizes = [1, 64], strides = [1, 1]} : vector<9x64xf32> to vector<1x64xf32>
    %193 = vector.shape_cast %192 : vector<1x64xf32> to vector<1x1x1x64xf32>
    %194 = vector.broadcast %193 : vector<1x1x1x64xf32> to vector<1x8x8x64xf32>
    %195 = arith.mulf %191, %194 : vector<1x8x8x64xf32>
    %196 = arith.addf %190, %195 : vector<1x8x8x64xf32>
    %197 = vector.extract_strided_slice %159 {offsets = [0, 0, 0, 0], sizes = [1, 8, 8, 64], strides = [1, 1, 1, 1]} : vector<1x9x9x64xf32> to vector<1x8x8x64xf32>
    %198 = vector.extract_strided_slice %172 {offsets = [4, 0], sizes = [1, 64], strides = [1, 1]} : vector<9x64xf32> to vector<1x64xf32>
    %199 = vector.shape_cast %198 : vector<1x64xf32> to vector<1x1x1x64xf32>
    %200 = vector.broadcast %199 : vector<1x1x1x64xf32> to vector<1x8x8x64xf32>
    %201 = arith.mulf %197, %200 : vector<1x8x8x64xf32>
    %202 = arith.addf %196, %201 : vector<1x8x8x64xf32>
    %203 = vector.extract_strided_slice %163 {offsets = [0, 0, 1, 0], sizes = [1, 8, 8, 64], strides = [1, 1, 1, 1]} : vector<1x9x9x64xf32> to vector<1x8x8x64xf32>
    %204 = vector.extract_strided_slice %172 {offsets = [5, 0], sizes = [1, 64], strides = [1, 1]} : vector<9x64xf32> to vector<1x64xf32>
    %205 = vector.shape_cast %204 : vector<1x64xf32> to vector<1x1x1x64xf32>
    %206 = vector.broadcast %205 : vector<1x1x1x64xf32> to vector<1x8x8x64xf32>
    %207 = arith.mulf %203, %206 : vector<1x8x8x64xf32>
    %208 = arith.addf %202, %207 : vector<1x8x8x64xf32>
    %209 = vector.extract_strided_slice %171 {offsets = [0, 1, 0, 0], sizes = [1, 8, 8, 64], strides = [1, 1, 1, 1]} : vector<1x9x9x64xf32> to vector<1x8x8x64xf32>
    %210 = vector.extract_strided_slice %172 {offsets = [6, 0], sizes = [1, 64], strides = [1, 1]} : vector<9x64xf32> to vector<1x64xf32>
    %211 = vector.shape_cast %210 : vector<1x64xf32> to vector<1x1x1x64xf32>
    %212 = vector.broadcast %211 : vector<1x1x1x64xf32> to vector<1x8x8x64xf32>
    %213 = arith.mulf %209, %212 : vector<1x8x8x64xf32>
    %214 = arith.addf %208, %213 : vector<1x8x8x64xf32>
    %215 = vector.extract_strided_slice %167 {offsets = [0, 1, 0, 0], sizes = [1, 8, 8, 64], strides = [1, 1, 1, 1]} : vector<1x9x9x64xf32> to vector<1x8x8x64xf32>
    %216 = vector.extract_strided_slice %172 {offsets = [7, 0], sizes = [1, 64], strides = [1, 1]} : vector<9x64xf32> to vector<1x64xf32>
    %217 = vector.shape_cast %216 : vector<1x64xf32> to vector<1x1x1x64xf32>
    %218 = vector.broadcast %217 : vector<1x1x1x64xf32> to vector<1x8x8x64xf32>
    %219 = arith.mulf %215, %218 : vector<1x8x8x64xf32>
    %220 = arith.addf %214, %219 : vector<1x8x8x64xf32>
    %221 = vector.extract_strided_slice %171 {offsets = [0, 1, 1, 0], sizes = [1, 8, 8, 64], strides = [1, 1, 1, 1]} : vector<1x9x9x64xf32> to vector<1x8x8x64xf32>
    %222 = vector.extract_strided_slice %172 {offsets = [8, 0], sizes = [1, 64], strides = [1, 1]} : vector<9x64xf32> to vector<1x64xf32>
    %223 = vector.shape_cast %222 : vector<1x64xf32> to vector<1x1x1x64xf32>
    %224 = vector.broadcast %223 : vector<1x1x1x64xf32> to vector<1x8x8x64xf32>
    %225 = arith.mulf %221, %224 : vector<1x8x8x64xf32>
    %226 = arith.addf %220, %225 : vector<1x8x8x64xf32>
    %cst_97 = arith.constant dense<0.000000e+00> : vector<1x8x8xf32>
    %227 = vector.multi_reduction <add>, %226, %cst_97 [3] : vector<1x8x8x64xf32> to vector<1x8x8xf32>
    %228 = vector.shape_cast %173 : vector<1x1xf32> to vector<1x1x1xf32>
    %229 = vector.broadcast %228 : vector<1x1x1xf32> to vector<1x8x8xf32>
    %230 = arith.addf %227, %229 : vector<1x8x8xf32>
    %231 = vector.extract_strided_slice %167 {offsets = [0, 0, 0, 0], sizes = [1, 8, 8, 64], strides = [1, 1, 1, 1]} : vector<1x9x9x64xf32> to vector<1x8x8x64xf32>
    %232 = vector.extract_strided_slice %172 {offsets = [0, 0], sizes = [1, 64], strides = [1, 1]} : vector<9x64xf32> to vector<1x64xf32>
    %233 = vector.shape_cast %232 : vector<1x64xf32> to vector<1x1x1x64xf32>
    %234 = vector.broadcast %233 : vector<1x1x1x64xf32> to vector<1x8x8x64xf32>
    %235 = arith.mulf %231, %234 : vector<1x8x8x64xf32>
    %236 = vector.extract_strided_slice %171 {offsets = [0, 0, 1, 0], sizes = [1, 8, 8, 64], strides = [1, 1, 1, 1]} : vector<1x9x9x64xf32> to vector<1x8x8x64xf32>
    %237 = vector.extract_strided_slice %172 {offsets = [1, 0], sizes = [1, 64], strides = [1, 1]} : vector<9x64xf32> to vector<1x64xf32>
    %238 = vector.shape_cast %237 : vector<1x64xf32> to vector<1x1x1x64xf32>
    %239 = vector.broadcast %238 : vector<1x1x1x64xf32> to vector<1x8x8x64xf32>
    %240 = arith.mulf %236, %239 : vector<1x8x8x64xf32>
    %241 = arith.addf %235, %240 : vector<1x8x8x64xf32>
    %242 = vector.extract_strided_slice %167 {offsets = [0, 0, 1, 0], sizes = [1, 8, 8, 64], strides = [1, 1, 1, 1]} : vector<1x9x9x64xf32> to vector<1x8x8x64xf32>
    %243 = vector.extract_strided_slice %172 {offsets = [2, 0], sizes = [1, 64], strides = [1, 1]} : vector<9x64xf32> to vector<1x64xf32>
    %244 = vector.shape_cast %243 : vector<1x64xf32> to vector<1x1x1x64xf32>
    %245 = vector.broadcast %244 : vector<1x1x1x64xf32> to vector<1x8x8x64xf32>
    %246 = arith.mulf %242, %245 : vector<1x8x8x64xf32>
    %247 = arith.addf %241, %246 : vector<1x8x8x64xf32>
    %248 = vector.extract_strided_slice %159 {offsets = [0, 0, 0, 0], sizes = [1, 8, 8, 64], strides = [1, 1, 1, 1]} : vector<1x9x9x64xf32> to vector<1x8x8x64xf32>
    %249 = vector.extract_strided_slice %172 {offsets = [3, 0], sizes = [1, 64], strides = [1, 1]} : vector<9x64xf32> to vector<1x64xf32>
    %250 = vector.shape_cast %249 : vector<1x64xf32> to vector<1x1x1x64xf32>
    %251 = vector.broadcast %250 : vector<1x1x1x64xf32> to vector<1x8x8x64xf32>
    %252 = arith.mulf %248, %251 : vector<1x8x8x64xf32>
    %253 = arith.addf %247, %252 : vector<1x8x8x64xf32>
    %254 = vector.extract_strided_slice %163 {offsets = [0, 0, 1, 0], sizes = [1, 8, 8, 64], strides = [1, 1, 1, 1]} : vector<1x9x9x64xf32> to vector<1x8x8x64xf32>
    %255 = vector.extract_strided_slice %172 {offsets = [4, 0], sizes = [1, 64], strides = [1, 1]} : vector<9x64xf32> to vector<1x64xf32>
    %256 = vector.shape_cast %255 : vector<1x64xf32> to vector<1x1x1x64xf32>
    %257 = vector.broadcast %256 : vector<1x1x1x64xf32> to vector<1x8x8x64xf32>
    %258 = arith.mulf %254, %257 : vector<1x8x8x64xf32>
    %259 = arith.addf %253, %258 : vector<1x8x8x64xf32>
    %260 = vector.extract_strided_slice %159 {offsets = [0, 0, 1, 0], sizes = [1, 8, 8, 64], strides = [1, 1, 1, 1]} : vector<1x9x9x64xf32> to vector<1x8x8x64xf32>
    %261 = vector.extract_strided_slice %172 {offsets = [5, 0], sizes = [1, 64], strides = [1, 1]} : vector<9x64xf32> to vector<1x64xf32>
    %262 = vector.shape_cast %261 : vector<1x64xf32> to vector<1x1x1x64xf32>
    %263 = vector.broadcast %262 : vector<1x1x1x64xf32> to vector<1x8x8x64xf32>
    %264 = arith.mulf %260, %263 : vector<1x8x8x64xf32>
    %265 = arith.addf %259, %264 : vector<1x8x8x64xf32>
    %266 = vector.extract_strided_slice %167 {offsets = [0, 1, 0, 0], sizes = [1, 8, 8, 64], strides = [1, 1, 1, 1]} : vector<1x9x9x64xf32> to vector<1x8x8x64xf32>
    %267 = vector.extract_strided_slice %172 {offsets = [6, 0], sizes = [1, 64], strides = [1, 1]} : vector<9x64xf32> to vector<1x64xf32>
    %268 = vector.shape_cast %267 : vector<1x64xf32> to vector<1x1x1x64xf32>
    %269 = vector.broadcast %268 : vector<1x1x1x64xf32> to vector<1x8x8x64xf32>
    %270 = arith.mulf %266, %269 : vector<1x8x8x64xf32>
    %271 = arith.addf %265, %270 : vector<1x8x8x64xf32>
    %272 = vector.extract_strided_slice %171 {offsets = [0, 1, 1, 0], sizes = [1, 8, 8, 64], strides = [1, 1, 1, 1]} : vector<1x9x9x64xf32> to vector<1x8x8x64xf32>
    %273 = vector.extract_strided_slice %172 {offsets = [7, 0], sizes = [1, 64], strides = [1, 1]} : vector<9x64xf32> to vector<1x64xf32>
    %274 = vector.shape_cast %273 : vector<1x64xf32> to vector<1x1x1x64xf32>
    %275 = vector.broadcast %274 : vector<1x1x1x64xf32> to vector<1x8x8x64xf32>
    %276 = arith.mulf %272, %275 : vector<1x8x8x64xf32>
    %277 = arith.addf %271, %276 : vector<1x8x8x64xf32>
    %278 = vector.extract_strided_slice %167 {offsets = [0, 1, 1, 0], sizes = [1, 8, 8, 64], strides = [1, 1, 1, 1]} : vector<1x9x9x64xf32> to vector<1x8x8x64xf32>
    %279 = vector.extract_strided_slice %172 {offsets = [8, 0], sizes = [1, 64], strides = [1, 1]} : vector<9x64xf32> to vector<1x64xf32>
    %280 = vector.shape_cast %279 : vector<1x64xf32> to vector<1x1x1x64xf32>
    %281 = vector.broadcast %280 : vector<1x1x1x64xf32> to vector<1x8x8x64xf32>
    %282 = arith.mulf %278, %281 : vector<1x8x8x64xf32>
    %283 = arith.addf %277, %282 : vector<1x8x8x64xf32>
    %cst_98 = arith.constant dense<0.000000e+00> : vector<1x8x8xf32>
    %284 = vector.multi_reduction <add>, %283, %cst_98 [3] : vector<1x8x8x64xf32> to vector<1x8x8xf32>
    %285 = vector.shape_cast %173 : vector<1x1xf32> to vector<1x1x1xf32>
    %286 = vector.broadcast %285 : vector<1x1x1xf32> to vector<1x8x8xf32>
    %287 = arith.addf %284, %286 : vector<1x8x8xf32>
    %288 = vector.extract_strided_slice %163 {offsets = [0, 0, 0, 0], sizes = [1, 8, 8, 64], strides = [1, 1, 1, 1]} : vector<1x9x9x64xf32> to vector<1x8x8x64xf32>
    %289 = vector.extract_strided_slice %172 {offsets = [0, 0], sizes = [1, 64], strides = [1, 1]} : vector<9x64xf32> to vector<1x64xf32>
    %290 = vector.shape_cast %289 : vector<1x64xf32> to vector<1x1x1x64xf32>
    %291 = vector.broadcast %290 : vector<1x1x1x64xf32> to vector<1x8x8x64xf32>
    %292 = arith.mulf %288, %291 : vector<1x8x8x64xf32>
    %293 = vector.extract_strided_slice %159 {offsets = [0, 0, 0, 0], sizes = [1, 8, 8, 64], strides = [1, 1, 1, 1]} : vector<1x9x9x64xf32> to vector<1x8x8x64xf32>
    %294 = vector.extract_strided_slice %172 {offsets = [1, 0], sizes = [1, 64], strides = [1, 1]} : vector<9x64xf32> to vector<1x64xf32>
    %295 = vector.shape_cast %294 : vector<1x64xf32> to vector<1x1x1x64xf32>
    %296 = vector.broadcast %295 : vector<1x1x1x64xf32> to vector<1x8x8x64xf32>
    %297 = arith.mulf %293, %296 : vector<1x8x8x64xf32>
    %298 = arith.addf %292, %297 : vector<1x8x8x64xf32>
    %299 = vector.extract_strided_slice %163 {offsets = [0, 0, 1, 0], sizes = [1, 8, 8, 64], strides = [1, 1, 1, 1]} : vector<1x9x9x64xf32> to vector<1x8x8x64xf32>
    %300 = vector.extract_strided_slice %172 {offsets = [2, 0], sizes = [1, 64], strides = [1, 1]} : vector<9x64xf32> to vector<1x64xf32>
    %301 = vector.shape_cast %300 : vector<1x64xf32> to vector<1x1x1x64xf32>
    %302 = vector.broadcast %301 : vector<1x1x1x64xf32> to vector<1x8x8x64xf32>
    %303 = arith.mulf %299, %302 : vector<1x8x8x64xf32>
    %304 = arith.addf %298, %303 : vector<1x8x8x64xf32>
    %305 = vector.extract_strided_slice %171 {offsets = [0, 1, 0, 0], sizes = [1, 8, 8, 64], strides = [1, 1, 1, 1]} : vector<1x9x9x64xf32> to vector<1x8x8x64xf32>
    %306 = vector.extract_strided_slice %172 {offsets = [3, 0], sizes = [1, 64], strides = [1, 1]} : vector<9x64xf32> to vector<1x64xf32>
    %307 = vector.shape_cast %306 : vector<1x64xf32> to vector<1x1x1x64xf32>
    %308 = vector.broadcast %307 : vector<1x1x1x64xf32> to vector<1x8x8x64xf32>
    %309 = arith.mulf %305, %308 : vector<1x8x8x64xf32>
    %310 = arith.addf %304, %309 : vector<1x8x8x64xf32>
    %311 = vector.extract_strided_slice %167 {offsets = [0, 1, 0, 0], sizes = [1, 8, 8, 64], strides = [1, 1, 1, 1]} : vector<1x9x9x64xf32> to vector<1x8x8x64xf32>
    %312 = vector.extract_strided_slice %172 {offsets = [4, 0], sizes = [1, 64], strides = [1, 1]} : vector<9x64xf32> to vector<1x64xf32>
    %313 = vector.shape_cast %312 : vector<1x64xf32> to vector<1x1x1x64xf32>
    %314 = vector.broadcast %313 : vector<1x1x1x64xf32> to vector<1x8x8x64xf32>
    %315 = arith.mulf %311, %314 : vector<1x8x8x64xf32>
    %316 = arith.addf %310, %315 : vector<1x8x8x64xf32>
    %317 = vector.extract_strided_slice %171 {offsets = [0, 1, 1, 0], sizes = [1, 8, 8, 64], strides = [1, 1, 1, 1]} : vector<1x9x9x64xf32> to vector<1x8x8x64xf32>
    %318 = vector.extract_strided_slice %172 {offsets = [5, 0], sizes = [1, 64], strides = [1, 1]} : vector<9x64xf32> to vector<1x64xf32>
    %319 = vector.shape_cast %318 : vector<1x64xf32> to vector<1x1x1x64xf32>
    %320 = vector.broadcast %319 : vector<1x1x1x64xf32> to vector<1x8x8x64xf32>
    %321 = arith.mulf %317, %320 : vector<1x8x8x64xf32>
    %322 = arith.addf %316, %321 : vector<1x8x8x64xf32>
    %323 = vector.extract_strided_slice %163 {offsets = [0, 1, 0, 0], sizes = [1, 8, 8, 64], strides = [1, 1, 1, 1]} : vector<1x9x9x64xf32> to vector<1x8x8x64xf32>
    %324 = vector.extract_strided_slice %172 {offsets = [6, 0], sizes = [1, 64], strides = [1, 1]} : vector<9x64xf32> to vector<1x64xf32>
    %325 = vector.shape_cast %324 : vector<1x64xf32> to vector<1x1x1x64xf32>
    %326 = vector.broadcast %325 : vector<1x1x1x64xf32> to vector<1x8x8x64xf32>
    %327 = arith.mulf %323, %326 : vector<1x8x8x64xf32>
    %328 = arith.addf %322, %327 : vector<1x8x8x64xf32>
    %329 = vector.extract_strided_slice %159 {offsets = [0, 1, 0, 0], sizes = [1, 8, 8, 64], strides = [1, 1, 1, 1]} : vector<1x9x9x64xf32> to vector<1x8x8x64xf32>
    %330 = vector.extract_strided_slice %172 {offsets = [7, 0], sizes = [1, 64], strides = [1, 1]} : vector<9x64xf32> to vector<1x64xf32>
    %331 = vector.shape_cast %330 : vector<1x64xf32> to vector<1x1x1x64xf32>
    %332 = vector.broadcast %331 : vector<1x1x1x64xf32> to vector<1x8x8x64xf32>
    %333 = arith.mulf %329, %332 : vector<1x8x8x64xf32>
    %334 = arith.addf %328, %333 : vector<1x8x8x64xf32>
    %335 = vector.extract_strided_slice %163 {offsets = [0, 1, 1, 0], sizes = [1, 8, 8, 64], strides = [1, 1, 1, 1]} : vector<1x9x9x64xf32> to vector<1x8x8x64xf32>
    %336 = vector.extract_strided_slice %172 {offsets = [8, 0], sizes = [1, 64], strides = [1, 1]} : vector<9x64xf32> to vector<1x64xf32>
    %337 = vector.shape_cast %336 : vector<1x64xf32> to vector<1x1x1x64xf32>
    %338 = vector.broadcast %337 : vector<1x1x1x64xf32> to vector<1x8x8x64xf32>
    %339 = arith.mulf %335, %338 : vector<1x8x8x64xf32>
    %340 = arith.addf %334, %339 : vector<1x8x8x64xf32>
    %cst_99 = arith.constant dense<0.000000e+00> : vector<1x8x8xf32>
    %341 = vector.multi_reduction <add>, %340, %cst_99 [3] : vector<1x8x8x64xf32> to vector<1x8x8xf32>
    %342 = vector.shape_cast %173 : vector<1x1xf32> to vector<1x1x1xf32>
    %343 = vector.broadcast %342 : vector<1x1x1xf32> to vector<1x8x8xf32>
    %344 = arith.addf %341, %343 : vector<1x8x8xf32>
    %345 = vector.extract_strided_slice %159 {offsets = [0, 0, 0, 0], sizes = [1, 8, 8, 64], strides = [1, 1, 1, 1]} : vector<1x9x9x64xf32> to vector<1x8x8x64xf32>
    %346 = vector.extract_strided_slice %172 {offsets = [0, 0], sizes = [1, 64], strides = [1, 1]} : vector<9x64xf32> to vector<1x64xf32>
    %347 = vector.shape_cast %346 : vector<1x64xf32> to vector<1x1x1x64xf32>
    %348 = vector.broadcast %347 : vector<1x1x1x64xf32> to vector<1x8x8x64xf32>
    %349 = arith.mulf %345, %348 : vector<1x8x8x64xf32>
    %350 = vector.extract_strided_slice %163 {offsets = [0, 0, 1, 0], sizes = [1, 8, 8, 64], strides = [1, 1, 1, 1]} : vector<1x9x9x64xf32> to vector<1x8x8x64xf32>
    %351 = vector.extract_strided_slice %172 {offsets = [1, 0], sizes = [1, 64], strides = [1, 1]} : vector<9x64xf32> to vector<1x64xf32>
    %352 = vector.shape_cast %351 : vector<1x64xf32> to vector<1x1x1x64xf32>
    %353 = vector.broadcast %352 : vector<1x1x1x64xf32> to vector<1x8x8x64xf32>
    %354 = arith.mulf %350, %353 : vector<1x8x8x64xf32>
    %355 = arith.addf %349, %354 : vector<1x8x8x64xf32>
    %356 = vector.extract_strided_slice %159 {offsets = [0, 0, 1, 0], sizes = [1, 8, 8, 64], strides = [1, 1, 1, 1]} : vector<1x9x9x64xf32> to vector<1x8x8x64xf32>
    %357 = vector.extract_strided_slice %172 {offsets = [2, 0], sizes = [1, 64], strides = [1, 1]} : vector<9x64xf32> to vector<1x64xf32>
    %358 = vector.shape_cast %357 : vector<1x64xf32> to vector<1x1x1x64xf32>
    %359 = vector.broadcast %358 : vector<1x1x1x64xf32> to vector<1x8x8x64xf32>
    %360 = arith.mulf %356, %359 : vector<1x8x8x64xf32>
    %361 = arith.addf %355, %360 : vector<1x8x8x64xf32>
    %362 = vector.extract_strided_slice %167 {offsets = [0, 1, 0, 0], sizes = [1, 8, 8, 64], strides = [1, 1, 1, 1]} : vector<1x9x9x64xf32> to vector<1x8x8x64xf32>
    %363 = vector.extract_strided_slice %172 {offsets = [3, 0], sizes = [1, 64], strides = [1, 1]} : vector<9x64xf32> to vector<1x64xf32>
    %364 = vector.shape_cast %363 : vector<1x64xf32> to vector<1x1x1x64xf32>
    %365 = vector.broadcast %364 : vector<1x1x1x64xf32> to vector<1x8x8x64xf32>
    %366 = arith.mulf %362, %365 : vector<1x8x8x64xf32>
    %367 = arith.addf %361, %366 : vector<1x8x8x64xf32>
    %368 = vector.extract_strided_slice %171 {offsets = [0, 1, 1, 0], sizes = [1, 8, 8, 64], strides = [1, 1, 1, 1]} : vector<1x9x9x64xf32> to vector<1x8x8x64xf32>
    %369 = vector.extract_strided_slice %172 {offsets = [4, 0], sizes = [1, 64], strides = [1, 1]} : vector<9x64xf32> to vector<1x64xf32>
    %370 = vector.shape_cast %369 : vector<1x64xf32> to vector<1x1x1x64xf32>
    %371 = vector.broadcast %370 : vector<1x1x1x64xf32> to vector<1x8x8x64xf32>
    %372 = arith.mulf %368, %371 : vector<1x8x8x64xf32>
    %373 = arith.addf %367, %372 : vector<1x8x8x64xf32>
    %374 = vector.extract_strided_slice %167 {offsets = [0, 1, 1, 0], sizes = [1, 8, 8, 64], strides = [1, 1, 1, 1]} : vector<1x9x9x64xf32> to vector<1x8x8x64xf32>
    %375 = vector.extract_strided_slice %172 {offsets = [5, 0], sizes = [1, 64], strides = [1, 1]} : vector<9x64xf32> to vector<1x64xf32>
    %376 = vector.shape_cast %375 : vector<1x64xf32> to vector<1x1x1x64xf32>
    %377 = vector.broadcast %376 : vector<1x1x1x64xf32> to vector<1x8x8x64xf32>
    %378 = arith.mulf %374, %377 : vector<1x8x8x64xf32>
    %379 = arith.addf %373, %378 : vector<1x8x8x64xf32>
    %380 = vector.extract_strided_slice %159 {offsets = [0, 1, 0, 0], sizes = [1, 8, 8, 64], strides = [1, 1, 1, 1]} : vector<1x9x9x64xf32> to vector<1x8x8x64xf32>
    %381 = vector.extract_strided_slice %172 {offsets = [6, 0], sizes = [1, 64], strides = [1, 1]} : vector<9x64xf32> to vector<1x64xf32>
    %382 = vector.shape_cast %381 : vector<1x64xf32> to vector<1x1x1x64xf32>
    %383 = vector.broadcast %382 : vector<1x1x1x64xf32> to vector<1x8x8x64xf32>
    %384 = arith.mulf %380, %383 : vector<1x8x8x64xf32>
    %385 = arith.addf %379, %384 : vector<1x8x8x64xf32>
    %386 = vector.extract_strided_slice %163 {offsets = [0, 1, 1, 0], sizes = [1, 8, 8, 64], strides = [1, 1, 1, 1]} : vector<1x9x9x64xf32> to vector<1x8x8x64xf32>
    %387 = vector.extract_strided_slice %172 {offsets = [7, 0], sizes = [1, 64], strides = [1, 1]} : vector<9x64xf32> to vector<1x64xf32>
    %388 = vector.shape_cast %387 : vector<1x64xf32> to vector<1x1x1x64xf32>
    %389 = vector.broadcast %388 : vector<1x1x1x64xf32> to vector<1x8x8x64xf32>
    %390 = arith.mulf %386, %389 : vector<1x8x8x64xf32>
    %391 = arith.addf %385, %390 : vector<1x8x8x64xf32>
    %392 = vector.extract_strided_slice %159 {offsets = [0, 1, 1, 0], sizes = [1, 8, 8, 64], strides = [1, 1, 1, 1]} : vector<1x9x9x64xf32> to vector<1x8x8x64xf32>
    %393 = vector.extract_strided_slice %172 {offsets = [8, 0], sizes = [1, 64], strides = [1, 1]} : vector<9x64xf32> to vector<1x64xf32>
    %394 = vector.shape_cast %393 : vector<1x64xf32> to vector<1x1x1x64xf32>
    %395 = vector.broadcast %394 : vector<1x1x1x64xf32> to vector<1x8x8x64xf32>
    %396 = arith.mulf %392, %395 : vector<1x8x8x64xf32>
    %397 = arith.addf %391, %396 : vector<1x8x8x64xf32>
    %cst_100 = arith.constant dense<0.000000e+00> : vector<1x8x8xf32>
    %398 = vector.multi_reduction <add>, %397, %cst_100 [3] : vector<1x8x8x64xf32> to vector<1x8x8xf32>
    %399 = vector.shape_cast %173 : vector<1x1xf32> to vector<1x1x1xf32>
    %400 = vector.broadcast %399 : vector<1x1x1xf32> to vector<1x8x8xf32>
    %401 = arith.addf %398, %400 : vector<1x8x8xf32>
    %402 = vector.shape_cast %230 : vector<1x8x8xf32> to vector<1x1x8x8xf32>
    %403 = vector.shape_cast %287 : vector<1x8x8xf32> to vector<1x1x8x8xf32>
    %404 = vector.shape_cast %344 : vector<1x8x8xf32> to vector<1x1x8x8xf32>
    %405 = vector.shape_cast %401 : vector<1x8x8xf32> to vector<1x1x8x8xf32>
    %406 = tpu.concatenate %402, %403, %404, %405 in 1 : vector<1x1x8x8xf32>, vector<1x1x8x8xf32>, vector<1x1x8x8xf32>, vector<1x1x8x8xf32> -> vector<1x4x8x8xf32>
    %407 = vector.shape_cast %406 : vector<1x4x8x8xf32> to vector<1x256xf32>
    %408 = vector.shape_cast %407 : vector<1x256xf32> to vector<1x1x256xf32>
    %c0_101 = arith.constant 0 : index
    %c0_102 = arith.constant 0 : index
    %c0_103 = arith.constant 0 : index
    %409 = vector.load %arg10[%c0_101, %c0_102, %c0_103] : memref<1x1x256xf32, #tpu.memory_space<vmem>>, vector<1x1x256xf32>
    tpu.vector_store %arg10[%c0_101, %c0_102, %c0_103], %408 {strides = array<i32>} : memref<1x1x256xf32, #tpu.memory_space<vmem>>, vector<1x1x256xf32>,
    return
  }
  func.func @transform_0(%arg0: i32) -> (i32, i32, i32) {
    %c0_i32 = arith.constant 0 : i32
    %c0_i32_0 = arith.constant 0 : i32
    %c0_i32_1 = arith.constant 0 : i32
    return %arg0, %c0_i32, %c0_i32_0 : i32, i32, i32
  }
  func.func @transform_1(%arg0: i32) -> (i32, i32) {
    %c0_i32 = arith.constant 0 : i32
    %c0_i32_0 = arith.constant 0 : i32
    %c0_i32_1 = arith.constant 0 : i32
    return %c0_i32, %c0_i32_0 : i32, i32
  }
  func.func @transform_2(%arg0: i32) -> (i32, i32) {
    %c0_i32 = arith.constant 0 : i32
    %c0_i32_0 = arith.constant 0 : i32
    %c0_i32_1 = arith.constant 0 : i32
    return %c0_i32, %c0_i32_0 : i32, i32
  }
  func.func @transform_3(%arg0: i32) -> (i32, i32, i32) {
    %c0_i32 = arith.constant 0 : i32
    %c0_i32_0 = arith.constant 0 : i32
    %c0_i32_1 = arith.constant 0 : i32
    %c0_i32_2 = arith.constant 0 : i32
    return %c0_i32, %c0_i32_0, %c0_i32_1 : i32, i32, i32
  }
  func.func @transform_4(%arg0: i32) -> (i32, i32) {
    %c0_i32 = arith.constant 0 : i32
    %c0_i32_0 = arith.constant 0 : i32
    %c0_i32_1 = arith.constant 0 : i32
    return %c0_i32, %c0_i32_0 : i32, i32
  }
  func.func @transform_5(%arg0: i32) -> (i32, i32, i32) {
    %c0_i32 = arith.constant 0 : i32
    %c0_i32_0 = arith.constant 0 : i32
    %c0_i32_1 = arith.constant 0 : i32
    %c0_i32_2 = arith.constant 0 : i32
    return %c0_i32, %c0_i32_0, %c0_i32_1 : i32, i32, i32
  }
  func.func @transform_6(%arg0: i32) -> (i32, i32) {
    %c0_i32 = arith.constant 0 : i32
    %c0_i32_0 = arith.constant 0 : i32
    %c0_i32_1 = arith.constant 0 : i32
    return %c0_i32, %c0_i32_0 : i32, i32
  }
  func.func @transform_7(%arg0: i32) -> (i32, i32) {
    %c0_i32 = arith.constant 0 : i32
    %c0_i32_0 = arith.constant 0 : i32
    %c0_i32_1 = arith.constant 0 : i32
    return %c0_i32, %c0_i32_0 : i32, i32
  }
  func.func @transform_8(%arg0: i32) -> (i32, i32) {
    %c0_i32 = arith.constant 0 : i32
    %c0_i32_0 = arith.constant 0 : i32
    %c0_i32_1 = arith.constant 0 : i32
    return %c0_i32, %c0_i32_0 : i32, i32
  }
  func.func @transform_9(%arg0: i32) -> (i32, i32, i32) {
    %c0_i32 = arith.constant 0 : i32
    %c0_i32_0 = arith.constant 0 : i32
    %c0_i32_1 = arith.constant 0 : i32
    return %arg0, %c0_i32, %c0_i32_0 : i32, i32, i32
  }
}

</mosaic_0001>

<bundles_post_ra>
// kernel: unet_forward.1
= control target key start
LH: loop header
LB: loop body
LE: loop exit
PB: predicated region body
PF: predicated region fallthrough
CT: control target
= control target key end

     0   :  { %s5802_s11 = smov 0   ;;  %s9766_s0 = inlined_call_operand.vmem [shape: f32[2,256,9], index: 0, kind: input, shape index: {}]   ;;  %s9767_s1 = inlined_call_operand.vmem [shape: f32[9,64], index: 1, kind: input, shape index: {}]   ;;  %s9768_s2 = inlined_call_operand.vmem [shape: f32[1,64], index: 2, kind: input, shape index: {}]   ;;  %s9769_s3 = inlined_call_operand.vmem [shape: f32[9,64,128], index: 3, kind: input, shape index: {}]   ;;  %s9770_s4 = inlined_call_operand.vmem [shape: f32[1,128], index: 4, kind: input, shape index: {}]   ;;  %s9771_s5 = inlined_call_operand.vmem [shape: f32[9,128,256], index: 5, kind: input, shape index: {}]   ;;  %s9772_s6 = inlined_call_operand.vmem [shape: f32[1,256], index: 6, kind: input, shape index: {}]   ;;  %s9773_s7 = inlined_call_operand.vmem [shape: f32[9,64], index: 7, kind: input, shape index: {}]   ;;  %s9774_s8 = inlined_call_operand.<no memory space> [shape: f32[1,1], index: 8, kind: input, shape index: {}]   ;;  %s9775_s9 = inlined_call_operand.vmem [shape: f32[2,1,256], index: 9, kind: output, shape index: {}]  }
   0x1   :  { %v14_v0 = vstv %s9774_s8 }
   0x2   :  { %15 = vst [vmem:[#allocation2] sm:$0x1] %v14_v0 }
   0x3 LB: > { %s5171_s12 = sadd.s32 4294967295, %s5744_s11   ;;  %p5175_p0 = scmp.ge.s32.totalorder %s5744_s11, 1  ;;  %s5744_s11 = sphi %s5802_s11, %s21_s11  }
   0x4   : > { %p289_p1 = scmp.lt.s32.totalorder %s5744_s11, 3 }
   0x6   : > { %p290_p2 = pnand %p5175_p0, %p289_p1 }
   0x8   : > { %293 = sbr.rel (%p290_p2) target bundleno = 1915 (0x77b), region = 56 }
   0xd   : > { %v366_v1 = vld [vmem:[%s9767_s1 + $0x8] sm:$0x1]  ;;  %vm468_vm0 = vcmask 1040384   ;;  %v365_v2 = vld [vmem:[%s9767_s1] sm:$0xff]  ;;  %p324_p3 = scmp.lt.s32.totalorder %s5171_s12, 1  ;;  %vm371_vm1 = vcmask 72704  }
   0xe   : > { %5179 = vmatpush.msk.msra.mxu0 %vm468_vm0, %v366_v1  ;;  %v5219_v39 = vld [vmem:[%s9769_s3 + $0x78] sm:$0xff]  ;;  %v5218_v40 = vld [vmem:[%s9769_s3 + $0x70] sm:$0xff]  ;;  %v5217_v43 = vld [vmem:[%s9769_s3 + $0x68] sm:$0xff]  ;;  %v5746_v51 = vmov 0.0   ;;  %vm702_vm2 = vcmask 523264   ;;  %vm832_vm3 = vcmask 1046528  }
   0xf   : > { %s10080_s12 = smov (!%p324_p3, %s5171_s12), 1  ;;  %734 = vmatpush.msra.mxu1 %v5219_v39  ;;  %v5216_v44 = vld [vmem:[%s9769_s3 + $0x60] sm:$0xff]  ;;  %v5215_v45 = vld [vmem:[%s9769_s3 + $0x58] sm:$0xff]  ;;  %v5214_v46 = vld [vmem:[%s9769_s3 + $0x50] sm:$0xff]  ;;  %vm1714_vm5 = vcmask 1045504   ;;  %s5747_s29 = smov 64  }
  0x10   : > { %487 = vmatpush.msra.mxu0 %v365_v2  ;;  %s5701_s16 = sshll.u32 %s10080_s12, 8  ;;  %v5213_v49 = vld [vmem:[%s9769_s3 + $0x48] sm:$0xff]  ;;  %v5212_v50 = vld [vmem:[%s9769_s3 + $0x40] sm:$0xff]  ;;  %vm6755_vm4 = vmneg %vm468_vm0  ;;  %vm5021_vm6 = vcmask 130112   ;;  %vm5025_vm7 = vcmask 195712   ;;  %vm5029_vm8 = vcmask 261312  }
  0x11   : > { %s5823_s19 = scalar_lea.vmem %s9766_s0, %s5701_s16  ;;  %735 = vmatpush.msra.mxu1 %v5218_v40  ;;  %v5946_v59 = vld [vmem:[%s9768_s2] ss:$0 sm:$0xff]  ;;  %vm5033_vm9 = vcmask 326912   ;;  %vm5037_vm10 = vcmask 392512   ;;  %vm5041_vm11 = vcmask 458112   ;;  %vm5045_vm12 = vcmask 523712  }
  0x12   : > { %v333_v3 = vld [vmem:[%s5823_s19] sm:$0xff]  ;;  %v334_v4 = vld [vmem:[%s5823_s19 + $0x8] sm:$0xff]  ;;  %v335_v5 = vld [vmem:[%s5823_s19 + $0x10] sm:$0xff]  ;;  %vm5049_vm13 = vcmask 589312   ;;  %vm5053_vm14 = vcmask 654912   ;;  %vm5057_vm15 = vcmask 720512  }
  0x13   : > { %5180 = vmatmul.msk.f32.vlgmr.msra.gmra.mxu0 %vm371_vm1, %v333_v3  ;;  %v336_v6 = vld [vmem:[%s5823_s19 + $0x18] sm:$0xff]  ;;  %v337_v7 = vld [vmem:[%s5823_s19 + $0x20] sm:$0xff]  ;;  %v338_v8 = vld [vmem:[%s5823_s19 + $0x28] sm:$0xff]  ;;  %736 = vmatpush.msra.mxu1 %v5217_v43  ;;  %s5178_s17 = sshll.u32 %s10080_s12, 1 }
  0x14   : > { %v339_v9 = vld [vmem:[%s5823_s19 + $0x30] sm:$0xff]  ;;  %v340_v10 = vld [vmem:[%s5823_s19 + $0x38] sm:$0xff]  ;;  %v341_v11 = vld [vmem:[%s5823_s19 + $0x40] sm:$0xff]  ;;  %s332_s21 = scalar_lea.vmem %s9775_s9, %s5178_s17 }
  0x15   : > { %v342_v12 = vld [vmem:[%s5823_s19 + $0x48] sm:$0xff]  ;;  %v343_v13 = vld [vmem:[%s5823_s19 + $0x50] sm:$0xff]  ;;  %v344_v14 = vld [vmem:[%s5823_s19 + $0x58] sm:$0xff]  ;;  %737 = vmatpush.msra.mxu1 %v5216_v44 }
  0x16   : > { %v345_v15 = vld [vmem:[%s5823_s19 + $0x60] sm:$0xff]  ;;  %v346_v16 = vld [vmem:[%s5823_s19 + $0x68] sm:$0xff]  ;;  %v347_v17 = vld [vmem:[%s5823_s19 + $0x70] sm:$0xff] }
  0x17   : > { %v348_v18 = vld [vmem:[%s5823_s19 + $0x78] sm:$0xff]  ;;  %v349_v20 = vld [vmem:[%s5823_s19 + $0x80] sm:$0xff]  ;;  %v350_v22 = vld [vmem:[%s5823_s19 + $0x88] sm:$0xff]  ;;  %738 = vmatpush.msra.mxu1 %v5215_v45 }
  0x18   : > { %v351_v24 = vld [vmem:[%s5823_s19 + $0x90] sm:$0xff]  ;;  %v352_v26 = vld [vmem:[%s5823_s19 + $0x98] sm:$0xff]  ;;  %v353_v28 = vld [vmem:[%s5823_s19 + $0xa0] sm:$0xff] }
  0x19   : > { %v354_v30 = vld [vmem:[%s5823_s19 + $0xa8] sm:$0xff]  ;;  %v355_v32 = vld [vmem:[%s5823_s19 + $0xb0] sm:$0xff]  ;;  %v356_v34 = vld [vmem:[%s5823_s19 + $0xb8] sm:$0xff]  ;;  %739 = vmatpush.msra.mxu1 %v5214_v46 }
  0x1a   : > { %v357_v36 = vld [vmem:[%s5823_s19 + $0xc0] sm:$0xff]  ;;  %v358_v38 = vld [vmem:[%s5823_s19 + $0xc8] sm:$0xff]  ;;  %v359_v42 = vld [vmem:[%s5823_s19 + $0xd0] sm:$0xff] }
  0x1b   : > { %5181 = vmatmul.msk.f32.gmra.mxu0 %vm371_vm1, %v334_v4  ;;  %v360_v48 = vld [vmem:[%s5823_s19 + $0xd8] sm:$0xff]  ;;  %740 = vmatpush.msra.mxu1 %v5213_v49  ;;  %v361_v53 = vld [vmem:[%s5823_s19 + $0xe0] sm:$0xff]  ;;  %v362_v55 = vld [vmem:[%s5823_s19 + $0xe8] sm:$0xff] }
  0x1c   : > { %v363_v57 = vld [vmem:[%s5823_s19 + $0xf0] sm:$0xff]  ;;  %v692_v3 = vld [vmem:[%s9769_s3 + $0x38] sm:$0xff]  ;;  %v5235_v40 = vld [vmem:[%s9769_s3 + $0x80] sm:$0xff] }
  0x1d   : > { %741 = vmatpush.msra.mxu1 %v5212_v50  ;;  %5702 = vmatpush.msra.mxu2 %v692_v3  ;;  %v5257_v43 = vld [vmem:[%s9769_s3 + $0xf0] sm:$0xff]  ;;  %v5256_v45 = vld [vmem:[%s9769_s3 + $0xe8] sm:$0xff]  ;;  %v5255_v46 = vld [vmem:[%s9769_s3 + $0xe0] sm:$0xff] }
  0x1e   : > { %742 = vmatmul.f32.vlgmr.msra.gmra.mxu1 %v5746_v51  ;;  %v5254_v50 = vld [vmem:[%s9769_s3 + $0xd8] sm:$0xff] }
  0x1f   : > { %799 = vmatpush.msrb.mxu1 %v692_v3 }
  0x23   : > { %5182 = vmatmul.msk.f32.gmra.mxu0 %vm371_vm1, %v335_v5  ;;  %v691_v5 = vld [vmem:[%s9769_s3 + $0x30] sm:$0xff] }
  0x24   : > { %800 = vmatpush.msrb.mxu1 %v691_v5  ;;  %5703 = vmatpush.msra.mxu2 %v691_v5 }
  0x2b   : > { %5183 = vmatmul.msk.f32.gmra.mxu0 %vm371_vm1, %v336_v6 }
  0x33   : > { %5184 = vmatmul.msk.f32.gmra.mxu0 %vm371_vm1, %v337_v7  ;;  %v5242_v7 = vld [vmem:[%s9769_s3 + $0xb8] sm:$0xff] }
  0x34   : > { %890 = vmatpush.msra.mxu3 %v5242_v7  ;;  %v364_v7 = vld [vmem:[%s5823_s19 + $0xf8] sm:$0xff] }
  0x3b   : > { %5185 = vmatmul.msk.f32.gmra.mxu0 %vm371_vm1, %v338_v8  ;;  %v690_v8 = vld [vmem:[%s9769_s3 + $0x28] sm:$0xff] }
  0x3c   : > { %5704 = vmatpush.msra.mxu2 %v690_v8  ;;  %801 = vmatpush.msrb.mxu1 %v690_v8  ;;  %v5288_v8 = vld [vmem:[%s9769_s3 + $0x168] sm:$0xff] }
  0x43   : > { %5186 = vmatmul.msk.f32.gmra.mxu0 %vm371_vm1, %v339_v9  ;;  %v5241_v9 = vld [vmem:[%s9769_s3 + $0xb0] sm:$0xff] }
  0x44   : > { %891 = vmatpush.msra.mxu3 %v5241_v9 }
  0x4b   : > { %5187 = vmatmul.msk.f32.gmra.mxu0 %vm371_vm1, %v340_v10  ;;  %v689_v10 = vld [vmem:[%s9769_s3 + $0x20] sm:$0xff] }
  0x4c   : > { %5705 = vmatpush.msra.mxu2 %v689_v10  ;;  %802 = vmatpush.msrb.mxu1 %v689_v10  ;;  %v5287_v10 = vld [vmem:[%s9769_s3 + $0x160] sm:$0xff] }
  0x53   : > { %5188 = vmatmul.msk.f32.gmra.mxu0 %vm371_vm1, %v341_v11  ;;  %v5240_v11 = vld [vmem:[%s9769_s3 + $0xa8] sm:$0xff] }
  0x54   : > { %892 = vmatpush.msra.mxu3 %v5240_v11 }
  0x5b   : > { %5189 = vmatmul.msk.f32.gmra.mxu0 %vm371_vm1, %v342_v12 }
  0x63   : > { %5190 = vmatmul.msk.f32.gmra.mxu0 %vm371_vm1, %v343_v13  ;;  %v688_v13 = vld [vmem:[%s9769_s3 + $0x18] sm:$0xff] }
  0x64   : > { %5706 = vmatpush.msra.mxu2 %v688_v13  ;;  %803 = vmatpush.msrb.mxu1 %v688_v13 }
  0x6b   : > { %5191 = vmatmul.msk.f32.gmra.mxu0 %vm371_vm1, %v344_v14 }
  0x73   : > { %5192 = vmatmul.msk.f32.gmra.mxu0 %vm371_vm1, %v345_v15  ;;  %v5239_v15 = vld [vmem:[%s9769_s3 + $0xa0] sm:$0xff] }
  0x74   : > { %893 = vmatpush.msra.mxu3 %v5239_v15 }
  0x7b   : > { %5193 = vmatmul.msk.f32.gmra.mxu0 %vm371_vm1, %v346_v16  ;;  %v687_v16 = vld [vmem:[%s9769_s3 + $0x10] sm:$0xff] }
  0x7c   : > { %5707 = vmatpush.msra.mxu2 %v687_v16  ;;  %804 = vmatpush.msrb.mxu1 %v687_v16 }
  0x83   : > { %5194 = vmatmul.msk.f32.gmra.mxu0 %vm371_vm1, %v347_v17  ;;  %v6002_v17 = vrot.slane %v5746_v51, 7 }
  0x85   : > { %9855 = vst [vmem:[#allocation3_spill] sm:$0xff] %v6002_v17 }
  0x8b   : > { %5195 = vmatmul.msk.f32.gmra.mxu0 %vm371_vm1, %v348_v18 }
  0x90   : > { %v5857_v19 = vpop.f32.mrf.mxu0 }
  0x93   : > { %5196 = vmatmul.msk.f32.gmra.mxu0 %vm371_vm1, %v349_v20  ;;  %v5238_v20 = vld [vmem:[%s9769_s3 + $0x98] sm:$0xff] }
  0x94   : > { %894 = vmatpush.msra.mxu3 %v5238_v20 }
  0x98   : > { %v5861_v21 = vpop.f32.mrf.mxu0 }
  0x9b   : > { %5197 = vmatmul.msk.f32.gmra.mxu0 %vm371_vm1, %v350_v22  ;;  %v686_v22 = vld [vmem:[%s9769_s3 + $0x8] sm:$0xff] }
  0x9c   : > { %5708 = vmatpush.msra.mxu2 %v686_v22  ;;  %805 = vmatpush.msrb.mxu1 %v686_v22 }
  0xa0   : > { %v5865_v23 = vpop.f32.mrf.mxu0 }
  0xa3   : > { %5198 = vmatmul.msk.f32.gmra.mxu0 %vm371_vm1, %v351_v24  ;;  %v5237_v24 = vld [vmem:[%s9769_s3 + $0x90] sm:$0xff] }
  0xa4   : > { %895 = vmatpush.msra.mxu3 %v5237_v24 }
  0xa8   : > { %v5869_v25 = vpop.f32.mrf.mxu0 }
  0xab   : > { %5199 = vmatmul.msk.f32.gmra.mxu0 %vm371_vm1, %v352_v26  ;;  %v685_v26 = vld [vmem:[%s9769_s3] sm:$0xff] }
  0xac   : > { %5709 = vmatpush.msra.mxu2 %v685_v26  ;;  %806 = vmatpush.msrb.mxu1 %v685_v26  ;;  %v5286_v26 = vld [vmem:[%s9769_s3 + $0x158] sm:$0xff] }
  0xb0   : > { %v5873_v27 = vpop.f32.mrf.mxu0 }
  0xb3   : > { %5200 = vmatmul.msk.f32.gmra.mxu0 %vm371_vm1, %v353_v28  ;;  %v6022_v28 = vsel %vm468_vm0, 0.0, %v6002_v17 }
  0xb8   : > { %v5877_v29 = vpop.f32.mrf.mxu0 }
  0xbb   : > { %5201 = vmatmul.msk.f32.gmra.mxu0 %vm371_vm1, %v354_v30  ;;  %v5236_v30 = vld [vmem:[%s9769_s3 + $0x88] sm:$0xff] }
  0xbc   : > { %896 = vmatpush.msra.mxu3 %v5236_v30 }
  0xbe   : > { %897 = vmatpush.msra.mxu3 %v5235_v40 }
  0xc0   : > { %v5881_v31 = vpop.f32.mrf.mxu0 }
  0xc3   : > { %5202 = vmatmul.msk.f32.gmra.mxu0 %vm371_vm1, %v355_v32 }
  0xc8   : > { %v5885_v33 = vpop.f32.mrf.mxu0 }
  0xcb   : > { %5203 = vmatmul.msk.f32.gmra.mxu0 %vm371_vm1, %v356_v34  ;;  %v5258_v34 = vld [vmem:[%s9769_s3 + $0xf8] sm:$0xff] }
  0xcc   : > { %972 = vmatpush.msra.mxu1 %v5258_v34 }
  0xce   : > { %973 = vmatpush.msra.mxu1 %v5257_v43 }
  0xd0   : > { %v5889_v35 = vpop.f32.mrf.mxu0  ;;  %974 = vmatpush.msra.mxu1 %v5256_v45 }
  0xd1   : > { %v514_v13 = vadd.f32 %v5946_v59, %v5889_v35 }
  0xd2   : > { %975 = vmatpush.msra.mxu1 %v5255_v46 }
  0xd3   : > { %5204 = vmatmul.msk.f32.gmra.mxu0 %vm371_vm1, %v357_v36  ;;  %v9776_v36 = vrot.slane %v6022_v28, 1  ;;  %v593_v20 = vmax.f32 %v514_v13, 0.0  ;;  %v5271_v13 = vld [vmem:[%s9769_s3 + $0x120] sm:$0xff] }
  0xd4   : > { %976 = vmatpush.msra.mxu1 %v5254_v50  ;;  %v5285_v50 = vld [vmem:[%s9769_s3 + $0x150] sm:$0xff] }
  0xd8   : > { %v5893_v37 = vpop.f32.mrf.mxu0 }
  0xd9   : > { %v517_v40 = vadd.f32 %v5946_v59, %v5893_v37 }
  0xdb   : > { %5205 = vmatmul.msk.f32.gmra.mxu0 %vm371_vm1, %v358_v38  ;;  %v834_v38 = vrot.slane %v6002_v17, 1  ;;  %v594_v46 = vmax.f32 %v517_v40, 0.0 }
  0xe0   : > { %v5903_v41 = vpop.f32.mrf.mxu0 }
  0xe3   : > { %5206 = vmatmul.msk.f32.gmra.mxu0 %vm371_vm1, %v359_v42  ;;  %v835_v42 = vsel %vm832_vm3, %v9776_v36, %v834_v38  ;;  %v6115_v38 = vrot.slane %v593_v20, 7 }
  0xe4   : > { %5243 = vmatmul.msk.f32.vlgmr.msra.gmra.mxu3 %vm702_vm2, %v835_v42 }
  0xe5   : > { %v6123_v45 = vsel %vm468_vm0, 0.0, %v6115_v38 }
  0xe8   : > { %v5919_v47 = vpop.f32.mrf.mxu0 }
  0xeb   : > { %5207 = vmatmul.msk.f32.gmra.mxu0 %vm371_vm1, %v360_v48  ;;  %v5290_v48 = vld [vmem:[%s9769_s3 + $0x178] sm:$0xff] }
  0xec   : > { %1152 = vmatpush.msrb.mxu3 %v5290_v48 }
  0xf0   : > { %v5929_v52 = vpop.f32.mrf.mxu0 }
  0xf3   : > { %5208 = vmatmul.msk.f32.gmra.mxu0 %vm371_vm1, %v361_v53  ;;  %v5253_v53 = vld [vmem:[%s9769_s3 + $0xd0] sm:$0xff] }
  0xf4   : > { %977 = vmatpush.msra.mxu1 %v5253_v53 }
  0xf8   : > { %v5933_v54 = vpop.f32.mrf.mxu0 }
  0xfb   : > { %5209 = vmatmul.msk.f32.gmra.mxu0 %vm371_vm1, %v362_v55 }
 0x100   : > { %v5937_v56 = vpop.f32.mrf.mxu0 }
 0x103   : > { %5210 = vmatmul.msk.f32.gmra.mxu0 %vm371_vm1, %v363_v57  ;;  %v5252_v57 = vld [vmem:[%s9769_s3 + $0xc8] sm:$0xff] }
 0x104   : > { %978 = vmatpush.msra.mxu1 %v5252_v57  ;;  %v5274_v57 = vld [vmem:[%s9769_s3 + $0x138] sm:$0xff] }
 0x105   : > { %1054 = vmatpush.msrb.mxu2 %v5274_v57 }
 0x108   : > { %v5941_v58 = vpop.f32.mrf.mxu0 }
 0x10b   : > { %5211 = vmatmul.msk.f32.gmra.mxu0 %vm371_vm1, %v364_v7  ;;  %v6146_v7 = vrot.slane %v594_v46, 7  ;;  %v523_v46 = vadd.f32 %v5946_v59, %v5919_v47  ;;  %vm5061_vm1 = vcmask 786112  }
 0x10d   : > { %v596_v47 = vmax.f32 %v523_v46, 0.0 }
 0x110   : > { %v537_v60 = vpop.f32.mrf.mxu0 }
 0x111   : > { %v5949_v61 = vadd.f32 %v5946_v59, %v537_v60  ;;  %v5251_v60 = vld [vmem:[%s9769_s3 + $0xc0] sm:$0xff] }
 0x112   : > { %979 = vmatpush.msra.mxu1 %v5251_v60 }
 0x113   : > { %v601_v62 = vmax.f32 %v5949_v61, 0.0 }
 0x115   : > { %5220 = vmatmul.msk.f32.gmra.mxu1 %vm702_vm2, %v601_v62 }
 0x118   : > { %v540_v63 = vpop.f32.mrf.mxu0 }
 0x119   : > { %v5956_v0 = vadd.f32 %v5946_v59, %v540_v63  ;;  %v5289_v63 = vld [vmem:[%s9769_s3 + $0x170] sm:$0xff] }
 0x11a   : > { %1153 = vmatpush.msrb.mxu3 %v5289_v63 }
 0x11b   : > { %v602_v1 = vmax.f32 %v5956_v0, 0.0 }
 0x11c   : > { %1154 = vmatpush.msrb.mxu3 %v5288_v8  ;;  %v520_v8 = vadd.f32 %v5946_v59, %v5903_v41  ;;  %v6163_v41 = vsel %vm468_vm0, 0.0, %v6146_v7 }
 0x11d   : > { %5221 = vmatmul.msk.f32.gmra.mxu1 %vm702_vm2, %v602_v1 }
 0x11e   : > { %1155 = vmatpush.msrb.mxu3 %v5287_v10 }
 0x120   : > { %v543_v2 = vpop.f32.mrf.mxu0  ;;  %1156 = vmatpush.msrb.mxu3 %v5286_v26 }
 0x121   : > { %v5966_v4 = vadd.f32 %v5946_v59, %v543_v2 }
 0x122   : > { %1157 = vmatpush.msrb.mxu3 %v5285_v50  ;;  %v5283_v50 = vld [vmem:[%s9769_s3 + $0x140] sm:$0xff] }
 0x123   : > { %v603_v6 = vmax.f32 %v5966_v4, 0.0 }
 0x125   : > { %5222 = vmatmul.msk.f32.gmra.mxu1 %vm702_vm2, %v603_v6 }
 0x128   : > { %v546_v12 = vpop.f32.mrf.mxu0 }
 0x129   : > { %v5994_v14 = vadd.f32 %v5946_v59, %v546_v12 }
 0x12b   : > { %v604_v18 = vmax.f32 %v5994_v14, 0.0 }
 0x12d   : > { %5223 = vmatmul.msk.f32.gmra.mxu1 %vm702_vm2, %v604_v18 }
 0x130   : > { %v549_v32 = vpop.f32.mrf.mxu0 }
 0x131   : > { %v6033_v39 = vadd.f32 %v5946_v59, %v549_v32 }
 0x133   : > { %v605_v44 = vmax.f32 %v6033_v39, 0.0 }
 0x135   : > { %5224 = vmatmul.msk.f32.gmra.mxu1 %vm702_vm2, %v605_v44 }
 0x138   : > { %v552_v49 = vpop.f32.mrf.mxu0 }
 0x139   : > { %v6062_v51 = vadd.f32 %v5946_v59, %v552_v49 }
 0x13b   : > { %v606_v55 = vmax.f32 %v6062_v51, 0.0 }
 0x13d   : > { %5225 = vmatmul.msk.f32.gmra.mxu1 %vm702_vm2, %v606_v55 }
 0x140   : > { %v555_v2 = vpop.f32.mrf.mxu0 }
 0x141   : > { %v6081_v3 = vadd.f32 %v5946_v59, %v555_v2  ;;  %v5273_v2 = vld [vmem:[%s9769_s3 + $0x130] sm:$0xff] }
 0x142   : > { %1055 = vmatpush.msrb.mxu2 %v5273_v2 }
 0x143   : > { %v607_v5 = vmax.f32 %v6081_v3, 0.0 }
 0x145   : > { %5226 = vmatmul.msk.f32.gmra.mxu1 %vm702_vm2, %v607_v5 }
 0x148   : > { %v6092_v9 = vpop.f32.mrf.mxu0 }
 0x149   : > { %v559_v51 = vadd.f32 %v5946_v59, %v6092_v9 }
 0x14d   : > { %5227 = vmatmul.msk.f32.vlgmr.msrb.gmra.mxu1 %vm702_vm2, %v6022_v28 }
 0x150   : > { %v561_v11 = vpop.f32.mrf.mxu0 }
 0x151   : > { %v562_v12 = vadd.f32 %v5946_v59, %v561_v11  ;;  %v5272_v11 = vld [vmem:[%s9769_s3 + $0x128] sm:$0xff] }
 0x152   : > { %1056 = vmatpush.msrb.mxu2 %v5272_v11 }
 0x153   : > { %v609_v15 = vmax.f32 %v562_v12, 0.0 }
 0x154   : > { %1057 = vmatpush.msrb.mxu2 %v5271_v13 }
 0x155   : > { %v659_v16 = vrot.slane %v609_v15, 7  ;;  %v595_v15 = vmax.f32 %v520_v8, 0.0 }
 0x157   : > { %v837_v22 = vrot.slane %v659_v16, 1  ;;  %v6103_v24 = vsel %vm468_vm0, 0.0, %v659_v16 }
 0x158   : > { %v564_v30 = vpop.f32.mrf.mxu0  ;;  %5228 = vmatmul.msk.f32.gmra.mxu1 %vm702_vm2, %v6103_v24  ;;  %v836_v32 = vrot.slane %v6103_v24, 1 }
 0x159   : > { %v565_v35 = vadd.f32 %v5946_v59, %v564_v30 }
 0x15a   : > { %v6113_v34 = vsel %vm832_vm3, %v836_v32, %v837_v22  ;;  %v5284_v22 = vld [vmem:[%s9769_s3 + $0x148] sm:$0xff]  ;;  %v5270_v32 = vld [vmem:[%s9769_s3 + $0x118] sm:$0xff] }
 0x15b   : > { %v610_v42 = vmax.f32 %v565_v35, 0.0  ;;  %5244 = vmatmul.msk.f32.gmra.mxu3 %vm702_vm2, %v6113_v34  ;;  %1058 = vmatpush.msrb.mxu2 %v5270_v32  ;;  %v5304_v32 = vld [vmem:[%s9769_s3 + $0x1a8] sm:$0xff] }
 0x15c   : > { %1158 = vmatpush.msrb.mxu3 %v5284_v22  ;;  %v6220_v22 = vrot.slane %v596_v47, 7 }
 0x15d   : > { %v660_v43 = vrot.slane %v610_v42, 7  ;;  %v5269_v42 = vld [vmem:[%s9769_s3 + $0x110] sm:$0xff] }
 0x15e   : > { %1059 = vmatpush.msrb.mxu2 %v5269_v42  ;;  %1159 = vmatpush.msrb.mxu3 %v5283_v50  ;;  %v6237_v50 = vsel %vm468_vm0, 0.0, %v6220_v22 }
 0x15f   : > { %v840_v48 = vrot.slane %v660_v43, 1  ;;  %v6126_v49 = vsel %vm468_vm0, 0.0, %v660_v43  ;;  %v6183_v43 = vrot.slane %v595_v15, 7 }
 0x160   : > { %v567_v53 = vpop.f32.mrf.mxu0  ;;  %5229 = vmatmul.msk.f32.vlgmr.msra.gmra.mxu2 %vm702_vm2, %v6126_v49  ;;  %v839_v37 = vrot.slane %v6126_v49, 1  ;;  %5259 = vmatmul.msk.f32.vlgmr.msra.gmra.mxu1 %vm702_vm2, %v6123_v45 }
 0x161   : > { %v568_v60 = vadd.f32 %v5946_v59, %v567_v53  ;;  %v5268_v53 = vld [vmem:[%s9769_s3 + $0x108] sm:$0xff]  ;;  %v6203_v8 = vsel %vm468_vm0, 0.0, %v6183_v43 }
 0x162   : > { %v6141_v63 = vsel %vm832_vm3, %v839_v37, %v840_v48  ;;  %v5267_v37 = vld [vmem:[%s9769_s3 + $0x100] sm:$0xff]  ;;  %1060 = vmatpush.msrb.mxu2 %v5268_v53 }
 0x163   : > { %v611_v10 = vmax.f32 %v568_v60, 0.0  ;;  %5245 = vmatmul.msk.f32.gmra.mxu3 %vm702_vm2, %v6141_v63 }
 0x164   : > { %1061 = vmatpush.msrb.mxu2 %v5267_v37 }
 0x165   : > { %v661_v12 = vrot.slane %v611_v10, 7 }
 0x167   : > { %v843_v16 = vrot.slane %v661_v12, 1  ;;  %v6159_v20 = vsel %vm468_vm0, 0.0, %v661_v12  ;;  %v5306_v12 = vld [vmem:[%s9769_s3 + $0x1b8] sm:$0xff] }
 0x168   : > { %v570_v26 = vpop.f32.mrf.mxu0  ;;  %5230 = vmatmul.msk.f32.gmra.mxu2 %vm702_vm2, %v6159_v20  ;;  %v842_v30 = vrot.slane %v6159_v20, 1  ;;  %5260 = vmatmul.msk.f32.gmra.mxu1 %vm702_vm2, %v6163_v41 }
 0x169   : > { %v571_v35 = vadd.f32 %v5946_v59, %v570_v26  ;;  %1213 = vmatpush.msrb.mxu1 %v5306_v12  ;;  %5710 = vmatpush.msra.mxu3 %v5306_v12  ;;  %v526_v26 = vadd.f32 %v5946_v59, %v5929_v52  ;;  %v529_v12 = vadd.f32 %v5946_v59, %v5933_v54 }
 0x16a   : > { %v6178_v40 = vsel %vm832_vm3, %v842_v30, %v843_v16  ;;  %v5305_v16 = vld [vmem:[%s9769_s3 + $0x1b0] sm:$0xff] }
 0x16b   : > { %v612_v48 = vmax.f32 %v571_v35, 0.0  ;;  %5246 = vmatmul.msk.f32.gmra.mxu3 %vm702_vm2, %v6178_v40  ;;  %1214 = vmatpush.msrb.mxu1 %v5305_v16  ;;  %v5303_v35 = vld [vmem:[%s9769_s3 + $0x1a0] sm:$0xff]  ;;  %v597_v46 = vmax.f32 %v526_v26, 0.0 }
 0x16c   : > { %5711 = vmatpush.msra.mxu3 %v5305_v16  ;;  %v5300_v16 = vld [vmem:[%s9769_s3 + $0x188] sm:$0xff]  ;;  %v5299_v26 = vld [vmem:[%s9769_s3 + $0x180] sm:$0xff] }
 0x16d   : > { %v662_v57 = vrot.slane %v612_v48, 7  ;;  %1215 = vmatpush.msrb.mxu1 %v5304_v32 }
 0x16e   : > { %5712 = vmatpush.msra.mxu3 %v5304_v32  ;;  %v598_v32 = vmax.f32 %v529_v12, 0.0 }
 0x16f   : > { %v846_v60 = vrot.slane %v662_v57, 1  ;;  %v6199_v2 = vsel %vm468_vm0, 0.0, %v662_v57  ;;  %1216 = vmatpush.msrb.mxu1 %v5303_v35  ;;  %v5302_v57 = vld [vmem:[%s9769_s3 + $0x198] sm:$0xff] }
 0x170   : > { %v573_v10 = vpop.f32.mrf.mxu0  ;;  %5231 = vmatmul.msk.f32.gmra.mxu2 %vm702_vm2, %v6199_v2  ;;  %v845_v11 = vrot.slane %v6199_v2, 1  ;;  %5261 = vmatmul.msk.f32.gmra.mxu1 %vm702_vm2, %v6203_v8 }
 0x171   : > { %v574_v13 = vadd.f32 %v5946_v59, %v573_v10  ;;  %1217 = vmatpush.msrb.mxu1 %v5302_v57  ;;  %5713 = vmatpush.msra.mxu3 %v5303_v35  ;;  %v5301_v10 = vld [vmem:[%s9769_s3 + $0x190] sm:$0xff] }
 0x172   : > { %v6215_v15 = vsel %vm832_vm3, %v845_v11, %v846_v60  ;;  %v6254_v11 = vrot.slane %v597_v46, 7 }
 0x173   : > { %v613_v30 = vmax.f32 %v574_v13, 0.0  ;;  %5247 = vmatmul.msk.f32.gmra.mxu3 %vm702_vm2, %v6215_v15  ;;  %1218 = vmatpush.msrb.mxu1 %v5301_v10 }
 0x174   : > { %5714 = vmatpush.msra.mxu3 %v5302_v57  ;;  %v6282_v57 = vrot.slane %v598_v32, 7 }
 0x175   : > { %v663_v42 = vrot.slane %v613_v30, 7  ;;  %1219 = vmatpush.msrb.mxu1 %v5300_v16 }
 0x176   : > { %5715 = vmatpush.msra.mxu3 %v5301_v10 }
 0x177   : > { %v849_v48 = vrot.slane %v663_v42, 1  ;;  %v6233_v52 = vsel %vm468_vm0, 0.0, %v663_v42  ;;  %v6271_v42 = vsel %vm468_vm0, 0.0, %v6254_v11  ;;  %1220 = vmatpush.msrb.mxu1 %v5299_v26 }
 0x178   : > { %v576_v53 = vpop.f32.mrf.mxu0  ;;  %5232 = vmatmul.msk.f32.gmra.mxu2 %vm702_vm2, %v6233_v52  ;;  %v848_v37 = vrot.slane %v6233_v52, 1  ;;  %5262 = vmatmul.msk.f32.gmra.mxu1 %vm702_vm2, %v6237_v50 }
 0x179   : > { %v577_v47 = vadd.f32 %v5946_v59, %v576_v53  ;;  %5716 = vmatpush.msra.mxu3 %v5300_v16  ;;  %v6293_v16 = vsel %vm468_vm0, 0.0, %v6282_v57 }
 0x17a   : > { %v6249_v60 = vsel %vm832_vm3, %v848_v37, %v849_v48 }
 0x17b   : > { %v614_v13 = vmax.f32 %v577_v47, 0.0  ;;  %5248 = vmatmul.msk.f32.gmra.mxu3 %vm702_vm2, %v6249_v60  ;;  %v532_v47 = vadd.f32 %v5946_v59, %v5937_v56 }
 0x17c   : > { %5717 = vmatpush.msra.mxu3 %v5299_v26  ;;  %v490_v26 = vadd.f32 %v5946_v59, %v5857_v19 }
 0x17d   : > { %v664_v30 = vrot.slane %v614_v13, 7  ;;  %v599_v13 = vmax.f32 %v532_v47, 0.0  ;;  %v1096_v47 = vrot.slane %v6115_v38, 1 }
 0x17f   : > { %v852_v35 = vrot.slane %v664_v30, 1  ;;  %v6267_v54 = vsel %vm468_vm0, 0.0, %v664_v30 }
 0x180   : > { %v579_v46 = vpop.f32.mrf.mxu0  ;;  %5233 = vmatmul.msk.f32.gmra.mxu2 %vm702_vm2, %v6267_v54  ;;  %v851_v48 = vrot.slane %v6267_v54, 1  ;;  %5263 = vmatmul.msk.f32.gmra.mxu1 %vm702_vm2, %v6271_v42 }
 0x181   : > { %v580_v53 = vadd.f32 %v5946_v59, %v579_v46  ;;  %v535_v46 = vadd.f32 %v5946_v59, %v5941_v58  ;;  %v5322_v58 = vld [vmem:[%s9769_s3 + $0x1f8] sm:$0xff] }
 0x182   : > { %v6280_v37 = vsel %vm832_vm3, %v851_v48, %v852_v35  ;;  %v6305_v35 = vrot.slane %v599_v13, 7  ;;  %v585_v48 = vmax.f32 %v490_v26, 0.0  ;;  %1274 = vmatpush.msra.mxu2 %v5322_v58 }
 0x183   : > { %v615_v10 = vmax.f32 %v580_v53, 0.0  ;;  %5249 = vmatmul.msk.f32.gmra.mxu3 %vm702_vm2, %v6280_v37  ;;  %v1095_v53 = vrot.slane %v6123_v45, 1  ;;  %v493_v45 = vadd.f32 %v5946_v59, %v5861_v21  ;;  %v5321_v21 = vld [vmem:[%s9769_s3 + $0x1f0] sm:$0xff] }
 0x184   : > { %v6315_v19 = vsel %vm468_vm0, 0.0, %v6305_v35  ;;  %1275 = vmatpush.msra.mxu2 %v5321_v21  ;;  %v1107_v21 = vrot.slane %v6271_v42, 1  ;;  %v1111_v42 = vrot.slane %v6282_v57, 1  ;;  %v5336_v57 = vld [vmem:[%s9769_s3 + $0x228] sm:$0xff] }
 0x185   : > { %v665_v12 = vrot.slane %v615_v10, 7  ;;  %v600_v10 = vmax.f32 %v535_v46, 0.0  ;;  %v1097_v38 = vsel %vm832_vm3, %v1095_v53, %v1096_v47  ;;  %v586_v13 = vmax.f32 %v493_v45, 0.0 }
 0x186   : > { %v496_v46 = vadd.f32 %v5946_v59, %v5865_v23  ;;  %v1102_v53 = vrot.slane %v6183_v43, 1  ;;  %v1101_v47 = vrot.slane %v6203_v8, 1  ;;  %v5320_v23 = vld [vmem:[%s9769_s3 + $0x1e8] sm:$0xff]  ;;  %v5319_v43 = vld [vmem:[%s9769_s3 + $0x1e0] sm:$0xff]  ;;  %v1104_v45 = vrot.slane %v6237_v50, 1 }
 0x187   : > { %v855_v30 = vrot.slane %v665_v12, 1  ;;  %v6289_v36 = vsel %vm468_vm0, 0.0, %v665_v12  ;;  %v6326_v12 = vrot.slane %v600_v10, 7  ;;  %1276 = vmatpush.msra.mxu2 %v5320_v23  ;;  %v499_v10 = vadd.f32 %v5946_v59, %v5869_v25  ;;  %v5318_v25 = vld [vmem:[%s9769_s3 + $0x1d8] sm:$0xff]  ;;  %v1468_v50 = vld [vmem:[%s9771_s5 + $0xe8] sm:$0xff] }
 0x188   : > { %5234 = vmatmul.msk.f32.gmra.mxu2 %vm702_vm2, %v6289_v36  ;;  %v854_v56 = vrot.slane %v6289_v36, 1  ;;  %5264 = vmatmul.msk.f32.gmra.mxu1 %vm702_vm2, %v6293_v16  ;;  %v1103_v58 = vsel %vm832_vm3, %v1101_v47, %v1102_v53  ;;  %v508_v53 = vadd.f32 %v5946_v59, %v5881_v31  ;;  %v1114_v23 = vrot.slane %v6305_v35, 1  ;;  %v1466_v31 = vld [vmem:[%s9771_s5 + $0xd8] sm:$0xff] }
 0x189   : > { %v6333_v26 = vsel %vm468_vm0, 0.0, %v6326_v12  ;;  %1277 = vmatpush.msra.mxu2 %v5319_v43  ;;  %v588_v8 = vmax.f32 %v499_v10, 0.0  ;;  %v1113_v10 = vrot.slane %v6315_v19, 1 }
 0x18a   : > { %v6303_v32 = vsel %vm832_vm3, %v854_v56, %v855_v30  ;;  %v1099_v30 = vrot.slane %v6146_v7, 1  ;;  %v1098_v56 = vrot.slane %v6163_v41, 1  ;;  %v1470_v41 = vld [vmem:[%s9771_s5 + $0xf8] sm:$0xff] }
 0x18b   : > { %5250 = vmatmul.msk.f32.gmra.mxu3 %vm702_vm2, %v6303_v32  ;;  %1673 = vmatpush.msrb.mxu0 %v1470_v41  ;;  %v5338_v41 = vld [vmem:[%s9769_s3 + $0x238] sm:$0xff]  ;;  %v1115_v35 = vsel %vm832_vm3, %v1113_v10, %v1114_v23 }
 0x18c   : > { %v1100_v7 = vsel %vm832_vm3, %v1098_v56, %v1099_v30  ;;  %1278 = vmatpush.msra.mxu2 %v5318_v25  ;;  %v1108_v56 = vrot.slane %v6254_v11, 1 }
 0x18d   : > { %1674 = vmatpush.msrb.mxu0 %v1468_v50  ;;  %v582_v50 = vpop.f32.mrf.mxu0 }
 0x18e   : > { %v583_v61 = vadd.f32 %v5946_v59, %v582_v50  ;;  %v1465_v50 = vld [vmem:[%s9771_s5 + $0xd0] sm:$0xff] }
 0x18f   : > { %1675 = vmatpush.msrb.mxu0 %v1466_v31 }
 0x190   : > { %5265 = vmatmul.msk.f32.gmra.mxu1 %vm702_vm2, %v6315_v19  ;;  %5275 = vmatmul.msk.f32.vlgmr.msrb.gmra.mxu2 %vm702_vm2, %v585_v48  ;;  %v587_v48 = vmax.f32 %v496_v46, 0.0  ;;  %v505_v46 = vadd.f32 %v5946_v59, %v5877_v29  ;;  %v6404_v29 = vpop.f32.mrf.mxu1  ;;  %v5334_v19 = vld [vmem:[%s9769_s3 + $0x218] sm:$0xff]  ;;  %v616_v0 = vmax.f32 %v583_v61, 0.0 }
 0x192   : > { %v590_v11 = vmax.f32 %v505_v46, 0.0 }
 0x193   : > { %5291 = vmatmul.msk.f32.vlgmr.msrb.gmra.mxu3 %vm702_vm2, %v1097_v38  ;;  %v502_v38 = vadd.f32 %v5946_v59, %v5873_v27  ;;  %v5315_v27 = vld [vmem:[%s9769_s3 + $0x1c0] sm:$0xff] }
 0x194   : > { %1337 = vmatpush.msrb.mxu3 %v5338_v41 }
 0x195   : > { %v589_v30 = vmax.f32 %v502_v38, 0.0 }
 0x198   : > { %5266 = vmatmul.msk.f32.gmra.mxu1 %vm702_vm2, %v6333_v26  ;;  %5276 = vmatmul.msk.f32.gmra.mxu2 %vm702_vm2, %v586_v13  ;;  %v6427_v43 = vpop.f32.mrf.mxu1 }
 0x19b   : > { %5292 = vmatmul.msk.f32.gmra.mxu3 %vm702_vm2, %v1100_v7  ;;  %v1109_v7 = vsel %vm832_vm3, %v1107_v21, %v1108_v56 }
 0x1a0   : > { %5277 = vmatmul.msk.f32.gmra.mxu2 %vm702_vm2, %v587_v48  ;;  %5307 = vmatmul.msk.f32.vlgmr.msrb.gmra.mxu1 %vm702_vm2, %v6103_v24  ;;  %v1105_v24 = vrot.slane %v6220_v22, 1  ;;  %v5317_v22 = vld [vmem:[%s9769_s3 + $0x1d0] sm:$0xff]  ;;  %v1110_v48 = vrot.slane %v6293_v16, 1  ;;  %v591_v16 = vmax.f32 %v508_v53, 0.0  ;;  %v6442_v38 = vpop.f32.mrf.mxu1  ;;  %v1454_v53 = vld [vmem:[%s9771_s5 + $0x78] sm:$0xff] }
 0x1a1   : > { %1279 = vmatpush.msra.mxu2 %v5317_v22  ;;  %v6458_v22 = vpop.f32.mrf.mxu3 }
 0x1a2   : > { %v1106_v13 = vsel %vm832_vm3, %v1104_v45, %v1105_v24  ;;  %v1112_v47 = vsel %vm832_vm3, %v1110_v48, %v1111_v42  ;;  %v1117_v24 = vrot.slane %v6326_v12, 1  ;;  %v1116_v45 = vrot.slane %v6333_v26, 1  ;;  %v5331_v12 = vld [vmem:[%s9769_s3 + $0x200] sm:$0xff]  ;;  %v1464_v26 = vld [vmem:[%s9771_s5 + $0xc8] sm:$0xff] }
 0x1a3   : > { %5293 = vmatmul.msk.f32.gmra.mxu3 %vm702_vm2, %v1103_v58  ;;  %v511_v58 = vadd.f32 %v5946_v59, %v5885_v33  ;;  %v5333_v33 = vld [vmem:[%s9769_s3 + $0x210] sm:$0xff]  ;;  %1676 = vmatpush.msrb.mxu0 %v1464_v26  ;;  %v1456_v59 = vld [vmem:[%s9771_s5 + $0x88] sm:$0xff]  ;;  %v1467_v26 = vld [vmem:[%s9771_s5 + $0xe0] sm:$0xff] }
 0x1a4   : > { %v1118_v25 = vsel %vm832_vm3, %v1116_v45, %v1117_v24  ;;  %v1452_v24 = vld [vmem:[%s9771_s5 + $0x68] sm:$0xff] }
 0x1a8   : > { %5278 = vmatmul.msk.f32.gmra.mxu2 %vm702_vm2, %v588_v8  ;;  %5308 = vmatmul.msk.f32.gmra.mxu1 %vm702_vm2, %v6126_v49  ;;  %v5316_v49 = vld [vmem:[%s9769_s3 + $0x1c8] sm:$0xff]  ;;  %v592_v8 = vmax.f32 %v511_v58, 0.0  ;;  %v5370_v58 = vld [vmem:[%s9771_s5 + $0x1b8] sm:$0xff] }
 0x1a9   : > { %1280 = vmatpush.msra.mxu2 %v5316_v49  ;;  %v6460_v49 = vpop.f32.mrf.mxu1 }
 0x1ab   : > { %5294 = vmatmul.msk.f32.gmra.mxu3 %vm702_vm2, %v1106_v13  ;;  %1281 = vmatpush.msra.mxu2 %v5315_v27  ;;  %v5332_v13 = vld [vmem:[%s9769_s3 + $0x208] sm:$0xff] }
 0x1b0   : > { %5279 = vmatmul.msk.f32.gmra.mxu2 %vm702_vm2, %v589_v30  ;;  %5309 = vmatmul.msk.f32.gmra.mxu1 %vm702_vm2, %v6159_v20  ;;  %v5337_v20 = vld [vmem:[%s9769_s3 + $0x230] sm:$0xff] }
 0x1b1   : > { %1338 = vmatpush.msrb.mxu3 %v5337_v20  ;;  %v6473_v27 = vpop.f32.mrf.mxu1 }
 0x1b3   : > { %5295 = vmatmul.msk.f32.gmra.mxu3 %vm702_vm2, %v1109_v7 }
 0x1b4   : > { %1339 = vmatpush.msrb.mxu3 %v5336_v57  ;;  %v5374_v57 = vld [vmem:[%s9771_s5 + $0x1d8] sm:$0xff] }
 0x1b8   : > { %5280 = vmatmul.msk.f32.gmra.mxu2 %vm702_vm2, %v590_v11  ;;  %5310 = vmatmul.msk.f32.gmra.mxu1 %vm702_vm2, %v6199_v2  ;;  %v5335_v2 = vld [vmem:[%s9769_s3 + $0x220] sm:$0xff] }
 0x1b9   : > { %1340 = vmatpush.msrb.mxu3 %v5335_v2  ;;  %v6488_v21 = vpop.f32.mrf.mxu1  ;;  %v5372_v2 = vld [vmem:[%s9771_s5 + $0x1c8] sm:$0xff] }
 0x1bb   : > { %5296 = vmatmul.msk.f32.gmra.mxu3 %vm702_vm2, %v1112_v47 }
 0x1bc   : > { %1341 = vmatpush.msrb.mxu3 %v5334_v19 }
 0x1be   : > { %1342 = vmatpush.msrb.mxu3 %v5333_v33  ;;  %v5366_v33 = vld [vmem:[%s9771_s5 + $0x198] sm:$0xff] }
 0x1c0   : > { %5281 = vmatmul.msk.f32.gmra.mxu2 %vm702_vm2, %v591_v16  ;;  %1343 = vmatpush.msrb.mxu3 %v5332_v13 }
 0x1c2   : > { %1344 = vmatpush.msrb.mxu3 %v5331_v12  ;;  %v5364_v12 = vld [vmem:[%s9771_s5 + $0x188] sm:$0xff] }
 0x1c3   : > { %5297 = vmatmul.msk.f32.gmra.mxu3 %vm702_vm2, %v1115_v35 }
 0x1c8   : > { %5282 = vmatmul.msk.f32.gmra.mxu2 %vm702_vm2, %v592_v8  ;;  %v5368_v8 = vld [vmem:[%s9771_s5 + $0x1a8] sm:$0xff] }
 0x1cb   : > { %5298 = vmatmul.msk.f32.gmra.mxu3 %vm702_vm2, %v1118_v25  ;;  %v1469_v25 = vld [vmem:[%s9771_s5 + $0xf0] sm:$0xff] }
 0x1d0   : > { %5323 = vmatmul.msk.f32.vlgmr.msra.gmra.mxu2 %vm702_vm2, %v601_v62 }
 0x1d3   : > { %5311 = vmatmul.msk.f32.vlgmr.msra.gmra.mxu3 %vm702_vm2, %v6233_v52  ;;  %v1462_v52 = vld [vmem:[%s9771_s5 + $0xb8] sm:$0xff] }
 0x1d4   : > { %1677 = vmatpush.msrb.mxu0 %v1462_v52  ;;  %1632 = vmatpush.msra.mxu3 %v1469_v25  ;;  %v5377_v52 = vld [vmem:[%s9771_s5 + $0x1f0] sm:$0xff]  ;;  %v5356_v25 = vld [vmem:[%s9771_s5 + $0x148] sm:$0xff] }
 0x1d5   : > { %1550 = vmatpush.msra.mxu1 %v5377_v52  ;;  %v1449_v52 = vld [vmem:[%s9771_s5 + $0x50] sm:$0xff] }
 0x1d6   : > { %1633 = vmatpush.msra.mxu3 %v1467_v26 }
 0x1d8   : > { %5324 = vmatmul.msk.f32.gmra.mxu2 %vm702_vm2, %v602_v1  ;;  %1634 = vmatpush.msra.mxu3 %v1465_v50  ;;  %v5363_v50 = vld [vmem:[%s9771_s5 + $0x180] sm:$0xff] }
 0x1db   : > { %5312 = vmatmul.msk.f32.gmra.mxu3 %vm702_vm2, %v6267_v54  ;;  %v666_v54 = vrot.slane %v616_v0, 7  ;;  %v1463_v0 = vld [vmem:[%s9771_s5 + $0xc0] sm:$0xff] }
 0x1dc   : > { %1635 = vmatpush.msra.mxu3 %v1463_v0  ;;  %v5361_v0 = vld [vmem:[%s9771_s5 + $0x170] sm:$0xff] }
 0x1dd   : > { %v684_v56 = vsel %vm468_vm0, 0.0, %v666_v54  ;;  %v1316_v16 = vrot.slane %v666_v54, 1  ;;  %v5362_v54 = vld [vmem:[%s9771_s5 + $0x178] sm:$0xff] }
 0x1de   : > { %v6468_v62 = vpop.f32.mrf.mxu3  ;;  %v1315_v23 = vrot.slane %v684_v56, 1 }
 0x1e0   : > { %5325 = vmatmul.msk.f32.gmra.mxu2 %vm702_vm2, %v603_v6 }
 0x1e3   : > { %v6478_v1 = vpop.f32.mrf.mxu2  ;;  %5313 = vmatmul.msk.f32.gmra.mxu3 %vm702_vm2, %v6289_v36  ;;  %v1460_v36 = vld [vmem:[%s9771_s5 + $0xa8] sm:$0xff] }
 0x1e4   : > { %1678 = vmatpush.msrb.mxu0 %v1460_v36  ;;  %v1461_v36 = vld [vmem:[%s9771_s5 + $0xb0] sm:$0xff] }
 0x1e5   : > { %1636 = vmatpush.msra.mxu3 %v1461_v36  ;;  %v5354_v36 = vld [vmem:[%s9771_s5 + $0x138] sm:$0xff] }
 0x1e6   : > { %v6482_v30 = vpop.f32.mrf.mxu3 }
 0x1e8   : > { %5326 = vmatmul.msk.f32.gmra.mxu2 %vm702_vm2, %v604_v18  ;;  %v6505_v18 = vpop.f32.mrf.mxu1 }
 0x1eb   : > { %v6490_v4 = vpop.f32.mrf.mxu2  ;;  %5314 = vmatmul.msk.f32.gmra.mxu3 %vm702_vm2, %v684_v56  ;;  %v5375_v56 = vld [vmem:[%s9771_s5 + $0x1e0] sm:$0xff] }
 0x1ec   : > { %1551 = vmatpush.msra.mxu1 %v5375_v56 }
 0x1ee   : > { %v6493_v6 = vpop.f32.mrf.mxu3 }
 0x1f0   : > { %5327 = vmatmul.msk.f32.gmra.mxu2 %vm702_vm2, %v605_v44  ;;  %v6516_v39 = vpop.f32.mrf.mxu1 }
 0x1f3   : > { %v6501_v14 = vpop.f32.mrf.mxu2  ;;  %5339 = vmatmul.msk.f32.vlgmr.msrb.gmra.mxu3 %vm702_vm2, %v6113_v34  ;;  %v1458_v34 = vld [vmem:[%s9771_s5 + $0x98] sm:$0xff] }
 0x1f4   : > { %1679 = vmatpush.msrb.mxu0 %v1458_v34 }
 0x1f6   : > { %v6507_v46 = vpop.f32.mrf.mxu3  ;;  %1680 = vmatpush.msrb.mxu0 %v1456_v59  ;;  %v5360_v59 = vld [vmem:[%s9771_s5 + $0x168] sm:$0xff] }
 0x1f8   : > { %5328 = vmatmul.msk.f32.gmra.mxu2 %vm702_vm2, %v606_v55  ;;  %v6532_v41 = vpop.f32.mrf.mxu1  ;;  %1681 = vmatpush.msrb.mxu0 %v1454_v53  ;;  %v5371_v53 = vld [vmem:[%s9771_s5 + $0x1c0] sm:$0xff] }
 0x1fa   : > { %1682 = vmatpush.msrb.mxu0 %v1452_v24 }
 0x1fb   : > { %v6512_v7 = vpop.f32.mrf.mxu2  ;;  %5340 = vmatmul.msk.f32.gmra.mxu3 %vm702_vm2, %v6141_v63  ;;  %v608_v63 = vmax.f32 %v559_v51, 0.0 }
 0x1fe   : > { %v6518_v44 = vpop.f32.mrf.mxu3 }
 0x200   : > { %5329 = vmatmul.msk.f32.gmra.mxu2 %vm702_vm2, %v607_v5  ;;  %v6546_v9 = vpop.f32.mrf.mxu1 }
 0x203   : > { %v6528_v55 = vpop.f32.mrf.mxu2  ;;  %5341 = vmatmul.msk.f32.gmra.mxu3 %vm702_vm2, %v6178_v40 }
 0x206   : > { %v6534_v11 = vpop.f32.mrf.mxu3 }
 0x208   : > { %5330 = vmatmul.msk.f32.gmra.mxu2 %vm702_vm2, %v608_v63  ;;  %v6554_v48 = vpop.f32.mrf.mxu1  ;;  %v5373_v63 = vld [vmem:[%s9771_s5 + $0x1d0] sm:$0xff] }
 0x209   : > { %1552 = vmatpush.msra.mxu1 %v5373_v63  ;;  %v5359_v63 = vld [vmem:[%s9771_s5 + $0x160] sm:$0xff] }
 0x20b   : > { %5342 = vmatmul.msk.f32.gmra.mxu3 %vm702_vm2, %v6215_v15  ;;  %v6539_v3 = vpop.f32.mrf.mxu2  ;;  %v5378_v15 = vld [vmem:[%s9771_s5 + $0x1f8] sm:$0xff]  ;;  %1553 = vmatpush.msra.mxu1 %v5371_v53  ;;  %v5357_v53 = vld [vmem:[%s9771_s5 + $0x150] sm:$0xff] }
 0x20c   : > { %1591 = vmatpush.msrb.mxu2 %v5378_v15  ;;  %v1450_v15 = vld [vmem:[%s9771_s5 + $0x58] sm:$0xff] }
 0x20d   : > { %1683 = vmatpush.msrb.mxu0 %v1450_v15  ;;  %v1448_v15 = vld [vmem:[%s9771_s5 + $0x48] sm:$0xff] }
 0x20e   : > { %v6541_v5 = vpop.f32.mrf.mxu3 }
 0x20f   : > { %1684 = vmatpush.msrb.mxu0 %v1448_v15  ;;  %v5349_v15 = vld [vmem:[%s9771_s5 + $0x110] sm:$0xff] }
 0x213   : > { %5343 = vmatmul.msk.f32.gmra.mxu3 %vm702_vm2, %v6249_v60  ;;  %v6550_v40 = vpop.f32.mrf.mxu2  ;;  %v5376_v60 = vld [vmem:[%s9771_s5 + $0x1e8] sm:$0xff] }
 0x214   : > { %1592 = vmatpush.msrb.mxu2 %v5376_v60  ;;  %v1459_v60 = vld [vmem:[%s9771_s5 + $0xa0] sm:$0xff] }
 0x215   : > { %1637 = vmatpush.msra.mxu3 %v1459_v60 }
 0x216   : > { %v6552_v42 = vpop.f32.mrf.mxu3  ;;  %1593 = vmatpush.msrb.mxu2 %v5374_v57  ;;  %v1457_v57 = vld [vmem:[%s9771_s5 + $0x90] sm:$0xff] }
 0x217   : > { %1638 = vmatpush.msra.mxu3 %v1457_v57  ;;  %v5352_v57 = vld [vmem:[%s9771_s5 + $0x128] sm:$0xff] }
 0x218   : > { %1594 = vmatpush.msrb.mxu2 %v5372_v2  ;;  %v1455_v2 = vld [vmem:[%s9771_s5 + $0x80] sm:$0xff] }
 0x219   : > { %1639 = vmatpush.msra.mxu3 %v1455_v2  ;;  %v1446_v2 = vld [vmem:[%s9771_s5 + $0x38] sm:$0xff] }
 0x21a   : > { %1595 = vmatpush.msrb.mxu2 %v5370_v58  ;;  %v5367_v58 = vld [vmem:[%s9771_s5 + $0x1a0] sm:$0xff]  ;;  %1685 = vmatpush.msrb.mxu0 %v1446_v2 }
 0x21b   : > { %5344 = vmatmul.msk.f32.gmra.mxu3 %vm702_vm2, %v6280_v37  ;;  %v6569_v47 = vpop.f32.mrf.mxu2  ;;  %v6573_v37 = vpop.f32.mrf.mxu1  ;;  %v5347_v2 = vld [vmem:[%s9771_s5 + $0x100] sm:$0xff] }
 0x21c   : > { %1596 = vmatpush.msrb.mxu2 %v5368_v8  ;;  %v1453_v8 = vld [vmem:[%s9771_s5 + $0x70] sm:$0xff] }
 0x21d   : > { %1640 = vmatpush.msra.mxu3 %v1453_v8  ;;  %v1444_v8 = vld [vmem:[%s9771_s5 + $0x28] sm:$0xff] }
 0x21e   : > { %v6561_v20 = vpop.f32.mrf.mxu3  ;;  %1597 = vmatpush.msrb.mxu2 %v5366_v33  ;;  %v5365_v33 = vld [vmem:[%s9771_s5 + $0x190] sm:$0xff]  ;;  %1686 = vmatpush.msrb.mxu0 %v1444_v8 }
 0x220   : > { %1598 = vmatpush.msrb.mxu2 %v5364_v12  ;;  %v1451_v12 = vld [vmem:[%s9771_s5 + $0x60] sm:$0xff] }
 0x221   : > { %1641 = vmatpush.msra.mxu3 %v1451_v12  ;;  %v1439_v12 = vld [vmem:[%s9771_s5] sm:$0xff] }
 0x222   : > { %1599 = vmatpush.msrb.mxu2 %v5362_v54  ;;  %v1447_v54 = vld [vmem:[%s9771_s5 + $0x40] sm:$0xff] }
 0x223   : > { %5345 = vmatmul.msk.f32.gmra.mxu3 %vm702_vm2, %v6303_v32  ;;  %v6583_v31 = vpop.f32.mrf.mxu2  ;;  %v1317_v32 = vsel %vm832_vm3, %v1315_v23, %v1316_v16  ;;  %v6590_v35 = vpop.f32.mrf.mxu1  ;;  %v5369_v23 = vld [vmem:[%s9771_s5 + $0x1b0] sm:$0xff] }
 0x224   : > { %1600 = vmatpush.msrb.mxu2 %v5360_v59  ;;  %1554 = vmatpush.msra.mxu1 %v5369_v23  ;;  %v1445_v59 = vld [vmem:[%s9771_s5 + $0x30] sm:$0xff]  ;;  %v1443_v23 = vld [vmem:[%s9771_s5 + $0x20] sm:$0xff] }
 0x225   : > { %1642 = vmatpush.msra.mxu3 %v1449_v52  ;;  %v5350_v52 = vld [vmem:[%s9771_s5 + $0x118] sm:$0xff] }
 0x226   : > { %v6578_v10 = vpop.f32.mrf.mxu3  ;;  %1555 = vmatpush.msra.mxu1 %v5367_v58  ;;  %v1441_v58 = vld [vmem:[%s9771_s5 + $0x10] sm:$0xff] }
 0x227   : > { %1643 = vmatpush.msra.mxu3 %v1447_v54 }
 0x228   : > { %1556 = vmatpush.msra.mxu1 %v5365_v33 }
 0x229   : > { %1644 = vmatpush.msra.mxu3 %v1445_v59 }
 0x22a   : > { %1557 = vmatpush.msra.mxu1 %v5363_v50  ;;  %v1442_v50 = vld [vmem:[%s9771_s5 + $0x18] sm:$0xff] }
 0x22b   : > { %5346 = vmatmul.msk.f32.gmra.mxu3 %vm702_vm2, %v1317_v32  ;;  %v6600_v45 = vpop.f32.mrf.mxu2  ;;  %v6619_v61 = vpop.f32.mrf.mxu1  ;;  %v5358_v32 = vld [vmem:[%s9771_s5 + $0x158] sm:$0xff]  ;;  %1687 = vmatpush.msrb.mxu0 %v1442_v50 }
 0x22c   : > { %1601 = vmatpush.msrb.mxu2 %v5358_v32  ;;  %1558 = vmatpush.msra.mxu1 %v5361_v0  ;;  %v5355_v32 = vld [vmem:[%s9771_s5 + $0x140] sm:$0xff] }
 0x22d   : > { %1645 = vmatpush.msra.mxu3 %v1443_v23  ;;  %v5351_v0 = vld [vmem:[%s9771_s5 + $0x120] sm:$0xff]  ;;  %v5348_v23 = vld [vmem:[%s9771_s5 + $0x108] sm:$0xff] }
 0x22e   : > { %v6592_v19 = vpop.f32.mrf.mxu3  ;;  %1602 = vmatpush.msrb.mxu2 %v5356_v25  ;;  %1559 = vmatpush.msra.mxu1 %v5359_v63  ;;  %v5353_v25 = vld [vmem:[%s9771_s5 + $0x130] sm:$0xff] }
 0x22f   : > { %1646 = vmatpush.msra.mxu3 %v1441_v58 }
 0x230   : > { %1603 = vmatpush.msrb.mxu2 %v5354_v36  ;;  %1560 = vmatpush.msra.mxu1 %v5357_v53  ;;  %v1440_v36 = vld [vmem:[%s9771_s5 + $0x8] sm:$0xff]  ;;  %v6774_v53 = vsel %vm468_vm0, %v6002_v17, 0.0 }
 0x231   : > { %1647 = vmatpush.msra.mxu3 %v1439_v12  ;;  %1688 = vmatpush.msrb.mxu0 %v1440_v36  ;;  %v5442_v12 = vld [vmem:[%s9771_s5 + $0x2f8] sm:$0xff]  ;;  %v5439_v36 = vld [vmem:[%s9771_s5 + $0x2e0] sm:$0xff] }
 0x232   : > { %1604 = vmatpush.msrb.mxu2 %v5352_v57  ;;  %1561 = vmatpush.msra.mxu1 %v5355_v32  ;;  %v1486_v57 = vrot.slane %v6774_v53, 1  ;;  %v9858_v32 = vrot.slane %v6022_v28, 1 }
 0x233   : > { %v6636_v34 = vpop.f32.mrf.mxu2  ;;  %v6658_v16 = vpop.f32.mrf.mxu1  ;;  %5380 = vmatmul.msk.f32.vlgmr.msra.gmra.mxu3 %vm6755_vm4, %v6002_v17  ;;  %5396 = vmatmul.msk.f32.vlgmr.msrb.gmra.mxu0 %vm6755_vm4, %v6002_v17  ;;  %v5435_v17 = vld [vmem:[%s9771_s5 + $0x2c0] sm:$0xff] }
 0x234   : > { %1562 = vmatpush.msra.mxu1 %v5353_v25  ;;  %1605 = vmatpush.msrb.mxu2 %v5350_v52  ;;  %v6789_v58 = vsel %vm832_vm3, %v9858_v32, %v1486_v57  ;;  %v5441_v25 = vld [vmem:[%s9771_s5 + $0x2f0] sm:$0xff] }
 0x235   : > { %9859 = vst [vmem:[#allocation4_spill] sm:$0xff] %v6789_v58  ;;  %v5437_v57 = vld [vmem:[%s9771_s5 + $0x2d0] sm:$0xff] }
 0x236   : > { %v6608_v13 = vpop.f32.mrf.mxu3  ;;  %1563 = vmatpush.msra.mxu1 %v5351_v0  ;;  %1606 = vmatpush.msrb.mxu2 %v5348_v23  ;;  %v809_v0 = vadd.f32 %v6532_v41, %v6404_v29  ;;  %v5438_v29 = vld [vmem:[%s9771_s5 + $0x2d8] sm:$0xff] }
 0x237   : > { %1607 = vmatmul.f32.vlgmr.msrb.gmra.mxu2 %v6789_v58 }
 0x238   : > { %1564 = vmatpush.msra.mxu1 %v5349_v15  ;;  %1821 = vmatpush.msra.mxu2 %v5442_v12  ;;  %v5440_v15 = vld [vmem:[%s9771_s5 + $0x2e8] sm:$0xff]  ;;  %v923_v41 = vadd.f32 %v6458_v22, %v809_v0  ;;  %v5434_v22 = vld [vmem:[%s9771_s5 + $0x2b8] sm:$0xff] }
 0x23a   : > { %1565 = vmatpush.msra.mxu1 %v5347_v2  ;;  %1822 = vmatpush.msra.mxu2 %v5440_v15  ;;  %v5433_v15 = vld [vmem:[%s9771_s5 + $0x2b0] sm:$0xff] }
 0x23b   : > { %v6686_v26 = vpop.f32.mrf.mxu2  ;;  %v6700_v56 = vpop.f32.mrf.mxu1  ;;  %1566 = vmatmul.f32.vlgmr.msra.gmra.mxu1 %v6789_v58 }
 0x23c   : > { %1780 = vmatpush.msrb.mxu1 %v5441_v25  ;;  %1823 = vmatpush.msra.mxu2 %v5438_v29  ;;  %v1005_v25 = vadd.f32 %v6554_v48, %v923_v41 }
 0x23e   : > { %v6638_v51 = vpop.f32.mrf.mxu3  ;;  %1781 = vmatpush.msrb.mxu1 %v5439_v36  ;;  %v1087_v12 = vadd.f32 %v6550_v40, %v1005_v25  ;;  %v5436_v36 = vld [vmem:[%s9771_s5 + $0x2c8] sm:$0xff]  ;;  %v812_v40 = vadd.f32 %v6546_v9, %v6427_v43 }
 0x23f   : > { %1824 = vmatpush.msra.mxu2 %v5436_v36  ;;  %v815_v36 = vadd.f32 %v6478_v1, %v6442_v38  ;;  %v5430_v38 = vld [vmem:[%s9771_s5 + $0x298] sm:$0xff] }
 0x240   : > { %1782 = vmatpush.msrb.mxu1 %v5437_v57  ;;  %v924_v0 = vadd.f32 %v6468_v62, %v812_v40  ;;  %v1185_v29 = vadd.f32 %v6552_v42, %v1087_v12  ;;  %v5431_v62 = vld [vmem:[%s9771_s5 + $0x2a0] sm:$0xff]  ;;  %v5432_v42 = vld [vmem:[%s9771_s5 + $0x2a8] sm:$0xff] }
 0x241   : > { %1825 = vmatpush.msra.mxu2 %v5434_v22  ;;  %v925_v12 = vadd.f32 %v6482_v30, %v815_v36  ;;  %v5471_v40 = vld [vmem:[%s9771_s5 + $0x3e0] sm:$0xff]  ;;  %v5469_v30 = vld [vmem:[%s9771_s5 + $0x3d0] sm:$0xff]  ;;  %v818_v36 = vadd.f32 %v6490_v4, %v6460_v49 }
 0x242   : > { %1783 = vmatpush.msrb.mxu1 %v5435_v17  ;;  %v1006_v41 = vadd.f32 %v6573_v37, %v924_v0  ;;  %v6846_v17 = vld [vmem:[%s9770_s4] ss:$0 sm:$0xff]  ;;  %v5429_v37 = vld [vmem:[%s9771_s5 + $0x290] sm:$0xff]  ;;  %v5472_v0 = vld [vmem:[%s9771_s5 + $0x3e8] sm:$0xff] }
 0x243   : > { %v6737_v33 = vpop.f32.mrf.mxu2  ;;  %v6762_v63 = vpop.f32.mrf.mxu1  ;;  %1826 = vmatpush.msra.mxu2 %v5432_v42 }
 0x244   : > { %1784 = vmatpush.msrb.mxu1 %v5433_v15  ;;  %v1088_v43 = vadd.f32 %v6569_v47, %v1006_v41  ;;  %v5473_v47 = vld [vmem:[%s9771_s5 + $0x3f0] sm:$0xff]  ;;  %v1007_v41 = vadd.f32 %v6590_v35, %v925_v12  ;;  %v5427_v35 = vld [vmem:[%s9771_s5 + $0x280] sm:$0xff] }
 0x245   : > { %1827 = vmatpush.msra.mxu2 %v5430_v38  ;;  %1911 = vmatpush.msrb.mxu3 %v5473_v47 }
 0x246   : > { %v6675_v24 = vpop.f32.mrf.mxu3  ;;  %1785 = vmatpush.msrb.mxu1 %v5431_v62  ;;  %v1186_v15 = vadd.f32 %v6561_v20, %v1088_v43  ;;  %v5470_v20 = vld [vmem:[%s9771_s5 + $0x3d8] sm:$0xff]  ;;  %v1089_v43 = vadd.f32 %v6583_v31, %v1007_v41 }
 0x247   : > { %1912 = vmatpush.msrb.mxu3 %v5471_v40  ;;  %v5426_v31 = vld [vmem:[%s9771_s5 + $0x278] sm:$0xff]  ;;  %v926_v40 = vadd.f32 %v6493_v6, %v818_v36 }
 0x248   : > { %1786 = vmatpush.msrb.mxu1 %v5429_v37  ;;  %v5425_v37 = vld [vmem:[%s9771_s5 + $0x270] sm:$0xff] }
 0x249   : > { %1913 = vmatpush.msrb.mxu3 %v5469_v30  ;;  %v1008_v6 = vadd.f32 %v6619_v61, %v926_v40 }
 0x24a   : > { %1787 = vmatpush.msrb.mxu1 %v5427_v35  ;;  %v821_v35 = vadd.f32 %v6501_v14, %v6473_v27  ;;  %v5421_v27 = vld [vmem:[%s9771_s5 + $0x250] sm:$0xff]  ;;  %v5422_v14 = vld [vmem:[%s9771_s5 + $0x258] sm:$0xff] }
 0x24b   : > { %v6793_v8 = vpop.f32.mrf.mxu2  ;;  %v6803_v52 = vpop.f32.mrf.mxu1 }
 0x24c   : > { %1788 = vmatpush.msrb.mxu1 %v5425_v37  ;;  %v927_v40 = vadd.f32 %v6507_v46, %v821_v35  ;;  %v824_v35 = vadd.f32 %v6512_v7, %v6488_v21  ;;  %v5417_v21 = vld [vmem:[%s9771_s5 + $0x230] sm:$0xff]  ;;  %v5418_v7 = vld [vmem:[%s9771_s5 + $0x238] sm:$0xff] }
 0x24e   : > { %v6714_v60 = vpop.f32.mrf.mxu3 }
 0x253   : > { %v1283_v23 = vpop.f32.mrf.mxu2  ;;  %v1222_v32 = vpop.f32.mrf.mxu1 }
 0x254   : > { %v1246_v25 = vadd.f32 %v1222_v32, %v1185_v29 }
 0x256   : > { %v6764_v59 = vpop.f32.mrf.mxu3  ;;  %v1307_v9 = vadd.f32 %v1283_v23, %v1246_v25  ;;  %v5474_v23 = vld [vmem:[%s9771_s5 + $0x3f8] sm:$0xff] }
 0x257   : > { %1952 = vmatpush.msra.mxu0 %v5474_v23 }
 0x259   : > { %1953 = vmatpush.msra.mxu0 %v5472_v0  ;;  %v1187_v0 = vadd.f32 %v6578_v10, %v1089_v43 }
 0x25b   : > { %v1286_v48 = vpop.f32.mrf.mxu2  ;;  %v1225_v58 = vpop.f32.mrf.mxu1  ;;  %1954 = vmatpush.msra.mxu0 %v5470_v20 }
 0x25c   : > { %v1247_v25 = vadd.f32 %v1225_v58, %v1186_v15  ;;  %v5428_v58 = vld [vmem:[%s9771_s5 + $0x288] sm:$0xff] }
 0x25d   : > { %1828 = vmatpush.msra.mxu2 %v5428_v58  ;;  %v1090_v58 = vadd.f32 %v6600_v45, %v1008_v6 }
 0x25e   : > { %v6801_v50 = vpop.f32.mrf.mxu3  ;;  %v1308_v62 = vadd.f32 %v1286_v48, %v1247_v25  ;;  %v5467_v48 = vld [vmem:[%s9771_s5 + $0x3c0] sm:$0xff]  ;;  %v5465_v25 = vld [vmem:[%s9771_s5 + $0x3b0] sm:$0xff] }
 0x25f   : > { %1829 = vmatpush.msra.mxu2 %v5426_v31  ;;  %1914 = vmatpush.msrb.mxu3 %v5467_v48  ;;  %v5464_v31 = vld [vmem:[%s9771_s5 + $0x3a8] sm:$0xff] }
 0x261   : > { %1915 = vmatpush.msrb.mxu3 %v5465_v25  ;;  %v5459_v25 = vld [vmem:[%s9771_s5 + $0x380] sm:$0xff] }
 0x263   : > { %v1289_v29 = vpop.f32.mrf.mxu2  ;;  %v1228_v49 = vpop.f32.mrf.mxu1 }
 0x264   : > { %v1248_v10 = vadd.f32 %v1228_v49, %v1187_v0  ;;  %v5423_v49 = vld [vmem:[%s9771_s5 + $0x260] sm:$0xff]  ;;  %v1188_v0 = vadd.f32 %v6592_v19, %v1090_v58  ;;  %v1009_v19 = vadd.f32 %v6658_v16, %v927_v40  ;;  %v5454_v40 = vld [vmem:[%s9771_s5 + $0x358] sm:$0xff] }
 0x265   : > { %1789 = vmatpush.msrb.mxu1 %v5423_v49  ;;  %v5419_v16 = vld [vmem:[%s9771_s5 + $0x240] sm:$0xff] }
 0x266   : > { %v6816_v2 = vpop.f32.mrf.mxu3  ;;  %v1309_v37 = vadd.f32 %v1289_v29, %v1248_v10  ;;  %v1091_v58 = vadd.f32 %v6636_v34, %v1009_v19  ;;  %v5452_v19 = vld [vmem:[%s9771_s5 + $0x348] sm:$0xff] }
 0x267   : > { %1790 = vmatpush.msrb.mxu1 %v5421_v27 }
 0x269   : > { %1791 = vmatpush.msrb.mxu1 %v5419_v16 }
 0x26b   : > { %v1292_v43 = vpop.f32.mrf.mxu2  ;;  %1792 = vmatpush.msrb.mxu1 %v5417_v21 }
 0x26e   : > { %v6833_v57 = vpop.f32.mrf.mxu3 }
 0x276   : > { %v1346_v32 = vpop.f32.mrf.mxu3 }
 0x277   : > { %v1370_v1 = vadd.f32 %v1346_v32, %v1307_v9  ;;  %v5468_v32 = vld [vmem:[%s9771_s5 + $0x3c8] sm:$0xff] }
 0x278   : > { %1955 = vmatpush.msra.mxu0 %v5468_v32 }
 0x279   : > { %v1382_v22 = vadd.f32 %v6846_v17, %v1370_v1 }
 0x27b   : > { %v1390_v9 = vmax.f32 %v1382_v22, 0.0 }
 0x27d   : > { %v6888_v42 = vrot.slane %v1390_v9, 7  ;;  %v5466_v9 = vld [vmem:[%s9771_s5 + $0x3b8] sm:$0xff] }
 0x27e   : > { %v1349_v4 = vpop.f32.mrf.mxu3  ;;  %1956 = vmatpush.msra.mxu0 %v5466_v9  ;;  %v5460_v9 = vld [vmem:[%s9771_s5 + $0x388] sm:$0xff] }
 0x27f   : > { %v1371_v38 = vadd.f32 %v1349_v4, %v1308_v62  ;;  %5382 = vmatmul.msk.f32.gmra.mxu3 %vm6755_vm4, %v6888_v42  ;;  %5398 = vmatmul.msk.f32.gmra.mxu0 %vm6755_vm4, %v6888_v42  ;;  %v1422_v1 = vsel %vm468_vm0, 0.0, %v6888_v42  ;;  %v1431_v47 = vsel %vm468_vm0, %v6888_v42, 0.0  ;;  %v5463_v62 = vld [vmem:[%s9771_s5 + $0x3a0] sm:$0xff]  ;;  %v5424_v4 = vld [vmem:[%s9771_s5 + $0x268] sm:$0xff] }
 0x280   : > { %v1488_v23 = vrot.slane %v1422_v1, 1  ;;  %v1489_v12 = vrot.slane %v1431_v47, 1  ;;  %v1718_v15 = vrot.slane %v1422_v1, 2  ;;  %v1719_v22 = vrot.slane %v1431_v47, 2  ;;  %1830 = vmatpush.msra.mxu2 %v5424_v4  ;;  %v5462_v1 = vld [vmem:[%s9771_s5 + $0x398] sm:$0xff]  ;;  %v1231_v47 = vpop.f32.mrf.mxu1  ;;  %1916 = vmatpush.msrb.mxu3 %v5463_v62  ;;  %v5457_v62 = vld [vmem:[%s9771_s5 + $0x370] sm:$0xff] }
 0x281   : > { %v1383_v41 = vadd.f32 %v6846_v17, %v1371_v38  ;;  %v5461_v38 = vld [vmem:[%s9771_s5 + $0x390] sm:$0xff]  ;;  %1957 = vmatpush.msra.mxu0 %v5464_v31  ;;  %v1249_v10 = vadd.f32 %v1231_v47, %v1188_v0  ;;  %v5420_v4 = vld [vmem:[%s9771_s5 + $0x248] sm:$0xff]  ;;  %v5458_v31 = vld [vmem:[%s9771_s5 + $0x378] sm:$0xff] }
 0x282   : > { %v6928_v30 = vsel %vm832_vm3, %v1488_v23, %v1489_v12  ;;  %v6931_v20 = vsel %vm1714_vm5, %v1718_v15, %v1719_v22  ;;  %1831 = vmatpush.msra.mxu2 %v5422_v14  ;;  %1917 = vmatpush.msrb.mxu3 %v5461_v38 }
 0x283   : > { %v1391_v36 = vmax.f32 %v1383_v41, 0.0  ;;  %1569 = vmatmul.f32.gmra.mxu1 %v6928_v30  ;;  %1610 = vmatmul.f32.gmra.mxu2 %v6928_v30 }
 0x284   : > { %1958 = vmatpush.msra.mxu0 %v5462_v1  ;;  %1918 = vmatpush.msrb.mxu3 %v5459_v25 }
 0x285   : > { %v6942_v61 = vrot.slane %v1391_v36, 7  ;;  %1832 = vmatpush.msra.mxu2 %v5420_v4  ;;  %v5413_v4 = vld [vmem:[%s9771_s5 + $0x210] sm:$0xff] }
 0x286   : > { %v1352_v48 = vpop.f32.mrf.mxu3  ;;  %1959 = vmatpush.msra.mxu0 %v5460_v9  ;;  %1919 = vmatpush.msrb.mxu3 %v5457_v62  ;;  %v5451_v9 = vld [vmem:[%s9771_s5 + $0x340] sm:$0xff] }
 0x287   : > { %v1372_v45 = vadd.f32 %v1352_v48, %v1309_v37  ;;  %5384 = vmatmul.msk.f32.gmra.mxu3 %vm6755_vm4, %v6942_v61  ;;  %5400 = vmatmul.msk.f32.gmra.mxu0 %vm6755_vm4, %v6942_v61  ;;  %v1423_v29 = vsel %vm468_vm0, 0.0, %v6942_v61  ;;  %v1432_v32 = vsel %vm468_vm0, %v6942_v61, 0.0  ;;  %v1310_v37 = vadd.f32 %v1292_v43, %v1249_v10  ;;  %v1295_v48 = vpop.f32.mrf.mxu2  ;;  %v5415_v62 = vld [vmem:[%s9771_s5 + $0x220] sm:$0xff] }
 0x288   : > { %v1491_v23 = vrot.slane %v1423_v29, 1  ;;  %v1492_v12 = vrot.slane %v1432_v32, 1  ;;  %v1721_v15 = vrot.slane %v1423_v29, 2  ;;  %v1722_v22 = vrot.slane %v1432_v32, 2  ;;  %v5456_v29 = vld [vmem:[%s9771_s5 + $0x368] sm:$0xff]  ;;  %1960 = vmatpush.msra.mxu0 %v5458_v31  ;;  %1833 = vmatpush.msra.mxu2 %v5418_v7  ;;  %v5414_v31 = vld [vmem:[%s9771_s5 + $0x218] sm:$0xff] }
 0x289   : > { %v1384_v41 = vadd.f32 %v6846_v17, %v1372_v45  ;;  %v5455_v45 = vld [vmem:[%s9771_s5 + $0x360] sm:$0xff]  ;;  %1793 = vmatpush.msrb.mxu1 %v5415_v62 }
 0x28a   : > { %v6985_v6 = vsel %vm832_vm3, %v1491_v23, %v1492_v12  ;;  %v6988_v46 = vsel %vm1714_vm5, %v1721_v15, %v1722_v22  ;;  %v928_v23 = vadd.f32 %v6518_v44, %v824_v35  ;;  %v1189_v12 = vadd.f32 %v6608_v13, %v1091_v58  ;;  %v5453_v22 = vld [vmem:[%s9771_s5 + $0x350] sm:$0xff]  ;;  %1920 = vmatpush.msrb.mxu3 %v5455_v45  ;;  %v5416_v35 = vld [vmem:[%s9771_s5 + $0x228] sm:$0xff] }
 0x28b   : > { %v1392_v36 = vmax.f32 %v1384_v41, 0.0  ;;  %1572 = vmatmul.f32.gmra.mxu1 %v6985_v6  ;;  %1613 = vmatmul.f32.gmra.mxu2 %v6985_v6 }
 0x28c   : > { %1961 = vmatpush.msra.mxu0 %v5456_v29  ;;  %v1010_v13 = vadd.f32 %v6700_v56, %v928_v23  ;;  %v1250_v41 = vadd.f32 %v6764_v59, %v1189_v12  ;;  %1921 = vmatpush.msrb.mxu3 %v5453_v22  ;;  %v827_v56 = vadd.f32 %v6528_v55, %v6505_v18  ;;  %v5449_v18 = vld [vmem:[%s9771_s5 + $0x330] sm:$0xff]  ;;  %v5450_v55 = vld [vmem:[%s9771_s5 + $0x338] sm:$0xff]  ;;  %v5447_v29 = vld [vmem:[%s9771_s5 + $0x320] sm:$0xff] }
 0x28d   : > { %v6999_v49 = vrot.slane %v1392_v36, 7  ;;  %1834 = vmatpush.msra.mxu2 %v5416_v35  ;;  %1794 = vmatpush.msrb.mxu1 %v5413_v4  ;;  %v5446_v22 = vld [vmem:[%s9771_s5 + $0x318] sm:$0xff] }
 0x28e   : > { %v1355_v27 = vpop.f32.mrf.mxu3  ;;  %1962 = vmatpush.msra.mxu0 %v5454_v40  ;;  %v1092_v59 = vadd.f32 %v6686_v26, %v1010_v13  ;;  %v1311_v10 = vadd.f32 %v1295_v48, %v1250_v41  ;;  %1922 = vmatpush.msrb.mxu3 %v5451_v9  ;;  %v5444_v41 = vld [vmem:[%s9771_s5 + $0x308] sm:$0xff]  ;;  %v5538_v9 = vld [vmem:[%s9771_s5 + $0x4f8] sm:$0xff] }
 0x28f   : > { %v1373_v34 = vadd.f32 %v1355_v27, %v1310_v37  ;;  %5386 = vmatmul.msk.f32.gmra.mxu3 %vm6755_vm4, %v6999_v49  ;;  %5402 = vmatmul.msk.f32.gmra.mxu0 %vm6755_vm4, %v6999_v49  ;;  %v1424_v43 = vsel %vm468_vm0, 0.0, %v6999_v49  ;;  %v1433_v14 = vsel %vm468_vm0, %v6999_v49, 0.0  ;;  %v1298_v48 = vpop.f32.mrf.mxu2 }
 0x290   : > { %v1494_v32 = vrot.slane %v1424_v43, 1  ;;  %v1495_v38 = vrot.slane %v1433_v14, 1  ;;  %v1724_v1 = vrot.slane %v1424_v43, 2  ;;  %v1725_v47 = vrot.slane %v1433_v14, 2  ;;  %1963 = vmatpush.msra.mxu0 %v5452_v19  ;;  %1923 = vmatpush.msrb.mxu3 %v5449_v18 }
 0x291   : > { %v1385_v15 = vadd.f32 %v6846_v17, %v1373_v34  ;;  %v929_v43 = vadd.f32 %v6534_v11, %v827_v56  ;;  %v1190_v14 = vadd.f32 %v6638_v51, %v1092_v59  ;;  %1835 = vmatpush.msra.mxu2 %v5414_v31  ;;  %v5411_v11 = vld [vmem:[%s9771_s5 + $0x200] sm:$0xff]  ;;  %v5412_v51 = vld [vmem:[%s9771_s5 + $0x208] sm:$0xff] }
 0x292   : > { %v7042_v0 = vsel %vm832_vm3, %v1494_v32, %v1495_v38  ;;  %v7045_v44 = vsel %vm1714_vm5, %v1724_v1, %v1725_v47  ;;  %1964 = vmatpush.msra.mxu0 %v5450_v55  ;;  %v5448_v32 = vld [vmem:[%s9771_s5 + $0x328] sm:$0xff]  ;;  %1924 = vmatpush.msrb.mxu3 %v5447_v29  ;;  %v5531_v29 = vld [vmem:[%s9771_s5 + $0x4c0] sm:$0xff] }
 0x293   : > { %v1393_v25 = vmax.f32 %v1385_v15, 0.0  ;;  %1575 = vmatmul.f32.gmra.mxu1 %v7042_v0  ;;  %1616 = vmatmul.f32.gmra.mxu2 %v7042_v0  ;;  %v1011_v47 = vadd.f32 %v6762_v63, %v929_v43  ;;  %v1251_v23 = vadd.f32 %v6801_v50, %v1190_v14  ;;  %v5445_v15 = vld [vmem:[%s9771_s5 + $0x310] sm:$0xff]  ;;  %v5443_v50 = vld [vmem:[%s9771_s5 + $0x300] sm:$0xff] }
 0x294   : > { %1965 = vmatpush.msra.mxu0 %v5448_v32  ;;  %1795 = vmatpush.msrb.mxu1 %v5411_v11  ;;  %v5532_v32 = vld [vmem:[%s9771_s5 + $0x4c8] sm:$0xff] }
 0x295   : > { %v7060_v36 = vrot.slane %v1393_v25, 7  ;;  %v1093_v40 = vadd.f32 %v6737_v33, %v1011_v47  ;;  %v1312_v63 = vadd.f32 %v1298_v48, %v1251_v23  ;;  %1836 = vmatpush.msra.mxu2 %v5412_v51  ;;  %1925 = vmatpush.msrb.mxu3 %v5445_v15  ;;  %v5537_v33 = vld [vmem:[%s9771_s5 + $0x4f0] sm:$0xff] }
 0x296   : > { %v1358_v58 = vpop.f32.mrf.mxu3  ;;  %1966 = vmatpush.msra.mxu0 %v5446_v22  ;;  %2048 = vmatpush.msra.mxu1 %v5537_v33 }
 0x297   : > { %v1374_v26 = vadd.f32 %v1358_v58, %v1311_v10  ;;  %5388 = vmatmul.msk.f32.gmra.mxu3 %vm6755_vm4, %v7060_v36  ;;  %5404 = vmatmul.msk.f32.gmra.mxu0 %vm6755_vm4, %v7060_v36  ;;  %v1425_v37 = vsel %vm468_vm0, 0.0, %v7060_v36  ;;  %v1434_v16 = vsel %vm468_vm0, %v7060_v36, 0.0  ;;  %v1191_v18 = vadd.f32 %v6675_v24, %v1093_v40 }
 0x298   : > { %v1497_v27 = vrot.slane %v1425_v37, 1  ;;  %v1498_v21 = vrot.slane %v1434_v16, 1  ;;  %v1727_v7 = vrot.slane %v1425_v37, 2  ;;  %v1728_v34 = vrot.slane %v1434_v16, 2  ;;  %1926 = vmatpush.msrb.mxu3 %v5443_v50  ;;  %1967 = vmatpush.msra.mxu0 %v5444_v41  ;;  %v5536_v37 = vld [vmem:[%s9771_s5 + $0x4e8] sm:$0xff]  ;;  %v1301_v16 = vpop.f32.mrf.mxu2  ;;  %v5530_v50 = vld [vmem:[%s9771_s5 + $0x4b8] sm:$0xff] }
 0x299   : > { %v1386_v45 = vadd.f32 %v6846_v17, %v1374_v26  ;;  %2089 = vmatpush.msrb.mxu2 %v5538_v9  ;;  %v5535_v26 = vld [vmem:[%s9771_s5 + $0x4e0] sm:$0xff]  ;;  %v1252_v24 = vadd.f32 %v6816_v2, %v1191_v18  ;;  %v5525_v18 = vld [vmem:[%s9771_s5 + $0x490] sm:$0xff] }
 0x29a   : > { %v7100_v38 = vsel %vm832_vm3, %v1497_v27, %v1498_v21  ;;  %v7109_v1 = vsel %vm1714_vm5, %v1727_v7, %v1728_v34  ;;  %v5533_v27 = vld [vmem:[%s9771_s5 + $0x4d0] sm:$0xff]  ;;  %v5534_v21 = vld [vmem:[%s9771_s5 + $0x4d8] sm:$0xff]  ;;  %2049 = vmatpush.msra.mxu1 %v5535_v26  ;;  %v5527_v9 = vld [vmem:[%s9771_s5 + $0x4a0] sm:$0xff]  ;;  %v1716_v26 = vrot.slane %v6774_v53, 2 }
 0x29b   : > { %v1394_v12 = vmax.f32 %v1386_v45, 0.0  ;;  %1578 = vmatmul.f32.gmra.mxu1 %v7100_v38  ;;  %1619 = vmatmul.f32.gmra.mxu2 %v7100_v38  ;;  %v1313_v7 = vadd.f32 %v1301_v16, %v1252_v24  ;;  %v5523_v16 = vld [vmem:[%s9771_s5 + $0x480] sm:$0xff]  ;;  %v5524_v53 = vld [vmem:[%s9771_s5 + $0x488] sm:$0xff]  ;;  %v5569_v24 = vld [vmem:[%s9771_s5 + $0x5f0] sm:$0xff] }
 0x29c   : > { %2090 = vmatpush.msrb.mxu2 %v5536_v37  ;;  %2050 = vmatpush.msra.mxu1 %v5533_v27  ;;  %v1715_v37 = vrot.slane %v6022_v28, 2  ;;  %v5567_v27 = vld [vmem:[%s9771_s5 + $0x5e0] sm:$0xff] }
 0x29d   : > { %v7122_v13 = vrot.slane %v1394_v12, 7  ;;  %2183 = vmatpush.msra.mxu3 %v5569_v24  ;;  %v5548_v24 = vld [vmem:[%s9771_s5 + $0x548] sm:$0xff] }
 0x29e   : > { %v1361_v25 = vpop.f32.mrf.mxu3  ;;  %2091 = vmatpush.msrb.mxu2 %v5534_v21  ;;  %2051 = vmatpush.msra.mxu1 %v5531_v29  ;;  %v5568_v21 = vld [vmem:[%s9771_s5 + $0x5e8] sm:$0xff] }
 0x29f   : > { %v1375_v19 = vadd.f32 %v1361_v25, %v1312_v63  ;;  %5390 = vmatmul.msk.f32.gmra.mxu3 %vm6755_vm4, %v7122_v13  ;;  %5406 = vmatmul.msk.f32.gmra.mxu0 %vm6755_vm4, %v7122_v13  ;;  %v1426_v56 = vsel %vm468_vm0, 0.0, %v7122_v13  ;;  %v1435_v59 = vsel %vm468_vm0, %v7122_v13, 0.0  ;;  %v5529_v63 = vld [vmem:[%s9771_s5 + $0x4b0] sm:$0xff]  ;;  %v5564_v29 = vld [vmem:[%s9771_s5 + $0x5c8] sm:$0xff] }
 0x2a0   : > { %v1500_v10 = vrot.slane %v1426_v56, 1  ;;  %v1501_v62 = vrot.slane %v1435_v59, 1  ;;  %v1730_v35 = vrot.slane %v1426_v56, 2  ;;  %v1731_v58 = vrot.slane %v1435_v59, 2  ;;  %2092 = vmatpush.msrb.mxu2 %v5532_v32  ;;  %2052 = vmatpush.msra.mxu1 %v5529_v63  ;;  %v5519_v32 = vld [vmem:[%s9771_s5 + $0x460] sm:$0xff]  ;;  %v5518_v63 = vld [vmem:[%s9771_s5 + $0x458] sm:$0xff] }
 0x2a1   : > { %v1387_v55 = vadd.f32 %v6846_v17, %v1375_v19  ;;  %v5528_v19 = vld [vmem:[%s9771_s5 + $0x4a8] sm:$0xff]  ;;  %2184 = vmatpush.msra.mxu3 %v5567_v27  ;;  %v5511_v27 = vld [vmem:[%s9771_s5 + $0x420] sm:$0xff] }
 0x2a2   : > { %v7155_v4 = vsel %vm832_vm3, %v1500_v10, %v1501_v62  ;;  %v7158_v31 = vsel %vm1714_vm5, %v1730_v35, %v1731_v58  ;;  %2093 = vmatpush.msrb.mxu2 %v5530_v50  ;;  %2053 = vmatpush.msra.mxu1 %v5527_v9  ;;  %v5557_v50 = vld [vmem:[%s9771_s5 + $0x590] sm:$0xff]  ;;  %v5556_v9 = vld [vmem:[%s9771_s5 + $0x588] sm:$0xff] }
 0x2a3   : > { %v1395_v48 = vmax.f32 %v1387_v55, 0.0  ;;  %1581 = vmatmul.f32.gmra.mxu1 %v7155_v4  ;;  %1622 = vmatmul.f32.gmra.mxu2 %v7155_v4  ;;  %v5526_v55 = vld [vmem:[%s9771_s5 + $0x498] sm:$0xff] }
 0x2a4   : > { %2094 = vmatpush.msrb.mxu2 %v5528_v19  ;;  %2054 = vmatpush.msra.mxu1 %v5525_v18  ;;  %v5515_v19 = vld [vmem:[%s9771_s5 + $0x440] sm:$0xff]  ;;  %v5552_v18 = vld [vmem:[%s9771_s5 + $0x568] sm:$0xff] }
 0x2a5   : > { %v7169_v34 = vrot.slane %v1395_v48, 7  ;;  %v7252_v48 = vsel %vm1714_vm5, %v1715_v37, %v1716_v26  ;;  %v5514_v26 = vld [vmem:[%s9771_s5 + $0x438] sm:$0xff]  ;;  %v5549_v37 = vld [vmem:[%s9771_s5 + $0x550] sm:$0xff] }
 0x2a6   : > { %v1364_v43 = vpop.f32.mrf.mxu3  ;;  %2095 = vmatpush.msrb.mxu2 %v5526_v55  ;;  %2055 = vmatpush.msra.mxu1 %v5523_v16  ;;  %v5513_v55 = vld [vmem:[%s9771_s5 + $0x430] sm:$0xff]  ;;  %v5550_v16 = vld [vmem:[%s9771_s5 + $0x558] sm:$0xff] }
 0x2a7   : > { %v1376_v2 = vadd.f32 %v1364_v43, %v1313_v7  ;;  %5392 = vmatmul.msk.f32.gmra.mxu3 %vm6755_vm4, %v7169_v34  ;;  %5408 = vmatmul.msk.f32.gmra.mxu0 %vm6755_vm4, %v7169_v34  ;;  %v1427_v14 = vsel %vm468_vm0, 0.0, %v7169_v34  ;;  %v1436_v45 = vsel %vm468_vm0, %v7169_v34, 0.0  ;;  %v5521_v7 = vld [vmem:[%s9771_s5 + $0x470] sm:$0xff]  ;;  %v5522_v43 = vld [vmem:[%s9771_s5 + $0x478] sm:$0xff] }
 0x2a8   : > { %v1503_v11 = vrot.slane %v1427_v14, 1  ;;  %v1504_v51 = vrot.slane %v1436_v45, 1  ;;  %v1733_v47 = vrot.slane %v1427_v14, 2  ;;  %v1734_v23 = vrot.slane %v1436_v45, 2  ;;  %2096 = vmatpush.msrb.mxu2 %v5524_v53  ;;  %v5566_v14 = vld [vmem:[%s9771_s5 + $0x5d8] sm:$0xff]  ;;  %2056 = vmatpush.msra.mxu1 %v5521_v7  ;;  %v5563_v45 = vld [vmem:[%s9771_s5 + $0x5c0] sm:$0xff] }
 0x2a9   : > { %v1388_v12 = vadd.f32 %v6846_v17, %v1376_v2  ;;  %v5565_v2 = vld [vmem:[%s9771_s5 + $0x5d0] sm:$0xff]  ;;  %v5547_v53 = vld [vmem:[%s9771_s5 + $0x540] sm:$0xff] }
 0x2aa   : > { %v7189_v15 = vsel %vm832_vm3, %v1503_v11, %v1504_v51  ;;  %v7192_v22 = vsel %vm1714_vm5, %v1733_v47, %v1734_v23  ;;  %2097 = vmatpush.msrb.mxu2 %v5522_v43  ;;  %2185 = vmatpush.msra.mxu3 %v5565_v2  ;;  %v5520_v11 = vld [vmem:[%s9771_s5 + $0x468] sm:$0xff]  ;;  %v5561_v51 = vld [vmem:[%s9771_s5 + $0x5b0] sm:$0xff]  ;;  %v5562_v47 = vld [vmem:[%s9771_s5 + $0x5b8] sm:$0xff] }
 0x2ab   : > { %v1396_v40 = vmax.f32 %v1388_v12, 0.0  ;;  %1584 = vmatmul.f32.gmra.mxu1 %v7189_v15  ;;  %1625 = vmatmul.f32.gmra.mxu2 %v7189_v15  ;;  %v5559_v23 = vld [vmem:[%s9771_s5 + $0x5a0] sm:$0xff]  ;;  %v5560_v12 = vld [vmem:[%s9771_s5 + $0x5a8] sm:$0xff] }
 0x2ac   : > { %2186 = vmatpush.msra.mxu3 %v5563_v45  ;;  %2057 = vmatpush.msra.mxu1 %v5519_v32  ;;  %v5543_v7 = vld [vmem:[%s9771_s5 + $0x520] sm:$0xff]  ;;  %v5544_v43 = vld [vmem:[%s9771_s5 + $0x528] sm:$0xff]  ;;  %v5510_v45 = vld [vmem:[%s9771_s5 + $0x418] sm:$0xff] }
 0x2ad   : > { %v7202_v41 = vrot.slane %v1396_v40, 7  ;;  %2098 = vmatpush.msrb.mxu2 %v5520_v11  ;;  %v5517_v40 = vld [vmem:[%s9771_s5 + $0x450] sm:$0xff]  ;;  %v5539_v11 = vld [vmem:[%s9771_s5 + $0x500] sm:$0xff] }
 0x2ae   : > { %2187 = vmatpush.msra.mxu3 %v5561_v51  ;;  %2058 = vmatpush.msra.mxu1 %v5517_v40  ;;  %v5540_v51 = vld [vmem:[%s9771_s5 + $0x508] sm:$0xff]  ;;  %v5602_v40 = vld [vmem:[%s9771_s5 + $0x6f8] sm:$0xff] }
 0x2af   : > { %5394 = vmatmul.msk.f32.gmra.mxu3 %vm6755_vm4, %v7202_v41  ;;  %5410 = vmatmul.msk.f32.gmra.mxu0 %vm6755_vm4, %v7202_v41  ;;  %v1428_v25 = vsel %vm468_vm0, 0.0, %v7202_v41  ;;  %v1437_v33 = vsel %vm468_vm0, %v7202_v41, 0.0 }
 0x2b0   : > { %v1506_v56 = vrot.slane %v1428_v25, 1  ;;  %v1507_v59 = vrot.slane %v1437_v33, 1  ;;  %v1736_v10 = vrot.slane %v1428_v25, 2  ;;  %v1737_v62 = vrot.slane %v1437_v33, 2  ;;  %2188 = vmatpush.msra.mxu3 %v5559_v23  ;;  %v5558_v25 = vld [vmem:[%s9771_s5 + $0x598] sm:$0xff]  ;;  %2099 = vmatpush.msrb.mxu2 %v5518_v63  ;;  %v5555_v33 = vld [vmem:[%s9771_s5 + $0x580] sm:$0xff]  ;;  %v1304_v63 = vpop.f32.mrf.mxu2 }
 0x2b1   : > { %2059 = vmatpush.msra.mxu1 %v5515_v19  ;;  %v5597_v19 = vld [vmem:[%s9771_s5 + $0x6d0] sm:$0xff] }
 0x2b2   : > { %v7221_v35 = vsel %vm832_vm3, %v1506_v56, %v1507_v59  ;;  %v7224_v58 = vsel %vm1714_vm5, %v1736_v10, %v1737_v62  ;;  %2189 = vmatpush.msra.mxu3 %v5557_v50  ;;  %v5516_v56 = vld [vmem:[%s9771_s5 + $0x448] sm:$0xff]  ;;  %v5553_v59 = vld [vmem:[%s9771_s5 + $0x570] sm:$0xff]  ;;  %v5554_v10 = vld [vmem:[%s9771_s5 + $0x578] sm:$0xff] }
 0x2b3   : > { %1587 = vmatmul.f32.gmra.mxu1 %v7221_v35  ;;  %1628 = vmatmul.f32.gmra.mxu2 %v7221_v35  ;;  %v5551_v62 = vld [vmem:[%s9771_s5 + $0x560] sm:$0xff] }
 0x2b4   : > { %2190 = vmatpush.msra.mxu3 %v5555_v33  ;;  %2100 = vmatpush.msrb.mxu2 %v5516_v56  ;;  %v5598_v56 = vld [vmem:[%s9771_s5 + $0x6d8] sm:$0xff] }
 0x2b5   : > { %2060 = vmatpush.msra.mxu1 %v5513_v55  ;;  %v5594_v55 = vld [vmem:[%s9771_s5 + $0x6b8] sm:$0xff] }
 0x2b6   : > { %2191 = vmatpush.msra.mxu3 %v5553_v59  ;;  %2101 = vmatpush.msrb.mxu2 %v5514_v26 }
 0x2b7   : > { %5476 = vmatmul.msk.f32.vlgmr.msrb.gmra.mxu3 %vm6755_vm4, %v6888_v42  ;;  %5492 = vmatmul.msk.f32.vlgmr.msra.gmra.mxu0 %vm6755_vm4, %v6888_v42  ;;  %v5570_v42 = vld [vmem:[%s9771_s5 + $0x5f8] sm:$0xff] }
 0x2b8   : > { %2224 = vmatpush.msrb.mxu0 %v5570_v42  ;;  %2192 = vmatpush.msra.mxu3 %v5551_v62  ;;  %v830_v42 = vadd.f32 %v6539_v3, %v6516_v39  ;;  %v5545_v39 = vld [vmem:[%s9771_s5 + $0x530] sm:$0xff]  ;;  %v5546_v3 = vld [vmem:[%s9771_s5 + $0x538] sm:$0xff]  ;;  %v5596_v62 = vld [vmem:[%s9771_s5 + $0x6c8] sm:$0xff] }
 0x2b9   : > { %2061 = vmatpush.msra.mxu1 %v5511_v27  ;;  %v7507_v27 = vpop.f32.mrf.mxu1 }
 0x2ba   : > { %2225 = vmatpush.msrb.mxu0 %v5568_v21  ;;  %2193 = vmatpush.msra.mxu3 %v5549_v37  ;;  %v5512_v21 = vld [vmem:[%s9771_s5 + $0x428] sm:$0xff]  ;;  %v930_v2 = vadd.f32 %v6541_v5, %v830_v42  ;;  %v5542_v5 = vld [vmem:[%s9771_s5 + $0x518] sm:$0xff]  ;;  %v5591_v37 = vld [vmem:[%s9771_s5 + $0x6a0] sm:$0xff] }
 0x2bb   : > { %1796 = vmatmul.f32.vlgmr.msrb.gmra.mxu1 %v7252_v48  ;;  %1837 = vmatmul.f32.vlgmr.msra.gmra.mxu2 %v7252_v48  ;;  %v5590_v42 = vld [vmem:[%s9771_s5 + $0x698] sm:$0xff] }
 0x2bc   : > { %2226 = vmatpush.msrb.mxu0 %v5566_v14  ;;  %2194 = vmatpush.msra.mxu3 %v5547_v53  ;;  %v5509_v14 = vld [vmem:[%s9771_s5 + $0x410] sm:$0xff]  ;;  %v1012_v32 = vadd.f32 %v6803_v52, %v930_v2  ;;  %v5508_v52 = vld [vmem:[%s9771_s5 + $0x408] sm:$0xff]  ;;  %v7497_v53 = vpop.f32.mrf.mxu0 }
 0x2bd   : > { %2102 = vmatpush.msrb.mxu2 %v5512_v21  ;;  %2062 = vmatpush.msra.mxu1 %v5509_v14  ;;  %v5587_v21 = vld [vmem:[%s9771_s5 + $0x680] sm:$0xff]  ;;  %v5585_v14 = vld [vmem:[%s9771_s5 + $0x670] sm:$0xff] }
 0x2be   : > { %2227 = vmatpush.msrb.mxu0 %v5564_v29  ;;  %2195 = vmatpush.msra.mxu3 %v5545_v39  ;;  %v5541_v29 = vld [vmem:[%s9771_s5 + $0x510] sm:$0xff]  ;;  %v1094_v23 = vadd.f32 %v6793_v8, %v1012_v32  ;;  %v5588_v39 = vld [vmem:[%s9771_s5 + $0x688] sm:$0xff]  ;;  %v7542_v32 = vpop.f32.mrf.mxu2 }
 0x2bf   : > { %5478 = vmatmul.msk.f32.gmra.mxu3 %vm6755_vm4, %v6942_v61  ;;  %5494 = vmatmul.msk.f32.gmra.mxu0 %vm6755_vm4, %v6942_v61  ;;  %v5601_v8 = vld [vmem:[%s9771_s5 + $0x6f0] sm:$0xff] }
 0x2c0   : > { %2228 = vmatpush.msrb.mxu0 %v5562_v47  ;;  %2196 = vmatpush.msra.mxu3 %v5543_v7  ;;  %v5507_v47 = vld [vmem:[%s9771_s5 + $0x400] sm:$0xff]  ;;  %v5666_v7 = vld [vmem:[%s9771_s5 + $0x7f8] sm:$0xff] }
 0x2c1   : > { %2103 = vmatpush.msrb.mxu2 %v5510_v45  ;;  %2063 = vmatpush.msra.mxu1 %v5507_v47  ;;  %v5586_v45 = vld [vmem:[%s9771_s5 + $0x678] sm:$0xff]  ;;  %v5583_v47 = vld [vmem:[%s9771_s5 + $0x660] sm:$0xff] }
 0x2c2   : > { %2229 = vmatpush.msrb.mxu0 %v5560_v12  ;;  %2197 = vmatpush.msra.mxu3 %v5541_v29  ;;  %v1192_v12 = vadd.f32 %v6714_v60, %v1094_v23  ;;  %v5599_v60 = vld [vmem:[%s9771_s5 + $0x6e0] sm:$0xff]  ;;  %v5661_v29 = vld [vmem:[%s9771_s5 + $0x7d0] sm:$0xff] }
 0x2c3   : > { %1799 = vmatmul.f32.gmra.mxu1 %v6931_v20  ;;  %1840 = vmatmul.f32.gmra.mxu2 %v6931_v20  ;;  %v5657_v23 = vld [vmem:[%s9771_s5 + $0x7b0] sm:$0xff] }
 0x2c4   : > { %2230 = vmatpush.msrb.mxu0 %v5558_v25  ;;  %2198 = vmatpush.msra.mxu3 %v5539_v11  ;;  %v1253_v50 = vadd.f32 %v6833_v57, %v1192_v12  ;;  %v1367_v25 = vpop.f32.mrf.mxu3  ;;  %v5659_v11 = vld [vmem:[%s9771_s5 + $0x7c0] sm:$0xff] }
 0x2c5   : > { %2104 = vmatpush.msrb.mxu2 %v5508_v52  ;;  %2314 = vmatpush.msrb.mxu1 %v5601_v8  ;;  %v5584_v52 = vld [vmem:[%s9771_s5 + $0x668] sm:$0xff]  ;;  %v5658_v8 = vld [vmem:[%s9771_s5 + $0x7b8] sm:$0xff] }
 0x2c6   : > { %2231 = vmatpush.msrb.mxu0 %v5556_v9  ;;  %v1314_v33 = vadd.f32 %v1304_v63, %v1253_v50  ;;  %v5600_v9 = vld [vmem:[%s9771_s5 + $0x6e8] sm:$0xff] }
 0x2c7   : > { %5480 = vmatmul.msk.f32.gmra.mxu3 %vm6755_vm4, %v6999_v49  ;;  %5496 = vmatmul.msk.f32.gmra.mxu0 %vm6755_vm4, %v6999_v49  ;;  %v5656_v63 = vld [vmem:[%s9771_s5 + $0x7a8] sm:$0xff] }
 0x2c8   : > { %2232 = vmatpush.msrb.mxu0 %v5554_v10  ;;  %2355 = vmatpush.msra.mxu2 %v5602_v40  ;;  %v1377_v57 = vadd.f32 %v1367_v25, %v1314_v33  ;;  %v5595_v10 = vld [vmem:[%s9771_s5 + $0x6c0] sm:$0xff]  ;;  %v5581_v33 = vld [vmem:[%s9771_s5 + $0x650] sm:$0xff] }
 0x2c9   : > { %2315 = vmatpush.msrb.mxu1 %v5599_v60  ;;  %v5655_v40 = vld [vmem:[%s9771_s5 + $0x7a0] sm:$0xff]  ;;  %v5582_v60 = vld [vmem:[%s9771_s5 + $0x658] sm:$0xff] }
 0x2ca   : > { %2233 = vmatpush.msrb.mxu0 %v5552_v18  ;;  %2356 = vmatpush.msra.mxu2 %v5600_v9  ;;  %v1389_v59 = vadd.f32 %v6846_v17, %v1377_v57  ;;  %v5593_v17 = vld [vmem:[%s9771_s5 + $0x6b0] sm:$0xff] }
 0x2cb   : > { %1802 = vmatmul.f32.gmra.mxu1 %v6988_v46  ;;  %1843 = vmatmul.f32.gmra.mxu2 %v6988_v46  ;;  %v5653_v9 = vld [vmem:[%s9771_s5 + $0x790] sm:$0xff] }
 0x2cc   : > { %2234 = vmatpush.msrb.mxu0 %v5550_v16  ;;  %2316 = vmatpush.msrb.mxu1 %v5597_v19  ;;  %v1397_v18 = vmax.f32 %v1389_v59, 0.0  ;;  %v5592_v16 = vld [vmem:[%s9771_s5 + $0x6a8] sm:$0xff]  ;;  %v7529_v2 = vpop.f32.mrf.mxu3  ;;  %v5654_v19 = vld [vmem:[%s9771_s5 + $0x798] sm:$0xff] }
 0x2cd   : > { %2357 = vmatpush.msra.mxu2 %v5598_v56  ;;  %v5651_v56 = vld [vmem:[%s9771_s5 + $0x780] sm:$0xff]  ;;  %v5652_v59 = vld [vmem:[%s9771_s5 + $0x788] sm:$0xff] }
 0x2ce   : > { %2235 = vmatpush.msrb.mxu0 %v5548_v24  ;;  %2317 = vmatpush.msrb.mxu1 %v5595_v10  ;;  %v7483_v26 = vrot.slane %v1397_v18, 7  ;;  %v5589_v24 = vld [vmem:[%s9771_s5 + $0x690] sm:$0xff]  ;;  %v5579_v18 = vld [vmem:[%s9771_s5 + $0x640] sm:$0xff] }
 0x2cf   : > { %5482 = vmatmul.msk.f32.gmra.mxu3 %vm6755_vm4, %v7060_v36  ;;  %5498 = vmatmul.msk.f32.gmra.mxu0 %vm6755_vm4, %v7060_v36 }
 0x2d0   : > { %2236 = vmatpush.msrb.mxu0 %v5546_v3  ;;  %2358 = vmatpush.msra.mxu2 %v5596_v62  ;;  %v5665_v3 = vld [vmem:[%s9771_s5 + $0x7f0] sm:$0xff] }
 0x2d1   : > { %2318 = vmatpush.msrb.mxu1 %v5593_v17  ;;  %2445 = vmatpush.msrb.mxu3 %v5665_v3  ;;  %v5580_v17 = vld [vmem:[%s9771_s5 + $0x648] sm:$0xff]  ;;  %v5577_v3 = vld [vmem:[%s9771_s5 + $0x630] sm:$0xff] }
 0x2d2   : > { %2237 = vmatpush.msrb.mxu0 %v5544_v43  ;;  %2359 = vmatpush.msra.mxu2 %v5594_v55  ;;  %v5664_v43 = vld [vmem:[%s9771_s5 + $0x7e8] sm:$0xff]  ;;  %v5649_v55 = vld [vmem:[%s9771_s5 + $0x770] sm:$0xff] }
 0x2d3   : > { %1805 = vmatmul.f32.gmra.mxu1 %v7045_v44  ;;  %1846 = vmatmul.f32.gmra.mxu2 %v7045_v44 }
 0x2d4   : > { %2238 = vmatpush.msrb.mxu0 %v5542_v5  ;;  %2319 = vmatpush.msrb.mxu1 %v5591_v37 }
 0x2d5   : > { %2360 = vmatpush.msra.mxu2 %v5592_v16  ;;  %v5650_v16 = vld [vmem:[%s9771_s5 + $0x778] sm:$0xff] }
 0x2d6   : > { %2239 = vmatpush.msrb.mxu0 %v5540_v51  ;;  %2320 = vmatpush.msrb.mxu1 %v5589_v24  ;;  %v5660_v51 = vld [vmem:[%s9771_s5 + $0x7c8] sm:$0xff]  ;;  %v5647_v24 = vld [vmem:[%s9771_s5 + $0x760] sm:$0xff] }
 0x2d7   : > { %5484 = vmatmul.msk.f32.gmra.mxu3 %vm6755_vm4, %v7122_v13  ;;  %5500 = vmatmul.msk.f32.gmra.mxu0 %vm6755_vm4, %v7122_v13 }
 0x2d8   : > { %2361 = vmatpush.msra.mxu2 %v5590_v42  ;;  %2321 = vmatpush.msrb.mxu1 %v5587_v21  ;;  %v5648_v42 = vld [vmem:[%s9771_s5 + $0x768] sm:$0xff] }
 0x2d9   : > { %2486 = vmatpush.msra.mxu0 %v5666_v7  ;;  %v5578_v7 = vld [vmem:[%s9771_s5 + $0x638] sm:$0xff] }
 0x2da   : > { %2362 = vmatpush.msra.mxu2 %v5588_v39  ;;  %2322 = vmatpush.msrb.mxu1 %v5585_v14  ;;  %v5646_v14 = vld [vmem:[%s9771_s5 + $0x758] sm:$0xff] }
 0x2db   : > { %1808 = vmatmul.f32.gmra.mxu1 %v7109_v1  ;;  %1849 = vmatmul.f32.gmra.mxu2 %v7109_v1 }
 0x2dc   : > { %2487 = vmatpush.msra.mxu0 %v5664_v43  ;;  %2363 = vmatpush.msra.mxu2 %v5586_v45  ;;  %v5643_v45 = vld [vmem:[%s9771_s5 + $0x740] sm:$0xff] }
 0x2dd   : > { %2323 = vmatpush.msrb.mxu1 %v5583_v47  ;;  %v5641_v47 = vld [vmem:[%s9771_s5 + $0x730] sm:$0xff] }
 0x2de   : > { %2364 = vmatpush.msra.mxu2 %v5584_v52 }
 0x2df   : > { %5486 = vmatmul.msk.f32.gmra.mxu3 %vm6755_vm4, %v7169_v34  ;;  %5502 = vmatmul.msk.f32.gmra.mxu0 %vm6755_vm4, %v7169_v34 }
 0x2e0   : > { %2324 = vmatpush.msrb.mxu1 %v5581_v33  ;;  %2365 = vmatpush.msra.mxu2 %v5582_v60  ;;  %v5574_v33 = vld [vmem:[%s9771_s5 + $0x618] sm:$0xff] }
 0x2e2   : > { %2325 = vmatpush.msrb.mxu1 %v5579_v18  ;;  %2366 = vmatpush.msra.mxu2 %v5580_v17  ;;  %v5571_v18 = vld [vmem:[%s9771_s5 + $0x600] sm:$0xff]  ;;  %v5572_v17 = vld [vmem:[%s9771_s5 + $0x608] sm:$0xff] }
 0x2e3   : > { %1811 = vmatmul.f32.gmra.mxu1 %v7158_v31  ;;  %1852 = vmatmul.f32.gmra.mxu2 %v7158_v31 }
 0x2e4   : > { %2326 = vmatpush.msrb.mxu1 %v5577_v3  ;;  %2367 = vmatpush.msra.mxu2 %v5578_v7 }
 0x2e7   : > { %5488 = vmatmul.msk.f32.gmra.mxu3 %vm6755_vm4, %v7202_v41  ;;  %5504 = vmatmul.msk.f32.gmra.mxu0 %vm6755_vm4, %v7202_v41 }
 0x2eb   : > { %1814 = vmatmul.f32.gmra.mxu1 %v7192_v22  ;;  %1855 = vmatmul.f32.gmra.mxu2 %v7192_v22 }
 0x2ef   : > { %5490 = vmatmul.msk.f32.gmra.mxu3 %vm6755_vm4, %v7483_v26  ;;  %5506 = vmatmul.msk.f32.gmra.mxu0 %vm6755_vm4, %v7483_v26 }
 0x2f3   : > { %1817 = vmatmul.f32.gmra.mxu1 %v7224_v58  ;;  %1858 = vmatmul.f32.gmra.mxu2 %v7224_v58 }
 0x2f7   : > { %2199 = vmatmul.f32.vlgmr.msra.gmra.mxu3 %v6931_v20  ;;  %2240 = vmatmul.f32.vlgmr.msrb.gmra.mxu0 %v6931_v20  ;;  %v5663_v20 = vld [vmem:[%s9771_s5 + $0x7e0] sm:$0xff] }
 0x2f8   : > { %2446 = vmatpush.msrb.mxu3 %v5663_v20  ;;  %v5645_v20 = vld [vmem:[%s9771_s5 + $0x750] sm:$0xff] }
 0x2fa   : > { %2447 = vmatpush.msrb.mxu3 %v5661_v29  ;;  %v5644_v29 = vld [vmem:[%s9771_s5 + $0x748] sm:$0xff] }
 0x2fb   : > { %2064 = vmatmul.f32.vlgmr.msra.gmra.mxu1 %v6928_v30  ;;  %2105 = vmatmul.f32.vlgmr.msrb.gmra.mxu2 %v6928_v30  ;;  %v5662_v30 = vld [vmem:[%s9771_s5 + $0x7d8] sm:$0xff] }
 0x2fc   : > { %v1693_v5 = vpop.f32.mrf.mxu0  ;;  %2488 = vmatpush.msra.mxu0 %v5662_v30  ;;  %2448 = vmatpush.msrb.mxu3 %v5659_v11  ;;  %v5575_v11 = vld [vmem:[%s9771_s5 + $0x620] sm:$0xff] }
 0x2fd   : > { %2327 = vmatpush.msrb.mxu1 %v5575_v11  ;;  %v5694_v11 = vld [vmem:[%s9771_s5 + $0x8d8] sm:$0xff] }
 0x2fe   : > { %2489 = vmatpush.msra.mxu0 %v5660_v51  ;;  %2449 = vmatpush.msrb.mxu3 %v5657_v23  ;;  %v5576_v51 = vld [vmem:[%s9771_s5 + $0x628] sm:$0xff]  ;;  %v5642_v23 = vld [vmem:[%s9771_s5 + $0x738] sm:$0xff] }
 0x2ff   : > { %2202 = vmatmul.f32.gmra.mxu3 %v6988_v46  ;;  %2243 = vmatmul.f32.gmra.mxu0 %v6988_v46 }
 0x300   : > { %v1570_v12 = vpop.f32.mrf.mxu1  ;;  %2490 = vmatpush.msra.mxu0 %v5658_v8  ;;  %2450 = vmatpush.msrb.mxu3 %v5655_v40  ;;  %v5640_v8 = vld [vmem:[%s9771_s5 + $0x728] sm:$0xff] }
 0x301   : > { %2368 = vmatpush.msra.mxu2 %v5576_v51 }
 0x302   : > { %v1652_v50 = vpop.f32.mrf.mxu3  ;;  %2491 = vmatpush.msra.mxu0 %v5656_v63  ;;  %2451 = vmatpush.msrb.mxu3 %v5653_v9  ;;  %v5637_v9 = vld [vmem:[%s9771_s5 + $0x710] sm:$0xff] }
 0x303   : > { %v7573_v25 = vadd.f32 %v1652_v50, %v1570_v12  ;;  %2067 = vmatmul.f32.gmra.mxu1 %v6985_v6  ;;  %2108 = vmatmul.f32.gmra.mxu2 %v6985_v6  ;;  %v5639_v12 = vld [vmem:[%s9771_s5 + $0x720] sm:$0xff]  ;;  %v5573_v50 = vld [vmem:[%s9771_s5 + $0x610] sm:$0xff] }
 0x304   : > { %v1696_v57 = vpop.f32.mrf.mxu0  ;;  %2492 = vmatpush.msra.mxu0 %v5654_v19  ;;  %2452 = vmatpush.msrb.mxu3 %v5651_v56  ;;  %v5635_v56 = vld [vmem:[%s9771_s5 + $0x700] sm:$0xff] }
 0x305   : > { %2328 = vmatpush.msrb.mxu1 %v5573_v50  ;;  %2369 = vmatpush.msra.mxu2 %v5574_v33 }
 0x306   : > { %v1611_v10 = vpop.f32.mrf.mxu2  ;;  %2493 = vmatpush.msra.mxu0 %v5652_v59  ;;  %2453 = vmatpush.msrb.mxu3 %v5649_v55  ;;  %v5636_v59 = vld [vmem:[%s9771_s5 + $0x708] sm:$0xff] }
 0x307   : > { %v7595_v62 = vadd.f32 %v1693_v5, %v1611_v10  ;;  %2205 = vmatmul.f32.gmra.mxu3 %v7045_v44  ;;  %2246 = vmatmul.f32.gmra.mxu0 %v7045_v44 }
 0x308   : > { %v1573_v37 = vpop.f32.mrf.mxu1  ;;  %2494 = vmatpush.msra.mxu0 %v5650_v16  ;;  %2454 = vmatpush.msrb.mxu3 %v5647_v24  ;;  %v5697_v24 = vld [vmem:[%s9771_s5 + $0x8f0] sm:$0xff] }
 0x309   : > { %2329 = vmatpush.msrb.mxu1 %v5571_v18  ;;  %2370 = vmatpush.msra.mxu2 %v5572_v17 }
 0x30a   : > { %v1655_v21 = vpop.f32.mrf.mxu3  ;;  %2495 = vmatpush.msra.mxu0 %v5648_v42  ;;  %2455 = vmatpush.msrb.mxu3 %v5645_v20  ;;  %v5698_v42 = vld [vmem:[%s9771_s5 + $0x8f8] sm:$0xff]  ;;  %v5695_v20 = vld [vmem:[%s9771_s5 + $0x8e0] sm:$0xff] }
 0x30b   : > { %v7617_v39 = vadd.f32 %v1655_v21, %v1573_v37  ;;  %2070 = vmatmul.f32.gmra.mxu1 %v7042_v0  ;;  %2111 = vmatmul.f32.gmra.mxu2 %v7042_v0 }
 0x30c   : > { %v1699_v43 = vpop.f32.mrf.mxu0  ;;  %2496 = vmatpush.msra.mxu0 %v5646_v14  ;;  %2456 = vmatpush.msrb.mxu3 %v5643_v45 }
 0x30d   : > { %2576 = vmatpush.msra.mxu1 %v5697_v24  ;;  %2617 = vmatpush.msrb.mxu2 %v5698_v42  ;;  %v5687_v42 = vld [vmem:[%s9771_s5 + $0x8a0] sm:$0xff] }
 0x30e   : > { %v1614_v5 = vpop.f32.mrf.mxu2  ;;  %2497 = vmatpush.msra.mxu0 %v5644_v29  ;;  %2457 = vmatpush.msrb.mxu3 %v5641_v47 }
 0x30f   : > { %v7639_v30 = vadd.f32 %v1696_v57, %v1614_v5  ;;  %2208 = vmatmul.f32.gmra.mxu3 %v7109_v1  ;;  %2249 = vmatmul.f32.gmra.mxu0 %v7109_v1  ;;  %v5638_v57 = vld [vmem:[%s9771_s5 + $0x718] sm:$0xff]  ;;  %v5693_v5 = vld [vmem:[%s9771_s5 + $0x8d0] sm:$0xff] }
 0x310   : > { %v1576_v52 = vpop.f32.mrf.mxu1  ;;  %2498 = vmatpush.msra.mxu0 %v5642_v23  ;;  %2458 = vmatpush.msrb.mxu3 %v5639_v12  ;;  %v1429_v23 = vsel %vm468_vm0, 0.0, %v7483_v26  ;;  %v1438_v12 = vsel %vm468_vm0, %v7483_v26, 0.0 }
 0x311   : > { %2577 = vmatpush.msra.mxu1 %v5695_v20 }
 0x312   : > { %v1658_v40 = vpop.f32.mrf.mxu3  ;;  %2499 = vmatpush.msra.mxu0 %v5640_v8  ;;  %2459 = vmatpush.msrb.mxu3 %v5637_v9  ;;  %v5691_v8 = vld [vmem:[%s9771_s5 + $0x8c0] sm:$0xff]  ;;  %v2147_v9 = vrot.slane %v1438_v12, 2 }
 0x313   : > { %v7661_v63 = vadd.f32 %v1658_v40, %v1576_v52  ;;  %2073 = vmatmul.f32.gmra.mxu1 %v7100_v38  ;;  %2114 = vmatmul.f32.gmra.mxu2 %v7100_v38  ;;  %v5692_v40 = vld [vmem:[%s9771_s5 + $0x8c8] sm:$0xff] }
 0x314   : > { %v1702_v60 = vpop.f32.mrf.mxu0  ;;  %2500 = vmatpush.msra.mxu0 %v5638_v57  ;;  %2460 = vmatpush.msrb.mxu3 %v5635_v56  ;;  %v5690_v56 = vld [vmem:[%s9771_s5 + $0x8b8] sm:$0xff] }
 0x315   : > { %2578 = vmatpush.msra.mxu1 %v5693_v5  ;;  %v5686_v5 = vld [vmem:[%s9771_s5 + $0x898] sm:$0xff] }
 0x316   : > { %v1617_v19 = vpop.f32.mrf.mxu2  ;;  %2501 = vmatpush.msra.mxu0 %v5636_v59 }
 0x317   : > { %v7683_v10 = vadd.f32 %v1699_v43, %v1617_v19  ;;  %2211 = vmatmul.f32.gmra.mxu3 %v7158_v31  ;;  %2252 = vmatmul.f32.gmra.mxu0 %v7158_v31  ;;  %v5696_v43 = vld [vmem:[%s9771_s5 + $0x8e8] sm:$0xff]  ;;  %v5689_v19 = vld [vmem:[%s9771_s5 + $0x8b0] sm:$0xff] }
 0x318   : > { %v1579_v55 = vpop.f32.mrf.mxu1  ;;  %2618 = vmatpush.msrb.mxu2 %v5696_v43  ;;  %2579 = vmatpush.msra.mxu1 %v5691_v8 }
 0x31a   : > { %v1661_v37 = vpop.f32.mrf.mxu3  ;;  %2619 = vmatpush.msrb.mxu2 %v5694_v11  ;;  %2580 = vmatpush.msra.mxu1 %v5689_v19 }
 0x31b   : > { %v7693_v16 = vadd.f32 %v1661_v37, %v1579_v55  ;;  %2076 = vmatmul.f32.gmra.mxu1 %v7155_v4  ;;  %2117 = vmatmul.f32.gmra.mxu2 %v7155_v4  ;;  %v2011_v55 = vrot.slane %v1429_v23, 1  ;;  %v2012_v37 = vrot.slane %v1438_v12, 1  ;;  %v5684_v12 = vld [vmem:[%s9771_s5 + $0x888] sm:$0xff] }
 0x31c   : > { %v1705_v21 = vpop.f32.mrf.mxu0  ;;  %2620 = vmatpush.msrb.mxu2 %v5692_v40  ;;  %2581 = vmatpush.msra.mxu1 %v5687_v42 }
 0x31d   : > { %v7761_v43 = vsel %vm832_vm3, %v2011_v55, %v2012_v37 }
 0x31e   : > { %v1620_v3 = vpop.f32.mrf.mxu2  ;;  %2621 = vmatpush.msrb.mxu2 %v5690_v56  ;;  %v5680_v56 = vld [vmem:[%s9771_s5 + $0x868] sm:$0xff] }
 0x31f   : > { %v7703_v7 = vadd.f32 %v1702_v60, %v1620_v3  ;;  %2214 = vmatmul.f32.gmra.mxu3 %v7192_v22  ;;  %2255 = vmatmul.f32.gmra.mxu0 %v7192_v22  ;;  %v2146_v60 = vrot.slane %v1429_v23, 2  ;;  %v5683_v23 = vld [vmem:[%s9771_s5 + $0x880] sm:$0xff] }
 0x320   : > { %v1582_v14 = vpop.f32.mrf.mxu1 }
 0x321   : > { %v7748_v17 = vsel %vm1714_vm5, %v2146_v60, %v2147_v9  ;;  %v1691_v60 = vadd.f32 %v7497_v53, %v7542_v32  ;;  %vm5077_vm5 = vcmask 1048512  }
 0x322   : > { %v1664_v45 = vpop.f32.mrf.mxu3 }
 0x323   : > { %v7713_v29 = vadd.f32 %v1664_v45, %v1582_v14  ;;  %2079 = vmatmul.f32.gmra.mxu1 %v7189_v15  ;;  %2120 = vmatmul.f32.gmra.mxu2 %v7189_v15  ;;  %v5685_v45 = vld [vmem:[%s9771_s5 + $0x890] sm:$0xff] }
 0x324   : > { %v1708_v51 = vpop.f32.mrf.mxu0  ;;  %2582 = vmatpush.msra.mxu1 %v5685_v45 }
 0x326   : > { %v1623_v47 = vpop.f32.mrf.mxu2  ;;  %2583 = vmatpush.msra.mxu1 %v5683_v23 }
 0x327   : > { %v7723_v52 = vadd.f32 %v1705_v21, %v1623_v47  ;;  %2217 = vmatmul.f32.gmra.mxu3 %v7224_v58  ;;  %2258 = vmatmul.f32.gmra.mxu0 %v7224_v58  ;;  %v5688_v21 = vld [vmem:[%s9771_s5 + $0x8a8] sm:$0xff] }
 0x328   : > { %v1585_v50 = vpop.f32.mrf.mxu1  ;;  %2622 = vmatpush.msrb.mxu2 %v5688_v21 }
 0x32a   : > { %v1667_v33 = vpop.f32.mrf.mxu3  ;;  %2623 = vmatpush.msrb.mxu2 %v5686_v5 }
 0x32b   : > { %v7737_v57 = vadd.f32 %v1667_v33, %v1585_v50  ;;  %2082 = vmatmul.f32.gmra.mxu1 %v7221_v35  ;;  %2123 = vmatmul.f32.gmra.mxu2 %v7221_v35  ;;  %v5682_v50 = vld [vmem:[%s9771_s5 + $0x878] sm:$0xff] }
 0x32c   : > { %v1711_v59 = vpop.f32.mrf.mxu0  ;;  %2624 = vmatpush.msrb.mxu2 %v5684_v12 }
 0x32e   : > { %v1626_v18 = vpop.f32.mrf.mxu2  ;;  %2625 = vmatpush.msrb.mxu2 %v5682_v50 }
 0x32f   : > { %v7750_v24 = vadd.f32 %v1708_v51, %v1626_v18  ;;  %2220 = vmatmul.f32.gmra.mxu3 %v7748_v17  ;;  %2261 = vmatmul.f32.gmra.mxu0 %v7748_v17 }
 0x330   : > { %v1588_v3 = vpop.f32.mrf.mxu1  ;;  %2626 = vmatpush.msrb.mxu2 %v5680_v56 }
 0x332   : > { %v1670_v20 = vpop.f32.mrf.mxu3 }
 0x333   : > { %v7763_v14 = vadd.f32 %v1670_v20, %v1588_v3  ;;  %2085 = vmatmul.f32.gmra.mxu1 %v7761_v43  ;;  %2126 = vmatmul.f32.gmra.mxu2 %v7761_v43  ;;  %v5676_v3 = vld [vmem:[%s9771_s5 + $0x848] sm:$0xff] }
 0x334   : > { %v1969_v11 = vpop.f32.mrf.mxu0 }
 0x336   : > { %v1629_v51 = vpop.f32.mrf.mxu2 }
 0x337   : > { %v7773_v47 = vadd.f32 %v1711_v59, %v1629_v51  ;;  %2461 = vmatmul.f32.vlgmr.msrb.gmra.mxu3 %v6985_v6  ;;  %2502 = vmatmul.f32.vlgmr.msra.gmra.mxu0 %v6985_v6  ;;  %v5681_v6 = vld [vmem:[%s9771_s5 + $0x870] sm:$0xff] }
 0x338   : > { %v7783_v8 = vpop.f32.mrf.mxu1  ;;  %2584 = vmatpush.msra.mxu1 %v5681_v6  ;;  %v5672_v6 = vld [vmem:[%s9771_s5 + $0x828] sm:$0xff] }
 0x33a   : > { %v7785_v40 = vpop.f32.mrf.mxu3 }
 0x33b   : > { %5604 = vmatmul.msk.f32.vlgmr.msrb.gmra.mxu1 %vm6755_vm4, %v6942_v61  ;;  %5620 = vmatmul.msk.f32.vlgmr.msra.gmra.mxu2 %vm6755_vm4, %v6942_v61  ;;  %v5679_v61 = vld [vmem:[%s9771_s5 + $0x860] sm:$0xff] }
 0x33c   : > { %v1972_v33 = vpop.f32.mrf.mxu0  ;;  %2585 = vmatpush.msra.mxu1 %v5679_v61 }
 0x33e   : > { %v1838_v9 = vpop.f32.mrf.mxu2 }
 0x33f   : > { %v1863_v19 = vadd.f32 %v1838_v9, %v1691_v60  ;;  %2464 = vmatmul.f32.gmra.mxu3 %v7042_v0  ;;  %2505 = vmatmul.f32.gmra.mxu0 %v7042_v0  ;;  %v5677_v0 = vld [vmem:[%s9771_s5 + $0x850] sm:$0xff] }
 0x340   : > { %v1800_v59 = vpop.f32.mrf.mxu1  ;;  %2586 = vmatpush.msra.mxu1 %v5677_v0 }
 0x341   : > { %v1864_v18 = vadd.f32 %v1800_v59, %v7573_v25  ;;  %v7810_v53 = vadd.f32 %v1969_v11, %v1863_v19  ;;  %v5678_v25 = vld [vmem:[%s9771_s5 + $0x858] sm:$0xff]  ;;  %v5668_v59 = vld [vmem:[%s9771_s5 + $0x808] sm:$0xff] }
 0x342   : > { %v1931_v32 = vpop.f32.mrf.mxu3  ;;  %2627 = vmatpush.msrb.mxu2 %v5678_v25 }
 0x343   : > { %v7812_v55 = vadd.f32 %v1931_v32, %v1864_v18  ;;  %5606 = vmatmul.msk.f32.gmra.mxu1 %vm6755_vm4, %v6999_v49  ;;  %5622 = vmatmul.msk.f32.gmra.mxu2 %vm6755_vm4, %v6999_v49  ;;  %v5675_v49 = vld [vmem:[%s9771_s5 + $0x840] sm:$0xff] }
 0x344   : > { %v1975_v37 = vpop.f32.mrf.mxu0  ;;  %2587 = vmatpush.msra.mxu1 %v5675_v49  ;;  %2628 = vmatpush.msrb.mxu2 %v5676_v3 }
 0x346   : > { %v1841_v42 = vpop.f32.mrf.mxu2 }
 0x347   : > { %v1865_v21 = vadd.f32 %v1841_v42, %v7595_v62  ;;  %2467 = vmatmul.f32.gmra.mxu3 %v7100_v38  ;;  %2508 = vmatmul.f32.gmra.mxu0 %v7100_v38  ;;  %v5673_v38 = vld [vmem:[%s9771_s5 + $0x830] sm:$0xff] }
 0x348   : > { %v1803_v20 = vpop.f32.mrf.mxu1  ;;  %2588 = vmatpush.msra.mxu1 %v5673_v38 }
 0x349   : > { %v1866_v45 = vadd.f32 %v1803_v20, %v7617_v39  ;;  %v7836_v5 = vadd.f32 %v1972_v33, %v1865_v21  ;;  %v5674_v39 = vld [vmem:[%s9771_s5 + $0x838] sm:$0xff] }
 0x34a   : > { %v1934_v62 = vpop.f32.mrf.mxu3  ;;  %2629 = vmatpush.msrb.mxu2 %v5674_v39 }
 0x34b   : > { %v7838_v11 = vadd.f32 %v1934_v62, %v1866_v45  ;;  %5608 = vmatmul.msk.f32.gmra.mxu1 %vm6755_vm4, %v7060_v36  ;;  %5624 = vmatmul.msk.f32.gmra.mxu2 %vm6755_vm4, %v7060_v36  ;;  %v5671_v36 = vld [vmem:[%s9771_s5 + $0x820] sm:$0xff] }
 0x34c   : > { %v1978_v51 = vpop.f32.mrf.mxu0  ;;  %2589 = vmatpush.msra.mxu1 %v5671_v36  ;;  %2630 = vmatpush.msrb.mxu2 %v5672_v6 }
 0x34e   : > { %v1844_v23 = vpop.f32.mrf.mxu2 }
 0x34f   : > { %v1867_v12 = vadd.f32 %v1844_v23, %v7639_v30  ;;  %2470 = vmatmul.f32.gmra.mxu3 %v7155_v4  ;;  %2511 = vmatmul.f32.gmra.mxu0 %v7155_v4  ;;  %v5669_v4 = vld [vmem:[%s9771_s5 + $0x810] sm:$0xff]  ;;  %v1650_v23 = vadd.f32 %v7529_v2, %v7507_v27 }
 0x350   : > { %v1806_v50 = vpop.f32.mrf.mxu1  ;;  %2590 = vmatpush.msra.mxu1 %v5669_v4 }
 0x351   : > { %v1868_v33 = vadd.f32 %v1806_v50, %v7661_v63  ;;  %v7862_v60 = vadd.f32 %v1975_v37, %v1867_v12  ;;  %v5670_v63 = vld [vmem:[%s9771_s5 + $0x818] sm:$0xff]  ;;  %v1862_v50 = vadd.f32 %v7783_v8, %v1650_v23 }
 0x352   : > { %v1937_v30 = vpop.f32.mrf.mxu3  ;;  %2631 = vmatpush.msrb.mxu2 %v5670_v63 }
 0x353   : > { %v7864_v9 = vadd.f32 %v1937_v30, %v1868_v33  ;;  %5610 = vmatmul.msk.f32.gmra.mxu1 %vm6755_vm4, %v7122_v13  ;;  %5626 = vmatmul.msk.f32.gmra.mxu2 %vm6755_vm4, %v7122_v13  ;;  %v5667_v13 = vld [vmem:[%s9771_s5 + $0x800] sm:$0xff]  ;;  %v9861_v33 = vld [vmem:[#allocation3_spill] sm:$0xff]  ;;  %v1993_v27 = vadd.f32 %v7785_v40, %v1862_v50 }
 0x354   : > { %v1981_v19 = vpop.f32.mrf.mxu0  ;;  %2591 = vmatpush.msra.mxu1 %v5667_v13  ;;  %2632 = vmatpush.msrb.mxu2 %v5668_v59 }
 0x356   : > { %v1847_v61 = vpop.f32.mrf.mxu2 }
 0x357   : > { %v1869_v56 = vadd.f32 %v1847_v61, %v7683_v10  ;;  %2473 = vmatmul.f32.gmra.mxu3 %v7189_v15  ;;  %2514 = vmatmul.f32.gmra.mxu0 %v7189_v15 }
 0x358   : > { %v1809_v18 = vpop.f32.mrf.mxu1 }
 0x359   : > { %v1870_v32 = vadd.f32 %v1809_v18, %v7693_v16  ;;  %v7888_v0 = vadd.f32 %v1978_v51, %v1869_v56  ;;  %v9860_v51 = vld [vmem:[#allocation4_spill] sm:$0xff] }
 0x35a   : > { %v1940_v10 = vpop.f32.mrf.mxu3 }
 0x35b   : > { %v7890_v25 = vadd.f32 %v1940_v10, %v1870_v32  ;;  %5612 = vmatmul.msk.f32.gmra.mxu1 %vm6755_vm4, %v7169_v34  ;;  %5628 = vmatmul.msk.f32.gmra.mxu2 %vm6755_vm4, %v7169_v34 }
 0x35c   : > { %v1984_v15 = vpop.f32.mrf.mxu0 }
 0x35e   : > { %v1850_v37 = vpop.f32.mrf.mxu2 }
 0x35f   : > { %v1871_v42 = vadd.f32 %v1850_v37, %v7703_v7  ;;  %2476 = vmatmul.f32.gmra.mxu3 %v7221_v35  ;;  %2517 = vmatmul.f32.gmra.mxu0 %v7221_v35 }
 0x360   : > { %v1812_v16 = vpop.f32.mrf.mxu1 }
 0x361   : > { %v1872_v21 = vadd.f32 %v1812_v16, %v7713_v29  ;;  %v7902_v49 = vadd.f32 %v1981_v19, %v1871_v42 }
 0x362   : > { %v1943_v3 = vpop.f32.mrf.mxu3 }
 0x363   : > { %v7904_v20 = vadd.f32 %v1943_v3, %v1872_v21  ;;  %5614 = vmatmul.msk.f32.gmra.mxu1 %vm6755_vm4, %v7202_v41  ;;  %5630 = vmatmul.msk.f32.gmra.mxu2 %vm6755_vm4, %v7202_v41 }
 0x364   : > { %v1987_v34 = vpop.f32.mrf.mxu0 }
 0x366   : > { %v1853_v7 = vpop.f32.mrf.mxu2 }
 0x367   : > { %v1873_v35 = vadd.f32 %v1853_v7, %v7723_v52  ;;  %2479 = vmatmul.f32.gmra.mxu3 %v7761_v43  ;;  %2520 = vmatmul.f32.gmra.mxu0 %v7761_v43 }
 0x368   : > { %v1815_v29 = vpop.f32.mrf.mxu1 }
 0x369   : > { %v1874_v45 = vadd.f32 %v1815_v29, %v7737_v57  ;;  %v7916_v62 = vadd.f32 %v1984_v15, %v1873_v35 }
 0x36a   : > { %v1946_v38 = vpop.f32.mrf.mxu3 }
 0x36b   : > { %v7918_v39 = vadd.f32 %v1946_v38, %v1874_v45  ;;  %5616 = vmatmul.msk.f32.gmra.mxu1 %vm6755_vm4, %v7483_v26  ;;  %5632 = vmatmul.msk.f32.gmra.mxu2 %vm6755_vm4, %v7483_v26 }
 0x36c   : > { %v1990_v41 = vpop.f32.mrf.mxu0 }
 0x36e   : > { %v1856_v52 = vpop.f32.mrf.mxu2 }
 0x36f   : > { %v1875_v43 = vadd.f32 %v1856_v52, %v7750_v24  ;;  %2482 = vmatmul.f32.gmra.mxu3 %v9860_v51  ;;  %2523 = vmatmul.f32.gmra.mxu0 %v9860_v51 }
 0x370   : > { %v1818_v57 = vpop.f32.mrf.mxu1 }
 0x371   : > { %v1876_v12 = vadd.f32 %v1818_v57, %v7763_v14  ;;  %v7932_v36 = vadd.f32 %v1987_v34, %v1875_v43 }
 0x372   : > { %v1949_v6 = vpop.f32.mrf.mxu3 }
 0x373   : > { %v7935_v26 = vadd.f32 %v1949_v6, %v1876_v12  ;;  %5618 = vmatmul.msk.f32.gmra.mxu1 %vm6755_vm4, %v9861_v33  ;;  %5634 = vmatmul.msk.f32.gmra.mxu2 %vm6755_vm4, %v9861_v33  ;;  %vm5073_vm4 = vcmask 982912  }
 0x374   : > { %v2241_v24 = vpop.f32.mrf.mxu0 }
 0x376   : > { %v1859_v30 = vpop.f32.mrf.mxu2 }
 0x377   : > { %v1877_v2 = vadd.f32 %v1859_v30, %v7773_v47 }
 0x378   : > { %v2065_v14 = vpop.f32.mrf.mxu1 }
 0x379   : > { %v7945_v4 = vadd.f32 %v2065_v14, %v1993_v27  ;;  %v2008_v8 = vadd.f32 %v1990_v41, %v1877_v2 }
 0x37b   : > { %2592 = vmatmul.f32.vlgmr.msra.gmra.mxu1 %v6988_v46  ;;  %2633 = vmatmul.f32.vlgmr.msrb.gmra.mxu2 %v6988_v46 }
 0x37c   : > { %v2244_v63 = vpop.f32.mrf.mxu0 }
 0x37e   : > { %v2106_v19 = vpop.f32.mrf.mxu2 }
 0x37f   : > { %v2131_v61 = vadd.f32 %v2106_v19, %v7810_v53 }
 0x380   : > { %v2068_v54 = vpop.f32.mrf.mxu1 }
 0x381   : > { %v7951_v56 = vadd.f32 %v2068_v54, %v7812_v55  ;;  %v2266_v13 = vadd.f32 %v2241_v24, %v2131_v61 }
 0x383   : > { %2595 = vmatmul.f32.gmra.mxu1 %v7045_v44  ;;  %2636 = vmatmul.f32.gmra.mxu2 %v7045_v44 }
 0x384   : > { %v2247_v47 = vpop.f32.mrf.mxu0 }
 0x386   : > { %v2109_v40 = vpop.f32.mrf.mxu2 }
 0x387   : > { %v2133_v59 = vadd.f32 %v2109_v40, %v7836_v5  ;;  %v2200_v5 = vpop.f32.mrf.mxu3 }
 0x388   : > { %v2071_v18 = vpop.f32.mrf.mxu1 }
 0x389   : > { %v7957_v46 = vadd.f32 %v2071_v18, %v7838_v11  ;;  %v2268_v32 = vadd.f32 %v2244_v63, %v2133_v59 }
 0x38b   : > { %2598 = vmatmul.f32.gmra.mxu1 %v7109_v1  ;;  %2639 = vmatmul.f32.gmra.mxu2 %v7109_v1 }
 0x38c   : > { %v7962_v10 = vpop.f32.mrf.mxu0 }
 0x38e   : > { %v2112_v53 = vpop.f32.mrf.mxu2 }
 0x38f   : > { %v2135_v55 = vadd.f32 %v2112_v53, %v7862_v60 }
 0x390   : > { %v2074_v15 = vpop.f32.mrf.mxu1 }
 0x391   : > { %v7965_v44 = vadd.f32 %v2074_v15, %v7864_v9  ;;  %v2270_v37 = vadd.f32 %v2247_v47, %v2135_v55  ;;  %v2674_v55 = vld [vmem:[%s9772_s6] sm:$0x3] }
 0x393   : > { %2601 = vmatmul.f32.gmra.mxu1 %v7158_v31  ;;  %2642 = vmatmul.f32.gmra.mxu2 %v7158_v31  ;;  %v2203_v31 = vpop.f32.mrf.mxu3 }
 0x394   : > { %v7975_v60 = vpop.f32.mrf.mxu0 }
 0x396   : > { %v2115_v11 = vpop.f32.mrf.mxu2 }
 0x397   : > { %v7970_v42 = vadd.f32 %v2115_v11, %v7888_v0 }
 0x398   : > { %v2077_v1 = vpop.f32.mrf.mxu1 }
 0x399   : > { %v7973_v16 = vadd.f32 %v2077_v1, %v7890_v25  ;;  %v8041_v1 = vperm.slane %v2674_v55, 0 }
 0x39b   : > { %2604 = vmatmul.f32.gmra.mxu1 %v7192_v22  ;;  %2645 = vmatmul.f32.gmra.mxu2 %v7192_v22 }
 0x39c   : > { %v7987_v0 = vpop.f32.mrf.mxu0 }
 0x39e   : > { %v2118_v9 = vpop.f32.mrf.mxu2 }
 0x39f   : > { %v7980_v21 = vadd.f32 %v2118_v9, %v7902_v49  ;;  %v2206_v49 = vpop.f32.mrf.mxu3 }
 0x3a0   : > { %v2080_v3 = vpop.f32.mrf.mxu1 }
 0x3a1   : > { %v7983_v34 = vadd.f32 %v2080_v3, %v7904_v20 }
 0x3a3   : > { %2607 = vmatmul.f32.gmra.mxu1 %v7224_v58  ;;  %2648 = vmatmul.f32.gmra.mxu2 %v7224_v58 }
 0x3a4   : > { %v7997_v20 = vpop.f32.mrf.mxu0 }
 0x3a6   : > { %v2121_v25 = vpop.f32.mrf.mxu2 }
 0x3a7   : > { %v7990_v7 = vadd.f32 %v2121_v25, %v7916_v62  ;;  %v8007_v62 = vpop.f32.mrf.mxu3  ;;  %v2267_v25 = vadd.f32 %v2203_v31, %v7951_v56 }
 0x3a8   : > { %v2083_v22 = vpop.f32.mrf.mxu1 }
 0x3a9   : > { %v7993_v35 = vadd.f32 %v2083_v22, %v7918_v39 }
 0x3ab   : > { %2610 = vmatmul.f32.gmra.mxu1 %v7748_v17  ;;  %2651 = vmatmul.f32.gmra.mxu2 %v7748_v17 }
 0x3ac   : > { %v2262_v52 = vpop.f32.mrf.mxu0 }
 0x3ae   : > { %v2124_v29 = vpop.f32.mrf.mxu2 }
 0x3af   : > { %v8000_v58 = vadd.f32 %v2124_v29, %v7932_v36  ;;  %v8009_v51 = vpop.f32.mrf.mxu3 }
 0x3b0   : > { %v2086_v45 = vpop.f32.mrf.mxu1 }
 0x3b1   : > { %v8003_v38 = vadd.f32 %v2086_v45, %v7935_v26 }
 0x3b3   : > { %2613 = vmatmul.f32.gmra.mxu1 %v7252_v48  ;;  %2654 = vmatmul.f32.gmra.mxu2 %v7252_v48 }
 0x3b4   : > { %v2503_v47 = vpop.f32.mrf.mxu0 }
 0x3b6   : > { %v2127_v39 = vpop.f32.mrf.mxu2 }
 0x3b7   : > { %v2145_v41 = vadd.f32 %v2127_v39, %v2008_v8  ;;  %v8011_v50 = vpop.f32.mrf.mxu3 }
 0x3b8   : > { %v2331_v17 = vpop.f32.mrf.mxu1 }
 0x3b9   : > { %v2280_v43 = vadd.f32 %v2262_v52, %v2145_v41 }
 0x3bc   : > { %v2506_v9 = vpop.f32.mrf.mxu0 }
 0x3be   : > { %v2372_v57 = vpop.f32.mrf.mxu2 }
 0x3bf   : > { %v2397_v23 = vadd.f32 %v2372_v57, %v2266_v13  ;;  %v8015_v27 = vpop.f32.mrf.mxu3  ;;  %v8047_v57 = vperm.slane %v2674_v55, 1 }
 0x3c0   : > { %v2334_v12 = vpop.f32.mrf.mxu1 }
 0x3c1   : > { %v2398_v45 = vadd.f32 %v2334_v12, %v2267_v25  ;;  %v2528_v39 = vadd.f32 %v2503_v47, %v2397_v23 }
 0x3c4   : > { %v2509_v56 = vpop.f32.mrf.mxu0 }
 0x3c6   : > { %v2375_v36 = vpop.f32.mrf.mxu2 }
 0x3c7   : > { %v2399_v6 = vadd.f32 %v2375_v36, %v2268_v32  ;;  %v8021_v8 = vpop.f32.mrf.mxu3  ;;  %v2265_v32 = vadd.f32 %v2200_v5, %v7945_v4 }
 0x3c8   : > { %v2337_v26 = vpop.f32.mrf.mxu1 }
 0x3c9   : > { %v2396_v53 = vadd.f32 %v2331_v17, %v2265_v32  ;;  %v2530_v32 = vadd.f32 %v2506_v9, %v2399_v6 }
 0x3ce   : > { %v2378_v24 = vpop.f32.mrf.mxu2 }
 0x3cf   : > { %v8013_v30 = vadd.f32 %v2378_v24, %v2270_v37  ;;  %v2462_v61 = vpop.f32.mrf.mxu3  ;;  %v2269_v24 = vadd.f32 %v2206_v49, %v7957_v46 }
 0x3d0   : > { %v2340_v48 = vpop.f32.mrf.mxu1  ;;  %v2527_v37 = vadd.f32 %v2462_v61, %v2396_v53 }
 0x3d1   : > { %v2400_v31 = vadd.f32 %v2337_v26, %v2269_v24 }
 0x3d6   : > { %v8017_v2 = vpop.f32.mrf.mxu2 }
 0x3d7   : > { %v2465_v59 = vpop.f32.mrf.mxu3 }
 0x3d8   : > { %v8019_v14 = vpop.f32.mrf.mxu1  ;;  %v2529_v52 = vadd.f32 %v2465_v59, %v2398_v45  ;;  %v2532_v45 = vadd.f32 %v2509_v56, %v8013_v30 }
 0x3de   : > { %v8023_v63 = vpop.f32.mrf.mxu2 }
 0x3df   : > { %v2468_v29 = vpop.f32.mrf.mxu3 }
 0x3e0   : > { %v8025_v19 = vpop.f32.mrf.mxu1  ;;  %v2531_v55 = vadd.f32 %v2468_v29, %v2400_v31 }
 0x3e6   : > { %v8027_v54 = vpop.f32.mrf.mxu2 }
 0x3e7   : > { %v2471_v47 = vpop.f32.mrf.mxu3 }
 0x3e8   : > { %v8029_v13 = vpop.f32.mrf.mxu1 }
 0x3ee   : > { %v8031_v40 = vpop.f32.mrf.mxu2 }
 0x3f0   : > { %v8033_v18 = vpop.f32.mrf.mxu1 }
 0x3f6   : > { %v2393_v15 = vpop.f32.mrf.mxu2 }
 0x3f7   : > { %v8039_v11 = vadd.f32 %v2393_v15, %v2280_v43 }
 0x3f8   : > { %v2593_v3 = vpop.f32.mrf.mxu1 }
 0x3f9   : > { %v2658_v22 = vadd.f32 %v2593_v3, %v2527_v37  ;;  %v2271_v3 = vadd.f32 %v8007_v62, %v7965_v44  ;;  %v2474_v44 = vpop.f32.mrf.mxu3 }
 0x3fb   : > { %v2680_v4 = vadd.f32 %v8041_v1, %v2658_v22  ;;  %v2402_v25 = vadd.f32 %v2340_v48, %v2271_v3  ;;  %v2512_v22 = vpop.f32.mrf.mxu0 }
 0x3fd   : > { %v8045_v5 = vmax.f32 %v2680_v4, 0.0  ;;  %v2272_v4 = vadd.f32 %v7962_v10, %v7970_v42 }
 0x3fe   : > { %v2634_v41 = vpop.f32.mrf.mxu2 }
 0x3ff   : > { %9862 = vst [vmem:[#allocation4_spill] sm:$0xff] %v8045_v5  ;;  %v2659_v17 = vadd.f32 %v2634_v41, %v2528_v39  ;;  %v2720_v43 = vrot.slane %v8045_v5, 7  ;;  %v2533_v39 = vadd.f32 %v2471_v47, %v2402_v25 }
 0x400   : > { %v2596_v36 = vpop.f32.mrf.mxu1 }
 0x401   : > { %v2660_v61 = vadd.f32 %v2596_v36, %v2529_v52  ;;  %2728 = vrot.lane.b32.xlu0 %v2720_v43, %s5747_s29  ;;  %v2681_v12 = vadd.f32 %v8047_v57, %v2659_v17  ;;  %v2273_v43 = vadd.f32 %v8009_v51, %v7973_v16  ;;  %v2403_v36 = vadd.f32 %v8017_v2, %v2272_v4 }
 0x402   : > { %v2274_v16 = vadd.f32 %v7975_v60, %v7980_v21 }
 0x403   : > { %v2682_v23 = vadd.f32 %v8041_v1, %v2660_v61  ;;  %v8056_v15 = vmax.f32 %v2681_v12, 0.0  ;;  %v2404_v10 = vadd.f32 %v8019_v14, %v2273_v43  ;;  %v2534_v56 = vadd.f32 %v2512_v22, %v2403_v36  ;;  %v2515_v31 = vpop.f32.mrf.mxu0 }
 0x404   : > { %v2275_v14 = vadd.f32 %v8011_v50, %v7983_v34 }
 0x405   : > { %v8054_v59 = vmax.f32 %v2682_v23, 0.0  ;;  %9864 = vst [vmem:[#allocation6_spill] sm:$0xff] %v8056_v15  ;;  %v2535_v2 = vadd.f32 %v2474_v44, %v2404_v10 }
 0x406   : > { %v2637_v53 = vpop.f32.mrf.mxu2  ;;  %v2406_v60 = vadd.f32 %v8025_v19, %v2275_v14  ;;  %v2277_v19 = vadd.f32 %v8015_v27, %v7993_v35 }
 0x407   : > { %9863 = vst [vmem:[#allocation5_spill] sm:$0xff] %v8054_v59  ;;  %v2661_v37 = vadd.f32 %v2637_v53, %v2530_v32  ;;  %v2721_v46 = vrot.slane %v8054_v59, 7  ;;  %v2477_v32 = vpop.f32.mrf.mxu3 }
 0x408   : > { %v2599_v49 = vpop.f32.mrf.mxu1 }
 0x409   : > { %v2662_v26 = vadd.f32 %v2599_v49, %v2531_v55  ;;  %2772 = vrot.lane.b32.xlu0 %v8056_v15, %s5747_s29  ;;  %2730 = vrot.lane.b32.xlu1 %v2721_v46, %s5747_s29  ;;  %v2683_v6 = vadd.f32 %v8047_v57, %v2661_v37  ;;  %v2405_v55 = vadd.f32 %v8023_v63, %v2274_v16 }
 0x40a   : > { %v2537_v63 = vadd.f32 %v2477_v32, %v2406_v60 }
 0x40b   : > { %v2684_v9 = vadd.f32 %v8041_v1, %v2662_v26  ;;  %v8071_v41 = vmax.f32 %v2683_v6, 0.0  ;;  %v2536_v34 = vadd.f32 %v2515_v31, %v2405_v55  ;;  %v2276_v26 = vadd.f32 %v7987_v0, %v7990_v7 }
 0x40c   : > { %v2408_v0 = vadd.f32 %v8029_v13, %v2277_v19 }
 0x40d   : > { %v8066_v29 = vmax.f32 %v2684_v9, 0.0  ;;  %9866 = vst [vmem:[#allocation8_spill] sm:$0xff] %v8071_v41  ;;  %v2518_v9 = vpop.f32.mrf.mxu0 }
 0x40e   : > { %v2640_v62 = vpop.f32.mrf.mxu2 }
 0x40f   : > { %9865 = vst [vmem:[#allocation7_spill] sm:$0xff] %v8066_v29  ;;  %v2663_v52 = vadd.f32 %v2640_v62, %v2532_v45  ;;  %v2722_v48 = vrot.slane %v8066_v29, 7  ;;  %v2407_v45 = vadd.f32 %v8027_v54, %v2276_v26  ;;  %v2480_v62 = vpop.f32.mrf.mxu3 }
 0x410   : > { %v2602_v17 = vpop.f32.mrf.mxu1 }
 0x411   : > { %v2664_v24 = vadd.f32 %v2602_v17, %v2533_v39  ;;  %2774 = vrot.lane.b32.xlu1 %v8071_v41, %s5747_s29  ;;  %2732 = vrot.lane.b32.xlu2 %v2722_v48, %s5747_s29  ;;  %v2685_v42 = vadd.f32 %v8047_v57, %v2663_v52  ;;  %v5748_v39 = vmov 0   ;;  %v2538_v27 = vadd.f32 %v2518_v9, %v2407_v45 }
 0x412   : > { %5729 = vset.pattern.permute.xlu1 %v5748_v39  ;;  %5730 = vset.pattern.permute.xlu2 %v5748_v39  ;;  %v2539_v48 = vadd.f32 %v2480_v62, %v2408_v0  ;;  %v2278_v17 = vadd.f32 %v7997_v20, %v8000_v58 }
 0x413   : > { %v2686_v30 = vadd.f32 %v8041_v1, %v2664_v24  ;;  %v8087_v12 = vmax.f32 %v2685_v42, 0.0  ;;  %5731 = vset.pattern.permute.xlu0 %v5748_v39  ;;  %v2279_v24 = vadd.f32 %v8021_v8, %v8003_v38  ;;  %v8176_v39 = vld [vmem:[%s9773_s7 + $0x8] ss:$0 sm:$0xff] }
 0x414   : > { %v2409_v10 = vadd.f32 %v8031_v40, %v2278_v17  ;;  %v3521_v17 = vmul.f32 %v8176_v39, %v8056_v15 }
 0x415   : > { %v8083_v61 = vmax.f32 %v2686_v30, 0.0  ;;  %9868 = vst [vmem:[#allocation10_spill] sm:$0xff] %v8087_v12  ;;  %v2410_v31 = vadd.f32 %v8033_v18, %v2279_v24 }
 0x416   : > { %v2643_v51 = vpop.f32.mrf.mxu2 }
 0x417   : > { %9867 = vst [vmem:[#allocation9_spill] sm:$0xff] %v8083_v61  ;;  %v2665_v23 = vadd.f32 %v2643_v51, %v2534_v56  ;;  %v2723_v47 = vrot.slane %v8083_v61, 7  ;;  %v2521_v56 = vpop.f32.mrf.mxu0  ;;  %v2483_v58 = vpop.f32.mrf.mxu3 }
 0x418   : > { %v2605_v53 = vpop.f32.mrf.mxu1  ;;  %v2540_v38 = vadd.f32 %v2521_v56, %v2409_v10  ;;  %v2541_v40 = vadd.f32 %v2483_v58, %v2410_v31 }
 0x419   : > { %v2687_v37 = vadd.f32 %v8047_v57, %v2665_v23  ;;  %v2666_v46 = vadd.f32 %v2605_v53, %v2535_v2  ;;  %2776 = vrot.lane.b32.xlu2 %v8087_v12, %s5747_s29  ;;  %2734 = vrot.lane.b32.xlu0 %v2723_v47, %s5747_s29 }
 0x41b   : > { %v8098_v21 = vmax.f32 %v2687_v37, 0.0  ;;  %v2688_v49 = vadd.f32 %v8041_v1, %v2666_v46 }
 0x41d   : > { %9869 = vst [vmem:[#allocation11_spill] sm:$0xff] %v8098_v21  ;;  %v8101_v3 = vmax.f32 %v2688_v49, 0.0  ;;  %2778 = vrot.lane.b32.xlu1 %v8098_v21, %s5747_s29 }
 0x41e   : > { %v2646_v50 = vpop.f32.mrf.mxu2 }
 0x41f   : > { %9870 = vst [vmem:[#allocation12_spill] sm:$0xff] %v8101_v3  ;;  %v2667_v25 = vadd.f32 %v2646_v50, %v2536_v34  ;;  %v2724_v6 = vrot.slane %v8101_v3, 7  ;;  %v2524_v32 = vpop.f32.mrf.mxu0  ;;  %v5734_v50 = vld [vmem:[#allocation2] ss:$0 sm:$0xff] }
 0x420   : > { %v2608_v22 = vpop.f32.mrf.mxu1  ;;  %v2542_v37 = vadd.f32 %v2524_v32, %v8039_v11 }
 0x421   : > { %v2689_v4 = vadd.f32 %v8047_v57, %v2667_v25  ;;  %v2668_v44 = vadd.f32 %v2608_v22, %v2537_v63  ;;  %2736 = vrot.lane.b32.xlu2 %v2724_v6, %s5747_s29 }
 0x423   : > { %v8114_v7 = vmax.f32 %v2689_v4, 0.0  ;;  %v2690_v52 = vadd.f32 %v8041_v1, %v2668_v44 }
 0x425   : > { %9871 = vst [vmem:[#allocation13_spill] sm:$0xff] %v8114_v7  ;;  %v8117_v35 = vmax.f32 %v2690_v52, 0.0  ;;  %2780 = vrot.lane.b32.xlu0 %v8114_v7, %s5747_s29 }
 0x426   : > { %v2649_v54 = vpop.f32.mrf.mxu2 }
 0x427   : > { %9872 = vst [vmem:[#allocation14_spill] sm:$0xff] %v8117_v35  ;;  %v2669_v43 = vadd.f32 %v2649_v54, %v2538_v27  ;;  %v2725_v36 = vrot.slane %v8117_v35, 7 }
 0x428   : > { %v2611_v13 = vpop.f32.mrf.mxu1 }
 0x429   : > { %v2691_v42 = vadd.f32 %v8047_v57, %v2669_v43  ;;  %v2670_v30 = vadd.f32 %v2611_v13, %v2539_v48  ;;  %2738 = vrot.lane.b32.xlu1 %v2725_v36, %s5747_s29  ;;  %v3522_v43 = vmul.f32 0.0, %v8176_v39 }
 0x42b   : > { %v8130_v16 = vmax.f32 %v2691_v42, 0.0  ;;  %v2692_v20 = vadd.f32 %v8041_v1, %v2670_v30 }
 0x42d   : > { %9873 = vst [vmem:[#allocation15_spill] sm:$0xff] %v8130_v16  ;;  %v8133_v51 = vmax.f32 %v2692_v20, 0.0  ;;  %2782 = vrot.lane.b32.xlu2 %v8130_v16, %s5747_s29 }
 0x42e   : > { %v2652_v8 = vpop.f32.mrf.mxu2 }
 0x42f   : > { %9874 = vst [vmem:[#allocation16_spill] sm:$0xff] %v8133_v51  ;;  %v2671_v2 = vadd.f32 %v2652_v8, %v2540_v38  ;;  %v2726_v23 = vrot.slane %v8133_v51, 7  ;;  %v3539_v38 = vrot.slane %v3521_v17, 1  ;;  %v8207_v8 = vrot.slane %v3522_v43, 1 }
 0x430   : > { %v2614_v47 = vpop.f32.mrf.mxu1 }
 0x431   : > { %v2693_v14 = vadd.f32 %v8047_v57, %v2671_v2  ;;  %v2672_v18 = vadd.f32 %v2614_v47, %v2541_v40  ;;  %2740 = vrot.lane.b32.xlu0 %v2726_v23, %s5747_s29  ;;  %9880 = vst [vmem:[#allocation22_spill] sm:$0xff] %v8207_v8  ;;  %v3524_v47 = vmul.f32 %v8176_v39, %v8087_v12 }
 0x433   : > { %v8140_v53 = vmax.f32 %v2693_v14, 0.0  ;;  %v2694_v55 = vadd.f32 %v8041_v1, %v2672_v18  ;;  %v2812_v1 = vld [vmem:[%s9773_s7] sm:$0xff] }
 0x434   : > { %v8156_v26 = vperm.slane %v2812_v1, 1  ;;  %v8164_v19 = vperm.slane %v2812_v1, 0  ;;  %v8170_v44 = vperm.slane %v2812_v1, 5  ;;  %v8180_v27 = vperm.slane %v2812_v1, 3 }
 0x435   : > { %9875 = vst [vmem:[#allocation17_spill] sm:$0xff] %v8140_v53  ;;  %v8144_v46 = vmax.f32 %v2694_v55, 0.0  ;;  %2784 = vrot.lane.b32.xlu1 %v8140_v53, %s5747_s29  ;;  %v8192_v13 = vperm.slane %v2812_v1, 4  ;;  %v8201_v31 = vperm.slane %v2812_v1, 7  ;;  %v8205_v58 = vperm.slane %v2812_v1, 6 }
 0x436   : > { %v2655_v60 = vpop.f32.mrf.mxu2  ;;  %v3174_v25 = vmul.f32 %v8156_v26, %v6022_v28  ;;  %v3175_v6 = vmul.f32 %v8156_v26, %v9861_v33  ;;  %v3166_v45 = vmul.f32 0.0, %v8164_v19  ;;  %v3382_v54 = vmul.f32 %v8170_v44, %v8045_v5 }
 0x437   : > { %9876 = vst [vmem:[#allocation18_spill] sm:$0xff] %v8144_v46  ;;  %v2673_v49 = vadd.f32 %v2655_v60, %v2542_v37  ;;  %v2727_v34 = vrot.slane %v8144_v46, 7  ;;  %v3383_v48 = vmul.f32 0.0, %v8170_v44  ;;  %v3294_v10 = vmul.f32 %v8180_v27, %v8045_v5 }
 0x438   : > { %v3206_v9 = vrot.slane %v3174_v25, 1  ;;  %v3207_v22 = vrot.slane %v3175_v6, 1  ;;  %v3400_v42 = vrot.slane %v3382_v54, 1  ;;  %v3385_v20 = vmul.f32 %v8170_v44, %v8066_v29 }
 0x439   : > { %2742 = vrot.lane.b32.xlu0 %v2727_v34, %s5747_s29  ;;  %v2695_v63 = vadd.f32 %v8047_v57, %v2673_v49  ;;  %v8166_v57 = vperm.slane %v2812_v1, 2  ;;  %v8197_v30 = vrot.slane %v3383_v48, 1  ;;  %v8211_v40 = vmul.f32 %v8164_v19, %v6022_v28 }
 0x43a   : > { %v3208_v62 = vsel %vm832_vm3, %v3206_v9, %v3207_v22  ;;  %v8216_v23 = vmul.f32 %v8164_v19, %v8045_v5  ;;  %v8222_v14 = vmul.f32 %v8192_v13, %v8045_v5  ;;  %v8232_v55 = vmul.f32 %v8201_v31, %v8056_v15 }
 0x43b   : > { %v8154_v11 = vmax.f32 %v2695_v63, 0.0  ;;  %v3246_v4 = vmul.f32 0.0, %v8166_v57  ;;  %v3238_v0 = vadd.f32 %v3208_v62, %v3166_v45  ;;  %v8190_v36 = vmul.f32 %v8166_v57, %v6022_v28  ;;  %9879 = vst [vmem:[#allocation21_spill] sm:$0xff] %v8197_v30 }
 0x43c   : > { %v3248_v56 = vmul.f32 %v8166_v57, %v8071_v41  ;;  %v8228_v32 = vsel %vm832_vm3, %v3400_v42, %v8197_v30  ;;  %v8236_v37 = vmul.f32 %v8156_v26, %v8056_v15  ;;  %v3405_v60 = vrot.slane %v3385_v20, 1 }
 0x43d   : > { %3155 = vperm.xlu1 %5729, %v5734_v50   ;;  %9877 = vst [vmem:[#allocation19_spill] sm:$0xff] %v8154_v11  ;;  %v8178_v52 = vrot.slane %v3246_v4, 1  ;;  %v3250_v49 = vmul.f32 %v8166_v57, %v8098_v21  ;;  %v8242_v34 = vmul.f32 %v8192_v13, %v8054_v59  ;;  %v8246_v50 = vmul.f32 %v8205_v58, %v8056_v15 }
 0x43e   : > { %v3266_v28 = vrot.slane %v3248_v56, 1  ;;  %v8250_v63 = vsel %vm832_vm3, %v3539_v38, %v8207_v8  ;;  %v3387_v1 = vmul.f32 %v8170_v44, %v8101_v3  ;;  %v8256_v25 = vmul.f32 %v8201_v31, %v8071_v41 }
 0x43f   : > { %9878 = vst [vmem:[#allocation20_spill] sm:$0xff] %v8178_v52  ;;  %v3286_v24 = vadd.f32 %v8178_v52, %v3238_v0  ;;  %v8260_v6 = vmul.f32 %v8156_v26, %v8071_v41  ;;  %v8264_v9 = vmul.f32 %v8164_v19, %v8071_v41  ;;  %v3544_v22 = vrot.slane %v3524_v47, 1 }
 0x440   : > { %v8268_v45 = vmul.f32 %v8192_v13, %v8066_v29  ;;  %v8272_v4 = vsel %vm832_vm3, %v3266_v28, %v8178_v52  ;;  %v8276_v62 = vmul.f32 %v8180_v27, %v8066_v29  ;;  %v3526_v0 = vmul.f32 %v8176_v39, %v8114_v7 }
 0x441   : > { %2786 = vrot.lane.b32.xlu0 %v8154_v11, %s5747_s29  ;;  %v8224_v18 = vadd.f32 %v3294_v10, %v3286_v24  ;;  %9881 = vst [vmem:[#allocation23_spill] sm:$0xff] %v8264_v9  ;;  %v8282_v54 = vmul.f32 %v8201_v31, %v8087_v12  ;;  %v8286_v48 = vmul.f32 %v8156_v26, %v8087_v12  ;;  %v3270_v43 = vrot.slane %v3250_v49, 1 }
 0x442   : > { %9882 = vst [vmem:[#allocation24_spill] sm:$0xff] %v8272_v4  ;;  %v8290_v17 = vsel %vm832_vm3, %v3405_v60, %v8197_v30  ;;  %v8294_v24 = vmul.f32 %v8192_v13, %v8083_v61  ;;  %v8298_v10 = vmul.f32 %v8205_v58, %v8087_v12  ;;  %v3409_v42 = vrot.slane %v3387_v1, 1 }
 0x443   : > { %9883 = vst [vmem:[#allocation25_spill] sm:$0xff] %v8276_v62  ;;  %v3252_v56 = vmul.f32 %v8166_v57, %v8130_v16  ;;  %v8304_v20 = vmul.f32 %v8201_v31, %v8098_v21  ;;  %v8308_v38 = vmul.f32 %v8156_v26, %v8098_v21  ;;  %v8312_v47 = vmul.f32 %v8192_v13, %v8101_v3 }
 0x444   : > { %9884 = vst [vmem:[#allocation26_spill] sm:$0xff] %v8290_v17  ;;  %v8316_v28 = vsel %vm832_vm3, %v3544_v22, %v8207_v8  ;;  %v8320_v60 = vmul.f32 %v8201_v31, %v8114_v7  ;;  %v8324_v49 = vmul.f32 %v8164_v19, %v8098_v21  ;;  %v3548_v1 = vrot.slane %v3526_v0, 1 }
 0x445   : > { %9885 = vst [vmem:[#allocation27_spill] sm:$0xff] %v8298_v10  ;;  %v3389_v2 = vmul.f32 %v8170_v44, %v8133_v51  ;;  %v8330_v5 = vmul.f32 %v8156_v26, %v8114_v7  ;;  %v8334_v22 = vmul.f32 %v8192_v13, %v8117_v35  ;;  %v8342_v10 = vmul.f32 %v8180_v27, %v8101_v3 }
 0x446   : > { %9886 = vst [vmem:[#allocation28_spill] sm:$0xff] %v8316_v28  ;;  %v8338_v28 = vsel %vm832_vm3, %v3270_v43, %v8178_v52  ;;  %v8346_v0 = vsel %vm832_vm3, %v3409_v42, %v8197_v30  ;;  %v8350_v17 = vmul.f32 %v8156_v26, %v8054_v59  ;;  %v2843_v43 = vmul.f32 %v8166_v57, %v9861_v33 }
 0x447   : > { %9887 = vst [vmem:[#allocation29_spill] sm:$0xff] %v8320_v60  ;;  %v3384_v42 = vmul.f32 %v8170_v44, %v8054_v59  ;;  %v8374_v33 = vmul.f32 %v8192_v13, %v8071_v41  ;;  %v8382_v62 = vmul.f32 %v8192_v13, %v8133_v51  ;;  %v8407_v9 = vmul.f32 %v8164_v19, %v8056_v15 }
 0x448   : > { %9888 = vst [vmem:[#allocation30_spill] sm:$0xff] %v8324_v49  ;;  %v3274_v49 = vrot.slane %v3252_v56, 1  ;;  %v8366_v56 = vmul.f32 %v8201_v31, %v8130_v16  ;;  %v2875_v4 = vrot.slane %v2843_v43, 1  ;;  %v8419_v43 = vmul.f32 %v8205_v58, %v8140_v53 }
 0x449   : > { %9889 = vst [vmem:[#allocation31_spill] sm:$0xff] %v8330_v5  ;;  %v3403_v5 = vrot.slane %v3384_v42, 1 }
 0x44a   : > { %9890 = vst [vmem:[#allocation32_spill] sm:$0xff] %v8334_v22  ;;  %v3247_v22 = vmul.f32 %v8166_v57, %v8056_v15 }
 0x44b   : > { %9891 = vst [vmem:[#allocation33_spill] sm:$0xff] %v8338_v28  ;;  %v8358_v28 = vmul.f32 %v8205_v58, %v8114_v7 }
 0x44c   : > { %9892 = vst [vmem:[#allocation34_spill] sm:$0xff] %v8342_v10  ;;  %v3528_v10 = vmul.f32 %v8176_v39, %v8140_v53 }
 0x44d   : > { %9893 = vst [vmem:[#allocation35_spill] sm:$0xff] %v8346_v0  ;;  %v3413_v0 = vrot.slane %v3389_v2, 1  ;;  %v2825_v2 = vmul.f32 0.0, %v8156_v26 }
 0x44e   : > { %9894 = vst [vmem:[#allocation36_spill] sm:$0xff] %v8350_v17  ;;  %v8370_v17 = vsel %vm832_vm3, %v3548_v1, %v8207_v8  ;;  %v3523_v1 = vmul.f32 %v8176_v39, %v8071_v41 }
 0x44f   : > { %9895 = vst [vmem:[#allocation37_spill] sm:$0xff] %v8358_v28  ;;  %v8378_v28 = vmul.f32 %v8156_v26, %v8130_v16  ;;  %v8403_v60 = vsel %vm832_vm3, %v3413_v0, %v8197_v30  ;;  %v8423_v0 = vmul.f32 %v8156_v26, %v8140_v53 }
 0x450   : > { %9896 = vst [vmem:[#allocation38_spill] sm:$0xff] %v8366_v56  ;;  %v8386_v56 = vmul.f32 %v8164_v19, %v8130_v16  ;;  %v3542_v42 = vrot.slane %v3523_v1, 1 }
 0x451   : > { %9897 = vst [vmem:[#allocation39_spill] sm:$0xff] %v8370_v17  ;;  %v8397_v17 = vmul.f32 %v8180_v27, %v8133_v51 }
 0x452   : > { %9898 = vst [vmem:[#allocation40_spill] sm:$0xff] %v8374_v33  ;;  %v8393_v33 = vsel %vm832_vm3, %v3274_v49, %v8178_v52  ;;  %v3386_v49 = vmul.f32 %v8170_v44, %v8083_v61 }
 0x453   : > { %9899 = vst [vmem:[#allocation41_spill] sm:$0xff] %v8378_v28  ;;  %v3264_v28 = vrot.slane %v3247_v22, 1  ;;  %v3525_v22 = vmul.f32 %v8176_v39, %v8098_v21 }
 0x454   : > { %9900 = vst [vmem:[#allocation42_spill] sm:$0xff] %v8382_v62  ;;  %v3552_v62 = vrot.slane %v3528_v10, 1  ;;  %v8415_v10 = vmul.f32 %v8201_v31, %v8140_v53  ;;  %v9912_v53 = vrot.slane %v8190_v36, 1  ;;  %v3407_v36 = vrot.slane %v3386_v49, 1 }
 0x455   : > { %9901 = vst [vmem:[#allocation43_spill] sm:$0xff] %v8386_v56  ;;  %v3249_v56 = vmul.f32 %v8166_v57, %v8087_v12  ;;  %v8477_v49 = vmul.f32 %v8156_v26, %v8083_v61 }
 0x456   : > { %9902 = vst [vmem:[#allocation44_spill] sm:$0xff] %v8397_v17  ;;  %v8434_v17 = vsel %vm832_vm3, %v3264_v28, %v8178_v52  ;;  %v2876_v1 = vsel %vm832_vm3, %v9912_v53, %v2875_v4  ;;  %v8453_v28 = vmul.f32 %v8201_v31, %v8066_v29  ;;  %v8465_v4 = vmul.f32 %v8201_v31, %v8154_v11 }
 0x457   : > { %9903 = vst [vmem:[#allocation45_spill] sm:$0xff] %v8403_v60  ;;  %v8430_v60 = vmul.f32 %v8192_v13, %v8144_v46  ;;  %v8457_v46 = vmul.f32 %v8205_v58, %v8071_v41  ;;  %v3251_v11 = vmul.f32 %v8166_v57, %v8114_v7  ;;  %v8489_v29 = vmul.f32 %v8192_v13, %v8098_v21 }
 0x458   : > { %9904 = vst [vmem:[#allocation46_spill] sm:$0xff] %v8407_v9  ;;  %v2833_v9 = vadd.f32 %v2825_v2, %v8211_v40  ;;  %v8449_v40 = vsel %vm832_vm3, %v3403_v5, %v8197_v30  ;;  %v3268_v2 = vrot.slane %v3249_v56, 1  ;;  %v8469_v5 = vsel %vm832_vm3, %v3542_v42, %v8207_v8 }
 0x459   : > { %9905 = vst [vmem:[#allocation47_spill] sm:$0xff] %v8415_v10  ;;  %v8445_v10 = vsel %vm832_vm3, %v3552_v62, %v8207_v8  ;;  %v8473_v62 = vmul.f32 %v8164_v19, %v8087_v12  ;;  %v8503_v12 = vsel %vm832_vm3, %v3407_v36, %v8197_v30  ;;  %v8507_v41 = vmul.f32 %v8205_v58, %v8098_v21 }
 0x45a   : > { %9906 = vst [vmem:[#allocation48_spill] sm:$0xff] %v8419_v43  ;;  %v8438_v43 = vmul.f32 %v8180_v27, %v8054_v59  ;;  %v3546_v59 = vrot.slane %v3525_v22, 1  ;;  %v2906_v56 = vadd.f32 %v2876_v1, %v2833_v9  ;;  %v8481_v22 = vmul.f32 %v8180_v27, %v8083_v61 }
 0x45b   : > { %9907 = vst [vmem:[#allocation49_spill] sm:$0xff] %v8423_v0  ;;  %v8493_v9 = vmul.f32 %v8201_v31, %v8101_v3  ;;  %v8497_v1 = vsel %vm832_vm3, %v3268_v2, %v8178_v52  ;;  %v8523_v36 = vmul.f32 %v8164_v19, %v8114_v7 }
 0x45c   : > { %9909 = vst [vmem:[#allocation51_spill] sm:$0xff] %v8430_v60 }
 0x45d   : > { %9910 = vst [vmem:[#allocation52_spill] sm:$0xff] %v8434_v17 }
 0x45e   : > { %9911 = vst [vmem:[#allocation53_spill] sm:$0xff] %v8438_v43 }
 0x45f   : > { %9913 = vst [vmem:[#allocation54_spill] sm:$0xff] %v8445_v10 }
 0x460   : > { %9914 = vst [vmem:[#allocation55_spill] sm:$0xff] %v8449_v40 }
 0x461   : > { %9915 = vst [vmem:[#allocation56_spill] sm:$0xff] %v8453_v28 }
 0x462   : > { %9916 = vst [vmem:[#allocation57_spill] sm:$0xff] %v8457_v46 }
 0x463   : > { %9917 = vst [vmem:[#allocation58_spill] sm:$0xff] %v8465_v4 }
 0x464   : > { %9918 = vst [vmem:[#allocation59_spill] sm:$0xff] %v8469_v5 }
 0x465   : > { %9919 = vst [vmem:[#allocation60_spill] sm:$0xff] %v8473_v62 }
 0x466   : > { %9920 = vst [vmem:[#allocation61_spill] sm:$0xff] %v8477_v49 }
 0x467   : > { %9921 = vst [vmem:[#allocation62_spill] sm:$0xff] %v8481_v22  ;;  %v8511_v22 = vsel %vm832_vm3, %v3546_v59, %v8207_v8  ;;  %v3272_v8 = vrot.slane %v3251_v11, 1 }
 0x468   : > { %9922 = vst [vmem:[#allocation63_spill] sm:$0xff] %v8489_v29 }
 0x469   : > { %9923 = vst [vmem:[#allocation64_spill] sm:$0xff] %v8493_v9  ;;  %v8519_v9 = vmul.f32 %v8156_v26, %v8117_v35 }
 0x46a   : > { %9924 = vst [vmem:[#allocation65_spill] sm:$0xff] %v8497_v1 }
 0x46b   : > { %v8425_v15 = vpop.permute.xlu2 %2732  ;;  %9925 = vst [vmem:[#allocation66_spill] sm:$0xff] %v8503_v12 }
 0x46c   : > { %9908 = vst [vmem:[#allocation50_spill] sm:$0xff] %v8425_v15  ;;  %v8461_v53 = vsel %vm468_vm0, 0.0, %v8425_v15  ;;  %v3315_v42 = vmul.f32 %v8192_v13, %v8425_v15  ;;  %v2954_v3 = vmul.f32 %v8170_v44, %v8425_v15  ;;  %v8527_v21 = vmul.f32 %v8166_v57, %v8425_v15 }
 0x46d   : > { %v2953_v61 = vmul.f32 %v8170_v44, %v8461_v53  ;;  %9926 = vst [vmem:[#allocation67_spill] sm:$0xff] %v8507_v41  ;;  %v3314_v2 = vmul.f32 %v8192_v13, %v8461_v53  ;;  %v3388_v41 = vmul.f32 %v8170_v44, %v8117_v35  ;;  %v8537_v12 = vmul.f32 %v8156_v26, %v8425_v15 }
 0x46e   : > { %9927 = vst [vmem:[#allocation68_spill] sm:$0xff] %v8511_v22  ;;  %v8531_v22 = vmul.f32 %v8180_v27, %v8117_v35  ;;  %v2988_v46 = vrot.slane %v2954_v3, 1  ;;  %v8557_v10 = vmul.f32 %v8180_v27, %v8461_v53 }
 0x46f   : > { %9928 = vst [vmem:[#allocation69_spill] sm:$0xff] %v8519_v9  ;;  %v3349_v9 = vrot.slane %v3315_v42, 1  ;;  %v2987_v35 = vrot.slane %v2953_v61, 1  ;;  %v3348_v40 = vrot.slane %v3314_v2, 1  ;;  %v3411_v61 = vrot.slane %v3388_v41, 1 }
 0x470   : > { %9929 = vst [vmem:[#allocation70_spill] sm:$0xff] %v8523_v36 }
 0x471   : > { %9930 = vst [vmem:[#allocation71_spill] sm:$0xff] %v8527_v21 }
 0x472   : > { %9931 = vst [vmem:[#allocation72_spill] sm:$0xff] %v8531_v22 }
 0x473   : > { %v2729_v59 = vpop.permute.xlu0 %2728  ;;  %9932 = vst [vmem:[#allocation73_spill] sm:$0xff] %v8537_v12  ;;  %v2777_v5 = vpop.permute.xlu2 %2776 }
 0x474   : > { %v8540_v7 = vsel %vm468_vm0, 0.0, %v2729_v59  ;;  %v3629_v36 = vmul.f32 %v8166_v57, %v2729_v59  ;;  %v3949_v22 = vmul.f32 %v8156_v26, %v2729_v59  ;;  %v2950_v62 = vmul.f32 %v8170_v44, %v2729_v59 }
 0x475   : > { %v3628_v11 = vmul.f32 %v8166_v57, %v8540_v7  ;;  %v3948_v1 = vmul.f32 %v8156_v26, %v8540_v7  ;;  %v2915_v42 = vmul.f32 %v8180_v27, %v8540_v7  ;;  %v8551_v17 = vrot.slane %v2777_v5, 7 }
 0x476   : > { %v3661_v29 = vrot.slane %v3629_v36, 1  ;;  %v3981_v49 = vrot.slane %v3949_v22, 1  ;;  %v2949_v4 = vmul.f32 %v8170_v44, %v8540_v7  ;;  %v2982_v5 = vrot.slane %v2950_v62, 1 }
 0x477   : > { %v3660_v43 = vrot.slane %v3628_v11, 1  ;;  %v3980_v28 = vrot.slane %v3948_v1, 1  ;;  %v2923_v1 = vadd.f32 %v2915_v42, %v2906_v56  ;;  %v8566_v11 = vmul.f32 %v8192_v13, %v2729_v59 }
 0x478   : > { %v2981_v15 = vrot.slane %v2949_v4, 1  ;;  %v8572_v36 = vsel %vm832_vm3, %v2987_v35, %v2988_v46  ;;  %v8589_v62 = vmul.f32 %v8192_v13, %v8130_v16  ;;  %v8593_v35 = vsel %vm832_vm3, %v3411_v61, %v8197_v30 }
 0x479   : > { %v8561_v3 = vsel %vm832_vm3, %v3660_v43, %v3661_v29  ;;  %v3982_v22 = vsel %vm832_vm3, %v3980_v28, %v3981_v49  ;;  %v2940_v41 = vadd.f32 %v8222_v14, %v2923_v1  ;;  %v8575_v29 = vsel %vm832_vm3, %v3348_v40, %v3349_v9  ;;  %9937 = vst [vmem:[#allocation78_spill] sm:$0xff] %v8593_v35 }
 0x47a   : > { %9933 = vst [vmem:[#allocation74_spill] sm:$0xff] %v8561_v3  ;;  %v8579_v43 = vsel %vm832_vm3, %v3272_v8, %v8178_v52  ;;  %v8583_v28 = vsel %vm468_vm0, 0.0, %v8551_v17  ;;  %v8597_v46 = vmul.f32 %v8164_v19, %v8540_v7  ;;  %v8601_v8 = vmul.f32 %v8201_v31, %v8133_v51 }
 0x47b   : > { %v2773_v60 = vpop.permute.xlu0 %2772  ;;  %v8568_v0 = vpop.permute.xlu1 %2730  ;;  %9935 = vst [vmem:[#allocation76_spill] sm:$0xff] %v8579_v43  ;;  %v8605_v14 = vmul.f32 %v8205_v58, %v8130_v16  ;;  %v2983_v49 = vsel %vm832_vm3, %v2981_v15, %v2982_v5  ;;  %v8619_v9 = vmul.f32 %v8176_v39, %v8551_v17  ;;  %v8625_v61 = vmul.f32 %v8205_v58, %v8583_v28 }
 0x47c   : > { %9934 = vst [vmem:[#allocation75_spill] sm:$0xff] %v8568_v0  ;;  %v8585_v4 = vrot.slane %v2773_v60, 7  ;;  %v8609_v60 = vmul.f32 %v8176_v39, %v8130_v16  ;;  %v3013_v59 = vadd.f32 %v2983_v49, %v2940_v41  ;;  %v2849_v1 = vmul.f32 %v8166_v57, %v8551_v17 }
 0x47d   : > { %9936 = vst [vmem:[#allocation77_spill] sm:$0xff] %v8589_v62  ;;  %v8630_v2 = vadd.f32 %v3982_v22, %v8216_v23  ;;  %v8640_v49 = vsel %vm468_vm0, 0.0, %v8568_v0  ;;  %v8649_v51 = vmul.f32 %v8176_v39, %v8583_v28 }
 0x47e   : > { %9938 = vst [vmem:[#allocation79_spill] sm:$0xff] %v8597_v46  ;;  %v8614_v56 = vsel %vm468_vm0, 0.0, %v8585_v4  ;;  %v3057_v5 = vmul.f32 %v8176_v39, %v8585_v4  ;;  %v2845_v23 = vmul.f32 %v8166_v57, %v8585_v4 }
 0x47f   : > { %9939 = vst [vmem:[#allocation80_spill] sm:$0xff] %v8601_v8  ;;  %v3022_v42 = vmul.f32 %v8205_v58, %v8614_v56  ;;  %v3056_v15 = vmul.f32 %v8176_v39, %v8614_v56  ;;  %v2817_v41 = vmul.f32 %v8164_v19, %v8614_v56  ;;  %v2844_v16 = vmul.f32 %v8166_v57, %v8614_v56 }
 0x480   : > { %9940 = vst [vmem:[#allocation81_spill] sm:$0xff] %v8605_v14  ;;  %v2878_v30 = vrot.slane %v2845_v23, 1 }
 0x481   : > { %9941 = vst [vmem:[#allocation82_spill] sm:$0xff] %v8609_v60  ;;  %v3030_v40 = vadd.f32 %v3022_v42, %v3013_v59  ;;  %v3088_v22 = vrot.slane %v3056_v15, 1  ;;  %v2834_v12 = vadd.f32 %v8236_v37, %v2817_v41  ;;  %v2877_v46 = vrot.slane %v2844_v16, 1 }
 0x482   : > { %9942 = vst [vmem:[#allocation83_spill] sm:$0xff] %v8630_v2  ;;  %v3089_v2 = vrot.slane %v3057_v5, 1  ;;  %v2819_v59 = vmul.f32 %v8164_v19, %v8583_v28  ;;  %v2951_v15 = vmul.f32 %v8170_v44, %v8640_v49  ;;  %v2952_v37 = vmul.f32 %v8170_v44, %v8568_v0 }
 0x483   : > { %v2775_v21 = vpop.permute.xlu1 %2774  ;;  %v3047_v3 = vadd.f32 %v8232_v55, %v3030_v40  ;;  %v2879_v41 = vsel %vm832_vm3, %v2877_v46, %v2878_v30  ;;  %v2916_v16 = vmul.f32 %v8180_v27, %v8640_v49  ;;  %v2848_v55 = vmul.f32 %v8166_v57, %v8583_v28 }
 0x484   : > { %v8654_v42 = vrot.slane %v2775_v21, 7  ;;  %v3090_v14 = vsel %vm832_vm3, %v3088_v22, %v3089_v2  ;;  %v2907_v2 = vadd.f32 %v2879_v41, %v2834_v12  ;;  %v2984_v35 = vrot.slane %v2951_v15, 1 }
 0x485   : > { %v3120_v5 = vadd.f32 %v3090_v14, %v3047_v3  ;;  %v2884_v14 = vrot.slane %v2849_v1, 1  ;;  %v2985_v52 = vrot.slane %v2952_v37, 1  ;;  %v2883_v1 = vrot.slane %v2848_v55, 1 }
 0x486   : > { %v8668_v21 = vsel %vm468_vm0, 0.0, %v8654_v42  ;;  %v3059_v40 = vmul.f32 %v8176_v39, %v8654_v42  ;;  %v2847_v23 = vmul.f32 %v8166_v57, %v8654_v42  ;;  %v2924_v22 = vadd.f32 %v2916_v16, %v2907_v2 }
 0x487   : > { %v3128_v3 = vsel %vm702_vm2, %v3120_v5, 0.0  ;;  %v3058_v30 = vmul.f32 %v8176_v39, %v8668_v21  ;;  %v2818_v12 = vmul.f32 %v8164_v19, %v8668_v21  ;;  %v2846_v8 = vmul.f32 %v8166_v57, %v8668_v21 }
 0x488   : > { %3129 = vadd.xlane.f32.xlu2 %v3128_v3  ;;  %v3092_v41 = vrot.slane %v3059_v40, 1  ;;  %v2881_v43 = vrot.slane %v2847_v23, 1  ;;  %v2836_v5 = vadd.f32 %v8286_v48, %v2819_v59  ;;  %v2941_v60 = vadd.f32 %v8242_v34, %v2924_v22 }
 0x489   : > { %v3091_v62 = vrot.slane %v3058_v30, 1  ;;  %v2835_v46 = vadd.f32 %v8260_v6, %v2818_v12  ;;  %v8687_v15 = vmul.f32 %v8192_v13, %v8568_v0  ;;  %v8691_v37 = vmul.f32 %v8166_v57, %v8568_v0 }
 0x48a   : > { %v2880_v2 = vrot.slane %v2846_v8, 1  ;;  %v3310_v48 = vmul.f32 %v8192_v13, %v8540_v7  ;;  %v2986_v6 = vsel %vm832_vm3, %v2984_v35, %v2985_v52  ;;  %v3023_v59 = vmul.f32 %v8205_v58, %v8668_v21 }
 0x48b   : > { %v8693_v16 = vpop.permute.xlu0 %2734  ;;  %v3094_v55 = vrot.slane %v8649_v51, 1  ;;  %v3014_v40 = vadd.f32 %v2986_v6, %v2941_v60  ;;  %v2885_v3 = vsel %vm832_vm3, %v2883_v1, %v2884_v14  ;;  %v3093_v7 = vsel %vm832_vm3, %v3091_v62, %v3092_v41 }
 0x48c   : > { %9943 = vst [vmem:[#allocation84_spill] sm:$0xff] %v8693_v16  ;;  %v8699_v34 = vsel %vm468_vm0, 0.0, %v8693_v16  ;;  %v2882_v23 = vsel %vm832_vm3, %v2880_v2, %v2881_v43  ;;  %v2909_v22 = vadd.f32 %v2885_v3, %v2836_v5  ;;  %v3449_v52 = vmul.f32 %v8201_v31, %v8614_v56 }
 0x48d   : > { %v2918_v8 = vmul.f32 %v8180_v27, %v8699_v34  ;;  %v2908_v30 = vadd.f32 %v2882_v23, %v2835_v46  ;;  %v3031_v12 = vadd.f32 %v3023_v59, %v3014_v40  ;;  %v2955_v51 = vmul.f32 %v8170_v44, %v8699_v34  ;;  %v8721_v46 = vpop.permute.xlu2 %2736 }
 0x48e   : > { %v2956_v43 = vmul.f32 %v8170_v44, %v8693_v16  ;;  %v3342_v60 = vrot.slane %v3310_v48, 1  ;;  %v3450_v62 = vmul.f32 %v8201_v31, %v8585_v4  ;;  %9945 = vst [vmem:[#allocation86_spill] sm:$0xff] %v8721_v46  ;;  %v9946_v59 = vrot.slane %v8566_v11, 1 }
 0x48f   : > { %v2779_v35 = vpop.permute.xlu1 %2778  ;;  %v2925_v1 = vadd.f32 %v8557_v10, %v2908_v30  ;;  %v2926_v2 = vadd.f32 %v2918_v8, %v2909_v22  ;;  %v3048_v41 = vadd.f32 %v8256_v25, %v3031_v12  ;;  %v2990_v5 = vrot.slane %v2955_v51, 1 }
 0x490   : > { %v8716_v14 = vrot.slane %v2779_v35, 7  ;;  %v2991_v6 = vrot.slane %v2956_v43, 1  ;;  %v3344_v40 = vsel %vm832_vm3, %v3342_v60, %v9946_v59  ;;  %v3481_v43 = vrot.slane %v3449_v52, 1 }
 0x491   : > { %v2942_v10 = vadd.f32 %v8268_v45, %v2925_v1  ;;  %v2943_v23 = vadd.f32 %v8294_v24, %v2926_v2  ;;  %v3121_v8 = vadd.f32 %v3093_v7, %v3048_v41  ;;  %v3374_v45 = vadd.f32 %v3344_v40, %v8224_v18 }
 0x492   : > { %9944 = vst [vmem:[#allocation85_spill] sm:$0xff] %v8716_v14  ;;  %v8729_v48 = vsel %vm468_vm0, 0.0, %v8716_v14  ;;  %v3063_v3 = vmul.f32 %v8176_v39, %v8716_v14  ;;  %v2992_v25 = vsel %vm832_vm3, %v2990_v5, %v2991_v6  ;;  %v3482_v60 = vrot.slane %v3450_v62, 1 }
 0x493   : > { %9947 = vst [vmem:[#allocation87_spill] sm:$0xff] %v8729_v48  ;;  %v3025_v30 = vmul.f32 %v8205_v58, %v8729_v48  ;;  %v3062_v11 = vmul.f32 %v8176_v39, %v8729_v48  ;;  %v3015_v22 = vadd.f32 %v8572_v36, %v2942_v10  ;;  %v3016_v35 = vadd.f32 %v2992_v25, %v2943_v23 }
 0x494   : > { %v3098_v12 = vrot.slane %v3063_v3, 1  ;;  %v3131_v24 = vsel %vm702_vm2, %v3121_v8, 0.0  ;;  %v3425_v2 = vadd.f32 %v8228_v32, %v3374_v45  ;;  %v2820_v41 = vmul.f32 %v8164_v19, %v8729_v48 }
 0x495   : > { %v3097_v51 = vrot.slane %v3062_v11, 1  ;;  %3132 = vadd.xlane.f32.xlu1 %v3131_v24  ;;  %v3032_v7 = vadd.f32 %v8625_v61, %v3015_v22  ;;  %v3033_v1 = vadd.f32 %v3025_v30, %v3016_v35  ;;  %v8749_v36 = vsel %vm468_vm0, 0.0, %v8721_v46  ;;  %v2783_v10 = vpop.permute.xlu2 %2782 }
 0x496   : > { %9948 = vst [vmem:[#allocation88_spill] sm:$0xff] %v8749_v36  ;;  %v2850_v52 = vmul.f32 %v8166_v57, %v8729_v48  ;;  %v2851_v62 = vmul.f32 %v8166_v57, %v8716_v14  ;;  %v9950_v6 = vrot.slane %v8619_v9, 1  ;;  %v3483_v23 = vsel %vm832_vm3, %v3481_v43, %v3482_v60 }
 0x497   : > { %v2781_v5 = vpop.permute.xlu0 %2780  ;;  %v3099_v18 = vsel %vm832_vm3, %v3097_v51, %v3098_v12  ;;  %v3049_v32 = vadd.f32 %v8282_v54, %v3032_v7  ;;  %v3050_v40 = vadd.f32 %v8304_v20, %v3033_v1  ;;  %v2837_v3 = vadd.f32 %v8308_v38, %v2820_v41  ;;  %v9963_v1 = vld [vmem:[#allocation24_spill] sm:$0xff] }
 0x498   : > { %v8756_v61 = vrot.slane %v2781_v5, 7  ;;  %v3096_v59 = vsel %vm832_vm3, %v3094_v55, %v9950_v6  ;;  %v2886_v8 = vrot.slane %v2850_v52, 1  ;;  %v2887_v25 = vrot.slane %v2851_v62, 1 }
 0x499   : > { %v8767_v30 = vmul.f32 %v8156_v26, %v8568_v0  ;;  %v3122_v11 = vadd.f32 %v3096_v59, %v3049_v32  ;;  %v3123_v22 = vadd.f32 %v3099_v18, %v3050_v40  ;;  %v3441_v54 = vadd.f32 %v8246_v50, %v3425_v2 }
 0x49a   : > { %9949 = vst [vmem:[#allocation89_spill] sm:$0xff] %v8756_v61  ;;  %v8772_v9 = vmul.f32 %v8166_v57, %v8721_v46  ;;  %v2888_v20 = vsel %vm832_vm3, %v2886_v8, %v2887_v25  ;;  %v2957_v55 = vmul.f32 %v8170_v44, %v8749_v36  ;;  %v2958_v38 = vmul.f32 %v8170_v44, %v8721_v46 }
 0x49b   : > { %9951 = vst [vmem:[#allocation90_spill] sm:$0xff] %v8767_v30  ;;  %v8781_v35 = vmul.f32 %v8192_v13, %v8721_v46  ;;  %v8783_v12 = vrot.slane %v2783_v10, 7  ;;  %v8787_v50 = vsel %vm468_vm0, 0.0, %v8756_v61  ;;  %v3513_v45 = vadd.f32 %v3483_v23, %v3441_v54  ;;  %v9972_v30 = vld [vmem:[#allocation33_spill] sm:$0xff] }
 0x49c   : > { %9952 = vst [vmem:[#allocation91_spill] sm:$0xff] %v8772_v9  ;;  %v3134_v24 = vsel %vm702_vm2, %v3122_v11, 0.0  ;;  %v3137_v51 = vsel %vm702_vm2, %v3123_v22, 0.0  ;;  %v2910_v43 = vadd.f32 %v2888_v20, %v2837_v3  ;;  %v2919_v60 = vmul.f32 %v8180_v27, %v8749_v36  ;;  %v8817_v3 = vpop.permute.xlu1 %2738 }
 0x49d   : > { %9953 = vst [vmem:[#allocation92_spill] sm:$0xff] %v8783_v12  ;;  %3135 = vadd.xlane.f32.xlu0 %v3134_v24  ;;  %3138 = vadd.xlane.f32.xlu2 %v3137_v51  ;;  %v2993_v2 = vrot.slane %v2957_v55, 1  ;;  %v2994_v41 = vrot.slane %v2958_v38, 1  ;;  %v3064_v52 = vmul.f32 %v8176_v39, %v8787_v50  ;;  %v3065_v62 = vmul.f32 %v8176_v39, %v8756_v61 }
 0x49e   : > { %9954 = vst [vmem:[#allocation93_spill] sm:$0xff] %v8787_v50  ;;  %v2927_v18 = vadd.f32 %v2919_v60, %v2910_v43  ;;  %v8802_v32 = vmul.f32 %v8166_v57, %v8693_v16  ;;  %v3564_v6 = vadd.f32 %v8250_v63, %v3513_v45  ;;  %v3178_v59 = vmul.f32 %v8156_v26, %v8668_v21 }
 0x49f   : > { %v3179_v40 = vmul.f32 %v8156_v26, %v8654_v42  ;;  %v8811_v10 = vsel %vm468_vm0, 0.0, %v8783_v12  ;;  %v8815_v23 = vmul.f32 %v8192_v13, %v8693_v16  ;;  %9956 = vst [vmem:[#allocation95_spill] sm:$0xff] %v8817_v3  ;;  %v3026_v63 = vmul.f32 %v8205_v58, %v8787_v50 }
 0x4a0   : > { %9955 = vst [vmem:[#allocation94_spill] sm:$0xff] %v8811_v10  ;;  %v2944_v8 = vadd.f32 %v8312_v47, %v2927_v18  ;;  %v2995_v25 = vsel %vm832_vm3, %v2993_v2, %v2994_v41  ;;  %v3100_v11 = vrot.slane %v3064_v52, 1  ;;  %v3212_v22 = vrot.slane %v3178_v59, 1 }
 0x4a1   : > { %v3213_v54 = vrot.slane %v3179_v40, 1  ;;  %v3101_v38 = vrot.slane %v3065_v62, 1  ;;  %v2821_v45 = vmul.f32 %v8164_v19, %v8787_v50  ;;  %v2852_v24 = vmul.f32 %v8166_v57, %v8787_v50  ;;  %v9960_v40 = vld [vmem:[#allocation23_spill] sm:$0xff] }
 0x4a2   : > { %v3017_v55 = vadd.f32 %v2995_v25, %v2944_v8  ;;  %v8832_v51 = vsel %vm468_vm0, 0.0, %v8817_v3  ;;  %v8836_v43 = vmul.f32 %v8192_v13, %v8817_v3  ;;  %v3572_v60 = vsel %vm702_vm2, %v3564_v6, 0.0 }
 0x4a3   : > { %v8823_v20 = vpop.permute.xlu0 %2740  ;;  %v3214_v41 = vsel %vm832_vm3, %v3212_v22, %v3213_v54  ;;  %v3453_v18 = vmul.f32 %v8201_v31, %v8583_v28  ;;  %v3454_v52 = vmul.f32 %v8201_v31, %v8551_v17  ;;  %v8846_v62 = vmul.f32 %v8166_v57, %v8817_v3  ;;  %v9962_v54 = vld [vmem:[#allocation31_spill] sm:$0xff] }
 0x4a4   : > { %9957 = vst [vmem:[#allocation96_spill] sm:$0xff] %v8823_v20  ;;  %v3034_v2 = vadd.f32 %v3026_v63, %v3017_v55  ;;  %v8850_v59 = vmul.f32 %v8156_v26, %v8817_v3  ;;  %v3240_v6 = vadd.f32 %v3214_v41, %v9960_v40  ;;  %v2853_v8 = vmul.f32 %v8166_v57, %v8756_v61  ;;  %v9961_v63 = vld [vmem:[#allocation29_spill] sm:$0xff] }
 0x4a5   : > { %9958 = vst [vmem:[#allocation97_spill] sm:$0xff] %v8836_v43  ;;  %3573 = vadd.xlane.f32.xlu0 %v3572_v60  ;;  %v3102_v22 = vsel %vm832_vm3, %v3100_v11, %v3101_v38  ;;  %v2838_v55 = vadd.f32 %v9962_v54, %v2821_v45  ;;  %v2889_v5 = vrot.slane %v2852_v24, 1  ;;  %v2959_v9 = vmul.f32 %v8170_v44, %v8832_v51  ;;  %v9966_v11 = vld [vmem:[#allocation26_spill] sm:$0xff] }
 0x4a6   : > { %9959 = vst [vmem:[#allocation98_spill] sm:$0xff] %v8850_v59  ;;  %v3051_v25 = vadd.f32 %v9961_v63, %v3034_v2  ;;  %v3288_v47 = vadd.f32 %v9963_v1, %v3240_v6  ;;  %v2890_v7 = vrot.slane %v2853_v8, 1  ;;  %v2960_v60 = vmul.f32 %v8170_v44, %v8817_v3  ;;  %v9965_v1 = vld [vmem:[#allocation25_spill] sm:$0xff] }
 0x4a7   : > { %v8865_v41 = vmul.f32 %v8166_v57, %v8823_v20  ;;  %v3487_v2 = vrot.slane %v3453_v18, 1  ;;  %v3488_v63 = vrot.slane %v3454_v52, 1  ;;  %v8870_v38 = vsel %vm468_vm0, 0.0, %v8823_v20  ;;  %v2785_v8 = vpop.permute.xlu1 %2784 }
 0x4a8   : > { %v3124_v40 = vadd.f32 %v3102_v22, %v3051_v25  ;;  %v3304_v45 = vadd.f32 %v9965_v1, %v3288_v47  ;;  %v2891_v24 = vsel %vm832_vm3, %v2889_v5, %v2890_v7  ;;  %v2920_v18 = vmul.f32 %v8180_v27, %v8832_v51 }
 0x4a9   : > { %9964 = vst [vmem:[#allocation23_spill] sm:$0xff] %v8865_v41  ;;  %v2911_v59 = vadd.f32 %v2891_v24, %v2838_v55  ;;  %v3066_v52 = vmul.f32 %v8176_v39, %v8811_v10  ;;  %v8883_v25 = vmul.f32 %v8192_v13, %v8823_v20  ;;  %v2996_v7 = vrot.slane %v2959_v9, 1  ;;  %v9967_v9 = vld [vmem:[#allocation32_spill] sm:$0xff] }
 0x4aa   : > { %v3140_v6 = vsel %vm702_vm2, %v3124_v40, 0.0  ;;  %v3376_v47 = vadd.f32 %v8575_v29, %v3304_v45  ;;  %v2997_v5 = vrot.slane %v2960_v60, 1  ;;  %v3489_v40 = vsel %vm832_vm3, %v3487_v2, %v3488_v63  ;;  %v9968_v63 = vld [vmem:[#allocation27_spill] sm:$0xff] }
 0x4ab   : > { %v8875_v54 = vpop.permute.xlu0 %2742  ;;  %3141 = vadd.xlane.f32.xlu2 %v3140_v6  ;;  %v2928_v55 = vadd.f32 %v2920_v18, %v2911_v59  ;;  %v3067_v1 = vmul.f32 %v8176_v39, %v8783_v12  ;;  %v8890_v24 = vrot.slane %v2785_v8, 7  ;;  %v3182_v16 = vmul.f32 %v8156_v26, %v8729_v48 }
 0x4ac   : > { %v3427_v3 = vadd.f32 %v9966_v11, %v3376_v47  ;;  %v3183_v29 = vmul.f32 %v8156_v26, %v8716_v14  ;;  %v3027_v45 = vmul.f32 %v8205_v58, %v8811_v10  ;;  %v3103_v2 = vrot.slane %v3066_v52, 1 }
 0x4ad   : > { %v2945_v60 = vadd.f32 %v9967_v9, %v2928_v55  ;;  %v3318_v59 = vmul.f32 %v8192_v13, %v8749_v36  ;;  %v2998_v8 = vsel %vm832_vm3, %v2996_v7, %v2997_v5  ;;  %v3218_v11 = vrot.slane %v3182_v16, 1  ;;  %v9969_v16 = vld [vmem:[#allocation30_spill] sm:$0xff] }
 0x4ae   : > { %v3443_v6 = vadd.f32 %v9968_v63, %v3427_v3  ;;  %v3219_v18 = vrot.slane %v3183_v29, 1  ;;  %v3104_v22 = vrot.slane %v3067_v1, 1  ;;  %v3457_v41 = vmul.f32 %v8201_v31, %v8787_v50  ;;  %v9970_v63 = vld [vmem:[#allocation28_spill] sm:$0xff] }
 0x4af   : > { %v3018_v47 = vadd.f32 %v2998_v8, %v2945_v60  ;;  %v3458_v55 = vmul.f32 %v8201_v31, %v8756_v61  ;;  %v2822_v0 = vmul.f32 %v8164_v19, %v8811_v10  ;;  %v2854_v3 = vmul.f32 %v8166_v57, %v8811_v10 }
 0x4b0   : > { %v3515_v9 = vadd.f32 %v3489_v40, %v3443_v6  ;;  %v3220_v52 = vsel %vm832_vm3, %v3218_v11, %v3219_v18  ;;  %v3354_v29 = vrot.slane %v3318_v59, 1  ;;  %v3355_v1 = vrot.slane %v8781_v35, 1  ;;  %v9971_v11 = vld [vmem:[#allocation38_spill] sm:$0xff] }
 0x4b1   : > { %v3035_v7 = vadd.f32 %v3027_v45, %v3018_v47  ;;  %v3242_v5 = vadd.f32 %v3220_v52, %v9969_v16  ;;  %v8917_v60 = vsel %vm468_vm0, 0.0, %v8890_v24  ;;  %v3493_v6 = vrot.slane %v3457_v41, 1 }
 0x4b2   : > { %v3566_v40 = vadd.f32 %v9970_v63, %v3515_v9  ;;  %v3494_v8 = vrot.slane %v3458_v55, 1  ;;  %v2855_v45 = vmul.f32 %v8166_v57, %v8783_v12  ;;  %v2892_v47 = vrot.slane %v2854_v3, 1  ;;  %v9973_v9 = vld [vmem:[#allocation41_spill] sm:$0xff] }
 0x4b3   : > { %v3052_v18 = vadd.f32 %v9971_v11, %v3035_v7  ;;  %v3290_v43 = vadd.f32 %v9972_v30, %v3242_v5  ;;  %v2787_v61 = vpop.permute.xlu0 %2786  ;;  %v8927_v35 = vsel %vm468_vm0, 0.0, %v8875_v54  ;;  %v3105_v52 = vsel %vm832_vm3, %v3103_v2, %v3104_v22  ;;  %v9974_v7 = vld [vmem:[#allocation34_spill] sm:$0xff] }
 0x4b4   : > { %v3578_v59 = vsel %vm702_vm2, %v3566_v40, 0.0  ;;  %v2839_v41 = vadd.f32 %v9973_v9, %v2822_v0  ;;  %v3356_v30 = vsel %vm832_vm3, %v3354_v29, %v3355_v1  ;;  %v2893_v5 = vrot.slane %v2855_v45, 1  ;;  %v9976_v45 = vld [vmem:[#allocation35_spill] sm:$0xff] }
 0x4b5   : > { %3579 = vadd.xlane.f32.xlu0 %v3578_v59  ;;  %v3125_v55 = vadd.f32 %v3105_v52, %v3052_v18  ;;  %v3306_v16 = vadd.f32 %v9974_v7, %v3290_v43  ;;  %v8933_v63 = vrot.slane %v2787_v61, 7  ;;  %v2921_v3 = vmul.f32 %v8180_v27, %v8870_v38  ;;  %v9977_v7 = vld [vmem:[#allocation37_spill] sm:$0xff] }
 0x4b6   : > { %v2961_v40 = vmul.f32 %v8170_v44, %v8870_v38  ;;  %v2962_v22 = vmul.f32 %v8170_v44, %v8823_v20  ;;  %v3495_v11 = vsel %vm832_vm3, %v3493_v6, %v3494_v8  ;;  %v2894_v43 = vsel %vm832_vm3, %v2892_v47, %v2893_v5 }
 0x4b7   : > { %9975 = vst [vmem:[#allocation29_spill] sm:$0xff] %v8933_v63  ;;  %v3143_v0 = vsel %vm702_vm2, %v3125_v55, 0.0  ;;  %v3378_v2 = vadd.f32 %v3356_v30, %v3306_v16  ;;  %v2912_v29 = vadd.f32 %v2894_v43, %v2839_v41  ;;  %v3028_v18 = vmul.f32 %v8205_v58, %v8917_v60 }
 0x4b8   : > { %3144 = vadd.xlane.f32.xlu2 %v3143_v0  ;;  %v2999_v61 = vrot.slane %v2961_v40, 1  ;;  %v3000_v1 = vrot.slane %v2962_v22, 1  ;;  %v3068_v52 = vmul.f32 %v8176_v39, %v8917_v60  ;;  %v3069_v9 = vmul.f32 %v8176_v39, %v8890_v24  ;;  %v9978_v22 = vld [vmem:[#allocation42_spill] sm:$0xff] }
 0x4b9   : > { %v3429_v59 = vadd.f32 %v9976_v45, %v3378_v2  ;;  %v3186_v6 = vmul.f32 %v8156_v26, %v8811_v10  ;;  %v2929_v8 = vadd.f32 %v2921_v3, %v2912_v29  ;;  %v3187_v41 = vmul.f32 %v8156_v26, %v8783_v12 }
 0x4ba   : > { %v3001_v47 = vsel %vm832_vm3, %v2999_v61, %v3000_v1  ;;  %v3322_v55 = vmul.f32 %v8192_v13, %v8870_v38  ;;  %v3106_v30 = vrot.slane %v3068_v52, 1  ;;  %v3107_v5 = vrot.slane %v3069_v9, 1 }
 0x4bb   : > { %v3445_v16 = vadd.f32 %v9977_v7, %v3429_v59  ;;  %v3224_v40 = vrot.slane %v3186_v6, 1  ;;  %v2946_v0 = vadd.f32 %v9978_v22, %v2929_v8  ;;  %v3225_v2 = vrot.slane %v3187_v41, 1  ;;  %v9981_v8 = vld [vmem:[#allocation43_spill] sm:$0xff] }
 0x4bc   : > { %v3360_v43 = vrot.slane %v3322_v55, 1  ;;  %v3361_v45 = vrot.slane %v8883_v25, 1  ;;  %v8963_v29 = vsel %vm468_vm0, 0.0, %v8933_v63  ;;  %v3461_v61 = vmul.f32 %v8201_v31, %v8917_v60  ;;  %v9980_v25 = vld [vmem:[#allocation39_spill] sm:$0xff] }
 0x4bd   : > { %v3517_v3 = vadd.f32 %v3495_v11, %v3445_v16  ;;  %9979 = vst [vmem:[#allocation31_spill] sm:$0xff] %v8963_v29  ;;  %v3462_v1 = vmul.f32 %v8201_v31, %v8890_v24  ;;  %v3019_v59 = vadd.f32 %v3001_v47, %v2946_v0  ;;  %v3108_v52 = vsel %vm832_vm3, %v3106_v30, %v3107_v5  ;;  %v9982_v0 = vld [vmem:[#allocation49_spill] sm:$0xff] }
 0x4be   : > { %v3226_v9 = vsel %vm832_vm3, %v3224_v40, %v3225_v2  ;;  %v2823_v6 = vmul.f32 %v8164_v19, %v8917_v60  ;;  %v3499_v55 = vrot.slane %v3461_v61, 1  ;;  %v3362_v22 = vsel %vm832_vm3, %v3360_v43, %v3361_v45  ;;  %v9984_v45 = vld [vmem:[#allocation44_spill] sm:$0xff] }
 0x4bf   : > { %v3568_v11 = vadd.f32 %v9980_v25, %v3517_v3  ;;  %v3244_v41 = vadd.f32 %v3226_v9, %v9981_v8  ;;  %v3500_v7 = vrot.slane %v3462_v1, 1  ;;  %v3036_v16 = vadd.f32 %v3028_v18, %v3019_v59  ;;  %v9983_v3 = vld [vmem:[#allocation47_spill] sm:$0xff] }
 0x4c0   : > { %v2856_v50 = vmul.f32 %v8166_v57, %v8917_v60  ;;  %v2857_v47 = vmul.f32 %v8166_v57, %v8890_v24  ;;  %v2840_v2 = vadd.f32 %v9982_v0, %v2823_v6  ;;  %v2963_v43 = vmul.f32 %v8170_v44, %v8927_v35 }
 0x4c1   : > { %v3584_v30 = vsel %vm702_vm2, %v3568_v11, 0.0  ;;  %v3292_v5 = vadd.f32 %v8393_v33, %v3244_v41  ;;  %v3501_v40 = vsel %vm832_vm3, %v3499_v55, %v3500_v7  ;;  %v3053_v61 = vadd.f32 %v9983_v3, %v3036_v16 }
 0x4c2   : > { %3585 = vadd.xlane.f32.xlu0 %v3584_v30  ;;  %v2895_v18 = vrot.slane %v2856_v50, 1  ;;  %v2896_v1 = vrot.slane %v2857_v47, 1  ;;  %v2922_v9 = vmul.f32 %v8180_v27, %v8927_v35  ;;  %v2964_v33 = vmul.f32 %v8170_v44, %v8875_v54 }
 0x4c3   : > { %v3308_v59 = vadd.f32 %v9984_v45, %v3292_v5  ;;  %v3070_v25 = vmul.f32 %v8176_v39, %v8963_v29  ;;  %v3126_v6 = vadd.f32 %v3108_v52, %v3053_v61  ;;  %v3002_v8 = vrot.slane %v2963_v43, 1  ;;  %v9985_v52 = vld [vmem:[#allocation45_spill] sm:$0xff] }
 0x4c4   : > { %v2897_v11 = vsel %vm832_vm3, %v2895_v18, %v2896_v1  ;;  %v3071_v50 = vmul.f32 %v8176_v39, %v8933_v63  ;;  %v3003_v7 = vrot.slane %v2964_v33, 1  ;;  %v3605_v5 = vmul.f32 %v8164_v19, %v8640_v49 }
 0x4c5   : > { %v3380_v41 = vadd.f32 %v3362_v22, %v3308_v59  ;;  %v2913_v55 = vadd.f32 %v2897_v11, %v2840_v2  ;;  %v3109_v16 = vrot.slane %v3070_v25, 1  ;;  %v3146_v47 = vsel %vm702_vm2, %v3126_v6, 0.0  ;;  %v9986_v22 = vld [vmem:[#allocation36_spill] sm:$0xff]  ;;  %v9988_v25 = vld [vmem:[#allocation51_spill] sm:$0xff] }
 0x4c6   : > { %v3110_v30 = vrot.slane %v3071_v50, 1  ;;  %v3630_v0 = vmul.f32 %v8166_v57, %v8640_v49  ;;  %3147 = vadd.xlane.f32.xlu1 %v3146_v47  ;;  %v3004_v18 = vsel %vm832_vm3, %v3002_v8, %v3003_v7  ;;  %v3029_v39 = vmul.f32 %v8205_v58, %v8963_v29  ;;  %v9987_v59 = vld [vmem:[#allocation48_spill] sm:$0xff]  ;;  %v9990_v47 = vld [vmem:[#allocation50_spill] sm:$0xff] }
 0x4c7   : > { %v3431_v3 = vadd.f32 %v9985_v52, %v3380_v41  ;;  %v2930_v61 = vadd.f32 %v2922_v9, %v2913_v55  ;;  %v3621_v2 = vadd.f32 %v9986_v22, %v3605_v5  ;;  %v3701_v43 = vmul.f32 %v8180_v27, %v8668_v21  ;;  %v9022_v55 = vld [vmem:[%s9773_s7 + $0x8] ss:$0 sm:$0xff] }
 0x4c8   : > { %v3663_v1 = vrot.slane %v3630_v0, 1  ;;  %v3734_v45 = vmul.f32 %v8170_v44, %v8668_v21  ;;  %v3111_v9 = vsel %vm832_vm3, %v3109_v16, %v3110_v30  ;;  %v3735_v11 = vmul.f32 %v8170_v44, %v8654_v42 }
 0x4c9   : > { %v3447_v33 = vadd.f32 %v9987_v59, %v3431_v3  ;;  %v2947_v6 = vadd.f32 %v9988_v25, %v2930_v61  ;;  %v9989_v8 = vrot.slane %v8691_v37, 1  ;;  %v3838_v7 = vmul.f32 %v9022_v55, %v8461_v53 }
 0x4ca   : > { %v3767_v41 = vrot.slane %v3734_v45, 1  ;;  %v3839_v5 = vmul.f32 %v9022_v55, %v9990_v47  ;;  %v3768_v52 = vrot.slane %v3735_v11, 1  ;;  %v3805_v37 = vmul.f32 %v8205_v58, %v8461_v53  ;;  %v9992_v11 = vld [vmem:[#allocation58_spill] sm:$0xff] }
 0x4cb   : > { %v3665_v50 = vsel %vm832_vm3, %v3663_v1, %v9989_v8  ;;  %v3519_v16 = vadd.f32 %v3501_v40, %v3447_v33  ;;  %v3020_v30 = vadd.f32 %v3004_v18, %v2947_v6  ;;  %v3871_v3 = vrot.slane %v3838_v7, 1  ;;  %v9991_v1 = vld [vmem:[#allocation54_spill] sm:$0xff]  ;;  %v9993_v7 = vld [vmem:[#allocation40_spill] sm:$0xff] }
 0x4cc   : > { %v3693_v0 = vadd.f32 %v3665_v50, %v3621_v2  ;;  %v3176_v61 = vmul.f32 %v8156_v26, %v8614_v56  ;;  %v3177_v22 = vmul.f32 %v8156_v26, %v8585_v4  ;;  %v3872_v8 = vrot.slane %v3839_v5, 1 }
 0x4cd   : > { %v3570_v45 = vadd.f32 %v9991_v1, %v3519_v16  ;;  %v3037_v59 = vadd.f32 %v3029_v39, %v3020_v30  ;;  %v3769_v40 = vsel %vm832_vm3, %v3767_v41, %v3768_v52  ;;  %v3312_v33 = vmul.f32 %v8192_v13, %v8640_v49 }
 0x4ce   : > { %v3709_v25 = vadd.f32 %v3701_v43, %v3693_v0  ;;  %v3209_v18 = vrot.slane %v3176_v61, 1  ;;  %v3210_v2 = vrot.slane %v3177_v22, 1  ;;  %v3346_v29 = vrot.slane %v8687_v15, 1  ;;  %v9994_v0 = vld [vmem:[#allocation46_spill] sm:$0xff] }
 0x4cf   : > { %v3590_v6 = vsel %vm702_vm2, %v3570_v45, 0.0  ;;  %v3054_v50 = vadd.f32 %v9992_v11, %v3037_v59  ;;  %v3345_v43 = vrot.slane %v3312_v33, 1  ;;  %v3451_v41 = vmul.f32 %v8201_v31, %v8668_v21 }
 0x4d0   : > { %v3725_v63 = vadd.f32 %v9993_v7, %v3709_v25  ;;  %3591 = vadd.xlane.f32.xlu0 %v3590_v6  ;;  %v3211_v39 = vsel %vm832_vm3, %v3209_v18, %v3210_v2  ;;  %v3452_v5 = vmul.f32 %v8201_v31, %v8654_v42  ;;  %v3607_v61 = vmul.f32 %v8164_v19, %v8699_v34 }
 0x4d1   : > { %v3127_v16 = vadd.f32 %v3111_v9, %v3054_v50  ;;  %v3239_v52 = vadd.f32 %v3211_v39, %v9994_v0  ;;  %v9052_v15 = vmul.f32 %v8192_v13, %v8875_v54  ;;  %v3873_v22 = vsel %vm832_vm3, %v3871_v3, %v3872_v8  ;;  %v9997_v3 = vld [vmem:[#allocation56_spill] sm:$0xff] }
 0x4d2   : > { %v3797_v30 = vadd.f32 %v3769_v40, %v3725_v63  ;;  %v3347_v1 = vsel %vm832_vm3, %v3345_v43, %v3346_v29  ;;  %v3634_v45 = vmul.f32 %v8166_v57, %v8699_v34  ;;  %v9995_v63 = vld [vmem:[#allocation52_spill] sm:$0xff]  ;;  %v9996_v40 = vld [vmem:[#allocation61_spill] sm:$0xff]  ;;  %v3484_v2 = vrot.slane %v3451_v41, 1 }
 0x4d3   : > { %v3149_v59 = vsel %vm702_vm2, %v3127_v16, 0.0  ;;  %v3287_v25 = vadd.f32 %v9995_v63, %v3239_v52  ;;  %v3623_v18 = vadd.f32 %v9996_v40, %v3607_v61  ;;  %v3485_v33 = vrot.slane %v3452_v5, 1  ;;  %v9998_v29 = vld [vmem:[#allocation53_spill] sm:$0xff] }
 0x4d4   : > { %v3813_v9 = vadd.f32 %v3805_v37, %v3797_v30  ;;  %3150 = vadd.xlane.f32.xlu2 %v3149_v59  ;;  %v3669_v6 = vrot.slane %v3634_v45, 1  ;;  %v3738_v11 = vmul.f32 %v8170_v44, %v8729_v48  ;;  %v3703_v7 = vmul.f32 %v8180_v27, %v8729_v48 }
 0x4d5   : > { %v3303_v50 = vadd.f32 %v9998_v29, %v3287_v25  ;;  %v3739_v37 = vmul.f32 %v8170_v44, %v8716_v14  ;;  %v9999_v39 = vrot.slane %v8802_v32, 1  ;;  %v3842_v5 = vmul.f32 %v9022_v55, %v8749_v36  ;;  %v10000_v25 = vld [vmem:[#allocation55_spill] sm:$0xff] }
 0x4d6   : > { %v3829_v8 = vadd.f32 %v9997_v3, %v3813_v9  ;;  %v3773_v41 = vrot.slane %v3738_v11, 1  ;;  %v3843_v16 = vmul.f32 %v9022_v55, %v8721_v46  ;;  %v3486_v45 = vsel %vm832_vm3, %v3484_v2, %v3485_v33  ;;  %v10001_v33 = vld [vmem:[#allocation57_spill] sm:$0xff] }
 0x4d7   : > { %v3671_v43 = vsel %vm832_vm3, %v3669_v6, %v9999_v39  ;;  %v3375_v0 = vadd.f32 %v3347_v1, %v3303_v50  ;;  %v3774_v61 = vrot.slane %v3739_v37, 1  ;;  %v3877_v59 = vrot.slane %v3842_v5, 1 }
 0x4d8   : > { %v3901_v30 = vadd.f32 %v3873_v22, %v3829_v8  ;;  %v3695_v52 = vadd.f32 %v3671_v43, %v3623_v18  ;;  %v3180_v9 = vmul.f32 %v8156_v26, %v8583_v28  ;;  %v3181_v32 = vmul.f32 %v8156_v26, %v8551_v17  ;;  %v10002_v8 = vld [vmem:[#allocation63_spill] sm:$0xff] }
 0x4d9   : > { %v3426_v40 = vadd.f32 %v10000_v25, %v3375_v0  ;;  %v3878_v11 = vrot.slane %v3843_v16, 1  ;;  %v3775_v22 = vsel %vm832_vm3, %v3773_v41, %v3774_v61  ;;  %v3316_v2 = vmul.f32 %v8192_v13, %v8699_v34  ;;  %v10003_v0 = vld [vmem:[#allocation60_spill] sm:$0xff] }
 0x4da   : > { %v3911_v63 = vsel %vm702_vm2, %v3901_v30, 0.0  ;;  %v3711_v6 = vadd.f32 %v3703_v7, %v3695_v52  ;;  %v3215_v1 = vrot.slane %v3180_v9, 1  ;;  %v3216_v18 = vrot.slane %v3181_v32, 1 }
 0x4db   : > { %3912 = vadd.xlane.f32.xlu0 %v3911_v63  ;;  %v3442_v3 = vadd.f32 %v10001_v33, %v3426_v40  ;;  %v3352_v50 = vrot.slane %v8815_v23, 1  ;;  %v3455_v37 = vmul.f32 %v8201_v31, %v8729_v48  ;;  %v3351_v39 = vrot.slane %v3316_v2, 1  ;;  %v10004_v63 = vld [vmem:[#allocation59_spill] sm:$0xff] }
 0x4dc   : > { %v3727_v29 = vadd.f32 %v10002_v8, %v3711_v6  ;;  %v3217_v7 = vsel %vm832_vm3, %v3215_v1, %v3216_v18  ;;  %v3456_v43 = vmul.f32 %v8201_v31, %v8716_v14  ;;  %v3609_v41 = vmul.f32 %v8164_v19, %v8832_v51  ;;  %v10005_v6 = vld [vmem:[#allocation65_spill] sm:$0xff]  ;;  %v10007_v18 = vld [vmem:[#allocation3_spill] sm:$0xff]  ;;  %v10008_v8 = vld [vmem:[#allocation64_spill] sm:$0xff] }
 0x4dd   : > { %v3514_v5 = vadd.f32 %v3486_v45, %v3442_v3  ;;  %v3807_v30 = vmul.f32 %v8205_v58, %v8749_v36  ;;  %v3241_v52 = vadd.f32 %v3217_v7, %v10003_v0  ;;  %v3879_v23 = vsel %vm832_vm3, %v3877_v59, %v3878_v11  ;;  %v10006_v45 = vld [vmem:[#allocation69_spill] sm:$0xff] }
 0x4de   : > { %v3799_v16 = vadd.f32 %v3775_v22, %v3727_v29  ;;  %v3353_v61 = vsel %vm832_vm3, %v3351_v39, %v3352_v50  ;;  %v3490_v9 = vrot.slane %v3455_v37, 1  ;;  %v3638_v32 = vmul.f32 %v8166_v57, %v8832_v51  ;;  %v10009_v50 = vld [vmem:[#allocation62_spill] sm:$0xff]  ;;  %v10043_v14 = vld [vmem:[#allocation9_spill] sm:$0xff] }
 0x4df   : > { %v3565_v25 = vadd.f32 %v10004_v63, %v3514_v5  ;;  %v3289_v1 = vadd.f32 %v10005_v6, %v3241_v52  ;;  %v3625_v22 = vadd.f32 %v10006_v45, %v3609_v41  ;;  %2744 = vrot.lane.b32.xlu1 %v10007_v18, %s5747_s29  ;;  %v3491_v2 = vrot.slane %v3456_v43, 1  ;;  %v10013_v18 = vld [vmem:[#allocation66_spill] sm:$0xff] }
 0x4e0   : > { %v3815_v40 = vadd.f32 %v3807_v30, %v3799_v16  ;;  %v3675_v33 = vrot.slane %v3638_v32, 1  ;;  %v3742_v59 = vmul.f32 %v8170_v44, %v8811_v10  ;;  %v3743_v11 = vmul.f32 %v8170_v44, %v8783_v12 }
 0x4e1   : > { %v3575_v3 = vsel %vm702_vm2, %v3565_v25, 0.0  ;;  %v3305_v37 = vadd.f32 %v10009_v50, %v3289_v1  ;;  %v3705_v7 = vmul.f32 %v8180_v27, %v8811_v10  ;;  %v10010_v39 = vrot.slane %v8846_v62, 1  ;;  %v10012_v62 = vld [vmem:[#allocation89_spill] sm:$0xff] }
 0x4e2   : > { %v3831_v29 = vadd.f32 %v10008_v8, %v3815_v40  ;;  %3576 = vadd.xlane.f32.xlu2 %v3575_v3  ;;  %v3779_v41 = vrot.slane %v3742_v59, 1  ;;  %v3780_v5 = vrot.slane %v3743_v11, 1  ;;  %v3846_v16 = vmul.f32 %v9022_v55, %v8870_v38  ;;  %v10011_v40 = vld [vmem:[#allocation93_spill] sm:$0xff]  ;;  %v10015_v3 = vld [vmem:[#allocation67_spill] sm:$0xff] }
 0x4e3   : > { %v3677_v43 = vsel %vm832_vm3, %v3675_v33, %v10010_v39  ;;  %v3377_v0 = vadd.f32 %v3353_v61, %v3305_v37  ;;  %v3847_v32 = vmul.f32 %v9022_v55, %v8823_v20  ;;  %v3492_v63 = vsel %vm832_vm3, %v3490_v9, %v3491_v2  ;;  %v10014_v9 = vld [vmem:[#allocation97_spill] sm:$0xff] }
 0x4e4   : > { %v3903_v30 = vadd.f32 %v3879_v23, %v3831_v29  ;;  %v3697_v52 = vadd.f32 %v3677_v43, %v3625_v22  ;;  %v3883_v25 = vrot.slane %v3846_v16, 1  ;;  %v3184_v6 = vmul.f32 %v8156_v26, %v10011_v40  ;;  %v10016_v29 = vld [vmem:[#allocation77_spill] sm:$0xff] }
 0x4e5   : > { %v3185_v1 = vmul.f32 %v8156_v26, %v10012_v62  ;;  %v3428_v33 = vadd.f32 %v10013_v18, %v3377_v0  ;;  %v3884_v23 = vrot.slane %v3847_v32, 1  ;;  %v3320_v11 = vmul.f32 %v8192_v13, %v8832_v51 }
 0x4e6   : > { %v3917_v45 = vsel %vm702_vm2, %v3903_v30, 0.0  ;;  %v3713_v59 = vadd.f32 %v3705_v7, %v3697_v52  ;;  %v3221_v61 = vrot.slane %v3184_v6, 1  ;;  %v3358_v2 = vrot.slane %v10014_v9, 1  ;;  %v10017_v30 = vld [vmem:[#allocation82_spill] sm:$0xff] }
 0x4e7   : > { %3918 = vadd.xlane.f32.xlu0 %v3917_v45  ;;  %v3222_v22 = vrot.slane %v3185_v1, 1  ;;  %v3444_v8 = vadd.f32 %v10015_v3, %v3428_v33  ;;  %v3781_v37 = vsel %vm832_vm3, %v3779_v41, %v3780_v5  ;;  %v3459_v39 = vmul.f32 %v8201_v31, %v8811_v10  ;;  %v10018_v1 = vld [vmem:[#allocation70_spill] sm:$0xff] }
 0x4e8   : > { %v3729_v50 = vadd.f32 %v10016_v29, %v3713_v59  ;;  %v3357_v43 = vrot.slane %v3320_v11, 1  ;;  %v3460_v16 = vmul.f32 %v8201_v31, %v8783_v12  ;;  %v3550_v0 = vrot.slane %v10017_v30, 1  ;;  %v10019_v59 = vld [vmem:[#allocation68_spill] sm:$0xff]  ;;  %v10021_v3 = vld [vmem:[#allocation22_spill] sm:$0xff]  ;;  %v10022_v29 = vld [vmem:[#allocation5_spill] sm:$0xff] }
 0x4e9   : > { %v3223_v7 = vsel %vm832_vm3, %v3221_v61, %v3222_v22  ;;  %v3516_v52 = vadd.f32 %v3492_v63, %v3444_v8  ;;  %v3809_v6 = vmul.f32 %v8205_v58, %v8870_v38  ;;  %v3885_v41 = vsel %vm832_vm3, %v3883_v25, %v3884_v23  ;;  %v10020_v11 = vld [vmem:[#allocation76_spill] sm:$0xff] }
 0x4ea   : > { %v3801_v32 = vadd.f32 %v3781_v37, %v3729_v50  ;;  %v3243_v45 = vadd.f32 %v3223_v7, %v10018_v1  ;;  %v3359_v5 = vsel %vm832_vm3, %v3357_v43, %v3358_v2  ;;  %v3496_v18 = vrot.slane %v3459_v39, 1  ;;  %v10023_v37 = vld [vmem:[#allocation80_spill] sm:$0xff] }
 0x4eb   : > { %v3497_v33 = vrot.slane %v3460_v16, 1  ;;  %v3567_v61 = vadd.f32 %v10019_v59, %v3516_v52  ;;  %v3950_v63 = vmul.f32 %v8156_v26, %v8640_v49  ;;  %v3551_v8 = vsel %vm832_vm3, %v3550_v0, %v10021_v3  ;;  %v10024_v7 = vld [vmem:[#allocation72_spill] sm:$0xff]  ;;  %v10026_v59 = vld [vmem:[#allocation90_spill] sm:$0xff] }
 0x4ec   : > { %v3817_v22 = vadd.f32 %v3809_v6, %v3801_v32  ;;  %v3291_v9 = vadd.f32 %v10020_v11, %v3243_v45  ;;  %v3941_v50 = vmul.f32 %v8164_v19, %v10022_v29  ;;  %v4021_v25 = vmul.f32 %v8166_v57, %v10022_v29  ;;  %v10025_v32 = vld [vmem:[#allocation8_spill] sm:$0xff] }
 0x4ed   : > { %v4086_v23 = vmul.f32 %v8192_v13, %v8668_v21  ;;  %v3581_v2 = vsel %vm702_vm2, %v3567_v61, 0.0  ;;  %v3983_v16 = vrot.slane %v3950_v63, 1  ;;  %v4087_v0 = vmul.f32 %v8192_v13, %v8654_v42 }
 0x4ee   : > { %v3833_v39 = vadd.f32 %v10023_v37, %v3817_v22  ;;  %v3307_v43 = vadd.f32 %v10024_v7, %v3291_v9  ;;  %3582 = vadd.xlane.f32.xlu2 %v3581_v2  ;;  %v4038_v30 = vrot.slane %v4021_v25, 1  ;;  %v4157_v6 = vmul.f32 %v8170_v44, %v10025_v32  ;;  %v10028_v9 = vld [vmem:[#allocation20_spill] sm:$0xff] }
 0x4ef   : > { %v4119_v52 = vrot.slane %v4086_v23, 1  ;;  %v3498_v21 = vsel %vm832_vm3, %v3496_v18, %v3497_v33  ;;  %v10027_v61 = vrot.slane %v10026_v59, 1  ;;  %v4120_v25 = vrot.slane %v4087_v0, 1  ;;  %v10029_v23 = vld [vmem:[#allocation78_spill] sm:$0xff]  ;;  %v10033_v59 = vld [vmem:[#allocation21_spill] sm:$0xff] }
 0x4f0   : > { %v3905_v1 = vadd.f32 %v3885_v41, %v3833_v39  ;;  %v3379_v45 = vadd.f32 %v3359_v5, %v3307_v43  ;;  %v4039_v63 = vsel %vm832_vm3, %v4038_v30, %v10028_v9  ;;  %v4174_v2 = vrot.slane %v4157_v6, 1  ;;  %v10030_v39 = vld [vmem:[#allocation7_spill] sm:$0xff]  ;;  %v10031_v43 = vld [vmem:[#allocation81_spill] sm:$0xff]  ;;  %v10032_v6 = vld [vmem:[#allocation4_spill] sm:$0xff] }
 0x4f1   : > { %v3985_v22 = vsel %vm832_vm3, %v3983_v16, %v10027_v61  ;;  %v4222_v41 = vmul.f32 %v8201_v31, %v8461_v53  ;;  %v4223_v5 = vmul.f32 %v8201_v31, %v9990_v47  ;;  %v4069_v33 = vmul.f32 %v8180_v27, %v10025_v32 }
 0x4f2   : > { %v4013_v11 = vadd.f32 %v3985_v22, %v3941_v50  ;;  %v3923_v42 = vsel %vm702_vm2, %v3905_v1, 0.0  ;;  %v3430_v37 = vadd.f32 %v10029_v23, %v3379_v45  ;;  %v4121_v50 = vsel %vm832_vm3, %v4119_v52, %v4120_v25  ;;  %v10034_v52 = vld [vmem:[#allocation79_spill] sm:$0xff] }
 0x4f3   : > { %3924 = vadd.xlane.f32.xlu0 %v3923_v42  ;;  %v4293_v7 = vmul.f32 %v9022_v55, %v10030_v39  ;;  %v4255_v30 = vrot.slane %v4222_v41, 1  ;;  %v4256_v0 = vrot.slane %v4223_v5, 1  ;;  %v3612_v1 = vmul.f32 %v8156_v26, %v10032_v6 }
 0x4f4   : > { %v4061_v18 = vadd.f32 %v4039_v63, %v4013_v11  ;;  %v3446_v16 = vadd.f32 %v10031_v43, %v3430_v37  ;;  %v4175_v47 = vsel %vm832_vm3, %v4174_v2, %v10033_v59  ;;  %v4205_v61 = vmul.f32 %v8205_v58, %v10030_v39  ;;  %v10035_v37 = vld [vmem:[#allocation6_spill] sm:$0xff] }
 0x4f5   : > { %v4308_v32 = vrot.slane %v4293_v7, 1  ;;  %v3620_v11 = vadd.f32 %v3612_v1, %v10034_v52  ;;  %v3700_v63 = vmul.f32 %v8180_v27, %v8614_v56  ;;  %v3732_v25 = vmul.f32 %v8170_v44, %v8614_v56  ;;  %v10037_v1 = vld [vmem:[#allocation75_spill] sm:$0xff] }
 0x4f6   : > { %v4077_v45 = vadd.f32 %v4069_v33, %v4061_v18  ;;  %v3518_v22 = vadd.f32 %v3498_v21, %v3446_v16  ;;  %v4257_v23 = vsel %vm832_vm3, %v4255_v30, %v4256_v0  ;;  %v3716_v41 = vmul.f32 %v8192_v13, %v10035_v37  ;;  %v10036_v18 = vld [vmem:[#allocation74_spill] sm:$0xff] }
 0x4f7   : > { %v3733_v2 = vmul.f32 %v8170_v44, %v8585_v4  ;;  %v4309_v21 = vsel %vm832_vm3, %v4308_v32, %v10021_v3  ;;  %v3692_v33 = vadd.f32 %v10036_v18, %v3620_v11  ;;  %v3764_v7 = vrot.slane %v3732_v25, 1 }
 0x4f8   : > { %v4149_v42 = vadd.f32 %v4121_v50, %v4077_v45  ;;  %v3569_v5 = vadd.f32 %v3551_v8, %v3518_v22  ;;  %v3836_v50 = vmul.f32 %v9022_v55, %v8640_v49  ;;  %v3837_v30 = vmul.f32 %v9022_v55, %v10037_v1 }
 0x4f9   : > { %v3765_v16 = vrot.slane %v3733_v2, 1  ;;  %v3708_v45 = vadd.f32 %v3700_v63, %v3692_v33  ;;  %v3606_v8 = vmul.f32 %v8164_v19, %v8461_v53  ;;  %v3614_v32 = vmul.f32 %v8156_v26, %v10030_v39 }
 0x4fa   : > { %v4197_v43 = vadd.f32 %v4175_v47, %v4149_v42  ;;  %v3587_v0 = vsel %vm702_vm2, %v3569_v5, 0.0  ;;  %v3868_v52 = vrot.slane %v3836_v50, 1  ;;  %v3869_v11 = vrot.slane %v3837_v30, 1  ;;  %v10038_v30 = vld [vmem:[#allocation10_spill] sm:$0xff] }
 0x4fb   : > { %3588 = vadd.xlane.f32.xlu2 %v3587_v0  ;;  %v3766_v47 = vsel %vm832_vm3, %v3764_v7, %v3765_v16  ;;  %v3724_v25 = vadd.f32 %v3716_v41, %v3708_v45  ;;  %v3804_v42 = vmul.f32 %v8205_v58, %v8640_v49  ;;  %v3820_v2 = vmul.f32 %v8201_v31, %v10022_v29 }
 0x4fc   : > { %v4213_v22 = vadd.f32 %v4205_v61, %v4197_v43  ;;  %v3632_v63 = vmul.f32 %v8166_v57, %v8461_v53  ;;  %v3622_v18 = vadd.f32 %v3614_v32, %v3606_v8  ;;  %v3702_v33 = vmul.f32 %v8180_v27, %v8583_v28  ;;  %v10039_v32 = vld [vmem:[#allocation71_spill] sm:$0xff] }
 0x4fd   : > { %v3736_v61 = vmul.f32 %v8170_v44, %v8583_v28  ;;  %v3796_v7 = vadd.f32 %v3766_v47, %v3724_v25  ;;  %v3870_v41 = vsel %vm832_vm3, %v3868_v52, %v3869_v11  ;;  %v3737_v16 = vmul.f32 %v8170_v44, %v8551_v17  ;;  %v10041_v25 = vld [vmem:[#allocation84_spill] sm:$0xff] }
 0x4fe   : > { %v4285_v5 = vadd.f32 %v4257_v23, %v4213_v22  ;;  %v3666_v43 = vrot.slane %v3632_v63, 1  ;;  %v3718_v0 = vmul.f32 %v8192_v13, %v10038_v30  ;;  %v3840_v23 = vmul.f32 %v9022_v55, %v8699_v34 }
 0x4ff   : > { %v3770_v45 = vrot.slane %v3736_v61, 1  ;;  %v3812_v8 = vadd.f32 %v3804_v42, %v3796_v7  ;;  %v10040_v22 = vrot.slane %v10039_v32, 1  ;;  %v3771_v47 = vrot.slane %v3737_v16, 1  ;;  %v10042_v32 = vld [vmem:[#allocation12_spill] sm:$0xff] }
 0x500   : > { %v4330_v50 = vadd.f32 %v4309_v21, %v4285_v5  ;;  %v3841_v52 = vmul.f32 %v9022_v55, %v10041_v25  ;;  %v3806_v21 = vmul.f32 %v8205_v58, %v8699_v34  ;;  %v3608_v5 = vmul.f32 %v8164_v19, %v8749_v36 }
 0x501   : > { %v3668_v46 = vsel %vm832_vm3, %v3666_v43, %v10040_v22  ;;  %v3828_v61 = vadd.f32 %v3820_v2, %v3812_v8  ;;  %v3874_v42 = vrot.slane %v3840_v23, 1  ;;  %v3616_v43 = vmul.f32 %v8156_v26, %v10042_v32 }
 0x502   : > { %v4340_v11 = vsel %vm702_vm2, %v4330_v50, 0.0  ;;  %v3694_v63 = vadd.f32 %v3668_v46, %v3622_v18  ;;  %v3875_v7 = vrot.slane %v3841_v52, 1  ;;  %v3772_v22 = vsel %vm832_vm3, %v3770_v45, %v3771_v47  ;;  %v10044_v52 = vld [vmem:[#allocation13_spill] sm:$0xff] }
 0x503   : > { %4341 = vadd.xlane.f32.xlu0 %v4340_v11  ;;  %v3822_v50 = vmul.f32 %v8201_v31, %v10043_v14  ;;  %v3636_v46 = vmul.f32 %v8166_v57, %v8749_v36  ;;  %v3900_v18 = vadd.f32 %v3870_v41, %v3828_v61  ;;  %v3624_v48 = vadd.f32 %v3616_v43, %v3608_v5  ;;  %v10045_v43 = vld [vmem:[#allocation91_spill] sm:$0xff] }
 0x504   : > { %v3710_v16 = vadd.f32 %v3702_v33, %v3694_v63  ;;  %v3704_v11 = vmul.f32 %v8180_v27, %v10011_v40  ;;  %v3740_v2 = vmul.f32 %v8170_v44, %v10011_v40  ;;  %v3720_v33 = vmul.f32 %v8192_v13, %v10044_v52 }
 0x505   : > { %v3672_v8 = vrot.slane %v3636_v46, 1  ;;  %v3741_v45 = vmul.f32 %v8170_v44, %v10012_v62  ;;  %v3908_v47 = vsel %vm702_vm2, %v3900_v18, 0.0  ;;  %v3876_v63 = vsel %vm832_vm3, %v3874_v42, %v3875_v7  ;;  %v10047_v46 = vld [vmem:[#allocation95_spill] sm:$0xff]  ;;  %v10048_v62 = vld [vmem:[#allocation14_spill] sm:$0xff] }
 0x506   : > { %v3726_v23 = vadd.f32 %v3718_v0, %v3710_v16  ;;  %v3776_v41 = vrot.slane %v3740_v2, 1  ;;  %v3844_v5 = vmul.f32 %v9022_v55, %v8832_v51  ;;  %3909 = vadd.xlane.f32.xlu2 %v3908_v47  ;;  %v10046_v40 = vrot.slane %v10045_v43, 1 }
 0x507   : > { %v3777_v16 = vrot.slane %v3741_v45, 1  ;;  %v3845_v52 = vmul.f32 %v9022_v55, %v10047_v46  ;;  %v3808_v18 = vmul.f32 %v8205_v58, %v8832_v51  ;;  %v3824_v42 = vmul.f32 %v8201_v31, %v10048_v62  ;;  %v10049_v45 = vld [vmem:[#allocation17_spill] sm:$0xff] }
 0x508   : > { %v3798_v61 = vadd.f32 %v3772_v22, %v3726_v23  ;;  %v3674_v0 = vsel %vm832_vm3, %v3672_v8, %v10046_v40  ;;  %v3188_v7 = vmul.f32 %v8156_v26, %v8917_v60  ;;  %v3880_v22 = vrot.slane %v3844_v5, 1  ;;  %v10052_v62 = vld [vmem:[#allocation29_spill] sm:$0xff] }
 0x509   : > { %v3696_v32 = vadd.f32 %v3674_v0, %v3624_v48  ;;  %v3881_v23 = vrot.slane %v3845_v52, 1  ;;  %v3189_v40 = vmul.f32 %v8156_v26, %v8890_v24  ;;  %v3173_v47 = vmul.f32 %v8164_v19, %v10049_v45 }
 0x50a   : > { %v3814_v2 = vadd.f32 %v3806_v21, %v3798_v61  ;;  %v3227_v48 = vrot.slane %v3188_v7, 1  ;;  %v3253_v43 = vmul.f32 %v8166_v57, %v10049_v45  ;;  %v3778_v46 = vsel %vm832_vm3, %v3776_v41, %v3777_v16  ;;  %v10050_v61 = vld [vmem:[#allocation18_spill] sm:$0xff] }
 0x50b   : > { %v3712_v8 = vadd.f32 %v3704_v11, %v3696_v32  ;;  %v3228_v36 = vrot.slane %v3189_v40, 1  ;;  %v3324_v21 = vmul.f32 %v8192_v13, %v8927_v35  ;;  %v3301_v20 = vmul.f32 %v8180_v27, %v10050_v61 }
 0x50c   : > { %v3830_v0 = vadd.f32 %v3822_v50, %v3814_v2  ;;  %v3276_v52 = vrot.slane %v3253_v43, 1  ;;  %v3390_v32 = vmul.f32 %v8170_v44, %v10050_v61  ;;  %v3882_v7 = vsel %vm832_vm3, %v3880_v22, %v3881_v23  ;;  %v10051_v43 = vld [vmem:[#allocation31_spill] sm:$0xff] }
 0x50d   : > { %v3728_v5 = vadd.f32 %v3720_v33, %v3712_v8  ;;  %v3229_v12 = vsel %vm832_vm3, %v3227_v48, %v3228_v36  ;;  %v3364_v50 = vrot.slane %v9052_v15, 1  ;;  %v3363_v33 = vrot.slane %v3324_v21, 1  ;;  %v10053_v23 = vld [vmem:[#allocation19_spill] sm:$0xff] }
 0x50e   : > { %v3902_v11 = vadd.f32 %v3876_v63, %v3830_v0  ;;  %v3245_v16 = vadd.f32 %v3229_v12, %v3173_v47  ;;  %v3277_v2 = vsel %vm832_vm3, %v3276_v52, %v10028_v9  ;;  %v3415_v8 = vrot.slane %v3390_v32, 1  ;;  %v10054_v0 = vld [vmem:[#allocation16_spill] sm:$0xff] }
 0x50f   : > { %v3800_v41 = vadd.f32 %v3778_v46, %v3728_v5  ;;  %v3463_v10 = vmul.f32 %v8201_v31, %v10051_v43  ;;  %v3464_v63 = vmul.f32 %v8201_v31, %v10052_v62  ;;  %v3440_v15 = vmul.f32 %v8205_v58, %v10053_v23 }
 0x510   : > { %v3914_v40 = vsel %vm702_vm2, %v3902_v11, 0.0  ;;  %v3293_v36 = vadd.f32 %v3277_v2, %v3245_v16  ;;  %v3529_v12 = vmul.f32 %v9022_v55, %v10053_v23  ;;  %v3610_v48 = vmul.f32 %v8164_v19, %v8870_v38 }
 0x511   : > { %3915 = vadd.xlane.f32.xlu2 %v3914_v40  ;;  %v3816_v22 = vadd.f32 %v3808_v18, %v3800_v41  ;;  %v3502_v46 = vrot.slane %v3463_v10, 1  ;;  %v3503_v47 = vrot.slane %v3464_v63, 1  ;;  %v3618_v21 = vmul.f32 %v8156_v26, %v10054_v0 }
 0x512   : > { %v3309_v52 = vadd.f32 %v3301_v20, %v3293_v36  ;;  %v3554_v32 = vrot.slane %v3529_v12, 1  ;;  %v3640_v18 = vmul.f32 %v8166_v57, %v8870_v38  ;;  %v3365_v11 = vsel %vm832_vm3, %v3363_v33, %v3364_v50  ;;  %v10055_v36 = vld [vmem:[#allocation23_spill] sm:$0xff] }
 0x513   : > { %v3832_v5 = vadd.f32 %v3824_v42, %v3816_v22  ;;  %v3416_v41 = vsel %vm832_vm3, %v3415_v8, %v10033_v59  ;;  %v3504_v10 = vsel %vm832_vm3, %v3502_v46, %v3503_v47  ;;  %v3626_v16 = vadd.f32 %v3618_v21, %v3610_v48  ;;  %v3130_v8 = vpop.xlane.xlu2 %3129  ;;  %v9324_v48 = vpop.permute.xlu1 %3155 }
 0x514   : > { %v3381_v40 = vadd.f32 %v3365_v11, %v3309_v52  ;;  %v3678_v63 = vrot.slane %v3640_v18, 1  ;;  %v3706_v23 = vmul.f32 %v8180_v27, %v8917_v60  ;;  %v3555_v20 = vsel %vm832_vm3, %v3554_v32, %v10021_v3 }
 0x515   : > { %v3904_v2 = vadd.f32 %v3882_v7, %v3832_v5  ;;  %v3722_v42 = vmul.f32 %v8192_v13, %v10049_v45  ;;  %v3744_v50 = vmul.f32 %v8170_v44, %v8917_v60  ;;  %v3745_v33 = vmul.f32 %v8170_v44, %v8890_v24 }
 0x516   : > { %v3432_v22 = vadd.f32 %v3416_v41, %v3381_v40  ;;  %v10056_v12 = vrot.slane %v10055_v36, 1  ;;  %v3848_v47 = vmul.f32 %v9022_v55, %v8927_v35  ;;  %v3849_v32 = vmul.f32 %v9022_v55, %v8875_v54 }
 0x517   : > { %v3920_v7 = vsel %vm702_vm2, %v3904_v2, 0.0  ;;  %v3782_v5 = vrot.slane %v3744_v50, 1  ;;  %v3783_v52 = vrot.slane %v3745_v33, 1  ;;  %v3810_v11 = vmul.f32 %v8205_v58, %v8927_v35 }
 0x518   : > { %v3680_v46 = vsel %vm832_vm3, %v3678_v63, %v10056_v12  ;;  %v3448_v18 = vadd.f32 %v3440_v15, %v3432_v22  ;;  %v3826_v41 = vmul.f32 %v8201_v31, %v10050_v61  ;;  %v3158_v2 = vadd.f32 %v9324_v48, %v3130_v8 }
 0x519   : > { %v3698_v21 = vadd.f32 %v3680_v46, %v3626_v16  ;;  %3921 = vadd.xlane.f32.xlu2 %v3920_v7  ;;  %v3784_v63 = vsel %vm832_vm3, %v3782_v5, %v3783_v52  ;;  %v3886_v36 = vrot.slane %v3848_v47, 1  ;;  %v3952_v16 = vmul.f32 %v8156_v26, %v8461_v53  ;;  %v10057_v52 = vld [vmem:[#allocation73_spill] sm:$0xff] }
 0x51a   : > { %v3520_v50 = vadd.f32 %v3504_v10, %v3448_v18  ;;  %v4401_v33 = vrot.slane %v3158_v2, 1  ;;  %v4402_v12 = vrot.slane %v3158_v2, 2  ;;  %v4403_v7 = vrot.slane %v3158_v2, 3  ;;  %4625 = vst [vmem:[#allocation1] ss:$9 sm:$0xff] %v3158_v2 }
 0x51b   : > { %v3714_v40 = vadd.f32 %v3706_v23, %v3698_v21  ;;  %v3887_v22 = vrot.slane %v3849_v32, 1  ;;  %v4404_v46 = vrot.slane %v3158_v2, 4  ;;  %v3942_v43 = vmul.f32 %v8164_v19, %v10030_v39 }
 0x51c   : > { %v3571_v62 = vadd.f32 %v3555_v20, %v3520_v50  ;;  %v4405_v8 = vrot.slane %v3158_v2, 5  ;;  %v4406_v23 = vrot.slane %v3158_v2, 6  ;;  %4627 = vst [vmem:[#allocation1 + $0x1] ss:$9 sm:$0xff] %v4401_v33  ;;  %v3986_v21 = vrot.slane %v3952_v16, 1 }
 0x51d   : > { %v3730_v15 = vadd.f32 %v3722_v42, %v3714_v40  ;;  %v4407_v5 = vrot.slane %v3158_v2, 7  ;;  %4629 = vst [vmem:[#allocation1 + $0x2] ss:$9 sm:$0xff] %v4402_v12  ;;  %v4022_v53 = vmul.f32 %v8166_v57, %v10030_v39  ;;  %v4088_v10 = vmul.f32 %v8192_v13, %v8583_v28 }
 0x51e   : > { %v3593_v42 = vsel %vm702_vm2, %v3571_v62, 0.0  ;;  %4631 = vst [vmem:[#allocation1 + $0x3] ss:$9 sm:$0xff] %v4403_v7  ;;  %v10058_v32 = vrot.slane %v10057_v52, 1  ;;  %v4089_v18 = vmul.f32 %v8192_v13, %v8551_v17  ;;  %v4158_v2 = vmul.f32 %v8170_v44, %v10038_v30  ;;  %v10059_v62 = vld [vmem:[#allocation98_spill] sm:$0xff] }
 0x51f   : > { %v3802_v47 = vadd.f32 %v3784_v63, %v3730_v15  ;;  %3594 = vadd.xlane.f32.xlu1 %v3593_v42  ;;  %4633 = vst [vmem:[#allocation1 + $0x4] ss:$9 sm:$0xff] %v4404_v46  ;;  %v4040_v63 = vrot.slane %v4022_v53, 1  ;;  %v4122_v16 = vrot.slane %v4088_v10, 1  ;;  %v9352_v28 = vmul.f32 %v8156_v26, %v10041_v25 }
 0x520   : > { %v3988_v20 = vsel %vm832_vm3, %v3986_v21, %v10058_v32  ;;  %v3996_v50 = vrot.slane %v10059_v62, 1  ;;  %4635 = vst [vmem:[#allocation1 + $0x5] ss:$9 sm:$0xff] %v4405_v8  ;;  %v4123_v33 = vrot.slane %v4089_v18, 1  ;;  %v4224_v17 = vmul.f32 %v8201_v31, %v8699_v34 }
 0x521   : > { %v3818_v40 = vadd.f32 %v3810_v11, %v3802_v47  ;;  %v4014_v39 = vadd.f32 %v3988_v20, %v3942_v43  ;;  %4637 = vst [vmem:[#allocation1 + $0x6] ss:$9 sm:$0xff] %v4406_v23  ;;  %v4041_v11 = vsel %vm832_vm3, %v4040_v63, %v10028_v9  ;;  %v4225_v43 = vmul.f32 %v8201_v31, %v10041_v25 }
 0x522   : > { %v4294_v7 = vmul.f32 %v9022_v55, %v10043_v14  ;;  %v3888_v15 = vsel %vm832_vm3, %v3886_v36, %v3887_v22  ;;  %4639 = vst [vmem:[#allocation1 + $0x7] ss:$9 sm:$0xff] %v4407_v5  ;;  %v4070_v8 = vmul.f32 %v8180_v27, %v10038_v30  ;;  %v4176_v21 = vrot.slane %v4158_v2, 1  ;;  %v3133_v2 = vpop.xlane.xlu1 %3132 }
 0x523   : > { %v3834_v12 = vadd.f32 %v3826_v41, %v3818_v40  ;;  %v4062_v46 = vadd.f32 %v4041_v11, %v4014_v39  ;;  %v4124_v41 = vsel %vm832_vm3, %v4122_v16, %v4123_v33  ;;  %v4258_v23 = vrot.slane %v4224_v17, 1  ;;  %v10060_v33 = vld [vmem:[#allocation83_spill] sm:$0xff] }
 0x524   : > { %v4020_v53 = vmul.f32 %v8166_v57, %v10032_v6  ;;  %v4259_v25 = vrot.slane %v4225_v43, 1  ;;  %v4084_v42 = vmul.f32 %v8192_v13, %v8614_v56  ;;  %v4085_v36 = vmul.f32 %v8192_v13, %v8585_v4 }
 0x525   : > { %v3906_v47 = vadd.f32 %v3888_v15, %v3834_v12  ;;  %v4078_v10 = vadd.f32 %v4070_v8, %v4062_v46  ;;  %v4206_v30 = vmul.f32 %v8205_v58, %v10043_v14  ;;  %v4310_v5 = vrot.slane %v4294_v7, 1 }
 0x526   : > { %v4036_v52 = vrot.slane %v4020_v53, 1  ;;  %v4116_v20 = vrot.slane %v4084_v42, 1  ;;  %v4117_v18 = vrot.slane %v4085_v36, 1  ;;  %v4156_v6 = vmul.f32 %v8170_v44, %v10035_v37 }
 0x527   : > { %v3926_v22 = vsel %vm702_vm2, %v3906_v47, 0.0  ;;  %v4150_v32 = vadd.f32 %v4124_v41, %v4078_v10  ;;  %v4177_v56 = vsel %vm832_vm3, %v4176_v21, %v10033_v59  ;;  %v4220_v40 = vmul.f32 %v8201_v31, %v8640_v49 }
 0x528   : > { %3927 = vadd.xlane.f32.xlu2 %v3926_v22  ;;  %v4037_v4 = vsel %vm832_vm3, %v4036_v52, %v10028_v9  ;;  %v4221_v39 = vmul.f32 %v8201_v31, %v10037_v1  ;;  %v4260_v16 = vsel %vm832_vm3, %v4258_v23, %v4259_v25  ;;  %v4068_v12 = vmul.f32 %v8180_v27, %v10035_v37 }
 0x529   : > { %v4198_v63 = vadd.f32 %v4177_v56, %v4150_v32  ;;  %v4060_v17 = vadd.f32 %v4037_v4, %v10060_v33  ;;  %v9390_v11 = vld [vmem:[#allocation1] sm:$0xff]  ;;  %v4118_v43 = vsel %vm832_vm3, %v4116_v20, %v4117_v18  ;;  %v4172_v7 = vrot.slane %v4156_v6, 1  ;;  %v10063_v4 = vld [vmem:[#allocation92_spill] sm:$0xff] }
 0x52a   : > { %v4292_v15 = vmul.f32 %v9022_v55, %v10022_v29  ;;  %v3159_v49 = vadd.f32 %v9324_v48, %v3133_v2  ;;  %v4311_v1 = vsel %vm832_vm3, %v4310_v5, %v10021_v3  ;;  %v4204_v21 = vmul.f32 %v8205_v58, %v10022_v29  ;;  %v10061_v20 = vld [vmem:[#allocation14_spill] sm:$0xff] }
 0x52b   : > { %v4214_v46 = vadd.f32 %v4206_v30, %v4198_v63  ;;  %v4076_v8 = vadd.f32 %v4068_v12, %v4060_v17  ;;  %v4252_v47 = vrot.slane %v4220_v40, 1  ;;  %v4253_v37 = vrot.slane %v4221_v39, 1  ;;  %v10062_v2 = vld [vmem:[#allocation94_spill] sm:$0xff]  ;;  %v10064_v39 = vld [vmem:[#allocation15_spill] sm:$0xff] }
 0x52c   : > { %v4408_v41 = vrot.slane %v3159_v49, 1  ;;  %v4409_v23 = vrot.slane %v3159_v49, 2  ;;  %4641 = vst [vmem:[#allocation1] ss:$9 sm:$0xff] %v3159_v49  ;;  %v4410_v25 = vrot.slane %v3159_v49, 3  ;;  %v4411_v42 = vrot.slane %v3159_v49, 4 }
 0x52d   : > { %v4286_v53 = vadd.f32 %v4260_v16, %v4214_v46  ;;  %v4148_v10 = vadd.f32 %v4118_v43, %v4076_v8  ;;  %v4173_v36 = vsel %vm832_vm3, %v4172_v7, %v10033_v59  ;;  %v4306_v22 = vrot.slane %v4292_v15, 1  ;;  %v10065_v7 = vld [vmem:[#allocation96_spill] sm:$0xff] }
 0x52e   : > { %v4412_v30 = vrot.slane %v3159_v49, 5  ;;  %v4413_v52 = vrot.slane %v3159_v49, 6  ;;  %4642 = vst [vmem:[#allocation1 + $0x1] ss:$9 sm:$0xff] %v4408_v41  ;;  %v3958_v29 = vmul.f32 %v8156_v26, %v8832_v51  ;;  %v4025_v18 = vmul.f32 %v8166_v57, %v10061_v20 }
 0x52f   : > { %v4331_v5 = vadd.f32 %v4311_v1, %v4286_v53  ;;  %v4196_v32 = vadd.f32 %v4173_v36, %v4148_v10  ;;  %4643 = vst [vmem:[#allocation1 + $0x2] ss:$9 sm:$0xff] %v4409_v23  ;;  %v4414_v6 = vrot.slane %v3159_v49, 7  ;;  %v4094_v56 = vmul.f32 %v8192_v13, %v10062_v2 }
 0x530   : > { %4644 = vst [vmem:[#allocation1 + $0x3] ss:$9 sm:$0xff] %v4410_v25  ;;  %v4095_v40 = vmul.f32 %v8192_v13, %v10063_v4  ;;  %v4161_v63 = vmul.f32 %v8170_v44, %v10064_v39  ;;  %v3995_v17 = vrot.slane %v3958_v29, 1  ;;  %v4046_v12 = vrot.slane %v4025_v18, 1 }
 0x531   : > { %v4343_v16 = vsel %vm702_vm2, %v4331_v5, 0.0  ;;  %v4212_v33 = vadd.f32 %v4204_v21, %v4196_v32  ;;  %4645 = vst [vmem:[#allocation1 + $0x4] ss:$9 sm:$0xff] %v4411_v42  ;;  %v3990_v43 = vrot.slane %v9352_v28, 1  ;;  %v9416_v15 = vmul.f32 %v8156_v26, %v10065_v7  ;;  %v10066_v32 = vld [vmem:[#allocation87_spill] sm:$0xff] }
 0x532   : > { %4344 = vadd.xlane.f32.xlu1 %v4343_v16  ;;  %v4254_v49 = vsel %vm832_vm3, %v4252_v47, %v4253_v37  ;;  %4646 = vst [vmem:[#allocation1 + $0x5] ss:$9 sm:$0xff] %v4412_v30  ;;  %v3945_v46 = vmul.f32 %v8164_v19, %v10061_v20  ;;  %v3997_v8 = vsel %vm832_vm3, %v3995_v17, %v3996_v50  ;;  %v4131_v21 = vrot.slane %v4094_v56, 1 }
 0x533   : > { %v4284_v1 = vadd.f32 %v4254_v49, %v4212_v33  ;;  %4647 = vst [vmem:[#allocation1 + $0x6] ss:$9 sm:$0xff] %v4413_v52  ;;  %v4132_v41 = vrot.slane %v4095_v40, 1  ;;  %v4307_v28 = vsel %vm832_vm3, %v4306_v22, %v10021_v3  ;;  %v4073_v47 = vmul.f32 %v8180_v27, %v10064_v39  ;;  %v10067_v40 = vld [vmem:[#allocation85_spill] sm:$0xff]  ;;  %v3136_v33 = vpop.xlane.xlu0 %3135 }
 0x534   : > { %4648 = vst [vmem:[#allocation1 + $0x7] ss:$9 sm:$0xff] %v4414_v6  ;;  %v4017_v23 = vadd.f32 %v3997_v8, %v3945_v46  ;;  %v4230_v37 = vmul.f32 %v8201_v31, %v8870_v38  ;;  %v4047_v10 = vsel %vm832_vm3, %v4046_v12, %v10028_v9  ;;  %v4182_v62 = vrot.slane %v4161_v63, 1  ;;  %v10068_v63 = vld [vmem:[#allocation11_spill] sm:$0xff] }
 0x535   : > { %v4329_v53 = vadd.f32 %v4307_v28, %v4284_v1  ;;  %v4231_v50 = vmul.f32 %v8201_v31, %v10065_v7  ;;  %v4297_v42 = vmul.f32 %v9022_v55, %v10054_v0  ;;  %v3954_v36 = vmul.f32 %v8156_v26, %v8699_v34 }
 0x536   : > { %v4065_v25 = vadd.f32 %v4047_v10, %v4017_v23  ;;  %v4023_v22 = vmul.f32 %v8166_v57, %v10043_v14  ;;  %v4133_v52 = vsel %vm832_vm3, %v4131_v21, %v4132_v41  ;;  %v4209_v5 = vmul.f32 %v8205_v58, %v10054_v0 }
 0x537   : > { %v4337_v30 = vsel %vm702_vm2, %v4329_v53, 0.0  ;;  %v4090_v29 = vmul.f32 %v8192_v13, %v10066_v32  ;;  %v4267_v6 = vrot.slane %v4230_v37, 1  ;;  %v3989_v2 = vrot.slane %v3954_v36, 1  ;;  %v10069_v53 = vld [vmem:[#allocation88_spill] sm:$0xff] }
 0x538   : > { %4338 = vadd.xlane.f32.xlu2 %v4337_v30  ;;  %v4081_v18 = vadd.f32 %v4073_v47, %v4065_v25  ;;  %v4042_v56 = vrot.slane %v4023_v22, 1  ;;  %v4268_v4 = vrot.slane %v4231_v50, 1  ;;  %v3943_v34 = vmul.f32 %v8164_v19, %v10043_v14  ;;  %v10070_v50 = vld [vmem:[#allocation86_spill] sm:$0xff] }
 0x539   : > { %v4091_v39 = vmul.f32 %v8192_v13, %v10067_v40  ;;  %v4159_v16 = vmul.f32 %v8170_v44, %v10068_v63  ;;  %v4316_v12 = vrot.slane %v4297_v42, 1  ;;  %v3991_v7 = vsel %vm832_vm3, %v3989_v2, %v3990_v43  ;;  %v10071_v2 = vld [vmem:[#allocation12_spill] sm:$0xff] }
 0x53a   : > { %v4153_v17 = vadd.f32 %v4133_v52, %v4081_v18  ;;  %v4125_v49 = vrot.slane %v4090_v29, 1  ;;  %v4183_v1 = vsel %vm832_vm3, %v4182_v62, %v10033_v59  ;;  %v4015_v8 = vadd.f32 %v3991_v7, %v3943_v34 }
 0x53b   : > { %v9453_v46 = vld [vmem:[#allocation1] sm:$0xff]  ;;  %v4071_v14 = vmul.f32 %v8180_v27, %v10068_v63  ;;  %v4126_v21 = vrot.slane %v4091_v39, 1  ;;  %v4043_v28 = vsel %vm832_vm3, %v4042_v56, %v10028_v9  ;;  %v4178_v23 = vrot.slane %v4159_v16, 1 }
 0x53c   : > { %v4201_v41 = vadd.f32 %v4183_v1, %v4153_v17  ;;  %v3160_v47 = vadd.f32 %v9324_v48, %v3136_v33  ;;  %v4269_v43 = vsel %vm832_vm3, %v4267_v6, %v4268_v4  ;;  %v4063_v37 = vadd.f32 %v4043_v28, %v4015_v8 }
 0x53d   : > { %v4226_v10 = vmul.f32 %v8201_v31, %v10069_v53  ;;  %v4227_v62 = vmul.f32 %v8201_v31, %v10070_v50  ;;  %v4317_v42 = vsel %vm832_vm3, %v4316_v12, %v10021_v3  ;;  %v4127_v36 = vsel %vm832_vm3, %v4125_v49, %v4126_v21 }
 0x53e   : > { %v4217_v25 = vadd.f32 %v4209_v5, %v4201_v41  ;;  %v4415_v22 = vrot.slane %v3160_v47, 1  ;;  %4650 = vst [vmem:[#allocation1] ss:$9 sm:$0xff] %v3160_v47  ;;  %v4079_v30 = vadd.f32 %v4071_v14, %v4063_v37  ;;  %v4416_v52 = vrot.slane %v3160_v47, 2  ;;  %v3139_v41 = vpop.xlane.xlu2 %3138 }
 0x53f   : > { %v4417_v32 = vrot.slane %v3160_v47, 3  ;;  %v4418_v29 = vrot.slane %v3160_v47, 4  ;;  %v4179_v6 = vsel %vm832_vm3, %v4178_v23, %v10033_v59  ;;  %v4295_v56 = vmul.f32 %v9022_v55, %v10071_v2 }
 0x540   : > { %v4289_v18 = vadd.f32 %v4269_v43, %v4217_v25  ;;  %v4419_v4 = vrot.slane %v3160_v47, 5  ;;  %4651 = vst [vmem:[#allocation1 + $0x1] ss:$9 sm:$0xff] %v4415_v22  ;;  %v4151_v5 = vadd.f32 %v4127_v36, %v4079_v30  ;;  %v4261_v34 = vrot.slane %v4226_v10, 1 }
 0x541   : > { %v4262_v40 = vrot.slane %v4227_v62, 1  ;;  %v4420_v39 = vrot.slane %v3160_v47, 6  ;;  %4652 = vst [vmem:[#allocation1 + $0x2] ss:$9 sm:$0xff] %v4416_v52  ;;  %v4421_v16 = vrot.slane %v3160_v47, 7  ;;  %v3960_v33 = vmul.f32 %v8156_v26, %v8870_v38 }
 0x542   : > { %v4334_v63 = vadd.f32 %v4317_v42, %v4289_v18  ;;  %4653 = vst [vmem:[#allocation1 + $0x3] ss:$9 sm:$0xff] %v4417_v32  ;;  %v4026_v17 = vmul.f32 %v8166_v57, %v10054_v0  ;;  %v3999_v12 = vrot.slane %v9416_v15, 1  ;;  %v4199_v7 = vadd.f32 %v4179_v6, %v4151_v5 }
 0x543   : > { %v4207_v55 = vmul.f32 %v8205_v58, %v10071_v2  ;;  %4654 = vst [vmem:[#allocation1 + $0x4] ss:$9 sm:$0xff] %v4418_v29  ;;  %v4312_v1 = vrot.slane %v4295_v56, 1  ;;  %v4263_v14 = vsel %vm832_vm3, %v4261_v34, %v4262_v40  ;;  %v3998_v38 = vrot.slane %v3960_v33, 1 }
 0x544   : > { %v4352_v49 = vsel %vm702_vm2, %v4334_v63, 0.0  ;;  %4655 = vst [vmem:[#allocation1 + $0x5] ss:$9 sm:$0xff] %v4419_v4  ;;  %v4048_v21 = vrot.slane %v4026_v17, 1  ;;  %v3946_v15 = vmul.f32 %v8164_v19, %v10054_v0  ;;  %v4096_v28 = vmul.f32 %v8192_v13, %v8917_v60 }
 0x545   : > { %4353 = vadd.xlane.f32.xlu1 %v4352_v49  ;;  %v4215_v8 = vadd.f32 %v4207_v55, %v4199_v7  ;;  %4656 = vst [vmem:[#allocation1 + $0x6] ss:$9 sm:$0xff] %v4420_v39  ;;  %v4097_v23 = vmul.f32 %v8192_v13, %v8890_v24  ;;  %v4162_v47 = vmul.f32 %v8170_v44, %v10049_v45 }
 0x546   : > { %4657 = vst [vmem:[#allocation1 + $0x7] ss:$9 sm:$0xff] %v4421_v16  ;;  %v4000_v37 = vsel %vm832_vm3, %v3998_v38, %v3999_v12  ;;  %v4313_v10 = vsel %vm832_vm3, %v4312_v1, %v10021_v3  ;;  %v4134_v25 = vrot.slane %v4096_v28, 1  ;;  %v3161_v0 = vadd.f32 %v9324_v48, %v3139_v41 }
 0x547   : > { %v4287_v43 = vadd.f32 %v4263_v14, %v4215_v8  ;;  %v4018_v62 = vadd.f32 %v4000_v37, %v3946_v15  ;;  %v4135_v42 = vrot.slane %v4097_v23, 1  ;;  %v4049_v60 = vsel %vm832_vm3, %v4048_v21, %v10028_v9  ;;  %v3142_v15 = vpop.xlane.xlu2 %3141 }
 0x548   : > { %v4074_v24 = vmul.f32 %v8180_v27, %v10049_v45  ;;  %v4184_v30 = vrot.slane %v4162_v47, 1  ;;  %v4232_v29 = vmul.f32 %v8201_v31, %v8927_v35  ;;  %v4233_v18 = vmul.f32 %v8201_v31, %v8875_v54  ;;  %v9510_v45 = vld [vmem:[%s9773_s7 + $0x8] ss:$0 sm:$0xff] }
 0x549   : > { %v4332_v36 = vadd.f32 %v4313_v10, %v4287_v43  ;;  %v4066_v22 = vadd.f32 %v4049_v60, %v4018_v62  ;;  %v4136_v32 = vsel %vm832_vm3, %v4134_v25, %v4135_v42  ;;  %v4422_v4 = vrot.slane %v3161_v0, 1 }
 0x54a   : > { %v4298_v5 = vmul.f32 %v9510_v45, %v10050_v61  ;;  %v4423_v34 = vrot.slane %v3161_v0, 2  ;;  %v4424_v39 = vrot.slane %v3161_v0, 3  ;;  %v4185_v63 = vsel %vm832_vm3, %v4184_v30, %v10033_v59 }
 0x54b   : > { %v4346_v52 = vsel %vm702_vm2, %v4332_v36, 0.0  ;;  %v4082_v6 = vadd.f32 %v4074_v24, %v4066_v22  ;;  %v4270_v16 = vrot.slane %v4232_v29, 1  ;;  %v4271_v33 = vrot.slane %v4233_v18, 1 }
 0x54c   : > { %4347 = vadd.xlane.f32.xlu2 %v4346_v52  ;;  %v4425_v17 = vrot.slane %v3161_v0, 4  ;;  %v4210_v7 = vmul.f32 %v8205_v58, %v10050_v61  ;;  %v4426_v55 = vrot.slane %v3161_v0, 5  ;;  %v4318_v49 = vrot.slane %v4298_v5, 1 }
 0x54d   : > { %v9505_v56 = vld [vmem:[#allocation1] sm:$0xff]  ;;  %v4154_v40 = vadd.f32 %v4136_v32, %v4082_v6  ;;  %v4427_v1 = vrot.slane %v3161_v0, 6  ;;  %v4428_v14 = vrot.slane %v3161_v0, 7  ;;  %v4272_v38 = vsel %vm832_vm3, %v4270_v16, %v4271_v33 }
 0x54e   : > { %4659 = vst [vmem:[#allocation1] ss:$9 sm:$0xff] %v3161_v0  ;;  %v4319_v41 = vsel %vm832_vm3, %v4318_v49, %v10021_v3  ;;  %v3162_v47 = vadd.f32 %v9324_v48, %v3142_v15  ;;  %v3574_v15 = vpop.xlane.xlu0 %3573 }
 0x54f   : > { %4660 = vst [vmem:[#allocation1 + $0x1] ss:$9 sm:$0xff] %v4422_v4  ;;  %v4202_v12 = vadd.f32 %v4185_v63, %v4154_v40  ;;  %v3145_v60 = vpop.xlane.xlu2 %3144  ;;  %v3148_v4 = vpop.xlane.xlu1 %3147 }
 0x550   : > { %4661 = vst [vmem:[#allocation1 + $0x2] ss:$9 sm:$0xff] %v4423_v34  ;;  %v4429_v37 = vrot.slane %v3162_v47, 1  ;;  %v4430_v10 = vrot.slane %v3162_v47, 2  ;;  %v4431_v62 = vrot.slane %v3162_v47, 3  ;;  %v4432_v25 = vrot.slane %v3162_v47, 4 }
 0x551   : > { %4662 = vst [vmem:[#allocation1 + $0x3] ss:$9 sm:$0xff] %v4424_v39  ;;  %v4218_v8 = vadd.f32 %v4210_v7, %v4202_v12  ;;  %v4433_v42 = vrot.slane %v3162_v47, 5  ;;  %v4434_v36 = vrot.slane %v3162_v47, 6  ;;  %v4435_v0 = vrot.slane %v3162_v47, 7 }
 0x552   : > { %4663 = vst [vmem:[#allocation1 + $0x4] ss:$9 sm:$0xff] %v4425_v17  ;;  %v3163_v22 = vadd.f32 %v9324_v48, %v3145_v60  ;;  %v3164_v5 = vadd.f32 %v9324_v48, %v3148_v4 }
 0x553   : > { %4664 = vst [vmem:[#allocation1 + $0x5] ss:$9 sm:$0xff] %v4426_v55  ;;  %v4290_v21 = vadd.f32 %v4272_v38, %v4218_v8 }
 0x554   : > { %4665 = vst [vmem:[#allocation1 + $0x6] ss:$9 sm:$0xff] %v4427_v1  ;;  %v4436_v30 = vrot.slane %v3163_v22, 1  ;;  %v4437_v52 = vrot.slane %v3163_v22, 2  ;;  %v4438_v32 = vrot.slane %v3163_v22, 3  ;;  %v4440_v29 = vrot.slane %v3163_v22, 5 }
 0x555   : > { %4666 = vst [vmem:[#allocation1 + $0x7] ss:$9 sm:$0xff] %v4428_v14  ;;  %v4335_v28 = vadd.f32 %v4319_v41, %v4290_v21  ;;  %v4441_v18 = vrot.slane %v3163_v22, 6  ;;  %v4442_v6 = vrot.slane %v3163_v22, 7  ;;  %v4443_v40 = vrot.slane %v3164_v5, 1 }
 0x556   : > { %v4444_v39 = vrot.slane %v3164_v5, 2  ;;  %v4445_v63 = vrot.slane %v3164_v5, 3  ;;  %v4446_v16 = vrot.slane %v3164_v5, 4  ;;  %v4447_v33 = vrot.slane %v3164_v5, 5 }
 0x557   : > { %v4355_v23 = vsel %vm702_vm2, %v4335_v28, 0.0  ;;  %v4448_v17 = vrot.slane %v3164_v5, 6  ;;  %v3151_v12 = vpop.xlane.xlu2 %3150  ;;  %v3596_v28 = vadd.f32 %v3574_v15, %v9324_v48 }
 0x558   : > { %4356 = vadd.xlane.f32.xlu2 %v4355_v23  ;;  %v3165_v7 = vadd.f32 %v9324_v48, %v3151_v12 }
 0x559   : > { %v4457_v23 = vrot.slane %v3596_v28, 1 }
 0x55a   : > { %v4450_v49 = vrot.slane %v3165_v7, 1  ;;  %v4451_v1 = vrot.slane %v3165_v7, 2  ;;  %v4452_v8 = vrot.slane %v3165_v7, 3  ;;  %v4453_v14 = vrot.slane %v3165_v7, 4 }
 0x55b   : > { %v4454_v38 = vrot.slane %v3165_v7, 5  ;;  %v4455_v21 = vrot.slane %v3165_v7, 6  ;;  %v4456_v41 = vrot.slane %v3165_v7, 7 }
 0x55c   : > { %v4667_v43 = vld [vmem:[#allocation1] sm:$0xff] }
 0x55d   : > { %4668 = vst [vmem:[#allocation1] ss:$9 sm:$0xff] %v3162_v47 }
 0x55e   : > { %4669 = vst [vmem:[#allocation1 + $0x1] ss:$9 sm:$0xff] %v4429_v37  ;;  %4921 = vperm.xlu1 %5729, %v9390_v11   ;;  %v4439_v11 = vrot.slane %v3163_v22, 4  ;;  %v4459_v37 = vrot.slane %v3596_v28, 3 }
 0x55f   : > { %4670 = vst [vmem:[#allocation1 + $0x2] ss:$9 sm:$0xff] %v4430_v10  ;;  %v4460_v10 = vrot.slane %v3596_v28, 4 }
 0x560   : > { %4671 = vst [vmem:[#allocation1 + $0x3] ss:$9 sm:$0xff] %v4431_v62  ;;  %v4461_v62 = vrot.slane %v3596_v28, 5 }
 0x561   : > { %4672 = vst [vmem:[#allocation1 + $0x4] ss:$9 sm:$0xff] %v4432_v25  ;;  %v4462_v25 = vrot.slane %v3596_v28, 6 }
 0x562   : > { %4673 = vst [vmem:[#allocation1 + $0x5] ss:$9 sm:$0xff] %v4433_v42  ;;  %v4463_v42 = vrot.slane %v3596_v28, 7 }
 0x563   : > { %4674 = vst [vmem:[#allocation1 + $0x6] ss:$9 sm:$0xff] %v4434_v36  ;;  %v3577_v36 = vpop.xlane.xlu2 %3576 }
 0x564   : > { %4675 = vst [vmem:[#allocation1 + $0x7] ss:$9 sm:$0xff] %v4435_v0  ;;  %v3597_v0 = vadd.f32 %v3577_v36, %v9324_v48  ;;  %v10075_v36 = vld [vmem:[#allocation13_spill] sm:$0xff] }
 0x566   : > { %4930 = vperm.xlu1 %5729, %v4667_v43   ;;  %v4458_v43 = vrot.slane %v3596_v28, 2 }
 0x56b   : > { %v4676_v24 = vld [vmem:[#allocation1] sm:$0xff] }
 0x56c   : > { %4677 = vst [vmem:[#allocation1] ss:$9 sm:$0xff] %v3163_v22  ;;  %v4464_v22 = vrot.slane %v3597_v0, 1 }
 0x56d   : > { %4678 = vst [vmem:[#allocation1 + $0x1] ss:$9 sm:$0xff] %v4436_v30  ;;  %v4466_v30 = vrot.slane %v3597_v0, 3 }
 0x56e   : > { %4679 = vst [vmem:[#allocation1 + $0x2] ss:$9 sm:$0xff] %v4437_v52  ;;  %v3957_v52 = vmul.f32 %v8156_v26, %v10070_v50  ;;  %v3643_v50 = vmul.f32 %v8166_v57, %v8875_v54 }
 0x56f   : > { %4680 = vst [vmem:[#allocation1 + $0x3] ss:$9 sm:$0xff] %v4438_v32  ;;  %v4467_v32 = vrot.slane %v3597_v0, 4 }
 0x570   : > { %4681 = vst [vmem:[#allocation1 + $0x4] ss:$9 sm:$0xff] %v4439_v11  ;;  %4924 = vperm.xlu2 %5730, %v9453_v46   ;;  %v4449_v46 = vrot.slane %v3164_v5, 7  ;;  %v3956_v11 = vmul.f32 %v8156_v26, %v10069_v53  ;;  %v3993_v4 = vrot.slane %v3957_v52, 1  ;;  %v3642_v53 = vmul.f32 %v8166_v57, %v8927_v35 }
 0x571   : > { %4682 = vst [vmem:[#allocation1 + $0x5] ss:$9 sm:$0xff] %v4440_v29  ;;  %v4468_v29 = vrot.slane %v3597_v0, 5 }
 0x572   : > { %4683 = vst [vmem:[#allocation1 + $0x6] ss:$9 sm:$0xff] %v4441_v18  ;;  %v4469_v18 = vrot.slane %v3597_v0, 6 }
 0x573   : > { %4684 = vst [vmem:[#allocation1 + $0x7] ss:$9 sm:$0xff] %v4442_v6  ;;  %v4470_v6 = vrot.slane %v3597_v0, 7 }
 0x578   : > { %4933 = vperm.xlu2 %5730, %v4676_v24   ;;  %v4465_v24 = vrot.slane %v3597_v0, 2 }
 0x57a   : > { %v4685_v34 = vld [vmem:[#allocation1] sm:$0xff] }
 0x57b   : > { %4686 = vst [vmem:[#allocation1] ss:$9 sm:$0xff] %v3164_v5  ;;  %4936 = vperm.xlu1 %5729, %v4685_v34   ;;  %v3992_v5 = vrot.slane %v3956_v11, 1  ;;  %v3580_v34 = vpop.xlane.xlu0 %3579 }
 0x57c   : > { %4687 = vst [vmem:[#allocation1 + $0x1] ss:$9 sm:$0xff] %v4443_v40  ;;  %v4024_v40 = vmul.f32 %v8166_v57, %v10071_v2 }
 0x57d   : > { %4688 = vst [vmem:[#allocation1 + $0x2] ss:$9 sm:$0xff] %v4444_v39  ;;  %v3598_v39 = vadd.f32 %v3580_v34, %v9324_v48 }
 0x57e   : > { %4689 = vst [vmem:[#allocation1 + $0x3] ss:$9 sm:$0xff] %v4445_v63  ;;  %v3994_v63 = vsel %vm832_vm3, %v3992_v5, %v3993_v4 }
 0x57f   : > { %4690 = vst [vmem:[#allocation1 + $0x4] ss:$9 sm:$0xff] %v4446_v16  ;;  %v3944_v16 = vmul.f32 %v8164_v19, %v10071_v2  ;;  %v10074_v2 = vld [vmem:[#allocation29_spill] sm:$0xff]  ;;  %v4472_v15 = vrot.slane %v3598_v39, 2  ;;  %v4477_v52 = vrot.slane %v3598_v39, 7 }
 0x580   : > { %4691 = vst [vmem:[#allocation1 + $0x5] ss:$9 sm:$0xff] %v4447_v33  ;;  %v3611_v33 = vmul.f32 %v8164_v19, %v8927_v35 }
 0x581   : > { %4692 = vst [vmem:[#allocation1 + $0x6] ss:$9 sm:$0xff] %v4448_v17  ;;  %v4044_v17 = vrot.slane %v4024_v40, 1 }
 0x582   : > { %4693 = vst [vmem:[#allocation1 + $0x7] ss:$9 sm:$0xff] %v4449_v46  ;;  %v10072_v46 = vld [vmem:[#allocation93_spill] sm:$0xff] }
 0x583   : > { %v4092_v12 = vmul.f32 %v8192_v13, %v10072_v46 }
 0x589   : > { %v4694_v55 = vld [vmem:[#allocation1] sm:$0xff] }
 0x58a   : > { %4695 = vst [vmem:[#allocation1] ss:$9 sm:$0xff] %v3165_v7  ;;  %4939 = vperm.xlu2 %5730, %v4694_v55   ;;  %v10073_v7 = vld [vmem:[#allocation89_spill] sm:$0xff] }
 0x58b   : > { %4696 = vst [vmem:[#allocation1 + $0x1] ss:$9 sm:$0xff] %v4450_v49  ;;  %v4093_v55 = vmul.f32 %v8192_v13, %v10073_v7  ;;  %v3682_v49 = vrot.slane %v3643_v50, 1 }
 0x58c   : > { %4697 = vst [vmem:[#allocation1 + $0x2] ss:$9 sm:$0xff] %v4451_v1  ;;  %v3681_v1 = vrot.slane %v3642_v53, 1 }
 0x58d   : > { %4698 = vst [vmem:[#allocation1 + $0x3] ss:$9 sm:$0xff] %v4452_v8  ;;  %v4016_v8 = vadd.f32 %v3994_v63, %v3944_v16  ;;  %v10077_v63 = vld [vmem:[#allocation19_spill] sm:$0xff] }
 0x58e   : > { %4699 = vst [vmem:[#allocation1 + $0x4] ss:$9 sm:$0xff] %v4453_v14  ;;  %v4471_v14 = vrot.slane %v3598_v39, 1  ;;  %v3723_v16 = vmul.f32 %v8192_v13, %v10077_v63 }
 0x58f   : > { %4700 = vst [vmem:[#allocation1 + $0x5] ss:$9 sm:$0xff] %v4454_v38 }
 0x590   : > { %4701 = vst [vmem:[#allocation1 + $0x6] ss:$9 sm:$0xff] %v4455_v21  ;;  %v3619_v21 = vmul.f32 %v8156_v26, %v10050_v61 }
 0x591   : > { %4702 = vst [vmem:[#allocation1 + $0x7] ss:$9 sm:$0xff] %v4456_v41  ;;  %v3747_v41 = vmul.f32 %v8170_v44, %v10074_v2 }
 0x598   : > { %v4703_v47 = vld [vmem:[#allocation1] sm:$0xff] }
 0x599   : > { %4704 = vst [vmem:[#allocation1] ss:$9 sm:$0xff] %v3596_v28  ;;  %4942 = vperm.xlu1 %5729, %v4703_v47   ;;  %v4473_v28 = vrot.slane %v3598_v39, 3  ;;  %v3627_v47 = vadd.f32 %v3619_v21, %v3611_v33  ;;  %v4228_v21 = vmul.f32 %v8201_v31, %v8832_v51 }
 0x59a   : > { %4705 = vst [vmem:[#allocation1 + $0x1] ss:$9 sm:$0xff] %v4457_v23  ;;  %v9556_v23 = vpop.permute.xlu1 %2744 }
 0x59b   : > { %4706 = vst [vmem:[#allocation1 + $0x2] ss:$9 sm:$0xff] %v4458_v43  ;;  %v4045_v43 = vsel %vm832_vm3, %v4044_v17, %v10028_v9  ;;  %v3851_v50 = vmul.f32 %v9510_v45, %v9556_v23 }
 0x59c   : > { %4707 = vst [vmem:[#allocation1 + $0x3] ss:$9 sm:$0xff] %v4459_v37  ;;  %v4128_v37 = vrot.slane %v4092_v12, 1 }
 0x59d   : > { %4708 = vst [vmem:[#allocation1 + $0x4] ss:$9 sm:$0xff] %v4460_v10  ;;  %v4129_v10 = vrot.slane %v4093_v55, 1 }
 0x59e   : > { %4709 = vst [vmem:[#allocation1 + $0x5] ss:$9 sm:$0xff] %v4461_v62  ;;  %v4474_v62 = vrot.slane %v3598_v39, 4 }
 0x59f   : > { %4710 = vst [vmem:[#allocation1 + $0x6] ss:$9 sm:$0xff] %v4462_v25  ;;  %v3683_v25 = vsel %vm832_vm3, %v3681_v1, %v3682_v49  ;;  %v4130_v4 = vsel %vm832_vm3, %v4128_v37, %v4129_v10 }
 0x5a0   : > { %4711 = vst [vmem:[#allocation1 + $0x7] ss:$9 sm:$0xff] %v4463_v42  ;;  %v4064_v42 = vadd.f32 %v4045_v43, %v4016_v8  ;;  %v3699_v11 = vadd.f32 %v3683_v25, %v3627_v47  ;;  %v3890_v8 = vrot.slane %v3851_v50, 1  ;;  %v3963_v43 = vmul.f32 %v8156_v26, %v8875_v54 }
 0x5a7   : > { %v4712_v60 = vld [vmem:[#allocation1] sm:$0xff] }
 0x5a8   : > { %4713 = vst [vmem:[#allocation1] ss:$9 sm:$0xff] %v3597_v0  ;;  %4945 = vperm.xlu2 %5730, %v4712_v60   ;;  %v4160_v0 = vmul.f32 %v8170_v44, %v10075_v36  ;;  %v4475_v60 = vrot.slane %v3598_v39, 5 }
 0x5a9   : > { %4714 = vst [vmem:[#allocation1 + $0x1] ss:$9 sm:$0xff] %v4464_v22  ;;  %v9565_v22 = vsel %vm468_vm0, 0.0, %v9556_v23 }
 0x5aa   : > { %4715 = vst [vmem:[#allocation1 + $0x2] ss:$9 sm:$0xff] %v4465_v24  ;;  %v3786_v24 = vrot.slane %v3747_v41, 1  ;;  %v3850_v5 = vmul.f32 %v9510_v45, %v9565_v22  ;;  %v4180_v40 = vrot.slane %v4160_v0, 1  ;;  %v3811_v46 = vmul.f32 %v8205_v58, %v9565_v22  ;;  %v10078_v41 = vld [vmem:[#allocation95_spill] sm:$0xff] }
 0x5ab   : > { %4716 = vst [vmem:[#allocation1 + $0x3] ss:$9 sm:$0xff] %v4466_v30  ;;  %v4476_v30 = vrot.slane %v3598_v39, 6  ;;  %v4264_v0 = vrot.slane %v4228_v21, 1 }
 0x5ac   : > { %4717 = vst [vmem:[#allocation1 + $0x4] ss:$9 sm:$0xff] %v4467_v32  ;;  %v4072_v32 = vmul.f32 %v8180_v27, %v10075_v36  ;;  %v3889_v55 = vrot.slane %v3850_v5, 1  ;;  %v4181_v1 = vsel %vm832_vm3, %v4180_v40, %v10033_v59  ;;  %v4296_v36 = vmul.f32 %v9510_v45, %v10061_v20 }
 0x5ad   : > { %4718 = vst [vmem:[#allocation1 + $0x5] ss:$9 sm:$0xff] %v4468_v29  ;;  %v10076_v29 = vld [vmem:[#allocation31_spill] sm:$0xff] }
 0x5ae   : > { %4719 = vst [vmem:[#allocation1 + $0x6] ss:$9 sm:$0xff] %v4469_v18  ;;  %v3707_v18 = vmul.f32 %v8180_v27, %v10076_v29  ;;  %v4080_v34 = vadd.f32 %v4072_v32, %v4064_v42  ;;  %v4208_v42 = vmul.f32 %v8205_v58, %v10061_v20  ;;  %v3891_v51 = vsel %vm832_vm3, %v3889_v55, %v3890_v8 }
 0x5af   : > { %4720 = vst [vmem:[#allocation1 + $0x7] ss:$9 sm:$0xff] %v4470_v6  ;;  %v3746_v6 = vmul.f32 %v8170_v44, %v10076_v29  ;;  %v4002_v32 = vrot.slane %v3963_v43, 1  ;;  %v4027_v20 = vmul.f32 %v8166_v57, %v10050_v61  ;;  %v4314_v5 = vrot.slane %v4296_v36, 1 }
 0x5b0   : > { %v3715_v53 = vadd.f32 %v3707_v18, %v3699_v11  ;;  %v4152_v17 = vadd.f32 %v4130_v4, %v4080_v34  ;;  %v3947_v57 = vmul.f32 %v8164_v19, %v10050_v61 }
 0x5b1   : > { %v3785_v33 = vrot.slane %v3746_v6, 1 }
 0x5b2   : > { %v3731_v12 = vadd.f32 %v3723_v16, %v3715_v53  ;;  %v4200_v47 = vadd.f32 %v4181_v1, %v4152_v17  ;;  %v4099_v53 = vmul.f32 %v8192_v13, %v10074_v2  ;;  %v4315_v16 = vsel %vm832_vm3, %v4314_v5, %v10021_v3 }
 0x5b3   : > { %v3787_v7 = vsel %vm832_vm3, %v3785_v33, %v3786_v24  ;;  %v3962_v24 = vmul.f32 %v8156_v26, %v8927_v35  ;;  %v4050_v33 = vrot.slane %v4027_v20, 1  ;;  %v4098_v17 = vmul.f32 %v8192_v13, %v10076_v29 }
 0x5b4   : > { %v4138_v55 = vrot.slane %v4099_v53, 1  ;;  %v4075_v13 = vmul.f32 %v8180_v27, %v10077_v63 }
 0x5b5   : > { %v4001_v26 = vrot.slane %v3962_v24, 1  ;;  %v4137_v1 = vrot.slane %v4098_v17, 1 }
 0x5b6   : > { %v9550_v38 = vld [vmem:[#allocation1] sm:$0xff] }
 0x5b7   : > { %4722 = vst [vmem:[#allocation1] ss:$9 sm:$0xff] %v3598_v39  ;;  %v3583_v39 = vpop.xlane.xlu2 %3582  ;;  %v4003_v50 = vsel %vm832_vm3, %v4001_v26, %v4002_v32 }
 0x5b8   : > { %4723 = vst [vmem:[#allocation1 + $0x1] ss:$9 sm:$0xff] %v4471_v14  ;;  %v3599_v49 = vadd.f32 %v3583_v39, %v9324_v48  ;;  %v3803_v14 = vadd.f32 %v3787_v7, %v3731_v12  ;;  %v3586_v39 = vpop.xlane.xlu0 %3585  ;;  %v4019_v12 = vadd.f32 %v4003_v50, %v3947_v57  ;;  %v3595_v50 = vpop.xlane.xlu1 %3594 }
 0x5b9   : > { %4724 = vst [vmem:[#allocation1 + $0x2] ss:$9 sm:$0xff] %v4472_v15  ;;  %v4229_v15 = vmul.f32 %v8201_v31, %v10078_v41  ;;  %v3600_v7 = vadd.f32 %v3586_v39, %v9324_v48  ;;  %v3603_v39 = vadd.f32 %v3595_v50, %v9324_v48 }
 0x5ba   : > { %4725 = vst [vmem:[#allocation1 + $0x3] ss:$9 sm:$0xff] %v4473_v28  ;;  %v3827_v28 = vmul.f32 0.0, %v8201_v31  ;;  %v3819_v37 = vadd.f32 %v3811_v46, %v3803_v14  ;;  %v4479_v25 = vrot.slane %v3599_v49, 2  ;;  %v4480_v54 = vrot.slane %v3599_v49, 3 }
 0x5bb   : > { %4726 = vst [vmem:[#allocation1 + $0x4] ss:$9 sm:$0xff] %v4474_v62  ;;  %v4478_v62 = vrot.slane %v3599_v49, 1  ;;  %v4481_v11 = vrot.slane %v3599_v49, 4  ;;  %v4482_v18 = vrot.slane %v3599_v49, 5  ;;  %v4483_v45 = vrot.slane %v3599_v49, 6 }
 0x5bc   : > { %4727 = vst [vmem:[#allocation1 + $0x5] ss:$9 sm:$0xff] %v4475_v60  ;;  %v4265_v60 = vrot.slane %v4229_v15, 1  ;;  %v4484_v35 = vrot.slane %v3599_v49, 7  ;;  %v4485_v2 = vrot.slane %v3600_v7, 1  ;;  %v4163_v14 = vmul.f32 %v8170_v44, %v10077_v63 }
 0x5bd   : > { %4728 = vst [vmem:[#allocation1 + $0x6] ss:$9 sm:$0xff] %v4476_v30  ;;  %v3835_v30 = vadd.f32 %v3827_v28, %v3819_v37  ;;  %v4486_v21 = vrot.slane %v3600_v7, 2  ;;  %v4487_v29 = vrot.slane %v3600_v7, 3  ;;  %v4488_v41 = vrot.slane %v3600_v7, 4 }
 0x5be   : > { %4729 = vst [vmem:[#allocation1 + $0x7] ss:$9 sm:$0xff] %v4477_v52  ;;  %v4216_v52 = vadd.f32 %v4208_v42, %v4200_v47  ;;  %v4266_v4 = vsel %vm832_vm3, %v4264_v0, %v4265_v60  ;;  %v4489_v28 = vrot.slane %v3600_v7, 5  ;;  %v4186_v47 = vrot.slane %v4163_v14, 1 }
 0x5bf   : > { %v3907_v6 = vadd.f32 %v3891_v51, %v3835_v30  ;;  %v4490_v43 = vrot.slane %v3600_v7, 6  ;;  %v4234_v44 = vmul.f32 %v8201_v31, %v9565_v22  ;;  %v4235_v37 = vmul.f32 %v8201_v31, %v9556_v23 }
 0x5c0   : > { %v4288_v40 = vadd.f32 %v4266_v4, %v4216_v52  ;;  %v4491_v63 = vrot.slane %v3600_v7, 7  ;;  %v4211_v51 = vmul.f32 0.0, %v8205_v58  ;;  %v4506_v53 = vrot.slane %v3603_v39, 1 }
 0x5c1   : > { %v3929_v34 = vsel %vm702_vm2, %v3907_v6, 0.0  ;;  %v4274_v42 = vrot.slane %v4235_v37, 1  ;;  %v3592_v6 = vpop.xlane.xlu0 %3591  ;;  %v4509_v17 = vrot.slane %v3603_v39, 4 }
 0x5c2   : > { %3930 = vadd.xlane.f32.xlu0 %v3929_v34  ;;  %v4333_v46 = vadd.f32 %v4315_v16, %v4288_v40  ;;  %v3602_v20 = vadd.f32 %v3592_v6, %v9324_v48  ;;  %v4507_v16 = vrot.slane %v3603_v39, 2 }
 0x5c4   : > { %v4349_v19 = vsel %vm702_vm2, %v4333_v46, 0.0  ;;  %v4500_v5 = vrot.slane %v3602_v20, 2  ;;  %v4501_v26 = vrot.slane %v3602_v20, 3  ;;  %v4504_v34 = vrot.slane %v3602_v20, 6 }
 0x5c5   : > { %v4730_v10 = vld [vmem:[#allocation1] sm:$0xff]  ;;  %v4505_v40 = vrot.slane %v3602_v20, 7  ;;  %v4510_v46 = vrot.slane %v3603_v39, 5 }
 0x5c6   : > { %4731 = vst [vmem:[#allocation1] ss:$9 sm:$0xff] %v3599_v49  ;;  %4951 = vperm.xlu1 %5729, %v4730_v10   ;;  %v4051_v49 = vsel %vm832_vm3, %v4050_v33, %v10028_v9  ;;  %v4139_v9 = vsel %vm832_vm3, %v4137_v1, %v4138_v55  ;;  %v3589_v10 = vpop.xlane.xlu2 %3588  ;;  %v4508_v33 = vrot.slane %v3603_v39, 3 }
 0x5c7   : > { %4732 = vst [vmem:[#allocation1 + $0x1] ss:$9 sm:$0xff] %v4478_v62  ;;  %v4067_v61 = vadd.f32 %v4051_v49, %v4019_v12  ;;  %v4187_v62 = vsel %vm832_vm3, %v4186_v47, %v10033_v59  ;;  %v3601_v22 = vadd.f32 %v3589_v10, %v9324_v48  ;;  %v4511_v12 = vrot.slane %v3603_v39, 6 }
 0x5c8   : > { %4733 = vst [vmem:[#allocation1 + $0x2] ss:$9 sm:$0xff] %v4479_v25  ;;  %v4273_v25 = vrot.slane %v4234_v44, 1 }
 0x5c9   : > { %4734 = vst [vmem:[#allocation1 + $0x3] ss:$9 sm:$0xff] %v4480_v54  ;;  %v4083_v15 = vadd.f32 %v4075_v13, %v4067_v61  ;;  %v4492_v60 = vrot.slane %v3601_v22, 1  ;;  %v4493_v54 = vrot.slane %v3601_v22, 2  ;;  %v4494_v30 = vrot.slane %v3601_v22, 3 }
 0x5ca   : > { %4735 = vst [vmem:[#allocation1 + $0x4] ss:$9 sm:$0xff] %v4481_v11  ;;  %4350 = vadd.xlane.f32.xlu0 %v4349_v19  ;;  %v4275_v31 = vsel %vm832_vm3, %v4273_v25, %v4274_v42  ;;  %v4495_v52 = vrot.slane %v3601_v22, 4  ;;  %v4496_v59 = vrot.slane %v3601_v22, 5  ;;  %v4497_v11 = vrot.slane %v3601_v22, 6 }
 0x5cb   : > { %4736 = vst [vmem:[#allocation1 + $0x5] ss:$9 sm:$0xff] %v4482_v18  ;;  %v4155_v27 = vadd.f32 %v4139_v9, %v4083_v15  ;;  %v4498_v58 = vrot.slane %v3601_v22, 7  ;;  %vm5069_vm3 = vcmask 917312  }
 0x5cc   : > { %4737 = vst [vmem:[#allocation1 + $0x6] ss:$9 sm:$0xff] %v4483_v45  ;;  %v4499_v45 = vrot.slane %v3602_v20, 1 }
 0x5cd   : > { %4738 = vst [vmem:[#allocation1 + $0x7] ss:$9 sm:$0xff] %v4484_v35  ;;  %v4203_v36 = vadd.f32 %v4187_v62, %v4155_v27  ;;  %v4503_v35 = vrot.slane %v3602_v20, 5 }
 0x5ce   : > { %v3910_v55 = vpop.xlane.xlu2 %3909 }
 0x5cf   : > { %v4219_v0 = vadd.f32 %v4211_v51, %v4203_v36 }
 0x5d1   : > { %v4291_v24 = vadd.f32 %v4275_v31, %v4219_v0 }
 0x5d3   : > { %v4336_v32 = vadd.f32 %v4291_v24, %v10021_v3  ;;  %v4502_v3 = vrot.slane %v3602_v20, 4 }
 0x5d4   : > { %v4739_v8 = vld [vmem:[#allocation1] sm:$0xff] }
 0x5d5   : > { %4740 = vst [vmem:[#allocation1] ss:$9 sm:$0xff] %v3600_v7  ;;  %4954 = vperm.xlu2 %5730, %v4739_v8   ;;  %v4358_v18 = vsel %vm702_vm2, %v4336_v32, 0.0  ;;  %v4512_v7 = vrot.slane %v3603_v39, 7  ;;  %vm5065_vm2 = vcmask 851712  }
 0x5d6   : > { %4741 = vst [vmem:[#allocation1 + $0x1] ss:$9 sm:$0xff] %v4485_v2  ;;  %4359 = vadd.xlane.f32.xlu0 %v4358_v18  ;;  %v3916_v37 = vpop.xlane.xlu2 %3915 }
 0x5d7   : > { %4742 = vst [vmem:[#allocation1 + $0x2] ss:$9 sm:$0xff] %v4486_v21  ;;  %v3913_v21 = vpop.xlane.xlu0 %3912  ;;  %v3934_v27 = vadd.f32 %v3916_v37, %v9324_v48 }
 0x5d8   : > { %4743 = vst [vmem:[#allocation1 + $0x3] ss:$9 sm:$0xff] %v4487_v29  ;;  %v3933_v13 = vadd.f32 %v3913_v21, %v9324_v48 }
 0x5d9   : > { %4744 = vst [vmem:[#allocation1 + $0x4] ss:$9 sm:$0xff] %v4488_v41  ;;  %v4528_v62 = vrot.slane %v3934_v27, 2  ;;  %v4529_v25 = vrot.slane %v3934_v27, 3  ;;  %v4530_v42 = vrot.slane %v3934_v27, 4  ;;  %v4531_v36 = vrot.slane %v3934_v27, 5 }
 0x5da   : > { %4745 = vst [vmem:[#allocation1 + $0x5] ss:$9 sm:$0xff] %v4489_v28  ;;  %v4520_v29 = vrot.slane %v3933_v13, 1  ;;  %v4521_v41 = vrot.slane %v3933_v13, 2  ;;  %v4522_v15 = vrot.slane %v3933_v13, 3  ;;  %v4523_v28 = vrot.slane %v3933_v13, 4 }
 0x5db   : > { %4746 = vst [vmem:[#allocation1 + $0x6] ss:$9 sm:$0xff] %v4490_v43  ;;  %v4524_v47 = vrot.slane %v3933_v13, 5  ;;  %v4525_v43 = vrot.slane %v3933_v13, 6  ;;  %v4526_v44 = vrot.slane %v3933_v13, 7  ;;  %v4532_v51 = vrot.slane %v3934_v27, 6 }
 0x5dc   : > { %4747 = vst [vmem:[#allocation1 + $0x7] ss:$9 sm:$0xff] %v4491_v63  ;;  %v4527_v63 = vrot.slane %v3934_v27, 1 }
 0x5df   : > { %v3919_v0 = vpop.xlane.xlu0 %3918 }
 0x5e0   : > { %v3935_v31 = vadd.f32 %v3919_v0, %v9324_v48 }
 0x5e2   : > { %v4535_v24 = vrot.slane %v3935_v31, 2  ;;  %v4540_v32 = vrot.slane %v3935_v31, 7 }
 0x5e3   : > { %v4748_v23 = vld [vmem:[#allocation1] sm:$0xff] }
 0x5e4   : > { %4749 = vst [vmem:[#allocation1] ss:$9 sm:$0xff] %v3601_v22  ;;  %v4533_v22 = vrot.slane %v3934_v27, 7 }
 0x5e5   : > { %4750 = vst [vmem:[#allocation1 + $0x1] ss:$9 sm:$0xff] %v4492_v60 }
 0x5e6   : > { %4751 = vst [vmem:[#allocation1 + $0x2] ss:$9 sm:$0xff] %v4493_v54  ;;  %v4536_v54 = vrot.slane %v3935_v31, 3 }
 0x5e7   : > { %4752 = vst [vmem:[#allocation1 + $0x3] ss:$9 sm:$0xff] %v4494_v30  ;;  %v4537_v30 = vrot.slane %v3935_v31, 4 }
 0x5e8   : > { %4753 = vst [vmem:[#allocation1 + $0x4] ss:$9 sm:$0xff] %v4495_v52  ;;  %v4538_v52 = vrot.slane %v3935_v31, 5 }
 0x5e9   : > { %4754 = vst [vmem:[#allocation1 + $0x5] ss:$9 sm:$0xff] %v4496_v59  ;;  %v4539_v59 = vrot.slane %v3935_v31, 6 }
 0x5ea   : > { %4755 = vst [vmem:[#allocation1 + $0x6] ss:$9 sm:$0xff] %v4497_v11  ;;  %4927 = vperm.xlu0 %5731, %v9505_v56   ;;  %v3932_v56 = vadd.f32 %v3910_v55, %v9324_v48  ;;  %v3922_v11 = vpop.xlane.xlu2 %3921 }
 0x5eb   : > { %4756 = vst [vmem:[#allocation1 + $0x7] ss:$9 sm:$0xff] %v4498_v58  ;;  %v3936_v58 = vadd.f32 %v3922_v11, %v9324_v48 }
 0x5ec   : > { %v4513_v49 = vrot.slane %v3932_v56, 1  ;;  %v4514_v19 = vrot.slane %v3932_v56, 2  ;;  %v4515_v61 = vrot.slane %v3932_v56, 3  ;;  %v4516_v2 = vrot.slane %v3932_v56, 4 }
 0x5ed   : > { %v4517_v8 = vrot.slane %v3932_v56, 5  ;;  %v4518_v14 = vrot.slane %v3932_v56, 6  ;;  %v4541_v18 = vrot.slane %v3936_v58, 1 }
 0x5f2   : > { %v4757_v4 = vld [vmem:[#allocation1] sm:$0xff]  ;;  %4948 = vperm.xlu0 %5731, %v9550_v38   ;;  %v4519_v38 = vrot.slane %v3932_v56, 7 }
 0x5f3   : > { %4758 = vst [vmem:[#allocation1] ss:$9 sm:$0xff] %v3602_v20  ;;  %4960 = vperm.xlu1 %5729, %v4757_v4   ;;  %v4542_v20 = vrot.slane %v3936_v58, 2  ;;  %v4544_v4 = vrot.slane %v3936_v58, 4 }
 0x5f4   : > { %4759 = vst [vmem:[#allocation1 + $0x1] ss:$9 sm:$0xff] %v4499_v45  ;;  %v4543_v45 = vrot.slane %v3936_v58, 3 }
 0x5f5   : > { %4760 = vst [vmem:[#allocation1 + $0x2] ss:$9 sm:$0xff] %v4500_v5  ;;  %v3928_v5 = vpop.xlane.xlu2 %3927 }
 0x5f6   : > { %4761 = vst [vmem:[#allocation1 + $0x3] ss:$9 sm:$0xff] %v4501_v26  ;;  %v4545_v26 = vrot.slane %v3936_v58, 5 }
 0x5f7   : > { %4762 = vst [vmem:[#allocation1 + $0x4] ss:$9 sm:$0xff] %v4502_v3  ;;  %v4546_v3 = vrot.slane %v3936_v58, 6 }
 0x5f8   : > { %4763 = vst [vmem:[#allocation1 + $0x5] ss:$9 sm:$0xff] %v4503_v35  ;;  %v4547_v35 = vrot.slane %v3936_v58, 7 }
 0x5f9   : > { %4764 = vst [vmem:[#allocation1 + $0x6] ss:$9 sm:$0xff] %v4504_v34  ;;  %v3925_v34 = vpop.xlane.xlu0 %3924 }
 0x5fa   : > { %4765 = vst [vmem:[#allocation1 + $0x7] ss:$9 sm:$0xff] %v4505_v40  ;;  %4957 = vperm.xlu0 %5731, %v4748_v23   ;;  %v4534_v23 = vrot.slane %v3935_v31, 1  ;;  %v3937_v40 = vadd.f32 %v3925_v34, %v9324_v48 }
 0x5fd   : > { %v9643_v50 = vpop.xlane.xlu2 %4338 }
 0x601   : > { %v4766_v57 = vld [vmem:[#allocation1] sm:$0xff] }
 0x602   : > { %4767 = vst [vmem:[#allocation1] ss:$9 sm:$0xff] %v3603_v39  ;;  %4963 = vperm.xlu2 %5730, %v4766_v57   ;;  %v4548_v39 = vrot.slane %v3937_v40, 1 }
 0x603   : > { %4768 = vst [vmem:[#allocation1 + $0x1] ss:$9 sm:$0xff] %v4506_v53  ;;  %v9645_v53 = vpop.xlane.xlu1 %4344 }
 0x604   : > { %4769 = vst [vmem:[#allocation1 + $0x2] ss:$9 sm:$0xff] %v4507_v16  ;;  %v4549_v16 = vrot.slane %v3937_v40, 2 }
 0x605   : > { %4770 = vst [vmem:[#allocation1 + $0x3] ss:$9 sm:$0xff] %v4508_v33  ;;  %v4550_v33 = vrot.slane %v3937_v40, 3  ;;  %v9647_v55 = vpop.xlane.xlu2 %4347 }
 0x606   : > { %4771 = vst [vmem:[#allocation1 + $0x4] ss:$9 sm:$0xff] %v4509_v17  ;;  %v4551_v17 = vrot.slane %v3937_v40, 4 }
 0x607   : > { %4772 = vst [vmem:[#allocation1 + $0x5] ss:$9 sm:$0xff] %v4510_v46  ;;  %v4552_v46 = vrot.slane %v3937_v40, 5 }
 0x608   : > { %4773 = vst [vmem:[#allocation1 + $0x6] ss:$9 sm:$0xff] %v4511_v12  ;;  %v4553_v12 = vrot.slane %v3937_v40, 6 }
 0x609   : > { %4774 = vst [vmem:[#allocation1 + $0x7] ss:$9 sm:$0xff] %v4512_v7  ;;  %v4554_v7 = vrot.slane %v3937_v40, 7 }
 0x610   : > { %v4775_v1 = vld [vmem:[#allocation1] sm:$0xff] }
 0x611   : > { %4776 = vst [vmem:[#allocation1] ss:$9 sm:$0xff] %v3932_v56  ;;  %4966 = vperm.xlu0 %5731, %v4775_v1   ;;  %v9649_v56 = vpop.xlane.xlu1 %4353  ;;  %v5016_v1 = vlaneseq }
 0x612   : > { %4777 = vst [vmem:[#allocation1 + $0x1] ss:$9 sm:$0xff] %v4513_v49  ;;  %v3938_v49 = vadd.f32 %v3928_v5, %v9324_v48 }
 0x613   : > { %4778 = vst [vmem:[#allocation1 + $0x2] ss:$9 sm:$0xff] %v4514_v19  ;;  %v9652_v19 = vpop.xlane.xlu2 %4356 }
 0x614   : > { %4779 = vst [vmem:[#allocation1 + $0x3] ss:$9 sm:$0xff] %v4515_v61  ;;  %v9654_v61 = vpop.xlane.xlu0 %4341  ;;  %v4557_v21 = vrot.slane %v3938_v49, 3 }
 0x615   : > { %4780 = vst [vmem:[#allocation1 + $0x4] ss:$9 sm:$0xff] %v4516_v2  ;;  %v4555_v2 = vrot.slane %v3938_v49, 1 }
 0x616   : > { %4781 = vst [vmem:[#allocation1 + $0x5] ss:$9 sm:$0xff] %v4517_v8 }
 0x617   : > { %4782 = vst [vmem:[#allocation1 + $0x6] ss:$9 sm:$0xff] %v4518_v14  ;;  %v9657_v14 = vand.u32 127, %v5016_v1 }
 0x618   : > { %4783 = vst [vmem:[#allocation1 + $0x7] ss:$9 sm:$0xff] %v4519_v38  ;;  %v4556_v38 = vrot.slane %v3938_v49, 2 }
 0x61f   : > { %v4784_v9 = vld [vmem:[#allocation1] sm:$0xff] }
 0x620   : > { %4785 = vst [vmem:[#allocation1] ss:$9 sm:$0xff] %v3933_v13  ;;  %4969 = vperm.xlu1 %5729, %v4784_v9   ;;  %v4558_v13 = vrot.slane %v3938_v49, 4  ;;  %v4559_v9 = vrot.slane %v3938_v49, 5 }
 0x621   : > { %4786 = vst [vmem:[#allocation1 + $0x1] ss:$9 sm:$0xff] %v4520_v29  ;;  %v4922_v29 = vpop.permute.xlu1 %4921 }
 0x622   : > { %4787 = vst [vmem:[#allocation1 + $0x2] ss:$9 sm:$0xff] %v4521_v41  ;;  %v9660_v41 = vadd.s32 4294967288, %v9657_v14 }
 0x623   : > { %4788 = vst [vmem:[#allocation1 + $0x3] ss:$9 sm:$0xff] %v4522_v15  ;;  %v4560_v15 = vrot.slane %v3938_v49, 6 }
 0x624   : > { %4789 = vst [vmem:[#allocation1 + $0x4] ss:$9 sm:$0xff] %v4523_v28  ;;  %v4561_v28 = vrot.slane %v3938_v49, 7 }
 0x625   : > { %4790 = vst [vmem:[#allocation1 + $0x5] ss:$9 sm:$0xff] %v4524_v47  ;;  %v5018_v47 = vperm.slane %v4922_v29, %v9657_v14 }
 0x626   : > { %4791 = vst [vmem:[#allocation1 + $0x6] ss:$9 sm:$0xff] %v4525_v43  ;;  %v4925_v43 = vpop.permute.xlu2 %4924 }
 0x627   : > { %4792 = vst [vmem:[#allocation1 + $0x7] ss:$9 sm:$0xff] %v4526_v44  ;;  %v5020_v44 = vperm.slane %v4925_v43, %v9660_v41 }
 0x62e   : > { %v4793_v10 = vld [vmem:[#allocation1] sm:$0xff] }
 0x62f   : > { %4794 = vst [vmem:[#allocation1] ss:$9 sm:$0xff] %v3934_v27  ;;  %4972 = vperm.xlu2 %5730, %v4793_v10  }
 0x630   : > { %4795 = vst [vmem:[#allocation1 + $0x1] ss:$9 sm:$0xff] %v4527_v63  ;;  %v5022_v63 = vsel %vm5021_vm6, %v5020_v44, %v5018_v47 }
 0x631   : > { %4796 = vst [vmem:[#allocation1 + $0x2] ss:$9 sm:$0xff] %v4528_v62 }
 0x632   : > { %4797 = vst [vmem:[#allocation1 + $0x3] ss:$9 sm:$0xff] %v4529_v25 }
 0x633   : > { %4798 = vst [vmem:[#allocation1 + $0x4] ss:$9 sm:$0xff] %v4530_v42 }
 0x634   : > { %4799 = vst [vmem:[#allocation1 + $0x5] ss:$9 sm:$0xff] %v4531_v36 }
 0x635   : > { %4800 = vst [vmem:[#allocation1 + $0x6] ss:$9 sm:$0xff] %v4532_v51  ;;  %v3931_v37 = vpop.xlane.xlu0 %3930 }
 0x636   : > { %4801 = vst [vmem:[#allocation1 + $0x7] ss:$9 sm:$0xff] %v4533_v22  ;;  %v3939_v27 = vadd.f32 %v3931_v37, %v9324_v48 }
 0x638   : > { %v4562_v10 = vrot.slane %v3939_v27, 1  ;;  %v4563_v62 = vrot.slane %v3939_v27, 2  ;;  %v4564_v42 = vrot.slane %v3939_v27, 3  ;;  %v4565_v36 = vrot.slane %v3939_v27, 4 }
 0x639   : > { %v4566_v51 = vrot.slane %v3939_v27, 5  ;;  %v4567_v22 = vrot.slane %v3939_v27, 6  ;;  %v4568_v0 = vrot.slane %v3939_v27, 7 }
 0x63d   : > { %v4802_v60 = vld [vmem:[#allocation1] sm:$0xff] }
 0x63e   : > { %4803 = vst [vmem:[#allocation1] ss:$9 sm:$0xff] %v3935_v31  ;;  %4975 = vperm.xlu0 %5731, %v4802_v60   ;;  %v9666_v31 = vpop.xlane.xlu0 %4350 }
 0x63f   : > { %4804 = vst [vmem:[#allocation1 + $0x1] ss:$9 sm:$0xff] %v4534_v23  ;;  %v4361_v23 = vadd.f32 %v9643_v50, %v9324_v48 }
 0x640   : > { %4805 = vst [vmem:[#allocation1 + $0x2] ss:$9 sm:$0xff] %v4535_v24 }
 0x641   : > { %4806 = vst [vmem:[#allocation1 + $0x3] ss:$9 sm:$0xff] %v4536_v54  ;;  %v4569_v24 = vrot.slane %v4361_v23, 1  ;;  %v4574_v11 = vrot.slane %v4361_v23, 6 }
 0x642   : > { %4807 = vst [vmem:[#allocation1 + $0x4] ss:$9 sm:$0xff] %v4537_v30  ;;  %v4570_v30 = vrot.slane %v4361_v23, 2 }
 0x643   : > { %4808 = vst [vmem:[#allocation1 + $0x5] ss:$9 sm:$0xff] %v4538_v52  ;;  %v4571_v52 = vrot.slane %v4361_v23, 3 }
 0x644   : > { %4809 = vst [vmem:[#allocation1 + $0x6] ss:$9 sm:$0xff] %v4539_v59  ;;  %v4572_v59 = vrot.slane %v4361_v23, 4 }
 0x645   : > { %4810 = vst [vmem:[#allocation1 + $0x7] ss:$9 sm:$0xff] %v4540_v32  ;;  %v4573_v32 = vrot.slane %v4361_v23, 5 }
 0x649   : > { %v9670_v60 = vpop.xlane.xlu0 %4359 }
 0x64c   : > { %v4811_v6 = vld [vmem:[#allocation1] sm:$0xff] }
 0x64d   : > { %4812 = vst [vmem:[#allocation1] ss:$9 sm:$0xff] %v3936_v58  ;;  %4978 = vperm.xlu1 %5729, %v4811_v6   ;;  %v9673_v58 = vadd.s32 4294967272, %v9657_v14  ;;  %v9676_v6 = vadd.s32 4294967264, %v9657_v14 }
 0x64e   : > { %4813 = vst [vmem:[#allocation1 + $0x1] ss:$9 sm:$0xff] %v4541_v18  ;;  %v4575_v18 = vrot.slane %v4361_v23, 7 }
 0x64f   : > { %4814 = vst [vmem:[#allocation1 + $0x2] ss:$9 sm:$0xff] %v4542_v20  ;;  %v4931_v20 = vpop.permute.xlu1 %4930 }
 0x650   : > { %4815 = vst [vmem:[#allocation1 + $0x3] ss:$9 sm:$0xff] %v4543_v45  ;;  %v9679_v45 = vadd.s32 4294967280, %v9657_v14 }
 0x651   : > { %4816 = vst [vmem:[#allocation1 + $0x4] ss:$9 sm:$0xff] %v4544_v4  ;;  %v4934_v4 = vpop.permute.xlu2 %4933 }
 0x652   : > { %4817 = vst [vmem:[#allocation1 + $0x5] ss:$9 sm:$0xff] %v4545_v26 }
 0x653   : > { %4818 = vst [vmem:[#allocation1 + $0x6] ss:$9 sm:$0xff] %v4546_v3  ;;  %v5028_v3 = vperm.slane %v4931_v20, %v9673_v58 }
 0x654   : > { %4819 = vst [vmem:[#allocation1 + $0x7] ss:$9 sm:$0xff] %v4547_v35  ;;  %v5032_v35 = vperm.slane %v4934_v4, %v9676_v6 }
 0x65b   : > { %v4820_v57 = vld [vmem:[#allocation1] sm:$0xff] }
 0x65c   : > { %4821 = vst [vmem:[#allocation1] ss:$9 sm:$0xff] %v3937_v40  ;;  %4981 = vperm.xlu2 %5730, %v4820_v57   ;;  %v4928_v5 = vpop.permute.xlu0 %4927  ;;  %v4362_v40 = vadd.f32 %v9654_v61, %v9324_v48 }
 0x65d   : > { %4822 = vst [vmem:[#allocation1 + $0x1] ss:$9 sm:$0xff] %v4548_v39  ;;  %v5024_v26 = vperm.slane %v4928_v5, %v9679_v45 }
 0x65e   : > { %4823 = vst [vmem:[#allocation1 + $0x2] ss:$9 sm:$0xff] %v4549_v16  ;;  %v4576_v57 = vrot.slane %v4362_v40, 1  ;;  %v4581_v61 = vrot.slane %v4362_v40, 6 }
 0x65f   : > { %4824 = vst [vmem:[#allocation1 + $0x3] ss:$9 sm:$0xff] %v4550_v33  ;;  %v5026_v34 = vsel %vm5025_vm7, %v5024_v26, %v5022_v63  ;;  %v4577_v33 = vrot.slane %v4362_v40, 2 }
 0x660   : > { %4825 = vst [vmem:[#allocation1 + $0x4] ss:$9 sm:$0xff] %v4551_v17  ;;  %v5030_v50 = vsel %vm5029_vm8, %v5028_v3, %v5026_v34  ;;  %v9690_v17 = vadd.s32 4294967256, %v9657_v14 }
 0x661   : > { %4826 = vst [vmem:[#allocation1 + $0x5] ss:$9 sm:$0xff] %v4552_v46  ;;  %v5034_v39 = vsel %vm5033_vm9, %v5032_v35, %v5030_v50  ;;  %v4578_v46 = vrot.slane %v4362_v40, 3 }
 0x662   : > { %4827 = vst [vmem:[#allocation1 + $0x6] ss:$9 sm:$0xff] %v4553_v12  ;;  %v4937_v12 = vpop.permute.xlu1 %4936 }
 0x663   : > { %4828 = vst [vmem:[#allocation1 + $0x7] ss:$9 sm:$0xff] %v4554_v7  ;;  %v4579_v7 = vrot.slane %v4362_v40, 4 }
 0x66a   : > { %v4829_v8 = vld [vmem:[#allocation1] sm:$0xff] }
 0x66b   : > { %4830 = vst [vmem:[#allocation1] ss:$9 sm:$0xff] %v3938_v49  ;;  %4984 = vperm.xlu0 %5731, %v4829_v8   ;;  %v4580_v49 = vrot.slane %v4362_v40, 5  ;;  %v4582_v8 = vrot.slane %v4362_v40, 7 }
 0x66c   : > { %4831 = vst [vmem:[#allocation1 + $0x1] ss:$9 sm:$0xff] %v4555_v2  ;;  %v5036_v2 = vperm.slane %v4937_v12, %v9690_v17 }
 0x66d   : > { %4832 = vst [vmem:[#allocation1 + $0x2] ss:$9 sm:$0xff] %v4556_v38 }
 0x66e   : > { %4833 = vst [vmem:[#allocation1 + $0x3] ss:$9 sm:$0xff] %v4557_v21  ;;  %v9694_v38 = vsel %vm5037_vm10, %v5036_v2, %v5034_v39  ;;  %v4363_v21 = vadd.f32 %v9645_v53, %v9324_v48  ;;  %v4364_v53 = vadd.f32 %v9647_v55, %v9324_v48  ;;  %v4365_v55 = vadd.f32 %v9666_v31, %v9324_v48 }
 0x66f   : > { %4834 = vst [vmem:[#allocation1 + $0x4] ss:$9 sm:$0xff] %v4558_v13  ;;  %v4366_v31 = vadd.f32 %v9649_v56, %v9324_v48  ;;  %v4367_v56 = vadd.f32 %v9652_v19, %v9324_v48  ;;  %v4368_v19 = vadd.f32 %v9670_v60, %v9324_v48  ;;  %v4940_v48 = vpop.permute.xlu2 %4939  ;;  %v4943_v60 = vpop.permute.xlu1 %4942 }
 0x670   : > { %4835 = vst [vmem:[#allocation1 + $0x5] ss:$9 sm:$0xff] %v4559_v9  ;;  %v4583_v13 = vrot.slane %v4363_v21, 1  ;;  %v4584_v9 = vrot.slane %v4363_v21, 2  ;;  %v4587_v47 = vrot.slane %v4363_v21, 5  ;;  %v4588_v43 = vrot.slane %v4363_v21, 6 }
 0x671   : > { %4836 = vst [vmem:[#allocation1 + $0x6] ss:$9 sm:$0xff] %v4560_v15  ;;  %v4585_v15 = vrot.slane %v4363_v21, 3  ;;  %v4589_v44 = vrot.slane %v4363_v21, 7  ;;  %v4590_v37 = vrot.slane %v4364_v53, 1  ;;  %v4591_v63 = vrot.slane %v4364_v53, 2 }
 0x672   : > { %4837 = vst [vmem:[#allocation1 + $0x7] ss:$9 sm:$0xff] %v4561_v28  ;;  %v4586_v28 = vrot.slane %v4363_v21, 4  ;;  %v4607_v20 = vrot.slane %v4366_v31, 4  ;;  %v4608_v4 = vrot.slane %v4366_v31, 5  ;;  %v4609_v5 = vrot.slane %v4366_v31, 6 }
 0x673   : > { %v4610_v26 = vrot.slane %v4366_v31, 7  ;;  %v4611_v3 = vrot.slane %v4367_v56, 1  ;;  %v4612_v34 = vrot.slane %v4367_v56, 2  ;;  %v4614_v50 = vrot.slane %v4367_v56, 4 }
 0x674   : > { %v4615_v39 = vrot.slane %v4367_v56, 5  ;;  %v4619_v12 = vrot.slane %v4368_v19, 2  ;;  %v4623_v2 = vrot.slane %v4368_v19, 6 }
 0x679   : > { %v4838_v25 = vld [vmem:[#allocation1] sm:$0xff] }
 0x67a   : > { %4987 = vperm.xlu1 %5729, %v4838_v25   ;;  %4839 = vst [vmem:[#allocation1] ss:$9 sm:$0xff] %v3939_v27  ;;  %v4594_v25 = vrot.slane %v4364_v53, 5 }
 0x67b   : > { %4840 = vst [vmem:[#allocation1 + $0x1] ss:$9 sm:$0xff] %v4562_v10  ;;  %v4592_v10 = vrot.slane %v4364_v53, 3 }
 0x67c   : > { %4841 = vst [vmem:[#allocation1 + $0x2] ss:$9 sm:$0xff] %v4563_v62  ;;  %v4593_v62 = vrot.slane %v4364_v53, 4 }
 0x67d   : > { %4842 = vst [vmem:[#allocation1 + $0x3] ss:$9 sm:$0xff] %v4564_v42  ;;  %v4595_v42 = vrot.slane %v4364_v53, 6 }
 0x67e   : > { %4843 = vst [vmem:[#allocation1 + $0x4] ss:$9 sm:$0xff] %v4565_v36  ;;  %v4596_v36 = vrot.slane %v4364_v53, 7 }
 0x67f   : > { %4844 = vst [vmem:[#allocation1 + $0x5] ss:$9 sm:$0xff] %v4566_v51  ;;  %v4597_v51 = vrot.slane %v4365_v55, 1 }
 0x680   : > { %4845 = vst [vmem:[#allocation1 + $0x6] ss:$9 sm:$0xff] %v4567_v22 }
 0x681   : > { %4846 = vst [vmem:[#allocation1 + $0x7] ss:$9 sm:$0xff] %v4568_v0  ;;  %v4598_v0 = vrot.slane %v4365_v55, 2 }
 0x688   : > { %v4847_v54 = vld [vmem:[#allocation1] sm:$0xff] }
 0x689   : > { %4848 = vst [vmem:[#allocation1] ss:$9 sm:$0xff] %v4361_v23  ;;  %4990 = vperm.xlu2 %5730, %v4847_v54   ;;  %v4599_v23 = vrot.slane %v4365_v55, 3  ;;  %v4601_v54 = vrot.slane %v4365_v55, 5 }
 0x68a   : > { %4849 = vst [vmem:[#allocation1 + $0x1] ss:$9 sm:$0xff] %v4569_v24  ;;  %v4600_v24 = vrot.slane %v4365_v55, 4 }
 0x68b   : > { %4850 = vst [vmem:[#allocation1 + $0x2] ss:$9 sm:$0xff] %v4570_v30  ;;  %v4602_v30 = vrot.slane %v4365_v55, 6 }
 0x68c   : > { %4851 = vst [vmem:[#allocation1 + $0x3] ss:$9 sm:$0xff] %v4571_v52  ;;  %v4603_v52 = vrot.slane %v4365_v55, 7 }
 0x68d   : > { %4852 = vst [vmem:[#allocation1 + $0x4] ss:$9 sm:$0xff] %v4572_v59  ;;  %v4604_v59 = vrot.slane %v4366_v31, 1 }
 0x68e   : > { %4853 = vst [vmem:[#allocation1 + $0x5] ss:$9 sm:$0xff] %v4573_v32 }
 0x68f   : > { %4854 = vst [vmem:[#allocation1 + $0x6] ss:$9 sm:$0xff] %v4574_v11  ;;  %v4605_v11 = vrot.slane %v4366_v31, 2 }
 0x690   : > { %4855 = vst [vmem:[#allocation1 + $0x7] ss:$9 sm:$0xff] %v4575_v18  ;;  %v4606_v18 = vrot.slane %v4366_v31, 3 }
 0x697   : > { %v4856_v16 = vld [vmem:[#allocation1] sm:$0xff] }
 0x698   : > { %4857 = vst [vmem:[#allocation1] ss:$9 sm:$0xff] %v4362_v40  ;;  %4993 = vperm.xlu0 %5731, %v4856_v16   ;;  %v4613_v40 = vrot.slane %v4367_v56, 3  ;;  %v4617_v16 = vrot.slane %v4367_v56, 7 }
 0x699   : > { %4858 = vst [vmem:[#allocation1 + $0x1] ss:$9 sm:$0xff] %v4576_v57  ;;  %v4616_v57 = vrot.slane %v4367_v56, 6 }
 0x69a   : > { %4859 = vst [vmem:[#allocation1 + $0x2] ss:$9 sm:$0xff] %v4577_v33  ;;  %v4618_v33 = vrot.slane %v4368_v19, 1 }
 0x69b   : > { %4860 = vst [vmem:[#allocation1 + $0x3] ss:$9 sm:$0xff] %v4578_v46 }
 0x69c   : > { %4861 = vst [vmem:[#allocation1 + $0x4] ss:$9 sm:$0xff] %v4579_v7  ;;  %v4620_v7 = vrot.slane %v4368_v19, 3 }
 0x69d   : > { %4862 = vst [vmem:[#allocation1 + $0x5] ss:$9 sm:$0xff] %v4580_v49  ;;  %v4621_v49 = vrot.slane %v4368_v19, 4 }
 0x69e   : > { %4863 = vst [vmem:[#allocation1 + $0x6] ss:$9 sm:$0xff] %v4581_v61  ;;  %v4622_v61 = vrot.slane %v4368_v19, 5 }
 0x69f   : > { %4864 = vst [vmem:[#allocation1 + $0x7] ss:$9 sm:$0xff] %v4582_v8  ;;  %v4624_v8 = vrot.slane %v4368_v19, 7 }
 0x6a6   : > { %v4865_v29 = vld [vmem:[#allocation1] sm:$0xff] }
 0x6a7   : > { %4996 = vperm.xlu1 %5729, %v4865_v29   ;;  %4866 = vst [vmem:[#allocation1] ss:$9 sm:$0xff] %v4363_v21  ;;  %v4946_v29 = vpop.permute.xlu2 %4945 }
 0x6a8   : > { %4867 = vst [vmem:[#allocation1 + $0x1] ss:$9 sm:$0xff] %v4583_v13  ;;  %v4949_v13 = vpop.permute.xlu0 %4948 }
 0x6a9   : > { %4868 = vst [vmem:[#allocation1 + $0x2] ss:$9 sm:$0xff] %v4584_v9  ;;  %v4952_v9 = vpop.permute.xlu1 %4951 }
 0x6aa   : > { %4869 = vst [vmem:[#allocation1 + $0x3] ss:$9 sm:$0xff] %v4585_v15 }
 0x6ab   : > { %4870 = vst [vmem:[#allocation1 + $0x4] ss:$9 sm:$0xff] %v4586_v28 }
 0x6ac   : > { %4871 = vst [vmem:[#allocation1 + $0x5] ss:$9 sm:$0xff] %v4587_v47 }
 0x6ad   : > { %4872 = vst [vmem:[#allocation1 + $0x6] ss:$9 sm:$0xff] %v4588_v43 }
 0x6ae   : > { %4873 = vst [vmem:[#allocation1 + $0x7] ss:$9 sm:$0xff] %v4589_v44 }
 0x6af   : > { %v9710_v28 = vpop.permute.xlu2 %4954 }
 0x6b0   : > { %v9708_v15 = vpop.permute.xlu0 %4957 }
 0x6b1   : > { %v9712_v47 = vpop.permute.xlu1 %4960 }
 0x6b5   : > { %v4874_v27 = vld [vmem:[#allocation1] sm:$0xff] }
 0x6b6   : > { %4999 = vperm.xlu2 %5730, %v4874_v27   ;;  %4875 = vst [vmem:[#allocation1] ss:$9 sm:$0xff] %v4364_v53 }
 0x6b7   : > { %4876 = vst [vmem:[#allocation1 + $0x1] ss:$9 sm:$0xff] %v4590_v37  ;;  %v9716_v44 = vpop.permute.xlu2 %4963 }
 0x6b8   : > { %4877 = vst [vmem:[#allocation1 + $0x2] ss:$9 sm:$0xff] %v4591_v63  ;;  %v9714_v43 = vpop.permute.xlu0 %4966 }
 0x6b9   : > { %4878 = vst [vmem:[#allocation1 + $0x3] ss:$9 sm:$0xff] %v4592_v10  ;;  %v4970_v53 = vpop.permute.xlu1 %4969 }
 0x6ba   : > { %4879 = vst [vmem:[#allocation1 + $0x4] ss:$9 sm:$0xff] %v4593_v62 }
 0x6bb   : > { %4880 = vst [vmem:[#allocation1 + $0x5] ss:$9 sm:$0xff] %v4594_v25  ;;  %v5039_v25 = vadd.s32 4294967248, %v9657_v14 }
 0x6bc   : > { %4881 = vst [vmem:[#allocation1 + $0x6] ss:$9 sm:$0xff] %v4595_v42 }
 0x6bd   : > { %4882 = vst [vmem:[#allocation1 + $0x7] ss:$9 sm:$0xff] %v4596_v36  ;;  %v5043_v36 = vadd.s32 4294967240, %v9657_v14 }
 0x6bf   : > { %v4973_v27 = vpop.permute.xlu2 %4972 }
 0x6c0   : > { %v4976_v37 = vpop.permute.xlu0 %4975 }
 0x6c1   : > { %v4979_v63 = vpop.permute.xlu1 %4978 }
 0x6c4   : > { %v4883_v22 = vld [vmem:[#allocation1] sm:$0xff] }
 0x6c5   : > { %5002 = vperm.xlu0 %5731, %v4883_v22   ;;  %4884 = vst [vmem:[#allocation1] ss:$9 sm:$0xff] %v4365_v55  ;;  %v5079_v55 = vperm.slane %v4970_v53, %v9657_v14  ;;  %v5082_v22 = vperm.slane %v4976_v37, %v9679_v45 }
 0x6c6   : > { %4885 = vst [vmem:[#allocation1 + $0x1] ss:$9 sm:$0xff] %v4597_v51  ;;  %v5040_v51 = vperm.slane %v4940_v48, %v5039_v25  ;;  %v5067_v48 = vadd.s32 4294967192, %v9657_v14 }
 0x6c7   : > { %4886 = vst [vmem:[#allocation1 + $0x2] ss:$9 sm:$0xff] %v4598_v0  ;;  %v4982_v62 = vpop.permute.xlu2 %4981  ;;  %v5080_v0 = vperm.slane %v4973_v27, %v9660_v41 }
 0x6c8   : > { %4887 = vst [vmem:[#allocation1 + $0x3] ss:$9 sm:$0xff] %v4599_v23  ;;  %v5084_v23 = vperm.slane %v4979_v63, %v9673_v58 }
 0x6c9   : > { %4888 = vst [vmem:[#allocation1 + $0x4] ss:$9 sm:$0xff] %v4600_v24 }
 0x6ca   : > { %4889 = vst [vmem:[#allocation1 + $0x5] ss:$9 sm:$0xff] %v4601_v54  ;;  %v5047_v54 = vadd.s32 4294967232, %v9657_v14 }
 0x6cb   : > { %4890 = vst [vmem:[#allocation1 + $0x6] ss:$9 sm:$0xff] %v4602_v30  ;;  %v5042_v30 = vsel %vm5041_vm11, %v5040_v51, %v9694_v38  ;;  %v5086_v38 = vperm.slane %v4982_v62, %v9676_v6 }
 0x6cc   : > { %4891 = vst [vmem:[#allocation1 + $0x7] ss:$9 sm:$0xff] %v4603_v52 }
 0x6d3   : > { %v4892_v32 = vld [vmem:[#allocation1] sm:$0xff] }
 0x6d4   : > { %5005 = vperm.xlu1 %5729, %v4892_v32   ;;  %4893 = vst [vmem:[#allocation1] ss:$9 sm:$0xff] %v4366_v31  ;;  %v5044_v31 = vperm.slane %v4943_v60, %v5043_v36  ;;  %v5081_v32 = vsel %vm5021_vm6, %v5080_v0, %v5079_v55  ;;  %vm5115_vm6 = vcmp.lt.s32.totalorder %v5016_v1, 256 }
 0x6d5   : > { %4894 = vst [vmem:[#allocation1 + $0x1] ss:$9 sm:$0xff] %v4604_v59  ;;  %v5051_v59 = vadd.s32 4294967224, %v9657_v14 }
 0x6d6   : > { %4895 = vst [vmem:[#allocation1 + $0x2] ss:$9 sm:$0xff] %v4605_v11  ;;  %v5083_v11 = vsel %vm5025_vm7, %v5082_v22, %v5081_v32  ;;  %v5046_v45 = vsel %vm5045_vm12, %v5044_v31, %v5042_v30 }
 0x6d7   : > { %4896 = vst [vmem:[#allocation1 + $0x3] ss:$9 sm:$0xff] %v4606_v18  ;;  %v5085_v41 = vsel %vm5029_vm8, %v5084_v23, %v5083_v11 }
 0x6d8   : > { %4897 = vst [vmem:[#allocation1 + $0x4] ss:$9 sm:$0xff] %v4607_v20  ;;  %v5048_v20 = vperm.slane %v4946_v29, %v5047_v54 }
 0x6d9   : > { %4898 = vst [vmem:[#allocation1 + $0x5] ss:$9 sm:$0xff] %v4608_v4 }
 0x6da   : > { %4899 = vst [vmem:[#allocation1 + $0x6] ss:$9 sm:$0xff] %v4609_v5  ;;  %v5052_v5 = vperm.slane %v4949_v13, %v5051_v59 }
 0x6db   : > { %4900 = vst [vmem:[#allocation1 + $0x7] ss:$9 sm:$0xff] %v4610_v26  ;;  %v5055_v26 = vadd.s32 4294967216, %v9657_v14 }
 0x6dd   : > { %v4985_v10 = vpop.permute.xlu0 %4984 }
 0x6de   : > { %v5088_v58 = vperm.slane %v4985_v10, %v9690_v17  ;;  %v5068_v10 = vperm.slane %v9712_v47, %v5067_v48 }
 0x6e2   : > { %v4901_v35 = vld [vmem:[#allocation1] sm:$0xff] }
 0x6e3   : > { %5008 = vperm.xlu2 %5730, %v4901_v35   ;;  %4902 = vst [vmem:[#allocation1] ss:$9 sm:$0xff] %v4367_v56  ;;  %v4991_v52 = vpop.permute.xlu2 %4990  ;;  %v5050_v56 = vsel %vm5049_vm13, %v5048_v20, %v5046_v45 }
 0x6e4   : > { %4903 = vst [vmem:[#allocation1 + $0x1] ss:$9 sm:$0xff] %v4611_v3  ;;  %v5087_v3 = vsel %vm5033_vm9, %v5086_v38, %v5085_v41  ;;  %v5054_v6 = vsel %vm5053_vm14, %v5052_v5, %v5050_v56 }
 0x6e5   : > { %4904 = vst [vmem:[#allocation1 + $0x2] ss:$9 sm:$0xff] %v4612_v34  ;;  %v5089_v35 = vsel %vm5037_vm10, %v5088_v58, %v5087_v3 }
 0x6e6   : > { %4905 = vst [vmem:[#allocation1 + $0x3] ss:$9 sm:$0xff] %v4613_v40  ;;  %v5059_v40 = vadd.s32 4294967208, %v9657_v14 }
 0x6e7   : > { %4906 = vst [vmem:[#allocation1 + $0x4] ss:$9 sm:$0xff] %v4614_v50 }
 0x6e8   : > { %4907 = vst [vmem:[#allocation1 + $0x5] ss:$9 sm:$0xff] %v4615_v39 }
 0x6e9   : > { %4908 = vst [vmem:[#allocation1 + $0x6] ss:$9 sm:$0xff] %v4616_v57  ;;  %v5063_v57 = vadd.s32 4294967200, %v9657_v14 }
 0x6ea   : > { %4909 = vst [vmem:[#allocation1 + $0x7] ss:$9 sm:$0xff] %v4617_v16  ;;  %v5092_v16 = vperm.slane %v4991_v52, %v5043_v36 }
 0x6ec   : > { %v4988_v42 = vpop.permute.xlu1 %4987 }
 0x6ed   : > { %v5090_v4 = vperm.slane %v4988_v42, %v5039_v25 }
 0x6ef   : > { %v5091_v17 = vsel %vm5041_vm11, %v5090_v4, %v5089_v35 }
 0x6f1   : > { %v4910_v46 = vld [vmem:[#allocation1] sm:$0xff] }
 0x6f2   : > { %5011 = vperm.xlu0 %5731, %v4910_v46   ;;  %4911 = vst [vmem:[#allocation1] ss:$9 sm:$0xff] %v4368_v19  ;;  %v5093_v46 = vsel %vm5045_vm12, %v5092_v16, %v5091_v17 }
 0x6f3   : > { %4912 = vst [vmem:[#allocation1 + $0x1] ss:$9 sm:$0xff] %v4618_v33  ;;  %v5056_v33 = vperm.slane %v4952_v9, %v5055_v26  ;;  %v5071_v9 = vadd.s32 4294967184, %v9657_v14 }
 0x6f4   : > { %4913 = vst [vmem:[#allocation1 + $0x2] ss:$9 sm:$0xff] %v4619_v12 }
 0x6f5   : > { %4914 = vst [vmem:[#allocation1 + $0x3] ss:$9 sm:$0xff] %v4620_v7  ;;  %v5060_v7 = vperm.slane %v9710_v28, %v5059_v40  ;;  %v5072_v23 = vperm.slane %v9716_v44, %v5071_v9 }
 0x6f6   : > { %4915 = vst [vmem:[#allocation1 + $0x4] ss:$9 sm:$0xff] %v4621_v49  ;;  %v5058_v49 = vsel %vm5057_vm15, %v5056_v33, %v5054_v6 }
 0x6f7   : > { %4916 = vst [vmem:[#allocation1 + $0x5] ss:$9 sm:$0xff] %v4622_v61  ;;  %v5062_v28 = vsel %vm5061_vm1, %v5060_v7, %v5058_v49 }
 0x6f8   : > { %4917 = vst [vmem:[#allocation1 + $0x6] ss:$9 sm:$0xff] %v4623_v2  ;;  %v5064_v2 = vperm.slane %v9708_v15, %v5063_v57  ;;  %v5075_v15 = vadd.s32 4294967176, %v9657_v14 }
 0x6f9   : > { %4918 = vst [vmem:[#allocation1 + $0x7] ss:$9 sm:$0xff] %v4624_v8 }
 0x6fa   : > { %v5066_v27 = vsel %vm5065_vm2, %v5064_v2, %v5062_v28  ;;  %v5076_v51 = vperm.slane %v9714_v43, %v5075_v15 }
 0x6fb   : > { %v5070_v36 = vsel %vm5069_vm3, %v5068_v10, %v5066_v27 }
 0x700   : > { %v4919_v21 = vld [vmem:[#allocation1] sm:$0xff] }
 0x701   : > { %5014 = vperm.xlu1 %5729, %v4919_v21  }
 0x70a   : > { %v4994_v24 = vpop.permute.xlu0 %4993 }
 0x70b   : > { %v5094_v39 = vperm.slane %v4994_v24, %v5047_v54  ;;  %v5074_v54 = vsel %vm5073_vm4, %v5072_v23, %v5070_v36 }
 0x70c   : > { %v5078_v30 = vsel %vm5077_vm5, %v5076_v51, %v5074_v54 }
 0x70d   : > { %v5095_v61 = vsel %vm5049_vm13, %v5094_v39, %v5093_v46 }
 0x710   : > { %v5000_v50 = vpop.permute.xlu2 %4999 }
 0x711   : > { %v5098_v60 = vperm.slane %v5000_v50, %v5055_v26 }
 0x719   : > { %v4997_v18 = vpop.permute.xlu1 %4996 }
 0x71a   : > { %v5096_v19 = vperm.slane %v4997_v18, %v5051_v59 }
 0x71c   : > { %v5097_v8 = vsel %vm5053_vm14, %v5096_v19, %v5095_v61 }
 0x71d   : > { %v5099_v37 = vsel %vm5057_vm15, %v5098_v60, %v5097_v8 }
 0x737   : > { %v5003_v34 = vpop.permute.xlu0 %5002 }
 0x738   : > { %v5100_v21 = vperm.slane %v5003_v34, %v5059_v40 }
 0x73a   : > { %v5101_v63 = vsel %vm5061_vm1, %v5100_v21, %v5099_v37 }
 0x73d   : > { %v5009_v53 = vpop.permute.xlu2 %5008 }
 0x73e   : > { %v5104_v42 = vperm.slane %v5009_v53, %v5067_v48 }
 0x746   : > { %v5006_v12 = vpop.permute.xlu1 %5005 }
 0x747   : > { %v5102_v13 = vperm.slane %v5006_v12, %v5063_v57 }
 0x749   : > { %v5103_v62 = vsel %vm5065_vm2, %v5102_v13, %v5101_v63 }
 0x74a   : > { %v5105_v22 = vsel %vm5069_vm3, %v5104_v42, %v5103_v62 }
 0x764   : > { %v5012_v29 = vpop.permute.xlu0 %5011 }
 0x765   : > { %v5106_v25 = vperm.slane %v5012_v29, %v5071_v9 }
 0x767   : > { %v5107_v24 = vsel %vm5073_vm4, %v5106_v25, %v5105_v22 }
 0x773   : > { %v5015_v55 = vpop.permute.xlu1 %5014 }
 0x774   : > { %v5108_v0 = vperm.slane %v5015_v55, %v5075_v15 }
 0x776   : > { %v5109_v14 = vsel %vm5077_vm5, %v5108_v0, %v5107_v24 }
 0x777   : > { %v5110_v47 = vrot.slane %v5109_v14, 7 }
 0x779   : > { %v5111_v52 = vsel %vm468_vm0, %v5078_v30, %v5110_v47 }
 0x77a   : > { %5117 = vst.msk [vmem:[%s332_s21] sm:$0x3] %vm5115_vm6, %v5111_v52 }
 0x77b PF: > { %s21_s11 = sadd.s32 1, %s5744_s11  }
 0x77c   : > { %p18_p4 = scmp.ge.s32.totalorder %s21_s11, 4  }
 0x77e   :  { %20 = sbr.rel (!%p18_p4) target bundleno = 3 (0x3), region = 109 }

</bundles_post_ra>
